<compile_context>
chip_gen: v5e
topology: v5e:2x2
jax: 0.10.0
libtpu: 0.0.40
codegen_flags: <defaults>
</compile_context>

<pallas_src>
import functools

import jax
import jax.numpy as jnp
from jax.experimental import pallas as pl
from jax.experimental.pallas import tpu as pltpu

NUM_CLASSES = 78
BN_EPS = 1e-5
LANE = 128
NEG_INF = -1e30
# Worst-case per matmul call: 2x(192x1152) bf16 A blocks + (1152x512) bf16 B
# (double-buffered) + 2x(192x512) f32 out/identity  < ~4 MiB, comfortably under
# this limit on v5e/v6e (128 MiB physical) and v7x (64 MiB physical).
VMEM_LIMIT_BYTES = 32 * 1024 * 1024


# ----------------------------- small helpers -------------------------------

def _round_up(v, m):
    return ((v + m - 1) // m) * m


def _pad_axis(x, size, axis, value=0.0):
    extra = size - x.shape[axis]
    if extra <= 0:
        return x
    widths = [(0, 0)] * x.ndim
    widths[axis] = (0, extra)
    return jnp.pad(x, widths, constant_values=value)


def bn_fold(bn):
    scale = bn["gamma"] / jnp.sqrt(bn["var"] + BN_EPS)
    shift = bn["beta"] - bn["mean"] * scale
    return scale, shift


# ----------------------------- Pallas kernels ------------------------------

def _matmul_affine_kernel(a_ref, b_ref, scale_ref, shift_ref, *rest, relu,
                          add_identity):
    if add_identity:
        id_ref, o_ref = rest
    else:
        (o_ref,) = rest
    acc = jnp.dot(a_ref[...], b_ref[...], preferred_element_type=jnp.float32)
    acc = acc * scale_ref[...] + shift_ref[...]          # folded BN / bias (f32)
    if add_identity:
        acc = acc + id_ref[...]                          # fused residual add
    if relu:
        acc = jnp.maximum(acc, 0.0)
    o_ref[...] = acc


def _choose_tm(m):
    # Tile rows without padding A (tm divides M, multiple of 8); prefer >=2 grid
    # steps so v7x's two TensorCores both get work on the non-trivial matmuls.
    if m % 8 != 0 or m < 32:
        return m
    for tm in (256, 192, 128, 96, 64, 48, 32, 24, 16, 8):
        if tm < m and m % tm == 0:
            return tm
    return m


def matmul_affine(a, b, scale, shift, identity=None, relu=False):
    """out = [relu]((A @ B) * scale + shift [+ identity]).

    A is cast to bf16, B is pre-packed bf16 (MXU-native); accumulation and the
    whole epilogue stay f32 (v5e has no bf16 VPU path).  N is a multiple of 128.
    """
    m, k = a.shape
    k2, n = b.shape
    assert k == k2 and n % LANE == 0, (a.shape, b.shape)
    tm = _choose_tm(m)
    a = a.astype(jnp.bfloat16)
    in_specs = [
        pl.BlockSpec((tm, k), lambda i: (i, 0)),
        pl.BlockSpec((k, n), lambda i: (0, 0)),
        pl.BlockSpec((1, n), lambda i: (0, 0)),
        pl.BlockSpec((1, n), lambda i: (0, 0)),
    ]
    args = [a, b, scale.reshape(1, n), shift.reshape(1, n)]
    if identity is not None:
        assert identity.shape == (m, n)
        in_specs.append(pl.BlockSpec((tm, n), lambda i: (i, 0)))
        args.append(identity.astype(jnp.float32))
    return pl.pallas_call(
        functools.partial(_matmul_affine_kernel, relu=relu,
                          add_identity=identity is not None),
        out_shape=jax.ShapeDtypeStruct((m, n), jnp.float32),
        grid=(m // tm,),
        in_specs=in_specs,
        out_specs=pl.BlockSpec((tm, n), lambda i: (i, 0)),
        compiler_params=pltpu.CompilerParams(
            dimension_semantics=("parallel",),
            vmem_limit_bytes=VMEM_LIMIT_BYTES),
    )(*args)


def _maxpool_3x3_s2_kernel(xq_ref, o_ref, *, n, oh, ow):
    # xq_ref: (4*n, Hc, Wc, C) parity-split padded input; component (a, b)
    # holds padded rows a::2 / cols b::2, so every tap of the 3x3 stride-2
    # window becomes a unit-stride offset slice of one component.
    r = None
    for i in range(3):
        for j in range(3):
            c0 = ((i % 2) * 2 + (j % 2)) * n
            win = xq_ref[c0:c0 + n, i // 2:i // 2 + oh, j // 2:j // 2 + ow, :]
            r = win if r is None else jnp.maximum(r, win)
    o_ref[...] = r


def maxpool_3x3_s2_p1(x):
    n, h, w, c = x.shape
    oh = (h + 2 - 3) // 2 + 1
    ow = (w + 2 - 3) // 2 + 1
    xp = jnp.pad(x, ((0, 0), (1, 1), (1, 1), (0, 0)), constant_values=NEG_INF)
    hp, wp = h + 2, w + 2
    hc, wc = (hp + 1) // 2, (wp + 1) // 2
    comps = []
    for a in range(2):
        for b in range(2):
            comp = xp[:, a::2, b::2, :]
            comp = jnp.pad(
                comp,
                ((0, 0), (0, hc - comp.shape[1]), (0, wc - comp.shape[2]), (0, 0)),
                constant_values=NEG_INF)
            comps.append(comp)
    xq = jnp.concatenate(comps, axis=0)              # (4*n, hc, wc, c): 1x data
    return pl.pallas_call(
        functools.partial(_maxpool_3x3_s2_kernel, n=n, oh=oh, ow=ow),
        out_shape=jax.ShapeDtypeStruct((n, oh, ow, c), x.dtype),
        compiler_params=pltpu.CompilerParams(vmem_limit_bytes=VMEM_LIMIT_BYTES),
    )(xq)


def _avgpool_h_kernel(x_ref, o_ref):
    o_ref[...] = jnp.mean(x_ref[...], axis=1, keepdims=True)


def avgpool_h(x):
    # AvgPool2d((H, 1), (1, 1)) with kernel height == H -> mean over H.
    n, h, w, c = x.shape
    return pl.pallas_call(
        _avgpool_h_kernel,
        out_shape=jax.ShapeDtypeStruct((n, 1, w, c), x.dtype),
        compiler_params=pltpu.CompilerParams(vmem_limit_bytes=VMEM_LIMIT_BYTES),
    )(x)


def _log_softmax_kernel(x_ref, o_ref):
    x = x_ref[...]
    m = jnp.max(x, axis=-1, keepdims=True)
    s = x - m
    lse = jnp.log(jnp.sum(jnp.exp(s), axis=-1, keepdims=True))
    o_ref[...] = s - lse


def log_softmax_last(x):
    return pl.pallas_call(
        _log_softmax_kernel,
        out_shape=jax.ShapeDtypeStruct(x.shape, x.dtype),
        compiler_params=pltpu.CompilerParams(vmem_limit_bytes=VMEM_LIMIT_BYTES),
    )(x)


# ------------------------------- JAX glue ----------------------------------

def im2col(x, kh, kw, stride, pad, pad_value=0.0):
    # x: (N, H, W, C) -> (N, oh, ow, kh*kw, C); cheap XLA slices, built in bf16.
    x = jnp.pad(x, ((0, 0), (pad, pad), (pad, pad), (0, 0)),
                constant_values=pad_value)
    _, h, w, _ = x.shape
    oh = (h - kh) // stride + 1
    ow = (w - kw) // stride + 1
    cols = []
    for i in range(kh):
        for j in range(kw):
            cols.append(x[:, i:i + stride * (oh - 1) + 1:stride,
                          j:j + stride * (ow - 1) + 1:stride, :])
    return jnp.stack(cols, axis=3), oh, ow


def conv2d_affine(x, cp, identity=None, relu=False):
    """Conv2d on an NHWC (lane-padded) activation using a prepared weight pack;
    folded-BN affine / residual add / ReLU are fused in the matmul epilogue."""
    n = x.shape[0]
    kh, kw, stride, pad = cp["kh"], cp["kw"], cp["stride"], cp["pad"]
    x = x.astype(jnp.bfloat16)       # MXU is bf16-native; epilogue stays f32
    if kh == 1 and kw == 1 and pad == 0:
        if stride > 1:
            x = x[:, ::stride, ::stride, :]
        _, oh, ow, c = x.shape
        patches = x.reshape(n * oh * ow, c)
    else:
        patches, oh, ow = im2col(x, kh, kw, stride, pad)
        patches = patches.reshape(n * oh * ow, kh * kw * x.shape[-1])
    kp = cp["w"].shape[0]
    if patches.shape[1] != kp:       # stem conv: K = 7*7*3 = 147 padded to 256
        patches = jnp.pad(patches, ((0, 0), (0, kp - patches.shape[1])))
    id_flat = None
    if identity is not None:
        id_flat = identity.reshape(n * oh * ow, identity.shape[-1])
    out = matmul_affine(patches, cp["w"], cp["scale"], cp["shift"],
                        identity=id_flat, relu=relu)
    return out.reshape(n, oh, ow, out.shape[-1])


def bottleneck(x, bp):
    out = conv2d_affine(x, bp["conv1"], relu=True)
    out = conv2d_affine(out, bp["conv2"], relu=True)
    identity = conv2d_affine(x, bp["down"]) if "down" in bp else x
    # residual add + ReLU fused into conv3's matmul epilogue
    return conv2d_affine(out, bp["conv3"], identity=identity, relu=True)


def my_net_res50_forward(prep, x_nchw):
    # export=False path of myNetRes50.forward
    x = jnp.transpose(x_nchw, (0, 2, 3, 1)).astype(jnp.float32)   # NCHW -> NHWC
    x = conv2d_affine(x, prep["conv1"], relu=True)                # (N,24,8,128)
    x = maxpool_3x3_s2_p1(x)                                      # (N,12,4,128)
    for bp in prep["layer1"]:
        x = bottleneck(x, bp)
    for bp in prep["layer2"]:
        x = bottleneck(x, bp)
    assert x.shape[1] == 6, "feature height must be 6 before AvgPool2d((6,1))"
    x = avgpool_h(x)                                              # (N,1,W,512)
    x = conv2d_affine(x, prep["fc"])                              # (N,1,W,128)
    assert x.shape[1] == 1, "the height of conv must be 1"
    conv = x[:, 0, :, :]                                          # (N, W, 128)
    conv = jnp.transpose(conv, (1, 0, 2))                         # (W, N, 128)
    wd, nd, cd = conv.shape
    ls = log_softmax_last(conv.reshape(wd * nd, cd))
    # padded class lanes carry -1e30 logits -> contribute ~0 to the softmax sum
    return ls[:, :NUM_CLASSES].reshape(wd, nd, NUM_CLASSES)
    # TODO(synk): export=True branch (argmax over classes) not implemented since
    #             the module defaults to export=False.


# ------------------------ one-time parameter packing ------------------------

def prepare_params(params):
    """Fold BN into per-channel affines, pre-transpose conv weights to (K, N)
    bf16 matrices, and zero-pad in/out channel dims to multiples of 128 lanes
    (padded activation channels stay exactly 0 through every layer)."""

    def prep(w, scale, shift, stride, pad, cin_store, shift_pad=0.0):
        o, i, kh, kw = w.shape
        cout_store = _round_up(o, LANE)
        wt = jnp.transpose(w, (2, 3, 1, 0))                 # (KH, KW, I, O)
        wt = _pad_axis(wt, cin_store, axis=2)               # zero rows: pad in-ch
        wt = wt.reshape(kh * kw * cin_store, o)
        wt = _pad_axis(wt, cout_store, axis=1)              # zero cols: pad out-ch
        wt = _pad_axis(wt, _round_up(wt.shape[0], LANE), axis=0)  # K -> 128 mult
        return dict(w=wt.astype(jnp.bfloat16),
                    scale=_pad_axis(scale, cout_store, 0),
                    shift=_pad_axis(shift, cout_store, 0, value=shift_pad),
                    kh=kh, kw=kw, stride=stride, pad=pad, cout=cout_store)

    prep_tree = {"conv1": prep(params["conv1_w"], *bn_fold(params["bn1"]), 2, 3, 3)}
    cin = prep_tree["conv1"]["cout"]

    def prep_layer(layer_params, cin):
        blocks = []
        for p in layer_params:
            bp = {"conv1": prep(p["conv1_w"], *bn_fold(p["bn1"]), 1, 0, cin)}
            bp["conv2"] = prep(p["conv2_w"], *bn_fold(p["bn2"]), p["stride"], 1,
                               bp["conv1"]["cout"])
            bp["conv3"] = prep(p["conv3_w"], *bn_fold(p["bn3"]), 1, 0,
                               bp["conv2"]["cout"])
            if "down_w" in p:
                bp["down"] = prep(p["down_w"], *bn_fold(p["down_bn"]),
                                  p["stride"], 0, cin)
            blocks.append(bp)
            cin = bp["conv3"]["cout"]
        return blocks, cin

    prep_tree["layer1"], cin = prep_layer(params["layer1"], cin)
    prep_tree["layer2"], cin = prep_layer(params["layer2"], cin)
    # fc: scale = 1 for real classes, shift = bias; padded classes get scale 0
    # and shift = -1e30 so the fused 128-lane log_softmax ignores them.
    prep_tree["fc"] = prep(params["fc_w"], jnp.ones((NUM_CLASSES,), jnp.float32),
                           params["fc_b"], 1, 0, cin, shift_pad=NEG_INF)
    return prep_tree


# --------------------------- parameter creation -----------------------------

def init_params(key):
    keys = jax.random.split(key, 256)
    ctr = [0]

    def nk():
        k = keys[ctr[0]]
        ctr[0] += 1
        return k

    def conv_w(o, i, kh, kw):
        fan_in = float(i * kh * kw)
        return jax.random.normal(nk(), (o, i, kh, kw), jnp.float32) / jnp.sqrt(fan_in)

    def bn_p(c):
        return dict(
            gamma=1.0 + 0.1 * jax.random.normal(nk(), (c,), jnp.float32),
            beta=0.1 * jax.random.normal(nk(), (c,), jnp.float32),
            mean=0.1 * jax.random.normal(nk(), (c,), jnp.float32),
            var=0.5 + jax.random.uniform(nk(), (c,), jnp.float32),
        )

    def make_layer(inplanes, planes, blocks, stride):
        expansion = 4
        layer = []
        for b in range(blocks):
            s = stride if b == 0 else 1
            inp = inplanes if b == 0 else planes * expansion
            p = dict(
                stride=s,
                conv1_w=conv_w(planes, inp, 1, 1), bn1=bn_p(planes),
                conv2_w=conv_w(planes, planes, 3, 3), bn2=bn_p(planes),
                conv3_w=conv_w(planes * expansion, planes, 1, 1),
                bn3=bn_p(planes * expansion),
            )
            if b == 0 and (stride != 1 or inplanes != planes * expansion):
                p["down_w"] = conv_w(planes * expansion, inp, 1, 1)
                p["down_bn"] = bn_p(planes * expansion)
            layer.append(p)
        return layer

    params = dict(conv1_w=conv_w(64, 3, 7, 7), bn1=bn_p(64))
    params["layer1"] = make_layer(64, 64, 3, 1)      # resnet50.layer1
    params["layer2"] = make_layer(256, 128, 4, 2)    # resnet50.layer2
    params["fc_w"] = conv_w(NUM_CLASSES, 512, 1, 1)  # Conv2d(512, 78, 1, 1)
    params["fc_b"] = 0.1 * jax.random.normal(nk(), (NUM_CLASSES,), jnp.float32)
    return params


if __name__ == "__main__":
    key = jax.random.PRNGKey(0)
    pkey, xkey = jax.random.split(key)
    params = init_params(pkey)
    prep = prepare_params(params)     # BN folding / weight packing done once
    # H=48 so the feature height is 48/2/2/2 = 6 before AvgPool2d((6,1)),
    # matching the module's assertion; W=16 gives a final sequence length of 2.
    x = jax.random.normal(xkey, (2, 3, 48, 16), jnp.float32)  # NCHW like PyTorch
    fwd = jax.jit(functools.partial(my_net_res50_forward, prep))
    out = jax.block_until_ready(fwd(x))
    assert out.shape == (2, 2, NUM_CLASSES), out.shape
    assert bool(jnp.isfinite(out).all())
    assert bool(jnp.allclose(jnp.exp(out).sum(-1), 1.0, atol=1e-3))
    print("KERNEL_OK")
</pallas_src>

<mosaic_0001>
module attributes {stable_mosaic.version = 11 : i64} {
  func.func @_matmul_affine_kernel(%arg0: i32, %arg1: memref<192x256xbf16, #tpu.memory_space<vmem>>, %arg2: memref<256x128xbf16, #tpu.memory_space<vmem>>, %arg3: memref<1x128xf32, #tpu.memory_space<vmem>>, %arg4: memref<1x128xf32, #tpu.memory_space<vmem>>, %arg5: memref<192x128xf32, #tpu.memory_space<vmem>>) attributes {dimension_semantics = [#tpu.dimension_semantics<parallel>], iteration_bounds = array<i64: 2>, scalar_prefetch = 0 : i64, scratch_operands = 0 : i64, tpu.core_type = #tpu.core_type<tc>, window_params = [{transform_indices = @transform_0, window_bounds = array<i64: 192, 256>}, {pipeline_mode = #tpu.pipeline_mode<synchronous>, transform_indices = @transform_1, window_bounds = array<i64: 256, 128>}, {pipeline_mode = #tpu.pipeline_mode<synchronous>, transform_indices = @transform_2, window_bounds = array<i64: 1, 128>}, {pipeline_mode = #tpu.pipeline_mode<synchronous>, transform_indices = @transform_3, window_bounds = array<i64: 1, 128>}, {transform_indices = @transform_4, window_bounds = array<i64: 192, 128>}]} {
    %c0 = arith.constant 0 : index
    %c0_0 = arith.constant 0 : index
    %0 = vector.load %arg1[%c0, %c0_0] : memref<192x256xbf16, #tpu.memory_space<vmem>>, vector<192x256xbf16>
    %c0_1 = arith.constant 0 : index
    %c0_2 = arith.constant 0 : index
    %1 = vector.load %arg2[%c0_1, %c0_2] : memref<256x128xbf16, #tpu.memory_space<vmem>>, vector<256x128xbf16>
    %cst = arith.constant dense<0.000000e+00> : vector<192x128xf32>
    %2 = tpu.matmul %0, %1, %cst {dimension_numbers = #tpu.dot_dimension_numbers<[1], [0], [0], [1], [0, 0, 1, 1], [], []>} : vector<192x256xbf16>, vector<256x128xbf16>, vector<192x128xf32> -> vector<192x128xf32>
    %c0_3 = arith.constant 0 : index
    %c0_4 = arith.constant 0 : index
    %3 = vector.load %arg3[%c0_3, %c0_4] : memref<1x128xf32, #tpu.memory_space<vmem>>, vector<1x128xf32>
    %4 = vector.broadcast %3 : vector<1x128xf32> to vector<192x128xf32>
    %5 = arith.mulf %2, %4 : vector<192x128xf32>
    %c0_5 = arith.constant 0 : index
    %c0_6 = arith.constant 0 : index
    %6 = vector.load %arg4[%c0_5, %c0_6] : memref<1x128xf32, #tpu.memory_space<vmem>>, vector<1x128xf32>
    %7 = vector.broadcast %6 : vector<1x128xf32> to vector<192x128xf32>
    %8 = arith.addf %5, %7 : vector<192x128xf32>
    %cst_7 = arith.constant 0.000000e+00 : f32
    %9 = vector.broadcast %cst_7 : f32 to vector<192x128xf32>
    %10 = arith.maximumf %8, %9 : vector<192x128xf32>
    %c0_8 = arith.constant 0 : index
    %c0_9 = arith.constant 0 : index
    %11 = vector.load %arg5[%c0_8, %c0_9] : memref<192x128xf32, #tpu.memory_space<vmem>>, vector<192x128xf32>
    tpu.vector_store %arg5[%c0_8, %c0_9], %10 {strides = array<i32>} : memref<192x128xf32, #tpu.memory_space<vmem>>, vector<192x128xf32>,
    return
  }
  func.func @transform_0(%arg0: i32) -> (i32, i32) {
    %c0_i32 = arith.constant 0 : i32
    %c0_i32_0 = arith.constant 0 : i32
    return %arg0, %c0_i32 : i32, i32
  }
  func.func @transform_1(%arg0: i32) -> (i32, i32) {
    %c0_i32 = arith.constant 0 : i32
    %c0_i32_0 = arith.constant 0 : i32
    %c0_i32_1 = arith.constant 0 : i32
    return %c0_i32, %c0_i32_0 : i32, i32
  }
  func.func @transform_2(%arg0: i32) -> (i32, i32) {
    %c0_i32 = arith.constant 0 : i32
    %c0_i32_0 = arith.constant 0 : i32
    %c0_i32_1 = arith.constant 0 : i32
    return %c0_i32, %c0_i32_0 : i32, i32
  }
  func.func @transform_3(%arg0: i32) -> (i32, i32) {
    %c0_i32 = arith.constant 0 : i32
    %c0_i32_0 = arith.constant 0 : i32
    %c0_i32_1 = arith.constant 0 : i32
    return %c0_i32, %c0_i32_0 : i32, i32
  }
  func.func @transform_4(%arg0: i32) -> (i32, i32) {
    %c0_i32 = arith.constant 0 : i32
    %c0_i32_0 = arith.constant 0 : i32
    return %arg0, %c0_i32 : i32, i32
  }
}

module attributes {stable_mosaic.version = 11 : i64} {
  func.func @_matmul_affine_kernel(%arg0: i32, %arg1: memref<48x128xbf16, #tpu.memory_space<vmem>>, %arg2: memref<128x128xbf16, #tpu.memory_space<vmem>>, %arg3: memref<1x128xf32, #tpu.memory_space<vmem>>, %arg4: memref<1x128xf32, #tpu.memory_space<vmem>>, %arg5: memref<48x128xf32, #tpu.memory_space<vmem>>) attributes {dimension_semantics = [#tpu.dimension_semantics<parallel>], iteration_bounds = array<i64: 2>, scalar_prefetch = 0 : i64, scratch_operands = 0 : i64, tpu.core_type = #tpu.core_type<tc>, window_params = [{transform_indices = @transform_0, window_bounds = array<i64: 48, 128>}, {pipeline_mode = #tpu.pipeline_mode<synchronous>, transform_indices = @transform_1, window_bounds = array<i64: 128, 128>}, {pipeline_mode = #tpu.pipeline_mode<synchronous>, transform_indices = @transform_2, window_bounds = array<i64: 1, 128>}, {pipeline_mode = #tpu.pipeline_mode<synchronous>, transform_indices = @transform_3, window_bounds = array<i64: 1, 128>}, {transform_indices = @transform_4, window_bounds = array<i64: 48, 128>}]} {
    %c0 = arith.constant 0 : index
    %c0_0 = arith.constant 0 : index
    %0 = vector.load %arg1[%c0, %c0_0] : memref<48x128xbf16, #tpu.memory_space<vmem>>, vector<48x128xbf16>
    %c0_1 = arith.constant 0 : index
    %c0_2 = arith.constant 0 : index
    %1 = vector.load %arg2[%c0_1, %c0_2] : memref<128x128xbf16, #tpu.memory_space<vmem>>, vector<128x128xbf16>
    %cst = arith.constant dense<0.000000e+00> : vector<48x128xf32>
    %2 = tpu.matmul %0, %1, %cst {dimension_numbers = #tpu.dot_dimension_numbers<[1], [0], [0], [1], [0, 0, 1, 1], [], []>} : vector<48x128xbf16>, vector<128x128xbf16>, vector<48x128xf32> -> vector<48x128xf32>
    %c0_3 = arith.constant 0 : index
    %c0_4 = arith.constant 0 : index
    %3 = vector.load %arg3[%c0_3, %c0_4] : memref<1x128xf32, #tpu.memory_space<vmem>>, vector<1x128xf32>
    %4 = vector.broadcast %3 : vector<1x128xf32> to vector<48x128xf32>
    %5 = arith.mulf %2, %4 : vector<48x128xf32>
    %c0_5 = arith.constant 0 : index
    %c0_6 = arith.constant 0 : index
    %6 = vector.load %arg4[%c0_5, %c0_6] : memref<1x128xf32, #tpu.memory_space<vmem>>, vector<1x128xf32>
    %7 = vector.broadcast %6 : vector<1x128xf32> to vector<48x128xf32>
    %8 = arith.addf %5, %7 : vector<48x128xf32>
    %cst_7 = arith.constant 0.000000e+00 : f32
    %9 = vector.broadcast %cst_7 : f32 to vector<48x128xf32>
    %10 = arith.maximumf %8, %9 : vector<48x128xf32>
    %c0_8 = arith.constant 0 : index
    %c0_9 = arith.constant 0 : index
    %11 = vector.load %arg5[%c0_8, %c0_9] : memref<48x128xf32, #tpu.memory_space<vmem>>, vector<48x128xf32>
    tpu.vector_store %arg5[%c0_8, %c0_9], %10 {strides = array<i32>} : memref<48x128xf32, #tpu.memory_space<vmem>>, vector<48x128xf32>,
    return
  }
  func.func @transform_0(%arg0: i32) -> (i32, i32) {
    %c0_i32 = arith.constant 0 : i32
    %c0_i32_0 = arith.constant 0 : i32
    return %arg0, %c0_i32 : i32, i32
  }
  func.func @transform_1(%arg0: i32) -> (i32, i32) {
    %c0_i32 = arith.constant 0 : i32
    %c0_i32_0 = arith.constant 0 : i32
    %c0_i32_1 = arith.constant 0 : i32
    return %c0_i32, %c0_i32_0 : i32, i32
  }
  func.func @transform_2(%arg0: i32) -> (i32, i32) {
    %c0_i32 = arith.constant 0 : i32
    %c0_i32_0 = arith.constant 0 : i32
    %c0_i32_1 = arith.constant 0 : i32
    return %c0_i32, %c0_i32_0 : i32, i32
  }
  func.func @transform_3(%arg0: i32) -> (i32, i32) {
    %c0_i32 = arith.constant 0 : i32
    %c0_i32_0 = arith.constant 0 : i32
    %c0_i32_1 = arith.constant 0 : i32
    return %c0_i32, %c0_i32_0 : i32, i32
  }
  func.func @transform_4(%arg0: i32) -> (i32, i32) {
    %c0_i32 = arith.constant 0 : i32
    %c0_i32_0 = arith.constant 0 : i32
    return %arg0, %c0_i32 : i32, i32
  }
}

module attributes {stable_mosaic.version = 11 : i64} {
  func.func @_maxpool_3x3_s2_kernel(%arg0: memref<8x13x5x128xf32, #tpu.memory_space<vmem>>, %arg1: memref<2x12x4x128xf32, #tpu.memory_space<vmem>>) attributes {dimension_semantics = [], scalar_prefetch = 0 : i64, scratch_operands = 0 : i64, tpu.core_type = #tpu.core_type<tc>} {
    %c0 = arith.constant 0 : index
    %c0_0 = arith.constant 0 : index
    %c0_1 = arith.constant 0 : index
    %c0_2 = arith.constant 0 : index
    %0 = vector.load %arg0[%c0, %c0_0, %c0_1, %c0_2] : memref<8x13x5x128xf32, #tpu.memory_space<vmem>>, vector<2x12x4x128xf32>
    %c2 = arith.constant 2 : index
    %c0_3 = arith.constant 0 : index
    %c0_4 = arith.constant 0 : index
    %c0_5 = arith.constant 0 : index
    %1 = vector.load %arg0[%c2, %c0_3, %c0_4, %c0_5] : memref<8x13x5x128xf32, #tpu.memory_space<vmem>>, vector<2x12x4x128xf32>
    %2 = arith.maximumf %0, %1 : vector<2x12x4x128xf32>
    %c0_6 = arith.constant 0 : index
    %c0_7 = arith.constant 0 : index
    %c1 = arith.constant 1 : index
    %c0_8 = arith.constant 0 : index
    %3 = vector.load %arg0[%c0_6, %c0_7, %c1, %c0_8] : memref<8x13x5x128xf32, #tpu.memory_space<vmem>>, vector<2x12x4x128xf32>
    %4 = arith.maximumf %2, %3 : vector<2x12x4x128xf32>
    %c4 = arith.constant 4 : index
    %c0_9 = arith.constant 0 : index
    %c0_10 = arith.constant 0 : index
    %c0_11 = arith.constant 0 : index
    %5 = vector.load %arg0[%c4, %c0_9, %c0_10, %c0_11] : memref<8x13x5x128xf32, #tpu.memory_space<vmem>>, vector<2x12x4x128xf32>
    %6 = arith.maximumf %4, %5 : vector<2x12x4x128xf32>
    %c6 = arith.constant 6 : index
    %c0_12 = arith.constant 0 : index
    %c0_13 = arith.constant 0 : index
    %c0_14 = arith.constant 0 : index
    %7 = vector.load %arg0[%c6, %c0_12, %c0_13, %c0_14] : memref<8x13x5x128xf32, #tpu.memory_space<vmem>>, vector<2x12x4x128xf32>
    %8 = arith.maximumf %6, %7 : vector<2x12x4x128xf32>
    %c4_15 = arith.constant 4 : index
    %c0_16 = arith.constant 0 : index
    %c1_17 = arith.constant 1 : index
    %c0_18 = arith.constant 0 : index
    %9 = vector.load %arg0[%c4_15, %c0_16, %c1_17, %c0_18] : memref<8x13x5x128xf32, #tpu.memory_space<vmem>>, vector<2x12x4x128xf32>
    %10 = arith.maximumf %8, %9 : vector<2x12x4x128xf32>
    %c0_19 = arith.constant 0 : index
    %c1_20 = arith.constant 1 : index
    %c0_21 = arith.constant 0 : index
    %c0_22 = arith.constant 0 : index
    %11 = vector.load %arg0[%c0_19, %c1_20, %c0_21, %c0_22] : memref<8x13x5x128xf32, #tpu.memory_space<vmem>>, vector<2x12x4x128xf32>
    %12 = arith.maximumf %10, %11 : vector<2x12x4x128xf32>
    %c2_23 = arith.constant 2 : index
    %c1_24 = arith.constant 1 : index
    %c0_25 = arith.constant 0 : index
    %c0_26 = arith.constant 0 : index
    %13 = vector.load %arg0[%c2_23, %c1_24, %c0_25, %c0_26] : memref<8x13x5x128xf32, #tpu.memory_space<vmem>>, vector<2x12x4x128xf32>
    %14 = arith.maximumf %12, %13 : vector<2x12x4x128xf32>
    %c0_27 = arith.constant 0 : index
    %c1_28 = arith.constant 1 : index
    %c1_29 = arith.constant 1 : index
    %c0_30 = arith.constant 0 : index
    %15 = vector.load %arg0[%c0_27, %c1_28, %c1_29, %c0_30] : memref<8x13x5x128xf32, #tpu.memory_space<vmem>>, vector<2x12x4x128xf32>
    %16 = arith.maximumf %14, %15 : vector<2x12x4x128xf32>
    %c0_31 = arith.constant 0 : index
    %c0_32 = arith.constant 0 : index
    %c0_33 = arith.constant 0 : index
    %c0_34 = arith.constant 0 : index
    %17 = vector.load %arg1[%c0_31, %c0_32, %c0_33, %c0_34] : memref<2x12x4x128xf32, #tpu.memory_space<vmem>>, vector<2x12x4x128xf32>
    tpu.vector_store %arg1[%c0_31, %c0_32, %c0_33, %c0_34], %16 {strides = array<i32>} : memref<2x12x4x128xf32, #tpu.memory_space<vmem>>, vector<2x12x4x128xf32>,
    return
  }
}

module attributes {stable_mosaic.version = 11 : i64} {
  func.func @_matmul_affine_kernel(%arg0: i32, %arg1: memref<48x128xbf16, #tpu.memory_space<vmem>>, %arg2: memref<128x256xbf16, #tpu.memory_space<vmem>>, %arg3: memref<1x256xf32, #tpu.memory_space<vmem>>, %arg4: memref<1x256xf32, #tpu.memory_space<vmem>>, %arg5: memref<48x256xf32, #tpu.memory_space<vmem>>) attributes {dimension_semantics = [#tpu.dimension_semantics<parallel>], iteration_bounds = array<i64: 2>, scalar_prefetch = 0 : i64, scratch_operands = 0 : i64, tpu.core_type = #tpu.core_type<tc>, window_params = [{transform_indices = @transform_0, window_bounds = array<i64: 48, 128>}, {pipeline_mode = #tpu.pipeline_mode<synchronous>, transform_indices = @transform_1, window_bounds = array<i64: 128, 256>}, {pipeline_mode = #tpu.pipeline_mode<synchronous>, transform_indices = @transform_2, window_bounds = array<i64: 1, 256>}, {pipeline_mode = #tpu.pipeline_mode<synchronous>, transform_indices = @transform_3, window_bounds = array<i64: 1, 256>}, {transform_indices = @transform_4, window_bounds = array<i64: 48, 256>}]} {
    %c0 = arith.constant 0 : index
    %c0_0 = arith.constant 0 : index
    %0 = vector.load %arg1[%c0, %c0_0] : memref<48x128xbf16, #tpu.memory_space<vmem>>, vector<48x128xbf16>
    %c0_1 = arith.constant 0 : index
    %c0_2 = arith.constant 0 : index
    %1 = vector.load %arg2[%c0_1, %c0_2] : memref<128x256xbf16, #tpu.memory_space<vmem>>, vector<128x256xbf16>
    %cst = arith.constant dense<0.000000e+00> : vector<48x256xf32>
    %2 = tpu.matmul %0, %1, %cst {dimension_numbers = #tpu.dot_dimension_numbers<[1], [0], [0], [1], [0, 0, 1, 1], [], []>} : vector<48x128xbf16>, vector<128x256xbf16>, vector<48x256xf32> -> vector<48x256xf32>
    %c0_3 = arith.constant 0 : index
    %c0_4 = arith.constant 0 : index
    %3 = vector.load %arg3[%c0_3, %c0_4] : memref<1x256xf32, #tpu.memory_space<vmem>>, vector<1x256xf32>
    %4 = vector.broadcast %3 : vector<1x256xf32> to vector<48x256xf32>
    %5 = arith.mulf %2, %4 : vector<48x256xf32>
    %c0_5 = arith.constant 0 : index
    %c0_6 = arith.constant 0 : index
    %6 = vector.load %arg4[%c0_5, %c0_6] : memref<1x256xf32, #tpu.memory_space<vmem>>, vector<1x256xf32>
    %7 = vector.broadcast %6 : vector<1x256xf32> to vector<48x256xf32>
    %8 = arith.addf %5, %7 : vector<48x256xf32>
    %c0_7 = arith.constant 0 : index
    %c0_8 = arith.constant 0 : index
    %9 = vector.load %arg5[%c0_7, %c0_8] : memref<48x256xf32, #tpu.memory_space<vmem>>, vector<48x256xf32>
    tpu.vector_store %arg5[%c0_7, %c0_8], %8 {strides = array<i32>} : memref<48x256xf32, #tpu.memory_space<vmem>>, vector<48x256xf32>,
    return
  }
  func.func @transform_0(%arg0: i32) -> (i32, i32) {
    %c0_i32 = arith.constant 0 : i32
    %c0_i32_0 = arith.constant 0 : i32
    return %arg0, %c0_i32 : i32, i32
  }
  func.func @transform_1(%arg0: i32) -> (i32, i32) {
    %c0_i32 = arith.constant 0 : i32
    %c0_i32_0 = arith.constant 0 : i32
    %c0_i32_1 = arith.constant 0 : i32
    return %c0_i32, %c0_i32_0 : i32, i32
  }
  func.func @transform_2(%arg0: i32) -> (i32, i32) {
    %c0_i32 = arith.constant 0 : i32
    %c0_i32_0 = arith.constant 0 : i32
    %c0_i32_1 = arith.constant 0 : i32
    return %c0_i32, %c0_i32_0 : i32, i32
  }
  func.func @transform_3(%arg0: i32) -> (i32, i32) {
    %c0_i32 = arith.constant 0 : i32
    %c0_i32_0 = arith.constant 0 : i32
    %c0_i32_1 = arith.constant 0 : i32
    return %c0_i32, %c0_i32_0 : i32, i32
  }
  func.func @transform_4(%arg0: i32) -> (i32, i32) {
    %c0_i32 = arith.constant 0 : i32
    %c0_i32_0 = arith.constant 0 : i32
    return %arg0, %c0_i32 : i32, i32
  }
}

module attributes {stable_mosaic.version = 11 : i64} {
  func.func @_matmul_affine_kernel(%arg0: i32, %arg1: memref<48x1152xbf16, #tpu.memory_space<vmem>>, %arg2: memref<1152x128xbf16, #tpu.memory_space<vmem>>, %arg3: memref<1x128xf32, #tpu.memory_space<vmem>>, %arg4: memref<1x128xf32, #tpu.memory_space<vmem>>, %arg5: memref<48x128xf32, #tpu.memory_space<vmem>>) attributes {dimension_semantics = [#tpu.dimension_semantics<parallel>], iteration_bounds = array<i64: 2>, scalar_prefetch = 0 : i64, scratch_operands = 0 : i64, tpu.core_type = #tpu.core_type<tc>, window_params = [{transform_indices = @transform_0, window_bounds = array<i64: 48, 1152>}, {pipeline_mode = #tpu.pipeline_mode<synchronous>, transform_indices = @transform_1, window_bounds = array<i64: 1152, 128>}, {pipeline_mode = #tpu.pipeline_mode<synchronous>, transform_indices = @transform_2, window_bounds = array<i64: 1, 128>}, {pipeline_mode = #tpu.pipeline_mode<synchronous>, transform_indices = @transform_3, window_bounds = array<i64: 1, 128>}, {transform_indices = @transform_4, window_bounds = array<i64: 48, 128>}]} {
    %c0 = arith.constant 0 : index
    %c0_0 = arith.constant 0 : index
    %0 = vector.load %arg1[%c0, %c0_0] : memref<48x1152xbf16, #tpu.memory_space<vmem>>, vector<48x1152xbf16>
    %c0_1 = arith.constant 0 : index
    %c0_2 = arith.constant 0 : index
    %1 = vector.load %arg2[%c0_1, %c0_2] : memref<1152x128xbf16, #tpu.memory_space<vmem>>, vector<1152x128xbf16>
    %cst = arith.constant dense<0.000000e+00> : vector<48x128xf32>
    %2 = tpu.matmul %0, %1, %cst {dimension_numbers = #tpu.dot_dimension_numbers<[1], [0], [0], [1], [0, 0, 1, 1], [], []>} : vector<48x1152xbf16>, vector<1152x128xbf16>, vector<48x128xf32> -> vector<48x128xf32>
    %c0_3 = arith.constant 0 : index
    %c0_4 = arith.constant 0 : index
    %3 = vector.load %arg3[%c0_3, %c0_4] : memref<1x128xf32, #tpu.memory_space<vmem>>, vector<1x128xf32>
    %4 = vector.broadcast %3 : vector<1x128xf32> to vector<48x128xf32>
    %5 = arith.mulf %2, %4 : vector<48x128xf32>
    %c0_5 = arith.constant 0 : index
    %c0_6 = arith.constant 0 : index
    %6 = vector.load %arg4[%c0_5, %c0_6] : memref<1x128xf32, #tpu.memory_space<vmem>>, vector<1x128xf32>
    %7 = vector.broadcast %6 : vector<1x128xf32> to vector<48x128xf32>
    %8 = arith.addf %5, %7 : vector<48x128xf32>
    %cst_7 = arith.constant 0.000000e+00 : f32
    %9 = vector.broadcast %cst_7 : f32 to vector<48x128xf32>
    %10 = arith.maximumf %8, %9 : vector<48x128xf32>
    %c0_8 = arith.constant 0 : index
    %c0_9 = arith.constant 0 : index
    %11 = vector.load %arg5[%c0_8, %c0_9] : memref<48x128xf32, #tpu.memory_space<vmem>>, vector<48x128xf32>
    tpu.vector_store %arg5[%c0_8, %c0_9], %10 {strides = array<i32>} : memref<48x128xf32, #tpu.memory_space<vmem>>, vector<48x128xf32>,
    return
  }
  func.func @transform_0(%arg0: i32) -> (i32, i32) {
    %c0_i32 = arith.constant 0 : i32
    %c0_i32_0 = arith.constant 0 : i32
    return %arg0, %c0_i32 : i32, i32
  }
  func.func @transform_1(%arg0: i32) -> (i32, i32) {
    %c0_i32 = arith.constant 0 : i32
    %c0_i32_0 = arith.constant 0 : i32
    %c0_i32_1 = arith.constant 0 : i32
    return %c0_i32, %c0_i32_0 : i32, i32
  }
  func.func @transform_2(%arg0: i32) -> (i32, i32) {
    %c0_i32 = arith.constant 0 : i32
    %c0_i32_0 = arith.constant 0 : i32
    %c0_i32_1 = arith.constant 0 : i32
    return %c0_i32, %c0_i32_0 : i32, i32
  }
  func.func @transform_3(%arg0: i32) -> (i32, i32) {
    %c0_i32 = arith.constant 0 : i32
    %c0_i32_0 = arith.constant 0 : i32
    %c0_i32_1 = arith.constant 0 : i32
    return %c0_i32, %c0_i32_0 : i32, i32
  }
  func.func @transform_4(%arg0: i32) -> (i32, i32) {
    %c0_i32 = arith.constant 0 : i32
    %c0_i32_0 = arith.constant 0 : i32
    return %arg0, %c0_i32 : i32, i32
  }
}

module attributes {stable_mosaic.version = 11 : i64} {
  func.func @_matmul_affine_kernel(%arg0: i32, %arg1: memref<48x128xbf16, #tpu.memory_space<vmem>>, %arg2: memref<128x256xbf16, #tpu.memory_space<vmem>>, %arg3: memref<1x256xf32, #tpu.memory_space<vmem>>, %arg4: memref<1x256xf32, #tpu.memory_space<vmem>>, %arg5: memref<48x256xf32, #tpu.memory_space<vmem>>, %arg6: memref<48x256xf32, #tpu.memory_space<vmem>>) attributes {dimension_semantics = [#tpu.dimension_semantics<parallel>], iteration_bounds = array<i64: 2>, scalar_prefetch = 0 : i64, scratch_operands = 0 : i64, tpu.core_type = #tpu.core_type<tc>, window_params = [{transform_indices = @transform_0, window_bounds = array<i64: 48, 128>}, {pipeline_mode = #tpu.pipeline_mode<synchronous>, transform_indices = @transform_1, window_bounds = array<i64: 128, 256>}, {pipeline_mode = #tpu.pipeline_mode<synchronous>, transform_indices = @transform_2, window_bounds = array<i64: 1, 256>}, {pipeline_mode = #tpu.pipeline_mode<synchronous>, transform_indices = @transform_3, window_bounds = array<i64: 1, 256>}, {transform_indices = @transform_4, window_bounds = array<i64: 48, 256>}, {transform_indices = @transform_5, window_bounds = array<i64: 48, 256>}]} {
    %c0 = arith.constant 0 : index
    %c0_0 = arith.constant 0 : index
    %0 = vector.load %arg1[%c0, %c0_0] : memref<48x128xbf16, #tpu.memory_space<vmem>>, vector<48x128xbf16>
    %c0_1 = arith.constant 0 : index
    %c0_2 = arith.constant 0 : index
    %1 = vector.load %arg2[%c0_1, %c0_2] : memref<128x256xbf16, #tpu.memory_space<vmem>>, vector<128x256xbf16>
    %cst = arith.constant dense<0.000000e+00> : vector<48x256xf32>
    %2 = tpu.matmul %0, %1, %cst {dimension_numbers = #tpu.dot_dimension_numbers<[1], [0], [0], [1], [0, 0, 1, 1], [], []>} : vector<48x128xbf16>, vector<128x256xbf16>, vector<48x256xf32> -> vector<48x256xf32>
    %c0_3 = arith.constant 0 : index
    %c0_4 = arith.constant 0 : index
    %3 = vector.load %arg3[%c0_3, %c0_4] : memref<1x256xf32, #tpu.memory_space<vmem>>, vector<1x256xf32>
    %4 = vector.broadcast %3 : vector<1x256xf32> to vector<48x256xf32>
    %5 = arith.mulf %2, %4 : vector<48x256xf32>
    %c0_5 = arith.constant 0 : index
    %c0_6 = arith.constant 0 : index
    %6 = vector.load %arg4[%c0_5, %c0_6] : memref<1x256xf32, #tpu.memory_space<vmem>>, vector<1x256xf32>
    %7 = vector.broadcast %6 : vector<1x256xf32> to vector<48x256xf32>
    %8 = arith.addf %5, %7 : vector<48x256xf32>
    %c0_7 = arith.constant 0 : index
    %c0_8 = arith.constant 0 : index
    %9 = vector.load %arg5[%c0_7, %c0_8] : memref<48x256xf32, #tpu.memory_space<vmem>>, vector<48x256xf32>
    %10 = arith.addf %8, %9 : vector<48x256xf32>
    %cst_9 = arith.constant 0.000000e+00 : f32
    %11 = vector.broadcast %cst_9 : f32 to vector<48x256xf32>
    %12 = arith.maximumf %10, %11 : vector<48x256xf32>
    %c0_10 = arith.constant 0 : index
    %c0_11 = arith.constant 0 : index
    %13 = vector.load %arg6[%c0_10, %c0_11] : memref<48x256xf32, #tpu.memory_space<vmem>>, vector<48x256xf32>
    tpu.vector_store %arg6[%c0_10, %c0_11], %12 {strides = array<i32>} : memref<48x256xf32, #tpu.memory_space<vmem>>, vector<48x256xf32>,
    return
  }
  func.func @transform_0(%arg0: i32) -> (i32, i32) {
    %c0_i32 = arith.constant 0 : i32
    %c0_i32_0 = arith.constant 0 : i32
    return %arg0, %c0_i32 : i32, i32
  }
  func.func @transform_1(%arg0: i32) -> (i32, i32) {
    %c0_i32 = arith.constant 0 : i32
    %c0_i32_0 = arith.constant 0 : i32
    %c0_i32_1 = arith.constant 0 : i32
    return %c0_i32, %c0_i32_0 : i32, i32
  }
  func.func @transform_2(%arg0: i32) -> (i32, i32) {
    %c0_i32 = arith.constant 0 : i32
    %c0_i32_0 = arith.constant 0 : i32
    %c0_i32_1 = arith.constant 0 : i32
    return %c0_i32, %c0_i32_0 : i32, i32
  }
  func.func @transform_3(%arg0: i32) -> (i32, i32) {
    %c0_i32 = arith.constant 0 : i32
    %c0_i32_0 = arith.constant 0 : i32
    %c0_i32_1 = arith.constant 0 : i32
    return %c0_i32, %c0_i32_0 : i32, i32
  }
  func.func @transform_4(%arg0: i32) -> (i32, i32) {
    %c0_i32 = arith.constant 0 : i32
    %c0_i32_0 = arith.constant 0 : i32
    return %arg0, %c0_i32 : i32, i32
  }
  func.func @transform_5(%arg0: i32) -> (i32, i32) {
    %c0_i32 = arith.constant 0 : i32
    %c0_i32_0 = arith.constant 0 : i32
    return %arg0, %c0_i32 : i32, i32
  }
}

module attributes {stable_mosaic.version = 11 : i64} {
  func.func @_matmul_affine_kernel(%arg0: i32, %arg1: memref<48x256xbf16, #tpu.memory_space<vmem>>, %arg2: memref<256x128xbf16, #tpu.memory_space<vmem>>, %arg3: memref<1x128xf32, #tpu.memory_space<vmem>>, %arg4: memref<1x128xf32, #tpu.memory_space<vmem>>, %arg5: memref<48x128xf32, #tpu.memory_space<vmem>>) attributes {dimension_semantics = [#tpu.dimension_semantics<parallel>], iteration_bounds = array<i64: 2>, scalar_prefetch = 0 : i64, scratch_operands = 0 : i64, tpu.core_type = #tpu.core_type<tc>, window_params = [{transform_indices = @transform_0, window_bounds = array<i64: 48, 256>}, {pipeline_mode = #tpu.pipeline_mode<synchronous>, transform_indices = @transform_1, window_bounds = array<i64: 256, 128>}, {pipeline_mode = #tpu.pipeline_mode<synchronous>, transform_indices = @transform_2, window_bounds = array<i64: 1, 128>}, {pipeline_mode = #tpu.pipeline_mode<synchronous>, transform_indices = @transform_3, window_bounds = array<i64: 1, 128>}, {transform_indices = @transform_4, window_bounds = array<i64: 48, 128>}]} {
    %c0 = arith.constant 0 : index
    %c0_0 = arith.constant 0 : index
    %0 = vector.load %arg1[%c0, %c0_0] : memref<48x256xbf16, #tpu.memory_space<vmem>>, vector<48x256xbf16>
    %c0_1 = arith.constant 0 : index
    %c0_2 = arith.constant 0 : index
    %1 = vector.load %arg2[%c0_1, %c0_2] : memref<256x128xbf16, #tpu.memory_space<vmem>>, vector<256x128xbf16>
    %cst = arith.constant dense<0.000000e+00> : vector<48x128xf32>
    %2 = tpu.matmul %0, %1, %cst {dimension_numbers = #tpu.dot_dimension_numbers<[1], [0], [0], [1], [0, 0, 1, 1], [], []>} : vector<48x256xbf16>, vector<256x128xbf16>, vector<48x128xf32> -> vector<48x128xf32>
    %c0_3 = arith.constant 0 : index
    %c0_4 = arith.constant 0 : index
    %3 = vector.load %arg3[%c0_3, %c0_4] : memref<1x128xf32, #tpu.memory_space<vmem>>, vector<1x128xf32>
    %4 = vector.broadcast %3 : vector<1x128xf32> to vector<48x128xf32>
    %5 = arith.mulf %2, %4 : vector<48x128xf32>
    %c0_5 = arith.constant 0 : index
    %c0_6 = arith.constant 0 : index
    %6 = vector.load %arg4[%c0_5, %c0_6] : memref<1x128xf32, #tpu.memory_space<vmem>>, vector<1x128xf32>
    %7 = vector.broadcast %6 : vector<1x128xf32> to vector<48x128xf32>
    %8 = arith.addf %5, %7 : vector<48x128xf32>
    %cst_7 = arith.constant 0.000000e+00 : f32
    %9 = vector.broadcast %cst_7 : f32 to vector<48x128xf32>
    %10 = arith.maximumf %8, %9 : vector<48x128xf32>
    %c0_8 = arith.constant 0 : index
    %c0_9 = arith.constant 0 : index
    %11 = vector.load %arg5[%c0_8, %c0_9] : memref<48x128xf32, #tpu.memory_space<vmem>>, vector<48x128xf32>
    tpu.vector_store %arg5[%c0_8, %c0_9], %10 {strides = array<i32>} : memref<48x128xf32, #tpu.memory_space<vmem>>, vector<48x128xf32>,
    return
  }
  func.func @transform_0(%arg0: i32) -> (i32, i32) {
    %c0_i32 = arith.constant 0 : i32
    %c0_i32_0 = arith.constant 0 : i32
    return %arg0, %c0_i32 : i32, i32
  }
  func.func @transform_1(%arg0: i32) -> (i32, i32) {
    %c0_i32 = arith.constant 0 : i32
    %c0_i32_0 = arith.constant 0 : i32
    %c0_i32_1 = arith.constant 0 : i32
    return %c0_i32, %c0_i32_0 : i32, i32
  }
  func.func @transform_2(%arg0: i32) -> (i32, i32) {
    %c0_i32 = arith.constant 0 : i32
    %c0_i32_0 = arith.constant 0 : i32
    %c0_i32_1 = arith.constant 0 : i32
    return %c0_i32, %c0_i32_0 : i32, i32
  }
  func.func @transform_3(%arg0: i32) -> (i32, i32) {
    %c0_i32 = arith.constant 0 : i32
    %c0_i32_0 = arith.constant 0 : i32
    %c0_i32_1 = arith.constant 0 : i32
    return %c0_i32, %c0_i32_0 : i32, i32
  }
  func.func @transform_4(%arg0: i32) -> (i32, i32) {
    %c0_i32 = arith.constant 0 : i32
    %c0_i32_0 = arith.constant 0 : i32
    return %arg0, %c0_i32 : i32, i32
  }
}

module attributes {stable_mosaic.version = 11 : i64} {
  func.func @_matmul_affine_kernel(%arg0: i32, %arg1: memref<48x1152xbf16, #tpu.memory_space<vmem>>, %arg2: memref<1152x128xbf16, #tpu.memory_space<vmem>>, %arg3: memref<1x128xf32, #tpu.memory_space<vmem>>, %arg4: memref<1x128xf32, #tpu.memory_space<vmem>>, %arg5: memref<48x128xf32, #tpu.memory_space<vmem>>) attributes {dimension_semantics = [#tpu.dimension_semantics<parallel>], iteration_bounds = array<i64: 2>, scalar_prefetch = 0 : i64, scratch_operands = 0 : i64, tpu.core_type = #tpu.core_type<tc>, window_params = [{transform_indices = @transform_0, window_bounds = array<i64: 48, 1152>}, {pipeline_mode = #tpu.pipeline_mode<synchronous>, transform_indices = @transform_1, window_bounds = array<i64: 1152, 128>}, {pipeline_mode = #tpu.pipeline_mode<synchronous>, transform_indices = @transform_2, window_bounds = array<i64: 1, 128>}, {pipeline_mode = #tpu.pipeline_mode<synchronous>, transform_indices = @transform_3, window_bounds = array<i64: 1, 128>}, {transform_indices = @transform_4, window_bounds = array<i64: 48, 128>}]} {
    %c0 = arith.constant 0 : index
    %c0_0 = arith.constant 0 : index
    %0 = vector.load %arg1[%c0, %c0_0] : memref<48x1152xbf16, #tpu.memory_space<vmem>>, vector<48x1152xbf16>
    %c0_1 = arith.constant 0 : index
    %c0_2 = arith.constant 0 : index
    %1 = vector.load %arg2[%c0_1, %c0_2] : memref<1152x128xbf16, #tpu.memory_space<vmem>>, vector<1152x128xbf16>
    %cst = arith.constant dense<0.000000e+00> : vector<48x128xf32>
    %2 = tpu.matmul %0, %1, %cst {dimension_numbers = #tpu.dot_dimension_numbers<[1], [0], [0], [1], [0, 0, 1, 1], [], []>} : vector<48x1152xbf16>, vector<1152x128xbf16>, vector<48x128xf32> -> vector<48x128xf32>
    %c0_3 = arith.constant 0 : index
    %c0_4 = arith.constant 0 : index
    %3 = vector.load %arg3[%c0_3, %c0_4] : memref<1x128xf32, #tpu.memory_space<vmem>>, vector<1x128xf32>
    %4 = vector.broadcast %3 : vector<1x128xf32> to vector<48x128xf32>
    %5 = arith.mulf %2, %4 : vector<48x128xf32>
    %c0_5 = arith.constant 0 : index
    %c0_6 = arith.constant 0 : index
    %6 = vector.load %arg4[%c0_5, %c0_6] : memref<1x128xf32, #tpu.memory_space<vmem>>, vector<1x128xf32>
    %7 = vector.broadcast %6 : vector<1x128xf32> to vector<48x128xf32>
    %8 = arith.addf %5, %7 : vector<48x128xf32>
    %cst_7 = arith.constant 0.000000e+00 : f32
    %9 = vector.broadcast %cst_7 : f32 to vector<48x128xf32>
    %10 = arith.maximumf %8, %9 : vector<48x128xf32>
    %c0_8 = arith.constant 0 : index
    %c0_9 = arith.constant 0 : index
    %11 = vector.load %arg5[%c0_8, %c0_9] : memref<48x128xf32, #tpu.memory_space<vmem>>, vector<48x128xf32>
    tpu.vector_store %arg5[%c0_8, %c0_9], %10 {strides = array<i32>} : memref<48x128xf32, #tpu.memory_space<vmem>>, vector<48x128xf32>,
    return
  }
  func.func @transform_0(%arg0: i32) -> (i32, i32) {
    %c0_i32 = arith.constant 0 : i32
    %c0_i32_0 = arith.constant 0 : i32
    return %arg0, %c0_i32 : i32, i32
  }
  func.func @transform_1(%arg0: i32) -> (i32, i32) {
    %c0_i32 = arith.constant 0 : i32
    %c0_i32_0 = arith.constant 0 : i32
    %c0_i32_1 = arith.constant 0 : i32
    return %c0_i32, %c0_i32_0 : i32, i32
  }
  func.func @transform_2(%arg0: i32) -> (i32, i32) {
    %c0_i32 = arith.constant 0 : i32
    %c0_i32_0 = arith.constant 0 : i32
    %c0_i32_1 = arith.constant 0 : i32
    return %c0_i32, %c0_i32_0 : i32, i32
  }
  func.func @transform_3(%arg0: i32) -> (i32, i32) {
    %c0_i32 = arith.constant 0 : i32
    %c0_i32_0 = arith.constant 0 : i32
    %c0_i32_1 = arith.constant 0 : i32
    return %c0_i32, %c0_i32_0 : i32, i32
  }
  func.func @transform_4(%arg0: i32) -> (i32, i32) {
    %c0_i32 = arith.constant 0 : i32
    %c0_i32_0 = arith.constant 0 : i32
    return %arg0, %c0_i32 : i32, i32
  }
}

module attributes {stable_mosaic.version = 11 : i64} {
  func.func @_matmul_affine_kernel(%arg0: i32, %arg1: memref<48x256xbf16, #tpu.memory_space<vmem>>, %arg2: memref<256x128xbf16, #tpu.memory_space<vmem>>, %arg3: memref<1x128xf32, #tpu.memory_space<vmem>>, %arg4: memref<1x128xf32, #tpu.memory_space<vmem>>, %arg5: memref<48x128xf32, #tpu.memory_space<vmem>>) attributes {dimension_semantics = [#tpu.dimension_semantics<parallel>], iteration_bounds = array<i64: 2>, scalar_prefetch = 0 : i64, scratch_operands = 0 : i64, tpu.core_type = #tpu.core_type<tc>, window_params = [{transform_indices = @transform_0, window_bounds = array<i64: 48, 256>}, {pipeline_mode = #tpu.pipeline_mode<synchronous>, transform_indices = @transform_1, window_bounds = array<i64: 256, 128>}, {pipeline_mode = #tpu.pipeline_mode<synchronous>, transform_indices = @transform_2, window_bounds = array<i64: 1, 128>}, {pipeline_mode = #tpu.pipeline_mode<synchronous>, transform_indices = @transform_3, window_bounds = array<i64: 1, 128>}, {transform_indices = @transform_4, window_bounds = array<i64: 48, 128>}]} {
    %c0 = arith.constant 0 : index
    %c0_0 = arith.constant 0 : index
    %0 = vector.load %arg1[%c0, %c0_0] : memref<48x256xbf16, #tpu.memory_space<vmem>>, vector<48x256xbf16>
    %c0_1 = arith.constant 0 : index
    %c0_2 = arith.constant 0 : index
    %1 = vector.load %arg2[%c0_1, %c0_2] : memref<256x128xbf16, #tpu.memory_space<vmem>>, vector<256x128xbf16>
    %cst = arith.constant dense<0.000000e+00> : vector<48x128xf32>
    %2 = tpu.matmul %0, %1, %cst {dimension_numbers = #tpu.dot_dimension_numbers<[1], [0], [0], [1], [0, 0, 1, 1], [], []>} : vector<48x256xbf16>, vector<256x128xbf16>, vector<48x128xf32> -> vector<48x128xf32>
    %c0_3 = arith.constant 0 : index
    %c0_4 = arith.constant 0 : index
    %3 = vector.load %arg3[%c0_3, %c0_4] : memref<1x128xf32, #tpu.memory_space<vmem>>, vector<1x128xf32>
    %4 = vector.broadcast %3 : vector<1x128xf32> to vector<48x128xf32>
    %5 = arith.mulf %2, %4 : vector<48x128xf32>
    %c0_5 = arith.constant 0 : index
    %c0_6 = arith.constant 0 : index
    %6 = vector.load %arg4[%c0_5, %c0_6] : memref<1x128xf32, #tpu.memory_space<vmem>>, vector<1x128xf32>
    %7 = vector.broadcast %6 : vector<1x128xf32> to vector<48x128xf32>
    %8 = arith.addf %5, %7 : vector<48x128xf32>
    %cst_7 = arith.constant 0.000000e+00 : f32
    %9 = vector.broadcast %cst_7 : f32 to vector<48x128xf32>
    %10 = arith.maximumf %8, %9 : vector<48x128xf32>
    %c0_8 = arith.constant 0 : index
    %c0_9 = arith.constant 0 : index
    %11 = vector.load %arg5[%c0_8, %c0_9] : memref<48x128xf32, #tpu.memory_space<vmem>>, vector<48x128xf32>
    tpu.vector_store %arg5[%c0_8, %c0_9], %10 {strides = array<i32>} : memref<48x128xf32, #tpu.memory_space<vmem>>, vector<48x128xf32>,
    return
  }
  func.func @transform_0(%arg0: i32) -> (i32, i32) {
    %c0_i32 = arith.constant 0 : i32
    %c0_i32_0 = arith.constant 0 : i32
    return %arg0, %c0_i32 : i32, i32
  }
  func.func @transform_1(%arg0: i32) -> (i32, i32) {
    %c0_i32 = arith.constant 0 : i32
    %c0_i32_0 = arith.constant 0 : i32
    %c0_i32_1 = arith.constant 0 : i32
    return %c0_i32, %c0_i32_0 : i32, i32
  }
  func.func @transform_2(%arg0: i32) -> (i32, i32) {
    %c0_i32 = arith.constant 0 : i32
    %c0_i32_0 = arith.constant 0 : i32
    %c0_i32_1 = arith.constant 0 : i32
    return %c0_i32, %c0_i32_0 : i32, i32
  }
  func.func @transform_3(%arg0: i32) -> (i32, i32) {
    %c0_i32 = arith.constant 0 : i32
    %c0_i32_0 = arith.constant 0 : i32
    %c0_i32_1 = arith.constant 0 : i32
    return %c0_i32, %c0_i32_0 : i32, i32
  }
  func.func @transform_4(%arg0: i32) -> (i32, i32) {
    %c0_i32 = arith.constant 0 : i32
    %c0_i32_0 = arith.constant 0 : i32
    return %arg0, %c0_i32 : i32, i32
  }
}

module attributes {stable_mosaic.version = 11 : i64} {
  func.func @_matmul_affine_kernel(%arg0: i32, %arg1: memref<24x256xbf16, #tpu.memory_space<vmem>>, %arg2: memref<256x512xbf16, #tpu.memory_space<vmem>>, %arg3: memref<1x512xf32, #tpu.memory_space<vmem>>, %arg4: memref<1x512xf32, #tpu.memory_space<vmem>>, %arg5: memref<24x512xf32, #tpu.memory_space<vmem>>) attributes {dimension_semantics = [#tpu.dimension_semantics<parallel>], iteration_bounds = array<i64: 1>, scalar_prefetch = 0 : i64, scratch_operands = 0 : i64, tpu.core_type = #tpu.core_type<tc>, window_params = [{transform_indices = @transform_0, window_bounds = array<i64: 24, 256>}, {pipeline_mode = #tpu.pipeline_mode<synchronous>, transform_indices = @transform_1, window_bounds = array<i64: 256, 512>}, {pipeline_mode = #tpu.pipeline_mode<synchronous>, transform_indices = @transform_2, window_bounds = array<i64: 1, 512>}, {pipeline_mode = #tpu.pipeline_mode<synchronous>, transform_indices = @transform_3, window_bounds = array<i64: 1, 512>}, {transform_indices = @transform_4, window_bounds = array<i64: 24, 512>}]} {
    %c0 = arith.constant 0 : index
    %c0_0 = arith.constant 0 : index
    %0 = vector.load %arg1[%c0, %c0_0] : memref<24x256xbf16, #tpu.memory_space<vmem>>, vector<24x256xbf16>
    %c0_1 = arith.constant 0 : index
    %c0_2 = arith.constant 0 : index
    %1 = vector.load %arg2[%c0_1, %c0_2] : memref<256x512xbf16, #tpu.memory_space<vmem>>, vector<256x512xbf16>
    %cst = arith.constant dense<0.000000e+00> : vector<24x512xf32>
    %2 = tpu.matmul %0, %1, %cst {dimension_numbers = #tpu.dot_dimension_numbers<[1], [0], [0], [1], [0, 0, 1, 1], [], []>} : vector<24x256xbf16>, vector<256x512xbf16>, vector<24x512xf32> -> vector<24x512xf32>
    %c0_3 = arith.constant 0 : index
    %c0_4 = arith.constant 0 : index
    %3 = vector.load %arg3[%c0_3, %c0_4] : memref<1x512xf32, #tpu.memory_space<vmem>>, vector<1x512xf32>
    %4 = vector.broadcast %3 : vector<1x512xf32> to vector<24x512xf32>
    %5 = arith.mulf %2, %4 : vector<24x512xf32>
    %c0_5 = arith.constant 0 : index
    %c0_6 = arith.constant 0 : index
    %6 = vector.load %arg4[%c0_5, %c0_6] : memref<1x512xf32, #tpu.memory_space<vmem>>, vector<1x512xf32>
    %7 = vector.broadcast %6 : vector<1x512xf32> to vector<24x512xf32>
    %8 = arith.addf %5, %7 : vector<24x512xf32>
    %c0_7 = arith.constant 0 : index
    %c0_8 = arith.constant 0 : index
    %9 = vector.load %arg5[%c0_7, %c0_8] : memref<24x512xf32, #tpu.memory_space<vmem>>, vector<24x512xf32>
    tpu.vector_store %arg5[%c0_7, %c0_8], %8 {strides = array<i32>} : memref<24x512xf32, #tpu.memory_space<vmem>>, vector<24x512xf32>,
    return
  }
  func.func @transform_0(%arg0: i32) -> (i32, i32) {
    %c0_i32 = arith.constant 0 : i32
    %c0_i32_0 = arith.constant 0 : i32
    return %arg0, %c0_i32 : i32, i32
  }
  func.func @transform_1(%arg0: i32) -> (i32, i32) {
    %c0_i32 = arith.constant 0 : i32
    %c0_i32_0 = arith.constant 0 : i32
    %c0_i32_1 = arith.constant 0 : i32
    return %c0_i32, %c0_i32_0 : i32, i32
  }
  func.func @transform_2(%arg0: i32) -> (i32, i32) {
    %c0_i32 = arith.constant 0 : i32
    %c0_i32_0 = arith.constant 0 : i32
    %c0_i32_1 = arith.constant 0 : i32
    return %c0_i32, %c0_i32_0 : i32, i32
  }
  func.func @transform_3(%arg0: i32) -> (i32, i32) {
    %c0_i32 = arith.constant 0 : i32
    %c0_i32_0 = arith.constant 0 : i32
    %c0_i32_1 = arith.constant 0 : i32
    return %c0_i32, %c0_i32_0 : i32, i32
  }
  func.func @transform_4(%arg0: i32) -> (i32, i32) {
    %c0_i32 = arith.constant 0 : i32
    %c0_i32_0 = arith.constant 0 : i32
    return %arg0, %c0_i32 : i32, i32
  }
}

module attributes {stable_mosaic.version = 11 : i64} {
  func.func @_matmul_affine_kernel(%arg0: i32, %arg1: memref<24x1152xbf16, #tpu.memory_space<vmem>>, %arg2: memref<1152x128xbf16, #tpu.memory_space<vmem>>, %arg3: memref<1x128xf32, #tpu.memory_space<vmem>>, %arg4: memref<1x128xf32, #tpu.memory_space<vmem>>, %arg5: memref<24x128xf32, #tpu.memory_space<vmem>>) attributes {dimension_semantics = [#tpu.dimension_semantics<parallel>], iteration_bounds = array<i64: 1>, scalar_prefetch = 0 : i64, scratch_operands = 0 : i64, tpu.core_type = #tpu.core_type<tc>, window_params = [{transform_indices = @transform_0, window_bounds = array<i64: 24, 1152>}, {pipeline_mode = #tpu.pipeline_mode<synchronous>, transform_indices = @transform_1, window_bounds = array<i64: 1152, 128>}, {pipeline_mode = #tpu.pipeline_mode<synchronous>, transform_indices = @transform_2, window_bounds = array<i64: 1, 128>}, {pipeline_mode = #tpu.pipeline_mode<synchronous>, transform_indices = @transform_3, window_bounds = array<i64: 1, 128>}, {transform_indices = @transform_4, window_bounds = array<i64: 24, 128>}]} {
    %c0 = arith.constant 0 : index
    %c0_0 = arith.constant 0 : index
    %0 = vector.load %arg1[%c0, %c0_0] : memref<24x1152xbf16, #tpu.memory_space<vmem>>, vector<24x1152xbf16>
    %c0_1 = arith.constant 0 : index
    %c0_2 = arith.constant 0 : index
    %1 = vector.load %arg2[%c0_1, %c0_2] : memref<1152x128xbf16, #tpu.memory_space<vmem>>, vector<1152x128xbf16>
    %cst = arith.constant dense<0.000000e+00> : vector<24x128xf32>
    %2 = tpu.matmul %0, %1, %cst {dimension_numbers = #tpu.dot_dimension_numbers<[1], [0], [0], [1], [0, 0, 1, 1], [], []>} : vector<24x1152xbf16>, vector<1152x128xbf16>, vector<24x128xf32> -> vector<24x128xf32>
    %c0_3 = arith.constant 0 : index
    %c0_4 = arith.constant 0 : index
    %3 = vector.load %arg3[%c0_3, %c0_4] : memref<1x128xf32, #tpu.memory_space<vmem>>, vector<1x128xf32>
    %4 = vector.broadcast %3 : vector<1x128xf32> to vector<24x128xf32>
    %5 = arith.mulf %2, %4 : vector<24x128xf32>
    %c0_5 = arith.constant 0 : index
    %c0_6 = arith.constant 0 : index
    %6 = vector.load %arg4[%c0_5, %c0_6] : memref<1x128xf32, #tpu.memory_space<vmem>>, vector<1x128xf32>
    %7 = vector.broadcast %6 : vector<1x128xf32> to vector<24x128xf32>
    %8 = arith.addf %5, %7 : vector<24x128xf32>
    %cst_7 = arith.constant 0.000000e+00 : f32
    %9 = vector.broadcast %cst_7 : f32 to vector<24x128xf32>
    %10 = arith.maximumf %8, %9 : vector<24x128xf32>
    %c0_8 = arith.constant 0 : index
    %c0_9 = arith.constant 0 : index
    %11 = vector.load %arg5[%c0_8, %c0_9] : memref<24x128xf32, #tpu.memory_space<vmem>>, vector<24x128xf32>
    tpu.vector_store %arg5[%c0_8, %c0_9], %10 {strides = array<i32>} : memref<24x128xf32, #tpu.memory_space<vmem>>, vector<24x128xf32>,
    return
  }
  func.func @transform_0(%arg0: i32) -> (i32, i32) {
    %c0_i32 = arith.constant 0 : i32
    %c0_i32_0 = arith.constant 0 : i32
    return %arg0, %c0_i32 : i32, i32
  }
  func.func @transform_1(%arg0: i32) -> (i32, i32) {
    %c0_i32 = arith.constant 0 : i32
    %c0_i32_0 = arith.constant 0 : i32
    %c0_i32_1 = arith.constant 0 : i32
    return %c0_i32, %c0_i32_0 : i32, i32
  }
  func.func @transform_2(%arg0: i32) -> (i32, i32) {
    %c0_i32 = arith.constant 0 : i32
    %c0_i32_0 = arith.constant 0 : i32
    %c0_i32_1 = arith.constant 0 : i32
    return %c0_i32, %c0_i32_0 : i32, i32
  }
  func.func @transform_3(%arg0: i32) -> (i32, i32) {
    %c0_i32 = arith.constant 0 : i32
    %c0_i32_0 = arith.constant 0 : i32
    %c0_i32_1 = arith.constant 0 : i32
    return %c0_i32, %c0_i32_0 : i32, i32
  }
  func.func @transform_4(%arg0: i32) -> (i32, i32) {
    %c0_i32 = arith.constant 0 : i32
    %c0_i32_0 = arith.constant 0 : i32
    return %arg0, %c0_i32 : i32, i32
  }
}

module attributes {stable_mosaic.version = 11 : i64} {
  func.func @_matmul_affine_kernel(%arg0: i32, %arg1: memref<24x128xbf16, #tpu.memory_space<vmem>>, %arg2: memref<128x512xbf16, #tpu.memory_space<vmem>>, %arg3: memref<1x512xf32, #tpu.memory_space<vmem>>, %arg4: memref<1x512xf32, #tpu.memory_space<vmem>>, %arg5: memref<24x512xf32, #tpu.memory_space<vmem>>, %arg6: memref<24x512xf32, #tpu.memory_space<vmem>>) attributes {dimension_semantics = [#tpu.dimension_semantics<parallel>], iteration_bounds = array<i64: 1>, scalar_prefetch = 0 : i64, scratch_operands = 0 : i64, tpu.core_type = #tpu.core_type<tc>, window_params = [{transform_indices = @transform_0, window_bounds = array<i64: 24, 128>}, {pipeline_mode = #tpu.pipeline_mode<synchronous>, transform_indices = @transform_1, window_bounds = array<i64: 128, 512>}, {pipeline_mode = #tpu.pipeline_mode<synchronous>, transform_indices = @transform_2, window_bounds = array<i64: 1, 512>}, {pipeline_mode = #tpu.pipeline_mode<synchronous>, transform_indices = @transform_3, window_bounds = array<i64: 1, 512>}, {transform_indices = @transform_4, window_bounds = array<i64: 24, 512>}, {transform_indices = @transform_5, window_bounds = array<i64: 24, 512>}]} {
    %c0 = arith.constant 0 : index
    %c0_0 = arith.constant 0 : index
    %0 = vector.load %arg1[%c0, %c0_0] : memref<24x128xbf16, #tpu.memory_space<vmem>>, vector<24x128xbf16>
    %c0_1 = arith.constant 0 : index
    %c0_2 = arith.constant 0 : index
    %1 = vector.load %arg2[%c0_1, %c0_2] : memref<128x512xbf16, #tpu.memory_space<vmem>>, vector<128x512xbf16>
    %cst = arith.constant dense<0.000000e+00> : vector<24x512xf32>
    %2 = tpu.matmul %0, %1, %cst {dimension_numbers = #tpu.dot_dimension_numbers<[1], [0], [0], [1], [0, 0, 1, 1], [], []>} : vector<24x128xbf16>, vector<128x512xbf16>, vector<24x512xf32> -> vector<24x512xf32>
    %c0_3 = arith.constant 0 : index
    %c0_4 = arith.constant 0 : index
    %3 = vector.load %arg3[%c0_3, %c0_4] : memref<1x512xf32, #tpu.memory_space<vmem>>, vector<1x512xf32>
    %4 = vector.broadcast %3 : vector<1x512xf32> to vector<24x512xf32>
    %5 = arith.mulf %2, %4 : vector<24x512xf32>
    %c0_5 = arith.constant 0 : index
    %c0_6 = arith.constant 0 : index
    %6 = vector.load %arg4[%c0_5, %c0_6] : memref<1x512xf32, #tpu.memory_space<vmem>>, vector<1x512xf32>
    %7 = vector.broadcast %6 : vector<1x512xf32> to vector<24x512xf32>
    %8 = arith.addf %5, %7 : vector<24x512xf32>
    %c0_7 = arith.constant 0 : index
    %c0_8 = arith.constant 0 : index
    %9 = vector.load %arg5[%c0_7, %c0_8] : memref<24x512xf32, #tpu.memory_space<vmem>>, vector<24x512xf32>
    %10 = arith.addf %8, %9 : vector<24x512xf32>
    %cst_9 = arith.constant 0.000000e+00 : f32
    %11 = vector.broadcast %cst_9 : f32 to vector<24x512xf32>
    %12 = arith.maximumf %10, %11 : vector<24x512xf32>
    %c0_10 = arith.constant 0 : index
    %c0_11 = arith.constant 0 : index
    %13 = vector.load %arg6[%c0_10, %c0_11] : memref<24x512xf32, #tpu.memory_space<vmem>>, vector<24x512xf32>
    tpu.vector_store %arg6[%c0_10, %c0_11], %12 {strides = array<i32>} : memref<24x512xf32, #tpu.memory_space<vmem>>, vector<24x512xf32>,
    return
  }
  func.func @transform_0(%arg0: i32) -> (i32, i32) {
    %c0_i32 = arith.constant 0 : i32
    %c0_i32_0 = arith.constant 0 : i32
    return %arg0, %c0_i32 : i32, i32
  }
  func.func @transform_1(%arg0: i32) -> (i32, i32) {
    %c0_i32 = arith.constant 0 : i32
    %c0_i32_0 = arith.constant 0 : i32
    %c0_i32_1 = arith.constant 0 : i32
    return %c0_i32, %c0_i32_0 : i32, i32
  }
  func.func @transform_2(%arg0: i32) -> (i32, i32) {
    %c0_i32 = arith.constant 0 : i32
    %c0_i32_0 = arith.constant 0 : i32
    %c0_i32_1 = arith.constant 0 : i32
    return %c0_i32, %c0_i32_0 : i32, i32
  }
  func.func @transform_3(%arg0: i32) -> (i32, i32) {
    %c0_i32 = arith.constant 0 : i32
    %c0_i32_0 = arith.constant 0 : i32
    %c0_i32_1 = arith.constant 0 : i32
    return %c0_i32, %c0_i32_0 : i32, i32
  }
  func.func @transform_4(%arg0: i32) -> (i32, i32) {
    %c0_i32 = arith.constant 0 : i32
    %c0_i32_0 = arith.constant 0 : i32
    return %arg0, %c0_i32 : i32, i32
  }
  func.func @transform_5(%arg0: i32) -> (i32, i32) {
    %c0_i32 = arith.constant 0 : i32
    %c0_i32_0 = arith.constant 0 : i32
    return %arg0, %c0_i32 : i32, i32
  }
}

module attributes {stable_mosaic.version = 11 : i64} {
  func.func @_matmul_affine_kernel(%arg0: i32, %arg1: memref<24x512xbf16, #tpu.memory_space<vmem>>, %arg2: memref<512x128xbf16, #tpu.memory_space<vmem>>, %arg3: memref<1x128xf32, #tpu.memory_space<vmem>>, %arg4: memref<1x128xf32, #tpu.memory_space<vmem>>, %arg5: memref<24x128xf32, #tpu.memory_space<vmem>>) attributes {dimension_semantics = [#tpu.dimension_semantics<parallel>], iteration_bounds = array<i64: 1>, scalar_prefetch = 0 : i64, scratch_operands = 0 : i64, tpu.core_type = #tpu.core_type<tc>, window_params = [{transform_indices = @transform_0, window_bounds = array<i64: 24, 512>}, {pipeline_mode = #tpu.pipeline_mode<synchronous>, transform_indices = @transform_1, window_bounds = array<i64: 512, 128>}, {pipeline_mode = #tpu.pipeline_mode<synchronous>, transform_indices = @transform_2, window_bounds = array<i64: 1, 128>}, {pipeline_mode = #tpu.pipeline_mode<synchronous>, transform_indices = @transform_3, window_bounds = array<i64: 1, 128>}, {transform_indices = @transform_4, window_bounds = array<i64: 24, 128>}]} {
    %c0 = arith.constant 0 : index
    %c0_0 = arith.constant 0 : index
    %0 = vector.load %arg1[%c0, %c0_0] : memref<24x512xbf16, #tpu.memory_space<vmem>>, vector<24x512xbf16>
    %c0_1 = arith.constant 0 : index
    %c0_2 = arith.constant 0 : index
    %1 = vector.load %arg2[%c0_1, %c0_2] : memref<512x128xbf16, #tpu.memory_space<vmem>>, vector<512x128xbf16>
    %cst = arith.constant dense<0.000000e+00> : vector<24x128xf32>
    %2 = tpu.matmul %0, %1, %cst {dimension_numbers = #tpu.dot_dimension_numbers<[1], [0], [0], [1], [0, 0, 1, 1], [], []>} : vector<24x512xbf16>, vector<512x128xbf16>, vector<24x128xf32> -> vector<24x128xf32>
    %c0_3 = arith.constant 0 : index
    %c0_4 = arith.constant 0 : index
    %3 = vector.load %arg3[%c0_3, %c0_4] : memref<1x128xf32, #tpu.memory_space<vmem>>, vector<1x128xf32>
    %4 = vector.broadcast %3 : vector<1x128xf32> to vector<24x128xf32>
    %5 = arith.mulf %2, %4 : vector<24x128xf32>
    %c0_5 = arith.constant 0 : index
    %c0_6 = arith.constant 0 : index
    %6 = vector.load %arg4[%c0_5, %c0_6] : memref<1x128xf32, #tpu.memory_space<vmem>>, vector<1x128xf32>
    %7 = vector.broadcast %6 : vector<1x128xf32> to vector<24x128xf32>
    %8 = arith.addf %5, %7 : vector<24x128xf32>
    %cst_7 = arith.constant 0.000000e+00 : f32
    %9 = vector.broadcast %cst_7 : f32 to vector<24x128xf32>
    %10 = arith.maximumf %8, %9 : vector<24x128xf32>
    %c0_8 = arith.constant 0 : index
    %c0_9 = arith.constant 0 : index
    %11 = vector.load %arg5[%c0_8, %c0_9] : memref<24x128xf32, #tpu.memory_space<vmem>>, vector<24x128xf32>
    tpu.vector_store %arg5[%c0_8, %c0_9], %10 {strides = array<i32>} : memref<24x128xf32, #tpu.memory_space<vmem>>, vector<24x128xf32>,
    return
  }
  func.func @transform_0(%arg0: i32) -> (i32, i32) {
    %c0_i32 = arith.constant 0 : i32
    %c0_i32_0 = arith.constant 0 : i32
    return %arg0, %c0_i32 : i32, i32
  }
  func.func @transform_1(%arg0: i32) -> (i32, i32) {
    %c0_i32 = arith.constant 0 : i32
    %c0_i32_0 = arith.constant 0 : i32
    %c0_i32_1 = arith.constant 0 : i32
    return %c0_i32, %c0_i32_0 : i32, i32
  }
  func.func @transform_2(%arg0: i32) -> (i32, i32) {
    %c0_i32 = arith.constant 0 : i32
    %c0_i32_0 = arith.constant 0 : i32
    %c0_i32_1 = arith.constant 0 : i32
    return %c0_i32, %c0_i32_0 : i32, i32
  }
  func.func @transform_3(%arg0: i32) -> (i32, i32) {
    %c0_i32 = arith.constant 0 : i32
    %c0_i32_0 = arith.constant 0 : i32
    %c0_i32_1 = arith.constant 0 : i32
    return %c0_i32, %c0_i32_0 : i32, i32
  }
  func.func @transform_4(%arg0: i32) -> (i32, i32) {
    %c0_i32 = arith.constant 0 : i32
    %c0_i32_0 = arith.constant 0 : i32
    return %arg0, %c0_i32 : i32, i32
  }
}

module attributes {stable_mosaic.version = 11 : i64} {
  func.func @_matmul_affine_kernel(%arg0: i32, %arg1: memref<24x1152xbf16, #tpu.memory_space<vmem>>, %arg2: memref<1152x128xbf16, #tpu.memory_space<vmem>>, %arg3: memref<1x128xf32, #tpu.memory_space<vmem>>, %arg4: memref<1x128xf32, #tpu.memory_space<vmem>>, %arg5: memref<24x128xf32, #tpu.memory_space<vmem>>) attributes {dimension_semantics = [#tpu.dimension_semantics<parallel>], iteration_bounds = array<i64: 1>, scalar_prefetch = 0 : i64, scratch_operands = 0 : i64, tpu.core_type = #tpu.core_type<tc>, window_params = [{transform_indices = @transform_0, window_bounds = array<i64: 24, 1152>}, {pipeline_mode = #tpu.pipeline_mode<synchronous>, transform_indices = @transform_1, window_bounds = array<i64: 1152, 128>}, {pipeline_mode = #tpu.pipeline_mode<synchronous>, transform_indices = @transform_2, window_bounds = array<i64: 1, 128>}, {pipeline_mode = #tpu.pipeline_mode<synchronous>, transform_indices = @transform_3, window_bounds = array<i64: 1, 128>}, {transform_indices = @transform_4, window_bounds = array<i64: 24, 128>}]} {
    %c0 = arith.constant 0 : index
    %c0_0 = arith.constant 0 : index
    %0 = vector.load %arg1[%c0, %c0_0] : memref<24x1152xbf16, #tpu.memory_space<vmem>>, vector<24x1152xbf16>
    %c0_1 = arith.constant 0 : index
    %c0_2 = arith.constant 0 : index
    %1 = vector.load %arg2[%c0_1, %c0_2] : memref<1152x128xbf16, #tpu.memory_space<vmem>>, vector<1152x128xbf16>
    %cst = arith.constant dense<0.000000e+00> : vector<24x128xf32>
    %2 = tpu.matmul %0, %1, %cst {dimension_numbers = #tpu.dot_dimension_numbers<[1], [0], [0], [1], [0, 0, 1, 1], [], []>} : vector<24x1152xbf16>, vector<1152x128xbf16>, vector<24x128xf32> -> vector<24x128xf32>
    %c0_3 = arith.constant 0 : index
    %c0_4 = arith.constant 0 : index
    %3 = vector.load %arg3[%c0_3, %c0_4] : memref<1x128xf32, #tpu.memory_space<vmem>>, vector<1x128xf32>
    %4 = vector.broadcast %3 : vector<1x128xf32> to vector<24x128xf32>
    %5 = arith.mulf %2, %4 : vector<24x128xf32>
    %c0_5 = arith.constant 0 : index
    %c0_6 = arith.constant 0 : index
    %6 = vector.load %arg4[%c0_5, %c0_6] : memref<1x128xf32, #tpu.memory_space<vmem>>, vector<1x128xf32>
    %7 = vector.broadcast %6 : vector<1x128xf32> to vector<24x128xf32>
    %8 = arith.addf %5, %7 : vector<24x128xf32>
    %cst_7 = arith.constant 0.000000e+00 : f32
    %9 = vector.broadcast %cst_7 : f32 to vector<24x128xf32>
    %10 = arith.maximumf %8, %9 : vector<24x128xf32>
    %c0_8 = arith.constant 0 : index
    %c0_9 = arith.constant 0 : index
    %11 = vector.load %arg5[%c0_8, %c0_9] : memref<24x128xf32, #tpu.memory_space<vmem>>, vector<24x128xf32>
    tpu.vector_store %arg5[%c0_8, %c0_9], %10 {strides = array<i32>} : memref<24x128xf32, #tpu.memory_space<vmem>>, vector<24x128xf32>,
    return
  }
  func.func @transform_0(%arg0: i32) -> (i32, i32) {
    %c0_i32 = arith.constant 0 : i32
    %c0_i32_0 = arith.constant 0 : i32
    return %arg0, %c0_i32 : i32, i32
  }
  func.func @transform_1(%arg0: i32) -> (i32, i32) {
    %c0_i32 = arith.constant 0 : i32
    %c0_i32_0 = arith.constant 0 : i32
    %c0_i32_1 = arith.constant 0 : i32
    return %c0_i32, %c0_i32_0 : i32, i32
  }
  func.func @transform_2(%arg0: i32) -> (i32, i32) {
    %c0_i32 = arith.constant 0 : i32
    %c0_i32_0 = arith.constant 0 : i32
    %c0_i32_1 = arith.constant 0 : i32
    return %c0_i32, %c0_i32_0 : i32, i32
  }
  func.func @transform_3(%arg0: i32) -> (i32, i32) {
    %c0_i32 = arith.constant 0 : i32
    %c0_i32_0 = arith.constant 0 : i32
    %c0_i32_1 = arith.constant 0 : i32
    return %c0_i32, %c0_i32_0 : i32, i32
  }
  func.func @transform_4(%arg0: i32) -> (i32, i32) {
    %c0_i32 = arith.constant 0 : i32
    %c0_i32_0 = arith.constant 0 : i32
    return %arg0, %c0_i32 : i32, i32
  }
}

module attributes {stable_mosaic.version = 11 : i64} {
  func.func @_matmul_affine_kernel(%arg0: i32, %arg1: memref<24x512xbf16, #tpu.memory_space<vmem>>, %arg2: memref<512x128xbf16, #tpu.memory_space<vmem>>, %arg3: memref<1x128xf32, #tpu.memory_space<vmem>>, %arg4: memref<1x128xf32, #tpu.memory_space<vmem>>, %arg5: memref<24x128xf32, #tpu.memory_space<vmem>>) attributes {dimension_semantics = [#tpu.dimension_semantics<parallel>], iteration_bounds = array<i64: 1>, scalar_prefetch = 0 : i64, scratch_operands = 0 : i64, tpu.core_type = #tpu.core_type<tc>, window_params = [{transform_indices = @transform_0, window_bounds = array<i64: 24, 512>}, {pipeline_mode = #tpu.pipeline_mode<synchronous>, transform_indices = @transform_1, window_bounds = array<i64: 512, 128>}, {pipeline_mode = #tpu.pipeline_mode<synchronous>, transform_indices = @transform_2, window_bounds = array<i64: 1, 128>}, {pipeline_mode = #tpu.pipeline_mode<synchronous>, transform_indices = @transform_3, window_bounds = array<i64: 1, 128>}, {transform_indices = @transform_4, window_bounds = array<i64: 24, 128>}]} {
    %c0 = arith.constant 0 : index
    %c0_0 = arith.constant 0 : index
    %0 = vector.load %arg1[%c0, %c0_0] : memref<24x512xbf16, #tpu.memory_space<vmem>>, vector<24x512xbf16>
    %c0_1 = arith.constant 0 : index
    %c0_2 = arith.constant 0 : index
    %1 = vector.load %arg2[%c0_1, %c0_2] : memref<512x128xbf16, #tpu.memory_space<vmem>>, vector<512x128xbf16>
    %cst = arith.constant dense<0.000000e+00> : vector<24x128xf32>
    %2 = tpu.matmul %0, %1, %cst {dimension_numbers = #tpu.dot_dimension_numbers<[1], [0], [0], [1], [0, 0, 1, 1], [], []>} : vector<24x512xbf16>, vector<512x128xbf16>, vector<24x128xf32> -> vector<24x128xf32>
    %c0_3 = arith.constant 0 : index
    %c0_4 = arith.constant 0 : index
    %3 = vector.load %arg3[%c0_3, %c0_4] : memref<1x128xf32, #tpu.memory_space<vmem>>, vector<1x128xf32>
    %4 = vector.broadcast %3 : vector<1x128xf32> to vector<24x128xf32>
    %5 = arith.mulf %2, %4 : vector<24x128xf32>
    %c0_5 = arith.constant 0 : index
    %c0_6 = arith.constant 0 : index
    %6 = vector.load %arg4[%c0_5, %c0_6] : memref<1x128xf32, #tpu.memory_space<vmem>>, vector<1x128xf32>
    %7 = vector.broadcast %6 : vector<1x128xf32> to vector<24x128xf32>
    %8 = arith.addf %5, %7 : vector<24x128xf32>
    %cst_7 = arith.constant 0.000000e+00 : f32
    %9 = vector.broadcast %cst_7 : f32 to vector<24x128xf32>
    %10 = arith.maximumf %8, %9 : vector<24x128xf32>
    %c0_8 = arith.constant 0 : index
    %c0_9 = arith.constant 0 : index
    %11 = vector.load %arg5[%c0_8, %c0_9] : memref<24x128xf32, #tpu.memory_space<vmem>>, vector<24x128xf32>
    tpu.vector_store %arg5[%c0_8, %c0_9], %10 {strides = array<i32>} : memref<24x128xf32, #tpu.memory_space<vmem>>, vector<24x128xf32>,
    return
  }
  func.func @transform_0(%arg0: i32) -> (i32, i32) {
    %c0_i32 = arith.constant 0 : i32
    %c0_i32_0 = arith.constant 0 : i32
    return %arg0, %c0_i32 : i32, i32
  }
  func.func @transform_1(%arg0: i32) -> (i32, i32) {
    %c0_i32 = arith.constant 0 : i32
    %c0_i32_0 = arith.constant 0 : i32
    %c0_i32_1 = arith.constant 0 : i32
    return %c0_i32, %c0_i32_0 : i32, i32
  }
  func.func @transform_2(%arg0: i32) -> (i32, i32) {
    %c0_i32 = arith.constant 0 : i32
    %c0_i32_0 = arith.constant 0 : i32
    %c0_i32_1 = arith.constant 0 : i32
    return %c0_i32, %c0_i32_0 : i32, i32
  }
  func.func @transform_3(%arg0: i32) -> (i32, i32) {
    %c0_i32 = arith.constant 0 : i32
    %c0_i32_0 = arith.constant 0 : i32
    %c0_i32_1 = arith.constant 0 : i32
    return %c0_i32, %c0_i32_0 : i32, i32
  }
  func.func @transform_4(%arg0: i32) -> (i32, i32) {
    %c0_i32 = arith.constant 0 : i32
    %c0_i32_0 = arith.constant 0 : i32
    return %arg0, %c0_i32 : i32, i32
  }
}

module attributes {stable_mosaic.version = 11 : i64} {
  func.func @_avgpool_h_kernel(%arg0: memref<2x6x2x512xf32, #tpu.memory_space<vmem>>, %arg1: memref<2x1x2x512xf32, #tpu.memory_space<vmem>>) attributes {dimension_semantics = [], scalar_prefetch = 0 : i64, scratch_operands = 0 : i64, tpu.core_type = #tpu.core_type<tc>} {
    %c0 = arith.constant 0 : index
    %c0_0 = arith.constant 0 : index
    %c0_1 = arith.constant 0 : index
    %c0_2 = arith.constant 0 : index
    %0 = vector.load %arg0[%c0, %c0_0, %c0_1, %c0_2] : memref<2x6x2x512xf32, #tpu.memory_space<vmem>>, vector<2x6x2x512xf32>
    %cst = arith.constant dense<0.000000e+00> : vector<2x2x512xf32>
    %1 = vector.multi_reduction <add>, %0, %cst [1] : vector<2x6x2x512xf32> to vector<2x2x512xf32>
    %2 = vector.shape_cast %1 : vector<2x2x512xf32> to vector<2x1x2x512xf32>
    %cst_3 = arith.constant 6.000000e+00 : f32
    %3 = vector.broadcast %cst_3 : f32 to vector<2x1x2x512xf32>
    %4 = arith.divf %2, %3 : vector<2x1x2x512xf32>
    %c0_4 = arith.constant 0 : index
    %c0_5 = arith.constant 0 : index
    %c0_6 = arith.constant 0 : index
    %c0_7 = arith.constant 0 : index
    %5 = vector.load %arg1[%c0_4, %c0_5, %c0_6, %c0_7] : memref<2x1x2x512xf32, #tpu.memory_space<vmem>>, vector<2x1x2x512xf32>
    tpu.vector_store %arg1[%c0_4, %c0_5, %c0_6, %c0_7], %4 {strides = array<i32>} : memref<2x1x2x512xf32, #tpu.memory_space<vmem>>, vector<2x1x2x512xf32>,
    return
  }
}

module attributes {stable_mosaic.version = 11 : i64} {
  func.func @_log_softmax_kernel(%arg0: memref<4x128xf32, #tpu.memory_space<vmem>>, %arg1: memref<4x128xf32, #tpu.memory_space<vmem>>) attributes {dimension_semantics = [], scalar_prefetch = 0 : i64, scratch_operands = 0 : i64, tpu.core_type = #tpu.core_type<tc>} {
    %c0 = arith.constant 0 : index
    %c0_0 = arith.constant 0 : index
    %0 = vector.load %arg0[%c0, %c0_0] : memref<4x128xf32, #tpu.memory_space<vmem>>, vector<4x128xf32>
    %cst = arith.constant dense<0xFF800000> : vector<4xf32>
    %1 = vector.multi_reduction <maximumf>, %0, %cst [1] : vector<4x128xf32> to vector<4xf32>
    %2 = vector.shape_cast %1 : vector<4xf32> to vector<4x1xf32>
    %3 = vector.broadcast %2 : vector<4x1xf32> to vector<4x128xf32>
    %4 = arith.subf %0, %3 : vector<4x128xf32>
    %5 = math.exp %4 : vector<4x128xf32>
    %cst_1 = arith.constant dense<0.000000e+00> : vector<4xf32>
    %6 = vector.multi_reduction <add>, %5, %cst_1 [1] : vector<4x128xf32> to vector<4xf32>
    %7 = vector.shape_cast %6 : vector<4xf32> to vector<4x1xf32>
    %8 = math.log %7 : vector<4x1xf32>
    %9 = vector.broadcast %8 : vector<4x1xf32> to vector<4x128xf32>
    %10 = arith.subf %4, %9 : vector<4x128xf32>
    %c0_2 = arith.constant 0 : index
    %c0_3 = arith.constant 0 : index
    %11 = vector.load %arg1[%c0_2, %c0_3] : memref<4x128xf32, #tpu.memory_space<vmem>>, vector<4x128xf32>
    tpu.vector_store %arg1[%c0_2, %c0_3], %10 {strides = array<i32>} : memref<4x128xf32, #tpu.memory_space<vmem>>, vector<4x128xf32>,
    return
  }
}

module attributes {stable_mosaic.version = 11 : i64} {
  func.func @_matmul_affine_kernel(%arg0: i32, %arg1: memref<4x512xbf16, #tpu.memory_space<vmem>>, %arg2: memref<512x128xbf16, #tpu.memory_space<vmem>>, %arg3: memref<1x128xf32, #tpu.memory_space<vmem>>, %arg4: memref<1x128xf32, #tpu.memory_space<vmem>>, %arg5: memref<4x128xf32, #tpu.memory_space<vmem>>) attributes {dimension_semantics = [#tpu.dimension_semantics<parallel>], iteration_bounds = array<i64: 1>, scalar_prefetch = 0 : i64, scratch_operands = 0 : i64, tpu.core_type = #tpu.core_type<tc>, window_params = [{transform_indices = @transform_0, window_bounds = array<i64: 4, 512>}, {pipeline_mode = #tpu.pipeline_mode<synchronous>, transform_indices = @transform_1, window_bounds = array<i64: 512, 128>}, {pipeline_mode = #tpu.pipeline_mode<synchronous>, transform_indices = @transform_2, window_bounds = array<i64: 1, 128>}, {pipeline_mode = #tpu.pipeline_mode<synchronous>, transform_indices = @transform_3, window_bounds = array<i64: 1, 128>}, {transform_indices = @transform_4, window_bounds = array<i64: 4, 128>}]} {
    %c0 = arith.constant 0 : index
    %c0_0 = arith.constant 0 : index
    %0 = vector.load %arg1[%c0, %c0_0] : memref<4x512xbf16, #tpu.memory_space<vmem>>, vector<4x512xbf16>
    %c0_1 = arith.constant 0 : index
    %c0_2 = arith.constant 0 : index
    %1 = vector.load %arg2[%c0_1, %c0_2] : memref<512x128xbf16, #tpu.memory_space<vmem>>, vector<512x128xbf16>
    %cst = arith.constant dense<0.000000e+00> : vector<4x128xf32>
    %2 = tpu.matmul %0, %1, %cst {dimension_numbers = #tpu.dot_dimension_numbers<[1], [0], [0], [1], [0, 0, 1, 1], [], []>} : vector<4x512xbf16>, vector<512x128xbf16>, vector<4x128xf32> -> vector<4x128xf32>
    %c0_3 = arith.constant 0 : index
    %c0_4 = arith.constant 0 : index
    %3 = vector.load %arg3[%c0_3, %c0_4] : memref<1x128xf32, #tpu.memory_space<vmem>>, vector<1x128xf32>
    %4 = vector.broadcast %3 : vector<1x128xf32> to vector<4x128xf32>
    %5 = arith.mulf %2, %4 : vector<4x128xf32>
    %c0_5 = arith.constant 0 : index
    %c0_6 = arith.constant 0 : index
    %6 = vector.load %arg4[%c0_5, %c0_6] : memref<1x128xf32, #tpu.memory_space<vmem>>, vector<1x128xf32>
    %7 = vector.broadcast %6 : vector<1x128xf32> to vector<4x128xf32>
    %8 = arith.addf %5, %7 : vector<4x128xf32>
    %c0_7 = arith.constant 0 : index
    %c0_8 = arith.constant 0 : index
    %9 = vector.load %arg5[%c0_7, %c0_8] : memref<4x128xf32, #tpu.memory_space<vmem>>, vector<4x128xf32>
    tpu.vector_store %arg5[%c0_7, %c0_8], %8 {strides = array<i32>} : memref<4x128xf32, #tpu.memory_space<vmem>>, vector<4x128xf32>,
    return
  }
  func.func @transform_0(%arg0: i32) -> (i32, i32) {
    %c0_i32 = arith.constant 0 : i32
    %c0_i32_0 = arith.constant 0 : i32
    return %arg0, %c0_i32 : i32, i32
  }
  func.func @transform_1(%arg0: i32) -> (i32, i32) {
    %c0_i32 = arith.constant 0 : i32
    %c0_i32_0 = arith.constant 0 : i32
    %c0_i32_1 = arith.constant 0 : i32
    return %c0_i32, %c0_i32_0 : i32, i32
  }
  func.func @transform_2(%arg0: i32) -> (i32, i32) {
    %c0_i32 = arith.constant 0 : i32
    %c0_i32_0 = arith.constant 0 : i32
    %c0_i32_1 = arith.constant 0 : i32
    return %c0_i32, %c0_i32_0 : i32, i32
  }
  func.func @transform_3(%arg0: i32) -> (i32, i32) {
    %c0_i32 = arith.constant 0 : i32
    %c0_i32_0 = arith.constant 0 : i32
    %c0_i32_1 = arith.constant 0 : i32
    return %c0_i32, %c0_i32_0 : i32, i32
  }
  func.func @transform_4(%arg0: i32) -> (i32, i32) {
    %c0_i32 = arith.constant 0 : i32
    %c0_i32_0 = arith.constant 0 : i32
    return %arg0, %c0_i32 : i32, i32
  }
}

</mosaic_0001>

<bundles_post_ra>
// kernel: my_net_res50_forward.28
= control target key start
LH: loop header
LB: loop body
LE: loop exit
PB: predicated region body
PF: predicated region fallthrough
CT: control target
= control target key end

     0   :  { %s1044_s15 = smov 0   ;;  %s1250_s0 = inlined_call_operand.vmem [shape: bf16[384,256], index: 0, kind: input, shape index: {}]   ;;  %s1251_s1 = inlined_call_operand.vmem [shape: bf16[256,128], index: 1, kind: input, shape index: {}]   ;;  %s1252_s2 = inlined_call_operand.vmem [shape: f32[1,128], index: 2, kind: input, shape index: {}]   ;;  %s1253_s3 = inlined_call_operand.vmem [shape: f32[1,128], index: 3, kind: input, shape index: {}]   ;;  %s1254_s4 = inlined_call_operand.vmem [shape: f32[384,128], index: 4, kind: output, shape index: {}]  }
   0x1 LB: > { %s774_s16 = sadd.s32 4294967295, %s1017_s15   ;;  %p778_p0 = scmp.ge.s32.totalorder %s1017_s15, 1  ;;  %s1017_s15 = sphi %s1044_s15, %s14_s15  }
   0x2   : > { %p164_p1 = scmp.lt.s32.totalorder %s1017_s15, 3 }
   0x4   : > { %p165_p2 = pnand %p778_p0, %p164_p1 }
   0x5   : > { %s191_s29 = smul.u32 (!%p165_p2), 24, %s774_s16 }
   0x6   : > { %168 = sbr.rel (%p165_p2) target bundleno = 273 (0x111), region = 36 }
   0x7   : > { %p192_p3 = scmp.lt.s32.totalorder (!%p165_p2), %s191_s29, 47 }
   0xb   : > { %v976_v0 = vld [vmem:[%s1251_s1 + $0x38] sm:$0xff]  ;;  %v975_v2 = vld [vmem:[%s1251_s1 + $0x30] sm:$0xff]  ;;  %v974_v4 = vld [vmem:[%s1251_s1 + $0x28] sm:$0xff]  ;;  %s1256_s29 = smov (!%p192_p3, %s191_s29), 47 }
   0xc   : > { %v984_v1 = vld [vmem:[%s1251_s1 + $0x78] sm:$0xff]  ;;  %476 = vmatpush.bf16.msra.mxu0 %v976_v0  ;;  %985 = vmatpush.bf16.msra.mxu2 %v976_v0  ;;  %v983_v3 = vld [vmem:[%s1251_s1 + $0x70] sm:$0xff]  ;;  %v982_v5 = vld [vmem:[%s1251_s1 + $0x68] sm:$0xff]  ;;  %s944_s17 = sshll.u32 %s1256_s29, 3 }
   0xd   : > { %545 = vmatpush.bf16.msra.mxu1 %v984_v1  ;;  %993 = vmatpush.bf16.msra.mxu3 %v984_v1  ;;  %v973_v6 = vld [vmem:[%s1251_s1 + $0x20] sm:$0xff]  ;;  %v972_v8 = vld [vmem:[%s1251_s1 + $0x18] sm:$0xff]  ;;  %v971_v10 = vld [vmem:[%s1251_s1 + $0x10] sm:$0xff]  ;;  %s1099_s22 = scalar_lea.vmem %s1250_s0, %s944_s17  ;;  %s1175_s10 = scalar_lea.vmem %s1254_s4, %s944_s17 }
   0xe   : > { %v981_v7 = vld [vmem:[%s1251_s1 + $0x60] sm:$0xff]  ;;  %v980_v9 = vld [vmem:[%s1251_s1 + $0x58] sm:$0xff]  ;;  %v979_v11 = vld [vmem:[%s1251_s1 + $0x50] sm:$0xff] }
   0xf   : > { %v970_v12 = vld [vmem:[%s1251_s1 + $0x8] sm:$0xff]  ;;  %v969_v14 = vld [vmem:[%s1251_s1] sm:$0xff]  ;;  %v792_v28 = vld [vmem:[%s1099_s22 + $0x10] sm:$0xf] }
  0x10   : > { %477 = vmatpush.bf16.msra.mxu0 %v975_v2  ;;  %986 = vmatpush.bf16.msra.mxu2 %v975_v2  ;;  %v978_v13 = vld [vmem:[%s1251_s1 + $0x48] sm:$0xff]  ;;  %v977_v15 = vld [vmem:[%s1251_s1 + $0x40] sm:$0xff]  ;;  %v948_v29 = vld [vmem:[%s1099_s22 + $0x14] sm:$0xf0] }
  0x11   : > { %546 = vmatpush.bf16.msra.mxu1 %v983_v3  ;;  %994 = vmatpush.bf16.msra.mxu3 %v983_v3  ;;  %v784_v16 = vld [vmem:[%s1099_s22] sm:$0xf]  ;;  %v946_v17 = vld [vmem:[%s1099_s22 + $0x4] sm:$0xf0]  ;;  %v945_v20 = vld [vmem:[%s1099_s22 + $0x4] sm:$0xf]  ;;  %v793_v36 = vor.u32 %v948_v29, %v792_v28 }
  0x12   : > { %v832_v18 = vld [vmem:[%s1099_s22 + $0x60] sm:$0xf]  ;;  %v958_v19 = vld [vmem:[%s1099_s22 + $0x64] sm:$0xf0]  ;;  %v786_v21 = vld [vmem:[%s1099_s22 + $0x8] sm:$0xf0]  ;;  %v785_v24 = vor.u32 %v946_v17, %v784_v16 }
  0x13   : > { %v957_v22 = vld [vmem:[%s1099_s22 + $0x64] sm:$0xf]  ;;  %v834_v23 = vld [vmem:[%s1099_s22 + $0x68] sm:$0xf0]  ;;  %v833_v25 = vor.u32 %v958_v19, %v832_v18  ;;  %v789_v26 = vor.u32 %v945_v20, %v786_v21  ;;  %v840_v30 = vld [vmem:[%s1099_s22 + $0x70] sm:$0xf] }
  0x14   : > { %478 = vmatpush.bf16.msra.mxu0 %v974_v4  ;;  %987 = vmatpush.bf16.msra.mxu2 %v974_v4  ;;  %v837_v27 = vor.u32 %v957_v22, %v834_v23  ;;  %v960_v31 = vld [vmem:[%s1099_s22 + $0x74] sm:$0xf0]  ;;  %v947_v32 = vld [vmem:[%s1099_s22 + $0x14] sm:$0xf]  ;;  %v794_v33 = vld [vmem:[%s1099_s22 + $0x18] sm:$0xf0] }
  0x15   : > { %547 = vmatpush.bf16.msra.mxu1 %v982_v5  ;;  %995 = vmatpush.bf16.msra.mxu3 %v982_v5  ;;  %v959_v34 = vld [vmem:[%s1099_s22 + $0x74] sm:$0xf]  ;;  %v842_v35 = vld [vmem:[%s1099_s22 + $0x78] sm:$0xf0]  ;;  %v841_v37 = vor.u32 %v960_v31, %v840_v30  ;;  %v797_v38 = vor.u32 %v947_v32, %v794_v33  ;;  %v800_v40 = vld [vmem:[%s1099_s22 + $0x20] sm:$0xf] }
  0x16   : > { %v845_v39 = vor.u32 %v959_v34, %v842_v35  ;;  %v950_v41 = vld [vmem:[%s1099_s22 + $0x24] sm:$0xf0]  ;;  %v848_v42 = vld [vmem:[%s1099_s22 + $0x80] sm:$0xf]  ;;  %v949_v44 = vld [vmem:[%s1099_s22 + $0x24] sm:$0xf] }
  0x17   : > { %v962_v43 = vld [vmem:[%s1099_s22 + $0x84] sm:$0xf0]  ;;  %v802_v45 = vld [vmem:[%s1099_s22 + $0x28] sm:$0xf0]  ;;  %v961_v46 = vld [vmem:[%s1099_s22 + $0x84] sm:$0xf]  ;;  %v801_v48 = vor.u32 %v950_v41, %v800_v40 }
  0x18   : > { %479 = vmatpush.bf16.msra.mxu0 %v973_v6  ;;  %988 = vmatpush.bf16.msra.mxu2 %v973_v6  ;;  %v850_v47 = vld [vmem:[%s1099_s22 + $0x88] sm:$0xf0]  ;;  %v849_v49 = vor.u32 %v962_v43, %v848_v42  ;;  %v805_v50 = vor.u32 %v949_v44, %v802_v45  ;;  %v808_v52 = vld [vmem:[%s1099_s22 + $0x30] sm:$0xf]  ;;  %v952_v53 = vld [vmem:[%s1099_s22 + $0x34] sm:$0xf0] }
  0x19   : > { %548 = vmatpush.bf16.msra.mxu1 %v981_v7  ;;  %996 = vmatpush.bf16.msra.mxu3 %v981_v7  ;;  %v853_v51 = vor.u32 %v961_v46, %v850_v47  ;;  %v856_v54 = vld [vmem:[%s1099_s22 + $0x90] sm:$0xf]  ;;  %v964_v55 = vld [vmem:[%s1099_s22 + $0x94] sm:$0xf0]  ;;  %v951_v56 = vld [vmem:[%s1099_s22 + $0x34] sm:$0xf]  ;;  %v809_v60 = vor.u32 %v952_v53, %v808_v52 }
  0x1a   : > { %v810_v57 = vld [vmem:[%s1099_s22 + $0x38] sm:$0xf0]  ;;  %v963_v58 = vld [vmem:[%s1099_s22 + $0x94] sm:$0xf]  ;;  %v857_v61 = vor.u32 %v964_v55, %v856_v54  ;;  %v816_v0 = vld [vmem:[%s1099_s22 + $0x40] sm:$0xf] }
  0x1b   : > { %v858_v59 = vld [vmem:[%s1099_s22 + $0x98] sm:$0xf0]  ;;  %v813_v62 = vor.u32 %v951_v56, %v810_v57  ;;  %v954_v1 = vld [vmem:[%s1099_s22 + $0x44] sm:$0xf0]  ;;  %v864_v2 = vld [vmem:[%s1099_s22 + $0xa0] sm:$0xf] }
  0x1c   : > { %480 = vmatpush.bf16.msra.mxu0 %v972_v8  ;;  %989 = vmatpush.bf16.msra.mxu2 %v972_v8  ;;  %v861_v63 = vor.u32 %v963_v58, %v858_v59  ;;  %v966_v3 = vld [vmem:[%s1099_s22 + $0xa4] sm:$0xf0]  ;;  %v953_v4 = vld [vmem:[%s1099_s22 + $0x44] sm:$0xf]  ;;  %v818_v5 = vld [vmem:[%s1099_s22 + $0x48] sm:$0xf0]  ;;  %v817_v8 = vor.u32 %v954_v1, %v816_v0 }
  0x1d   : > { %549 = vmatpush.bf16.msra.mxu1 %v980_v9  ;;  %997 = vmatpush.bf16.msra.mxu3 %v980_v9  ;;  %v965_v6 = vld [vmem:[%s1099_s22 + $0xa4] sm:$0xf]  ;;  %v866_v7 = vld [vmem:[%s1099_s22 + $0xa8] sm:$0xf0]  ;;  %v865_v9 = vor.u32 %v966_v3, %v864_v2  ;;  %v955_v16 = vld [vmem:[%s1099_s22 + $0x54] sm:$0xf] }
  0x1e   : > { %v826_v17 = vld [vmem:[%s1099_s22 + $0x58] sm:$0xf0]  ;;  %v967_v18 = vld [vmem:[%s1099_s22 + $0xb4] sm:$0xf]  ;;  %v1166_v28 = vld [vmem:[%s1253_s3] ss:$0 sm:$0xff] }
  0x1f   : > { %v874_v19 = vld [vmem:[%s1099_s22 + $0xb8] sm:$0xf0]  ;;  %v829_v22 = vor.u32 %v955_v16, %v826_v17 }
  0x20   : > { %481 = vmatpush.bf16.msra.mxu0 %v971_v10  ;;  %990 = vmatpush.bf16.msra.mxu2 %v971_v10  ;;  %v821_v10 = vor.u32 %v953_v4, %v818_v5  ;;  %v877_v23 = vor.u32 %v967_v18, %v874_v19 }
  0x21   : > { %550 = vmatpush.bf16.msra.mxu1 %v979_v11  ;;  %998 = vmatpush.bf16.msra.mxu3 %v979_v11  ;;  %v869_v11 = vor.u32 %v965_v6, %v866_v7 }
  0x24   : > { %482 = vmatpush.bf16.msra.mxu0 %v970_v12  ;;  %991 = vmatpush.bf16.msra.mxu2 %v970_v12  ;;  %v824_v12 = vld [vmem:[%s1099_s22 + $0x50] sm:$0xf] }
  0x25   : > { %551 = vmatpush.bf16.msra.mxu1 %v978_v13  ;;  %999 = vmatpush.bf16.msra.mxu3 %v978_v13  ;;  %v956_v13 = vld [vmem:[%s1099_s22 + $0x54] sm:$0xf0] }
  0x26   : > { %v825_v20 = vor.u32 %v956_v13, %v824_v12 }
  0x28   : > { %483 = vmatpush.bf16.msra.mxu0 %v969_v14  ;;  %992 = vmatpush.bf16.msra.mxu2 %v969_v14  ;;  %v872_v14 = vld [vmem:[%s1099_s22 + $0xb0] sm:$0xf] }
  0x29   : > { %552 = vmatpush.bf16.msra.mxu1 %v977_v15  ;;  %1000 = vmatpush.bf16.msra.mxu3 %v977_v15  ;;  %v968_v15 = vld [vmem:[%s1099_s22 + $0xb4] sm:$0xf0] }
  0x2a   : > { %v873_v21 = vor.u32 %v968_v15, %v872_v14 }
  0x2b   : > { %484 = vmatmul.bf16.vlgmr.msra.gmra.mxu0 %v785_v24  ;;  %514 = vmatmul.bf16.vlgmr.msra.gmra.mxu2 %v833_v25  ;;  %v1161_v25 = vld [vmem:[%s1252_s2] ss:$0 sm:$0xff] }
  0x2c   : > { %553 = vmatmul.bf16.vlgmr.msra.gmra.mxu1 %v789_v26  ;;  %583 = vmatmul.bf16.vlgmr.msra.gmra.mxu3 %v837_v27 }
  0x3b   : > { %489 = vmatmul.bf16.gmra.mxu0 %v793_v36  ;;  %519 = vmatmul.bf16.gmra.mxu2 %v841_v37 }
  0x3c   : > { %558 = vmatmul.bf16.gmra.mxu1 %v797_v38  ;;  %588 = vmatmul.bf16.gmra.mxu3 %v845_v39 }
  0x4b   : > { %494 = vmatmul.bf16.gmra.mxu0 %v801_v48  ;;  %524 = vmatmul.bf16.gmra.mxu2 %v849_v49 }
  0x4c   : > { %563 = vmatmul.bf16.gmra.mxu1 %v805_v50  ;;  %593 = vmatmul.bf16.gmra.mxu3 %v853_v51 }
  0x5b   : > { %499 = vmatmul.bf16.gmra.mxu0 %v809_v60  ;;  %529 = vmatmul.bf16.gmra.mxu2 %v857_v61 }
  0x5c   : > { %568 = vmatmul.bf16.gmra.mxu1 %v813_v62  ;;  %598 = vmatmul.bf16.gmra.mxu3 %v861_v63 }
  0x6b   : > { %504 = vmatmul.bf16.gmra.mxu0 %v817_v8  ;;  %534 = vmatmul.bf16.gmra.mxu2 %v865_v9 }
  0x6c   : > { %573 = vmatmul.bf16.gmra.mxu1 %v821_v10  ;;  %603 = vmatmul.bf16.gmra.mxu3 %v869_v11 }
  0x7b   : > { %509 = vmatmul.bf16.gmra.mxu0 %v825_v20  ;;  %539 = vmatmul.bf16.gmra.mxu2 %v873_v21 }
  0x7c   : > { %578 = vmatmul.bf16.gmra.mxu1 %v829_v22  ;;  %608 = vmatmul.bf16.gmra.mxu3 %v877_v23 }
  0xa8   : > { %v485_v24 = vpop.f32.mrf.mxu0 }
  0xa9   : > { %v554_v26 = vpop.f32.mrf.mxu1 }
  0xaa   : > { %v555_v27 = vadd.f32 %v554_v26, %v485_v24 }
  0xac   : > { %v618_v29 = vmul.f32 %v1161_v25, %v555_v27 }
  0xae   : > { %v646_v30 = vadd.f32 %v1166_v28, %v618_v29  ;;  %v515_v31 = vpop.f32.mrf.mxu2 }
  0xaf   : > { %v584_v32 = vpop.f32.mrf.mxu3 }
  0xb0   : > { %v670_v33 = vmax.f32 %v646_v30, 0.0  ;;  %v585_v34 = vadd.f32 %v584_v32, %v515_v31  ;;  %v487_v35 = vpop.f32.mrf.mxu0 }
  0xb1   : > { %v556_v36 = vpop.f32.mrf.mxu1 }
  0xb2   : > { %694 = vst [vmem:[%s1175_s10] sm:$0xff] %v670_v33  ;;  %v630_v37 = vmul.f32 %v1161_v25, %v585_v34  ;;  %v557_v38 = vadd.f32 %v556_v36, %v487_v35 }
  0xb4   : > { %v658_v39 = vadd.f32 %v1166_v28, %v630_v37  ;;  %v619_v40 = vmul.f32 %v1161_v25, %v557_v38 }
  0xb6   : > { %v682_v41 = vmax.f32 %v658_v39, 0.0  ;;  %v647_v42 = vadd.f32 %v1166_v28, %v619_v40  ;;  %v517_v43 = vpop.f32.mrf.mxu2 }
  0xb7   : > { %v586_v44 = vpop.f32.mrf.mxu3 }
  0xb8   : > { %706 = vst [vmem:[%s1175_s10 + $0x60] sm:$0xff] %v682_v41  ;;  %v671_v45 = vmax.f32 %v647_v42, 0.0  ;;  %v587_v46 = vadd.f32 %v586_v44, %v517_v43  ;;  %v490_v47 = vpop.f32.mrf.mxu0 }
  0xb9   : > { %v559_v48 = vpop.f32.mrf.mxu1 }
  0xba   : > { %695 = vst [vmem:[%s1175_s10 + $0x8] sm:$0xff] %v671_v45  ;;  %v631_v49 = vmul.f32 %v1161_v25, %v587_v46  ;;  %v560_v50 = vadd.f32 %v559_v48, %v490_v47 }
  0xbc   : > { %v659_v51 = vadd.f32 %v1166_v28, %v631_v49  ;;  %v620_v52 = vmul.f32 %v1161_v25, %v560_v50 }
  0xbe   : > { %v683_v53 = vmax.f32 %v659_v51, 0.0  ;;  %v648_v54 = vadd.f32 %v1166_v28, %v620_v52  ;;  %v520_v55 = vpop.f32.mrf.mxu2 }
  0xbf   : > { %v589_v56 = vpop.f32.mrf.mxu3 }
  0xc0   : > { %707 = vst [vmem:[%s1175_s10 + $0x68] sm:$0xff] %v683_v53  ;;  %v672_v57 = vmax.f32 %v648_v54, 0.0  ;;  %v590_v58 = vadd.f32 %v589_v56, %v520_v55  ;;  %v492_v59 = vpop.f32.mrf.mxu0 }
  0xc1   : > { %v561_v60 = vpop.f32.mrf.mxu1 }
  0xc2   : > { %696 = vst [vmem:[%s1175_s10 + $0x10] sm:$0xff] %v672_v57  ;;  %v632_v61 = vmul.f32 %v1161_v25, %v590_v58  ;;  %v562_v62 = vadd.f32 %v561_v60, %v492_v59 }
  0xc4   : > { %v660_v63 = vadd.f32 %v1166_v28, %v632_v61  ;;  %v621_v0 = vmul.f32 %v1161_v25, %v562_v62 }
  0xc6   : > { %v684_v1 = vmax.f32 %v660_v63, 0.0  ;;  %v649_v2 = vadd.f32 %v1166_v28, %v621_v0  ;;  %v522_v3 = vpop.f32.mrf.mxu2 }
  0xc7   : > { %v591_v4 = vpop.f32.mrf.mxu3 }
  0xc8   : > { %708 = vst [vmem:[%s1175_s10 + $0x70] sm:$0xff] %v684_v1  ;;  %v673_v5 = vmax.f32 %v649_v2, 0.0  ;;  %v592_v6 = vadd.f32 %v591_v4, %v522_v3  ;;  %v495_v7 = vpop.f32.mrf.mxu0 }
  0xc9   : > { %v564_v8 = vpop.f32.mrf.mxu1 }
  0xca   : > { %697 = vst [vmem:[%s1175_s10 + $0x18] sm:$0xff] %v673_v5  ;;  %v633_v9 = vmul.f32 %v1161_v25, %v592_v6  ;;  %v565_v10 = vadd.f32 %v564_v8, %v495_v7 }
  0xcc   : > { %v661_v11 = vadd.f32 %v1166_v28, %v633_v9  ;;  %v622_v12 = vmul.f32 %v1161_v25, %v565_v10 }
  0xce   : > { %v685_v13 = vmax.f32 %v661_v11, 0.0  ;;  %v650_v14 = vadd.f32 %v1166_v28, %v622_v12  ;;  %v525_v15 = vpop.f32.mrf.mxu2 }
  0xcf   : > { %v594_v16 = vpop.f32.mrf.mxu3 }
  0xd0   : > { %709 = vst [vmem:[%s1175_s10 + $0x78] sm:$0xff] %v685_v13  ;;  %v674_v17 = vmax.f32 %v650_v14, 0.0  ;;  %v595_v18 = vadd.f32 %v594_v16, %v525_v15  ;;  %v497_v19 = vpop.f32.mrf.mxu0 }
  0xd1   : > { %v566_v20 = vpop.f32.mrf.mxu1 }
  0xd2   : > { %698 = vst [vmem:[%s1175_s10 + $0x20] sm:$0xff] %v674_v17  ;;  %v634_v21 = vmul.f32 %v1161_v25, %v595_v18  ;;  %v567_v22 = vadd.f32 %v566_v20, %v497_v19 }
  0xd4   : > { %v662_v23 = vadd.f32 %v1166_v28, %v634_v21  ;;  %v623_v24 = vmul.f32 %v1161_v25, %v567_v22 }
  0xd6   : > { %v686_v26 = vmax.f32 %v662_v23, 0.0  ;;  %v651_v27 = vadd.f32 %v1166_v28, %v623_v24  ;;  %v527_v29 = vpop.f32.mrf.mxu2 }
  0xd7   : > { %v596_v30 = vpop.f32.mrf.mxu3 }
  0xd8   : > { %710 = vst [vmem:[%s1175_s10 + $0x80] sm:$0xff] %v686_v26  ;;  %v675_v31 = vmax.f32 %v651_v27, 0.0  ;;  %v597_v32 = vadd.f32 %v596_v30, %v527_v29  ;;  %v500_v33 = vpop.f32.mrf.mxu0 }
  0xd9   : > { %v569_v34 = vpop.f32.mrf.mxu1 }
  0xda   : > { %699 = vst [vmem:[%s1175_s10 + $0x28] sm:$0xff] %v675_v31  ;;  %v635_v35 = vmul.f32 %v1161_v25, %v597_v32  ;;  %v570_v36 = vadd.f32 %v569_v34, %v500_v33 }
  0xdc   : > { %v663_v37 = vadd.f32 %v1166_v28, %v635_v35  ;;  %v624_v38 = vmul.f32 %v1161_v25, %v570_v36 }
  0xde   : > { %v687_v39 = vmax.f32 %v663_v37, 0.0  ;;  %v652_v40 = vadd.f32 %v1166_v28, %v624_v38  ;;  %v530_v41 = vpop.f32.mrf.mxu2 }
  0xdf   : > { %v599_v42 = vpop.f32.mrf.mxu3 }
  0xe0   : > { %711 = vst [vmem:[%s1175_s10 + $0x88] sm:$0xff] %v687_v39  ;;  %v676_v43 = vmax.f32 %v652_v40, 0.0  ;;  %v600_v44 = vadd.f32 %v599_v42, %v530_v41  ;;  %v502_v45 = vpop.f32.mrf.mxu0 }
  0xe1   : > { %v571_v46 = vpop.f32.mrf.mxu1 }
  0xe2   : > { %700 = vst [vmem:[%s1175_s10 + $0x30] sm:$0xff] %v676_v43  ;;  %v636_v47 = vmul.f32 %v1161_v25, %v600_v44  ;;  %v572_v48 = vadd.f32 %v571_v46, %v502_v45 }
  0xe4   : > { %v664_v49 = vadd.f32 %v1166_v28, %v636_v47  ;;  %v625_v50 = vmul.f32 %v1161_v25, %v572_v48 }
  0xe6   : > { %v688_v51 = vmax.f32 %v664_v49, 0.0  ;;  %v653_v52 = vadd.f32 %v1166_v28, %v625_v50  ;;  %v532_v53 = vpop.f32.mrf.mxu2 }
  0xe7   : > { %v601_v54 = vpop.f32.mrf.mxu3 }
  0xe8   : > { %712 = vst [vmem:[%s1175_s10 + $0x90] sm:$0xff] %v688_v51  ;;  %v677_v55 = vmax.f32 %v653_v52, 0.0  ;;  %v602_v56 = vadd.f32 %v601_v54, %v532_v53  ;;  %v505_v57 = vpop.f32.mrf.mxu0 }
  0xe9   : > { %v574_v58 = vpop.f32.mrf.mxu1 }
  0xea   : > { %701 = vst [vmem:[%s1175_s10 + $0x38] sm:$0xff] %v677_v55  ;;  %v637_v59 = vmul.f32 %v1161_v25, %v602_v56  ;;  %v575_v60 = vadd.f32 %v574_v58, %v505_v57 }
  0xec   : > { %v665_v61 = vadd.f32 %v1166_v28, %v637_v59  ;;  %v626_v62 = vmul.f32 %v1161_v25, %v575_v60 }
  0xee   : > { %v689_v63 = vmax.f32 %v665_v61, 0.0  ;;  %v654_v0 = vadd.f32 %v1166_v28, %v626_v62  ;;  %v535_v1 = vpop.f32.mrf.mxu2 }
  0xef   : > { %v604_v2 = vpop.f32.mrf.mxu3 }
  0xf0   : > { %713 = vst [vmem:[%s1175_s10 + $0x98] sm:$0xff] %v689_v63  ;;  %v678_v3 = vmax.f32 %v654_v0, 0.0  ;;  %v605_v4 = vadd.f32 %v604_v2, %v535_v1  ;;  %v507_v5 = vpop.f32.mrf.mxu0 }
  0xf1   : > { %v576_v6 = vpop.f32.mrf.mxu1 }
  0xf2   : > { %702 = vst [vmem:[%s1175_s10 + $0x40] sm:$0xff] %v678_v3  ;;  %v638_v7 = vmul.f32 %v1161_v25, %v605_v4  ;;  %v577_v8 = vadd.f32 %v576_v6, %v507_v5 }
  0xf4   : > { %v666_v9 = vadd.f32 %v1166_v28, %v638_v7  ;;  %v627_v10 = vmul.f32 %v1161_v25, %v577_v8 }
  0xf6   : > { %v690_v11 = vmax.f32 %v666_v9, 0.0  ;;  %v655_v12 = vadd.f32 %v1166_v28, %v627_v10  ;;  %v537_v13 = vpop.f32.mrf.mxu2 }
  0xf7   : > { %v606_v14 = vpop.f32.mrf.mxu3 }
  0xf8   : > { %714 = vst [vmem:[%s1175_s10 + $0xa0] sm:$0xff] %v690_v11  ;;  %v679_v15 = vmax.f32 %v655_v12, 0.0  ;;  %v607_v16 = vadd.f32 %v606_v14, %v537_v13  ;;  %v510_v17 = vpop.f32.mrf.mxu0 }
  0xf9   : > { %v579_v18 = vpop.f32.mrf.mxu1 }
  0xfa   : > { %703 = vst [vmem:[%s1175_s10 + $0x48] sm:$0xff] %v679_v15  ;;  %v639_v19 = vmul.f32 %v1161_v25, %v607_v16  ;;  %v580_v20 = vadd.f32 %v579_v18, %v510_v17 }
  0xfc   : > { %v667_v21 = vadd.f32 %v1166_v28, %v639_v19  ;;  %v628_v22 = vmul.f32 %v1161_v25, %v580_v20 }
  0xfe   : > { %v691_v23 = vmax.f32 %v667_v21, 0.0  ;;  %v656_v24 = vadd.f32 %v1166_v28, %v628_v22  ;;  %v540_v26 = vpop.f32.mrf.mxu2 }
  0xff   : > { %v609_v27 = vpop.f32.mrf.mxu3 }
 0x100   : > { %715 = vst [vmem:[%s1175_s10 + $0xa8] sm:$0xff] %v691_v23  ;;  %v680_v29 = vmax.f32 %v656_v24, 0.0  ;;  %v610_v30 = vadd.f32 %v609_v27, %v540_v26  ;;  %v512_v31 = vpop.f32.mrf.mxu0 }
 0x101   : > { %v581_v32 = vpop.f32.mrf.mxu1 }
 0x102   : > { %704 = vst [vmem:[%s1175_s10 + $0x50] sm:$0xff] %v680_v29  ;;  %v640_v33 = vmul.f32 %v1161_v25, %v610_v30  ;;  %v582_v34 = vadd.f32 %v581_v32, %v512_v31 }
 0x104   : > { %v668_v35 = vadd.f32 %v1166_v28, %v640_v33  ;;  %v629_v36 = vmul.f32 %v1161_v25, %v582_v34 }
 0x106   : > { %v692_v37 = vmax.f32 %v668_v35, 0.0  ;;  %v657_v38 = vadd.f32 %v1166_v28, %v629_v36  ;;  %v542_v39 = vpop.f32.mrf.mxu2 }
 0x107   : > { %v611_v40 = vpop.f32.mrf.mxu3 }
 0x108   : > { %716 = vst [vmem:[%s1175_s10 + $0xb0] sm:$0xff] %v692_v37  ;;  %v681_v41 = vmax.f32 %v657_v38, 0.0  ;;  %v612_v42 = vadd.f32 %v611_v40, %v542_v39 }
 0x10a   : > { %705 = vst [vmem:[%s1175_s10 + $0x58] sm:$0xff] %v681_v41  ;;  %v641_v43 = vmul.f32 %v1161_v25, %v612_v42 }
 0x10c   : > { %v669_v44 = vadd.f32 %v1166_v28, %v641_v43 }
 0x10e   : > { %v693_v45 = vmax.f32 %v669_v44, 0.0 }
 0x110   : > { %717 = vst [vmem:[%s1175_s10 + $0xb8] sm:$0xff] %v693_v45 }
 0x111 PF: > { %s14_s15 = sadd.s32 1, %s1017_s15  }
 0x112   : > { %p11_p4 = scmp.ge.s32.totalorder %s14_s15, 4  }
 0x114   :  { %13 = sbr.rel (!%p11_p4) target bundleno = 1 (0x1), region = 66 }

// kernel: my_net_res50_forward.30
= control target key start
LH: loop header
LB: loop body
LE: loop exit
PB: predicated region body
PF: predicated region fallthrough
CT: control target
= control target key end

     0   :  { %s524_s15 = smov 0   ;;  %s575_s0 = inlined_call_operand.vmem [shape: bf16[96,128], index: 0, kind: input, shape index: {}]   ;;  %s576_s1 = inlined_call_operand.vmem [shape: bf16[128,128], index: 1, kind: input, shape index: {}]   ;;  %s577_s2 = inlined_call_operand.vmem [shape: f32[1,128], index: 2, kind: input, shape index: {}]   ;;  %s578_s3 = inlined_call_operand.vmem [shape: f32[1,128], index: 3, kind: input, shape index: {}]   ;;  %s579_s4 = inlined_call_operand.vmem [shape: f32[96,128], index: 4, kind: output, shape index: {}]  }
   0x1 LB: > { %s401_s16 = sadd.s32 4294967295, %s497_s15   ;;  %p405_p0 = scmp.ge.s32.totalorder %s497_s15, 1  ;;  %s497_s15 = sphi %s524_s15, %s14_s15  }
   0x2   : > { %p163_p1 = scmp.lt.s32.totalorder %s497_s15, 3 }
   0x4   : > { %p164_p2 = pnand %p405_p0, %p163_p1 }
   0x5   : > { %s189_s25 = smul.u32 (!%p164_p2), 6, %s401_s16 }
   0x6   : > { %167 = sbr.rel (%p164_p2) target bundleno = 191 (0xbf), region = 36 }
   0x7   : > { %p190_p3 = scmp.lt.s32.totalorder (!%p164_p2), %s189_s25, 11 }
   0xb   : > { %v464_v0 = vld [vmem:[%s576_s1 + $0x38] sm:$0xff]  ;;  %v463_v1 = vld [vmem:[%s576_s1 + $0x30] sm:$0xff]  ;;  %v462_v2 = vld [vmem:[%s576_s1 + $0x28] sm:$0xff]  ;;  %s581_s25 = smov (!%p190_p3, %s189_s25), 11 }
   0xc   : > { %289 = vmatpush.bf16.msra.mxu0 %v464_v0  ;;  %465 = vmatpush.bf16.msra.mxu1 %v464_v0  ;;  %v461_v3 = vld [vmem:[%s576_s1 + $0x20] sm:$0xff]  ;;  %v460_v4 = vld [vmem:[%s576_s1 + $0x18] sm:$0xff]  ;;  %v459_v5 = vld [vmem:[%s576_s1 + $0x10] sm:$0xff]  ;;  %s406_s6 = sshll.u32 %s581_s25, 2  ;;  %s407_s17 = sshll.u32 %s581_s25, 3 }
   0xd   : > { %466 = vmatpush.bf16.msra.mxu2 %v464_v0  ;;  %v458_v6 = vld [vmem:[%s576_s1 + $0x8] sm:$0xff]  ;;  %v457_v7 = vld [vmem:[%s576_s1] sm:$0xff]  ;;  %s193_s11 = scalar_lea.vmem %s575_s0, %s406_s6  ;;  %s199_s20 = scalar_lea.vmem %s579_s4, %s407_s17 }
   0xe   : > { %v454_v8 = vld [vmem:[%s193_s11] sm:$0xff]  ;;  %v455_v9 = vld [vmem:[%s193_s11 + $0x8] sm:$0xff]  ;;  %v456_v10 = vld [vmem:[%s193_s11 + $0x10] sm:$0xff] }
   0xf   : > { %v489_v11 = vld [vmem:[%s577_s2] ss:$0 sm:$0xff] }
  0x10   : > { %290 = vmatpush.bf16.msra.mxu0 %v463_v1  ;;  %467 = vmatpush.bf16.msra.mxu1 %v463_v1  ;;  %v490_v12 = vld [vmem:[%s578_s3] ss:$0 sm:$0xff] }
  0x11   : > { %468 = vmatpush.bf16.msra.mxu2 %v463_v1 }
  0x14   : > { %291 = vmatpush.bf16.msra.mxu0 %v462_v2  ;;  %469 = vmatpush.bf16.msra.mxu1 %v462_v2 }
  0x15   : > { %470 = vmatpush.bf16.msra.mxu2 %v462_v2 }
  0x18   : > { %292 = vmatpush.bf16.msra.mxu0 %v461_v3  ;;  %471 = vmatpush.bf16.msra.mxu1 %v461_v3 }
  0x19   : > { %472 = vmatpush.bf16.msra.mxu2 %v461_v3 }
  0x1c   : > { %293 = vmatpush.bf16.msra.mxu0 %v460_v4  ;;  %473 = vmatpush.bf16.msra.mxu1 %v460_v4 }
  0x1d   : > { %474 = vmatpush.bf16.msra.mxu2 %v460_v4 }
  0x20   : > { %294 = vmatpush.bf16.msra.mxu0 %v459_v5  ;;  %475 = vmatpush.bf16.msra.mxu1 %v459_v5 }
  0x21   : > { %476 = vmatpush.bf16.msra.mxu2 %v459_v5 }
  0x24   : > { %295 = vmatpush.bf16.msra.mxu0 %v458_v6  ;;  %477 = vmatpush.bf16.msra.mxu1 %v458_v6 }
  0x25   : > { %478 = vmatpush.bf16.msra.mxu2 %v458_v6 }
  0x28   : > { %296 = vmatpush.bf16.msra.mxu0 %v457_v7  ;;  %479 = vmatpush.bf16.msra.mxu1 %v457_v7 }
  0x29   : > { %480 = vmatpush.bf16.msra.mxu2 %v457_v7 }
  0x2b   : > { %297 = vmatmul.bf16.vlgmr.msra.gmra.mxu0 %v454_v8  ;;  %302 = vmatmul.bf16.vlgmr.msra.gmra.mxu1 %v455_v9 }
  0x2c   : > { %307 = vmatmul.bf16.vlgmr.msra.gmra.mxu2 %v456_v10 }
  0xa8   : > { %v298_v13 = vpop.f32.mrf.mxu0  ;;  %v303_v14 = vpop.f32.mrf.mxu1 }
  0xa9   : > { %v317_v15 = vmul.f32 %v489_v11, %v298_v13  ;;  %v319_v16 = vmul.f32 %v489_v11, %v303_v14 }
  0xab   : > { %v327_v17 = vadd.f32 %v490_v12, %v317_v15  ;;  %v329_v18 = vadd.f32 %v490_v12, %v319_v16 }
  0xad   : > { %v333_v19 = vmax.f32 %v327_v17, 0.0  ;;  %v335_v20 = vmax.f32 %v329_v18, 0.0 }
  0xaf   : > { %339 = vst [vmem:[%s199_s20] sm:$0xff] %v333_v19  ;;  %v308_v21 = vpop.f32.mrf.mxu2 }
  0xb0   : > { %341 = vst [vmem:[%s199_s20 + $0x10] sm:$0xff] %v335_v20  ;;  %v321_v22 = vmul.f32 %v489_v11, %v308_v21  ;;  %v300_v23 = vpop.f32.mrf.mxu0  ;;  %v305_v24 = vpop.f32.mrf.mxu1 }
  0xb1   : > { %v318_v25 = vmul.f32 %v489_v11, %v300_v23  ;;  %v320_v26 = vmul.f32 %v489_v11, %v305_v24 }
  0xb2   : > { %v331_v27 = vadd.f32 %v490_v12, %v321_v22 }
  0xb3   : > { %v328_v28 = vadd.f32 %v490_v12, %v318_v25  ;;  %v330_v29 = vadd.f32 %v490_v12, %v320_v26 }
  0xb4   : > { %v337_v30 = vmax.f32 %v331_v27, 0.0 }
  0xb5   : > { %v334_v31 = vmax.f32 %v328_v28, 0.0  ;;  %v336_v32 = vmax.f32 %v330_v29, 0.0 }
  0xb6   : > { %343 = vst [vmem:[%s199_s20 + $0x20] sm:$0xff] %v337_v30 }
  0xb7   : > { %340 = vst [vmem:[%s199_s20 + $0x8] sm:$0xff] %v334_v31  ;;  %v310_v33 = vpop.f32.mrf.mxu2 }
  0xb8   : > { %342 = vst [vmem:[%s199_s20 + $0x18] sm:$0xff] %v336_v32  ;;  %v322_v34 = vmul.f32 %v489_v11, %v310_v33 }
  0xba   : > { %v332_v35 = vadd.f32 %v490_v12, %v322_v34 }
  0xbc   : > { %v338_v36 = vmax.f32 %v332_v35, 0.0 }
  0xbe   : > { %344 = vst [vmem:[%s199_s20 + $0x28] sm:$0xff] %v338_v36 }
  0xbf PF: > { %s14_s15 = sadd.s32 1, %s497_s15  }
  0xc0   : > { %p11_p4 = scmp.ge.s32.totalorder %s14_s15, 4  }
  0xc2   :  { %13 = sbr.rel (!%p11_p4) target bundleno = 1 (0x1), region = 66 }

// kernel: my_net_res50_forward.29
= control target key start
LH: loop header
LB: loop body
LE: loop exit
PB: predicated region body
PF: predicated region fallthrough
CT: control target
= control target key end

     0   :  { %s1347_s0 = inlined_call_operand.vmem [shape: f32[8,13,5,128], index: 0, kind: input, shape index: {}]   ;;  %s1348_s1 = inlined_call_operand.vmem [shape: f32[2,12,4,128], index: 1, kind: output, shape index: {}]  }
   0x1   :  { %v8_v0 = vld [vmem:[%s1347_s0] sm:$0xf]  ;;  %v449_v1 = vld [vmem:[%s1347_s0 + $0xd0] sm:$0xf]  ;;  %v9_v6 = vld [vmem:[%s1347_s0 + $0x8] sm:$0xf] }
   0x2   :  { %v81_v2 = vld [vmem:[%s1347_s0 + $0x1] sm:$0xf]  ;;  %v57_v3 = vmax.f32 %v8_v0, %v449_v1  ;;  %v450_v7 = vld [vmem:[%s1347_s0 + $0xd8] sm:$0xf]  ;;  %v82_v8 = vld [vmem:[%s1347_s0 + $0x9] sm:$0xf] }
   0x3   :  { %v473_v4 = vld [vmem:[%s1347_s0 + $0x1a0] sm:$0xf]  ;;  %v497_v9 = vld [vmem:[%s1347_s0 + $0x270] sm:$0xf]  ;;  %v58_v10 = vmax.f32 %v9_v6, %v450_v7  ;;  %v474_v13 = vld [vmem:[%s1347_s0 + $0x1a8] sm:$0xf] }
   0x4   :  { %v105_v5 = vmax.f32 %v57_v3, %v81_v2  ;;  %v521_v12 = vld [vmem:[%s1347_s0 + $0x1a1] sm:$0xf]  ;;  %v10_v15 = vld [vmem:[%s1347_s0 + $0x10] sm:$0xf]  ;;  %v545_v19 = vld [vmem:[%s1347_s0 + $0x8] sm:$0xf] }
   0x5   :  { %v106_v14 = vmax.f32 %v58_v10, %v82_v8  ;;  %v451_v16 = vld [vmem:[%s1347_s0 + $0xe0] sm:$0xf]  ;;  %v83_v17 = vld [vmem:[%s1347_s0 + $0x11] sm:$0xf]  ;;  %v498_v20 = vld [vmem:[%s1347_s0 + $0x278] sm:$0xf] }
   0x6   :  { %v154_v11 = vmax.f32 %v105_v5, %v473_v4  ;;  %v59_v21 = vmax.f32 %v10_v15, %v451_v16  ;;  %v569_v22 = vld [vmem:[%s1347_s0 + $0xd8] sm:$0xf]  ;;  %v522_v24 = vld [vmem:[%s1347_s0 + $0x1a9] sm:$0xf]  ;;  %v475_v25 = vld [vmem:[%s1347_s0 + $0x1b0] sm:$0xf] }
   0x7   :  { %v155_v23 = vmax.f32 %v106_v14, %v474_v13  ;;  %v11_v28 = vld [vmem:[%s1347_s0 + $0x18] sm:$0xf]  ;;  %v452_v29 = vld [vmem:[%s1347_s0 + $0xe8] sm:$0xf]  ;;  %v546_v33 = vld [vmem:[%s1347_s0 + $0x10] sm:$0xf] }
   0x8   :  { %v203_v18 = vmax.f32 %v154_v11, %v497_v9  ;;  %v107_v27 = vmax.f32 %v59_v21, %v83_v17  ;;  %v84_v30 = vld [vmem:[%s1347_s0 + $0x19] sm:$0xf]  ;;  %v593_v31 = vld [vmem:[%s1347_s0 + $0x9] sm:$0xf]  ;;  %v499_v34 = vld [vmem:[%s1347_s0 + $0x280] sm:$0xf]  ;;  %v60_v35 = vmax.f32 %v11_v28, %v452_v29 }
   0x9   :  { %v204_v32 = vmax.f32 %v155_v23, %v498_v20  ;;  %v570_v37 = vld [vmem:[%s1347_s0 + $0xe0] sm:$0xf]  ;;  %v523_v39 = vld [vmem:[%s1347_s0 + $0x1b1] sm:$0xf]  ;;  %v476_v40 = vld [vmem:[%s1347_s0 + $0x1b8] sm:$0xf] }
   0xa   :  { %v251_v26 = vmax.f32 %v203_v18, %v521_v12  ;;  %v156_v38 = vmax.f32 %v107_v27, %v475_v25  ;;  %v108_v42 = vmax.f32 %v60_v35, %v84_v30  ;;  %v12_v43 = vld [vmem:[%s1347_s0 + $0x20] sm:$0xf]  ;;  %v453_v44 = vld [vmem:[%s1347_s0 + $0xf0] sm:$0xf]  ;;  %v547_v49 = vld [vmem:[%s1347_s0 + $0x18] sm:$0xf] }
   0xb   :  { %v252_v41 = vmax.f32 %v204_v32, %v522_v24  ;;  %v85_v45 = vld [vmem:[%s1347_s0 + $0x21] sm:$0xf]  ;;  %v594_v47 = vld [vmem:[%s1347_s0 + $0x11] sm:$0xf]  ;;  %v500_v50 = vld [vmem:[%s1347_s0 + $0x288] sm:$0xf]  ;;  %v61_v51 = vmax.f32 %v12_v43, %v453_v44 }
   0xc   :  { %v300_v36 = vmax.f32 %v251_v26, %v545_v19  ;;  %v205_v48 = vmax.f32 %v156_v38, %v499_v34  ;;  %v571_v53 = vld [vmem:[%s1347_s0 + $0xe8] sm:$0xf]  ;;  %v157_v54 = vmax.f32 %v108_v42, %v476_v40  ;;  %v524_v55 = vld [vmem:[%s1347_s0 + $0x1b9] sm:$0xf]  ;;  %v477_v56 = vld [vmem:[%s1347_s0 + $0x1c0] sm:$0xf] }
   0xd   :  { %v301_v52 = vmax.f32 %v252_v41, %v546_v33  ;;  %v109_v59 = vmax.f32 %v61_v51, %v85_v45  ;;  %v13_v60 = vld [vmem:[%s1347_s0 + $0x28] sm:$0xf]  ;;  %v454_v61 = vld [vmem:[%s1347_s0 + $0xf8] sm:$0xf]  ;;  %v548_v2 = vld [vmem:[%s1347_s0 + $0x20] sm:$0xf] }
   0xe   :  { %v349_v46 = vmax.f32 %v300_v36, %v569_v22  ;;  %v253_v58 = vmax.f32 %v205_v48, %v523_v39  ;;  %v86_v62 = vld [vmem:[%s1347_s0 + $0x29] sm:$0xf]  ;;  %v595_v0 = vld [vmem:[%s1347_s0 + $0x19] sm:$0xf]  ;;  %v206_v1 = vmax.f32 %v157_v54, %v500_v50  ;;  %v501_v3 = vld [vmem:[%s1347_s0 + $0x290] sm:$0xf]  ;;  %v62_v4 = vmax.f32 %v13_v60, %v454_v61 }
   0xf   :  { %v350_v63 = vmax.f32 %v301_v52, %v570_v37  ;;  %v572_v6 = vld [vmem:[%s1347_s0 + $0xf0] sm:$0xf]  ;;  %v158_v7 = vmax.f32 %v109_v59, %v477_v56  ;;  %v478_v8 = vld [vmem:[%s1347_s0 + $0x1c8] sm:$0xf]  ;;  %v525_v11 = vld [vmem:[%s1347_s0 + $0x1c1] sm:$0xf] }
  0x10   :  { %v397_v57 = vmax.f32 %v349_v46, %v593_v31  ;;  %v302_v5 = vmax.f32 %v253_v58, %v547_v49  ;;  %v254_v10 = vmax.f32 %v206_v1, %v524_v55  ;;  %v110_v12 = vmax.f32 %v62_v4, %v86_v62  ;;  %v14_v13 = vld [vmem:[%s1347_s0 + $0x30] sm:$0xf]  ;;  %v455_v14 = vld [vmem:[%s1347_s0 + $0x100] sm:$0xf]  ;;  %v502_v18 = vld [vmem:[%s1347_s0 + $0x298] sm:$0xf] }
  0x11   :  { %v398_v9 = vmax.f32 %v350_v63, %v594_v47  ;;  %v596_v16 = vld [vmem:[%s1347_s0 + $0x21] sm:$0xf]  ;;  %v207_v17 = vmax.f32 %v158_v7, %v501_v3  ;;  %v63_v19 = vmax.f32 %v14_v13, %v455_v14  ;;  %v87_v20 = vld [vmem:[%s1347_s0 + $0x31] sm:$0xf]  ;;  %v549_v22 = vld [vmem:[%s1347_s0 + $0x28] sm:$0xf] }
  0x12   :  { %421 = vst [vmem:[%s1348_s1] sm:$0xf] %v397_v57  ;;  %v351_v15 = vmax.f32 %v302_v5, %v571_v53  ;;  %v303_v21 = vmax.f32 %v254_v10, %v548_v2  ;;  %v159_v23 = vmax.f32 %v110_v12, %v478_v8  ;;  %v479_v24 = vld [vmem:[%s1347_s0 + $0x1d0] sm:$0xf]  ;;  %v573_v27 = vld [vmem:[%s1347_s0 + $0xf8] sm:$0xf] }
  0x13   :  { %422 = vst [vmem:[%s1348_s1 + $0x4] sm:$0xf] %v398_v9  ;;  %v255_v26 = vmax.f32 %v207_v17, %v525_v11  ;;  %v526_v28 = vld [vmem:[%s1347_s0 + $0x1c9] sm:$0xf]  ;;  %v111_v29 = vmax.f32 %v63_v19, %v87_v20  ;;  %v15_v30 = vld [vmem:[%s1347_s0 + $0x38] sm:$0xf] }
  0x14   :  { %v399_v25 = vmax.f32 %v351_v15, %v595_v0  ;;  %v352_v31 = vmax.f32 %v303_v21, %v572_v6  ;;  %v208_v32 = vmax.f32 %v159_v23, %v502_v18  ;;  %v503_v33 = vld [vmem:[%s1347_s0 + $0x2a0] sm:$0xf]  ;;  %v456_v34 = vld [vmem:[%s1347_s0 + $0x108] sm:$0xf]  ;;  %v88_v35 = vld [vmem:[%s1347_s0 + $0x39] sm:$0xf] }
  0x15   :  { %v304_v36 = vmax.f32 %v255_v26, %v549_v22  ;;  %v597_v37 = vld [vmem:[%s1347_s0 + $0x29] sm:$0xf]  ;;  %v550_v38 = vld [vmem:[%s1347_s0 + $0x30] sm:$0xf]  ;;  %v160_v39 = vmax.f32 %v111_v29, %v479_v24  ;;  %v64_v40 = vmax.f32 %v15_v30, %v456_v34  ;;  %v574_v43 = vld [vmem:[%s1347_s0 + $0x100] sm:$0xf] }
  0x16   :  { %423 = vst [vmem:[%s1348_s1 + $0x8] sm:$0xf] %v399_v25  ;;  %v400_v41 = vmax.f32 %v352_v31, %v596_v16  ;;  %v256_v42 = vmax.f32 %v208_v32, %v526_v28  ;;  %v527_v44 = vld [vmem:[%s1347_s0 + $0x1d1] sm:$0xf]  ;;  %v480_v45 = vld [vmem:[%s1347_s0 + $0x1d8] sm:$0xf] }
  0x17   :  { %v353_v46 = vmax.f32 %v304_v36, %v573_v27  ;;  %v209_v47 = vmax.f32 %v160_v39, %v503_v33  ;;  %v112_v48 = vmax.f32 %v64_v40, %v88_v35  ;;  %v16_v49 = vld [vmem:[%s1347_s0 + $0x40] sm:$0xf]  ;;  %v457_v50 = vld [vmem:[%s1347_s0 + $0x110] sm:$0xf]  ;;  %v551_v53 = vld [vmem:[%s1347_s0 + $0x38] sm:$0xf] }
  0x18   :  { %v89_v51 = vld [vmem:[%s1347_s0 + $0x41] sm:$0xf]  ;;  %424 = vst [vmem:[%s1348_s1 + $0xc] sm:$0xf] %v400_v41  ;;  %v305_v52 = vmax.f32 %v256_v42, %v550_v38  ;;  %v504_v54 = vld [vmem:[%s1347_s0 + $0x2a8] sm:$0xf]  ;;  %v65_v55 = vmax.f32 %v16_v49, %v457_v50 }
  0x19   :  { %v401_v56 = vmax.f32 %v353_v46, %v597_v37  ;;  %v598_v57 = vld [vmem:[%s1347_s0 + $0x31] sm:$0xf]  ;;  %v257_v58 = vmax.f32 %v209_v47, %v527_v44  ;;  %v575_v59 = vld [vmem:[%s1347_s0 + $0x108] sm:$0xf]  ;;  %v161_v60 = vmax.f32 %v112_v48, %v480_v45  ;;  %v481_v61 = vld [vmem:[%s1347_s0 + $0x1e0] sm:$0xf] }
  0x1a   :  { %v354_v62 = vmax.f32 %v305_v52, %v574_v43  ;;  %v599_v63 = vld [vmem:[%s1347_s0 + $0x39] sm:$0xf]  ;;  %v113_v1 = vmax.f32 %v65_v55, %v89_v51  ;;  %v17_v2 = vld [vmem:[%s1347_s0 + $0x48] sm:$0xf]  ;;  %v505_v6 = vld [vmem:[%s1347_s0 + $0x2b0] sm:$0xf] }
  0x1b   :  { %v528_v0 = vld [vmem:[%s1347_s0 + $0x1d9] sm:$0xf]  ;;  %425 = vst [vmem:[%s1348_s1 + $0x10] sm:$0xf] %v401_v56  ;;  %v306_v4 = vmax.f32 %v257_v58, %v551_v53  ;;  %v210_v5 = vmax.f32 %v161_v60, %v504_v54  ;;  %v90_v8 = vld [vmem:[%s1347_s0 + $0x49] sm:$0xf] }
  0x1c   :  { %v458_v3 = vld [vmem:[%s1347_s0 + $0x118] sm:$0xf]  ;;  %v402_v9 = vmax.f32 %v354_v62, %v598_v57  ;;  %v552_v10 = vld [vmem:[%s1347_s0 + $0x40] sm:$0xf]  ;;  %v576_v11 = vld [vmem:[%s1347_s0 + $0x110] sm:$0xf]  ;;  %v162_v12 = vmax.f32 %v113_v1, %v481_v61 }
  0x1d   :  { %v66_v7 = vmax.f32 %v17_v2, %v458_v3  ;;  %v482_v13 = vld [vmem:[%s1347_s0 + $0x1e8] sm:$0xf]  ;;  %v355_v14 = vmax.f32 %v306_v4, %v575_v59  ;;  %v258_v15 = vmax.f32 %v210_v5, %v528_v0  ;;  %v529_v16 = vld [vmem:[%s1347_s0 + $0x1e1] sm:$0xf]  ;;  %v506_v18 = vld [vmem:[%s1347_s0 + $0x2b8] sm:$0xf] }
  0x1e   :  { %v18_v19 = vld [vmem:[%s1347_s0 + $0x50] sm:$0xf]  ;;  %426 = vst [vmem:[%s1348_s1 + $0x14] sm:$0xf] %v402_v9  ;;  %v211_v20 = vmax.f32 %v162_v12, %v505_v6  ;;  %v459_v21 = vld [vmem:[%s1347_s0 + $0x120] sm:$0xf] }
  0x1f   :  { %v114_v17 = vmax.f32 %v66_v7, %v90_v8  ;;  %v91_v22 = vld [vmem:[%s1347_s0 + $0x51] sm:$0xf]  ;;  %v403_v23 = vmax.f32 %v355_v14, %v599_v63  ;;  %v307_v24 = vmax.f32 %v258_v15, %v552_v10  ;;  %v600_v25 = vld [vmem:[%s1347_s0 + $0x41] sm:$0xf]  ;;  %v553_v26 = vld [vmem:[%s1347_s0 + $0x48] sm:$0xf]  ;;  %v67_v28 = vmax.f32 %v18_v19, %v459_v21 }
  0x20   :  { %v259_v29 = vmax.f32 %v211_v20, %v529_v16  ;;  %v577_v30 = vld [vmem:[%s1347_s0 + $0x118] sm:$0xf]  ;;  %v530_v31 = vld [vmem:[%s1347_s0 + $0x1e9] sm:$0xf]  ;;  %v483_v32 = vld [vmem:[%s1347_s0 + $0x1f0] sm:$0xf] }
  0x21   :  { %v163_v27 = vmax.f32 %v114_v17, %v482_v13  ;;  %427 = vst [vmem:[%s1348_s1 + $0x18] sm:$0xf] %v403_v23  ;;  %v356_v33 = vmax.f32 %v307_v24, %v576_v11  ;;  %v115_v35 = vmax.f32 %v67_v28, %v91_v22  ;;  %v19_v36 = vld [vmem:[%s1347_s0 + $0x58] sm:$0xf]  ;;  %v460_v37 = vld [vmem:[%s1347_s0 + $0x128] sm:$0xf] }
  0x22   :  { %v308_v38 = vmax.f32 %v259_v29, %v553_v26  ;;  %v554_v39 = vld [vmem:[%s1347_s0 + $0x50] sm:$0xf]  ;;  %v507_v40 = vld [vmem:[%s1347_s0 + $0x2c0] sm:$0xf]  ;;  %v68_v41 = vmax.f32 %v19_v36, %v460_v37  ;;  %v92_v42 = vld [vmem:[%s1347_s0 + $0x59] sm:$0xf] }
  0x23   :  { %v212_v34 = vmax.f32 %v163_v27, %v506_v18  ;;  %v404_v43 = vmax.f32 %v356_v33, %v600_v25  ;;  %v601_v44 = vld [vmem:[%s1347_s0 + $0x49] sm:$0xf]  ;;  %v578_v46 = vld [vmem:[%s1347_s0 + $0x120] sm:$0xf]  ;;  %v164_v47 = vmax.f32 %v115_v35, %v483_v32  ;;  %v484_v48 = vld [vmem:[%s1347_s0 + $0x1f8] sm:$0xf] }
  0x24   :  { %v357_v49 = vmax.f32 %v308_v38, %v577_v30  ;;  %v602_v50 = vld [vmem:[%s1347_s0 + $0x51] sm:$0xf]  ;;  %v116_v52 = vmax.f32 %v68_v41, %v92_v42  ;;  %v20_v53 = vld [vmem:[%s1347_s0 + $0x68] sm:$0xf]  ;;  %v461_v54 = vld [vmem:[%s1347_s0 + $0x138] sm:$0xf] }
  0x25   :  { %v260_v45 = vmax.f32 %v212_v34, %v530_v31  ;;  %v531_v51 = vld [vmem:[%s1347_s0 + $0x1f1] sm:$0xf]  ;;  %428 = vst [vmem:[%s1348_s1 + $0x1c] sm:$0xf] %v404_v43  ;;  %v213_v56 = vmax.f32 %v164_v47, %v507_v40  ;;  %v508_v57 = vld [vmem:[%s1347_s0 + $0x2c8] sm:$0xf]  ;;  %v69_v58 = vmax.f32 %v20_v53, %v461_v54 }
  0x26   :  { %v93_v59 = vld [vmem:[%s1347_s0 + $0x69] sm:$0xf]  ;;  %v405_v60 = vmax.f32 %v357_v49, %v601_v44  ;;  %v555_v61 = vld [vmem:[%s1347_s0 + $0x58] sm:$0xf]  ;;  %v165_v63 = vmax.f32 %v116_v52, %v484_v48  ;;  %v21_v6 = vld [vmem:[%s1347_s0 + $0x70] sm:$0xf] }
  0x27   :  { %v309_v55 = vmax.f32 %v260_v45, %v554_v39  ;;  %v579_v62 = vld [vmem:[%s1347_s0 + $0x128] sm:$0xf]  ;;  %v261_v2 = vmax.f32 %v213_v56, %v531_v51  ;;  %v532_v3 = vld [vmem:[%s1347_s0 + $0x1f9] sm:$0xf]  ;;  %v117_v4 = vmax.f32 %v69_v58, %v93_v59  ;;  %v462_v8 = vld [vmem:[%s1347_s0 + $0x140] sm:$0xf] }
  0x28   :  { %v485_v0 = vld [vmem:[%s1347_s0 + $0x208] sm:$0xf]  ;;  %v509_v5 = vld [vmem:[%s1347_s0 + $0x2d8] sm:$0xf]  ;;  %429 = vst [vmem:[%s1348_s1 + $0x20] sm:$0xf] %v405_v60  ;;  %v214_v7 = vmax.f32 %v165_v63, %v508_v57  ;;  %v70_v15 = vmax.f32 %v21_v6, %v462_v8 }
  0x29   :  { %v358_v1 = vmax.f32 %v309_v55, %v578_v46  ;;  %v94_v9 = vld [vmem:[%s1347_s0 + $0x71] sm:$0xf]  ;;  %v310_v11 = vmax.f32 %v261_v2, %v555_v61  ;;  %v603_v12 = vld [vmem:[%s1347_s0 + $0x59] sm:$0xf]  ;;  %v556_v13 = vld [vmem:[%s1347_s0 + $0x60] sm:$0xf]  ;;  %v166_v14 = vmax.f32 %v117_v4, %v485_v0 }
  0x2a   :  { %v262_v16 = vmax.f32 %v214_v7, %v532_v3  ;;  %v580_v17 = vld [vmem:[%s1347_s0 + $0x130] sm:$0xf]  ;;  %v533_v18 = vld [vmem:[%s1347_s0 + $0x209] sm:$0xf]  ;;  %v118_v22 = vmax.f32 %v70_v15, %v94_v9  ;;  %v22_v23 = vld [vmem:[%s1347_s0 + $0x78] sm:$0xf] }
  0x2b   :  { %v406_v10 = vmax.f32 %v358_v1, %v602_v50  ;;  %v486_v19 = vld [vmem:[%s1347_s0 + $0x210] sm:$0xf]  ;;  %v359_v20 = vmax.f32 %v310_v11, %v579_v62  ;;  %v215_v21 = vmax.f32 %v166_v14, %v509_v5  ;;  %v463_v24 = vld [vmem:[%s1347_s0 + $0x148] sm:$0xf]  ;;  %v510_v27 = vld [vmem:[%s1347_s0 + $0x2e0] sm:$0xf] }
  0x2c   :  { %v311_v25 = vmax.f32 %v262_v16, %v556_v13  ;;  %v557_v26 = vld [vmem:[%s1347_s0 + $0x70] sm:$0xf]  ;;  %v71_v28 = vmax.f32 %v22_v23, %v463_v24  ;;  %v95_v29 = vld [vmem:[%s1347_s0 + $0x79] sm:$0xf]  ;;  %v604_v31 = vld [vmem:[%s1347_s0 + $0x61] sm:$0xf]  ;;  %v167_v34 = vmax.f32 %v118_v22, %v486_v19 }
  0x2d   :  { %430 = vst [vmem:[%s1348_s1 + $0x24] sm:$0xf] %v406_v10  ;;  %v407_v30 = vmax.f32 %v359_v20, %v603_v12  ;;  %v263_v32 = vmax.f32 %v215_v21, %v533_v18  ;;  %v581_v33 = vld [vmem:[%s1347_s0 + $0x140] sm:$0xf]  ;;  %v487_v35 = vld [vmem:[%s1347_s0 + $0x218] sm:$0xf] }
  0x2e   :  { %v360_v36 = vmax.f32 %v311_v25, %v580_v17  ;;  %v605_v37 = vld [vmem:[%s1347_s0 + $0x71] sm:$0xf]  ;;  %v119_v39 = vmax.f32 %v71_v28, %v95_v29  ;;  %v23_v40 = vld [vmem:[%s1347_s0 + $0x80] sm:$0xf]  ;;  %v216_v43 = vmax.f32 %v167_v34, %v510_v27  ;;  %v511_v44 = vld [vmem:[%s1347_s0 + $0x2e8] sm:$0xf] }
  0x2f   :  { %v534_v38 = vld [vmem:[%s1347_s0 + $0x211] sm:$0xf]  ;;  %431 = vst [vmem:[%s1348_s1 + $0x28] sm:$0xf] %v407_v30  ;;  %v312_v42 = vmax.f32 %v263_v32, %v557_v26  ;;  %v96_v46 = vld [vmem:[%s1347_s0 + $0x81] sm:$0xf] }
  0x30   :  { %v464_v41 = vld [vmem:[%s1347_s0 + $0x150] sm:$0xf]  ;;  %v408_v47 = vmax.f32 %v360_v36, %v604_v31  ;;  %v558_v48 = vld [vmem:[%s1347_s0 + $0x78] sm:$0xf]  ;;  %v582_v49 = vld [vmem:[%s1347_s0 + $0x148] sm:$0xf]  ;;  %v168_v50 = vmax.f32 %v119_v39, %v487_v35  ;;  %v264_v53 = vmax.f32 %v216_v43, %v534_v38 }
  0x31   :  { %v72_v45 = vmax.f32 %v23_v40, %v464_v41  ;;  %v488_v51 = vld [vmem:[%s1347_s0 + $0x220] sm:$0xf]  ;;  %v361_v52 = vmax.f32 %v312_v42, %v581_v33  ;;  %v535_v54 = vld [vmem:[%s1347_s0 + $0x219] sm:$0xf]  ;;  %v512_v56 = vld [vmem:[%s1347_s0 + $0x2f0] sm:$0xf] }
  0x32   :  { %v24_v57 = vld [vmem:[%s1347_s0 + $0x88] sm:$0xf]  ;;  %432 = vst [vmem:[%s1348_s1 + $0x2c] sm:$0xf] %v408_v47  ;;  %v217_v58 = vmax.f32 %v168_v50, %v511_v44  ;;  %v465_v59 = vld [vmem:[%s1347_s0 + $0x158] sm:$0xf]  ;;  %v313_v62 = vmax.f32 %v264_v53, %v558_v48 }
  0x33   :  { %v120_v55 = vmax.f32 %v72_v45, %v96_v46  ;;  %v97_v60 = vld [vmem:[%s1347_s0 + $0x89] sm:$0xf]  ;;  %v409_v61 = vmax.f32 %v361_v52, %v605_v37  ;;  %v606_v63 = vld [vmem:[%s1347_s0 + $0x79] sm:$0xf]  ;;  %v559_v0 = vld [vmem:[%s1347_s0 + $0x80] sm:$0xf]  ;;  %v73_v2 = vmax.f32 %v24_v57, %v465_v59 }
  0x34   :  { %v265_v3 = vmax.f32 %v217_v58, %v535_v54  ;;  %v583_v4 = vld [vmem:[%s1347_s0 + $0x150] sm:$0xf]  ;;  %v536_v5 = vld [vmem:[%s1347_s0 + $0x221] sm:$0xf]  ;;  %v489_v6 = vld [vmem:[%s1347_s0 + $0x228] sm:$0xf]  ;;  %v362_v7 = vmax.f32 %v313_v62, %v582_v49 }
  0x35   :  { %v169_v1 = vmax.f32 %v120_v55, %v488_v51  ;;  %433 = vst [vmem:[%s1348_s1 + $0x30] sm:$0xf] %v409_v61  ;;  %v121_v9 = vmax.f32 %v73_v2, %v97_v60  ;;  %v25_v10 = vld [vmem:[%s1347_s0 + $0x90] sm:$0xf]  ;;  %v466_v11 = vld [vmem:[%s1347_s0 + $0x160] sm:$0xf] }
  0x36   :  { %v314_v12 = vmax.f32 %v265_v3, %v559_v0  ;;  %v560_v13 = vld [vmem:[%s1347_s0 + $0x88] sm:$0xf]  ;;  %v513_v14 = vld [vmem:[%s1347_s0 + $0x2f8] sm:$0xf]  ;;  %v74_v15 = vmax.f32 %v25_v10, %v466_v11  ;;  %v98_v16 = vld [vmem:[%s1347_s0 + $0x91] sm:$0xf]  ;;  %v410_v17 = vmax.f32 %v362_v7, %v606_v63 }
  0x37   :  { %v218_v8 = vmax.f32 %v169_v1, %v512_v56  ;;  %v607_v18 = vld [vmem:[%s1347_s0 + $0x81] sm:$0xf]  ;;  %v584_v20 = vld [vmem:[%s1347_s0 + $0x158] sm:$0xf]  ;;  %v170_v21 = vmax.f32 %v121_v9, %v489_v6  ;;  %v490_v22 = vld [vmem:[%s1347_s0 + $0x230] sm:$0xf] }
  0x38   :  { %v363_v23 = vmax.f32 %v314_v12, %v583_v4  ;;  %v608_v24 = vld [vmem:[%s1347_s0 + $0x89] sm:$0xf]  ;;  %v122_v26 = vmax.f32 %v74_v15, %v98_v16  ;;  %v26_v27 = vld [vmem:[%s1347_s0 + $0x98] sm:$0xf]  ;;  %434 = vst [vmem:[%s1348_s1 + $0x34] sm:$0xf] %v410_v17 }
  0x39   :  { %v266_v19 = vmax.f32 %v218_v8, %v536_v5  ;;  %v537_v25 = vld [vmem:[%s1347_s0 + $0x229] sm:$0xf]  ;;  %v219_v30 = vmax.f32 %v170_v21, %v513_v14  ;;  %v514_v31 = vld [vmem:[%s1347_s0 + $0x300] sm:$0xf]  ;;  %v99_v33 = vld [vmem:[%s1347_s0 + $0x99] sm:$0xf] }
  0x3a   :  { %v467_v28 = vld [vmem:[%s1347_s0 + $0x168] sm:$0xf]  ;;  %v411_v34 = vmax.f32 %v363_v23, %v607_v18  ;;  %v561_v35 = vld [vmem:[%s1347_s0 + $0x90] sm:$0xf]  ;;  %v585_v36 = vld [vmem:[%s1347_s0 + $0x160] sm:$0xf]  ;;  %v171_v37 = vmax.f32 %v122_v26, %v490_v22 }
  0x3b   :  { %v315_v29 = vmax.f32 %v266_v19, %v560_v13  ;;  %v75_v32 = vmax.f32 %v26_v27, %v467_v28  ;;  %v491_v38 = vld [vmem:[%s1347_s0 + $0x238] sm:$0xf]  ;;  %v267_v40 = vmax.f32 %v219_v30, %v537_v25  ;;  %v538_v41 = vld [vmem:[%s1347_s0 + $0x231] sm:$0xf]  ;;  %v515_v43 = vld [vmem:[%s1347_s0 + $0x308] sm:$0xf] }
  0x3c   :  { %v27_v44 = vld [vmem:[%s1347_s0 + $0xa0] sm:$0xf]  ;;  %435 = vst [vmem:[%s1348_s1 + $0x38] sm:$0xf] %v411_v34  ;;  %v220_v45 = vmax.f32 %v171_v37, %v514_v31  ;;  %v468_v46 = vld [vmem:[%s1347_s0 + $0x170] sm:$0xf] }
  0x3d   :  { %v364_v39 = vmax.f32 %v315_v29, %v584_v20  ;;  %v123_v42 = vmax.f32 %v75_v32, %v99_v33  ;;  %v100_v47 = vld [vmem:[%s1347_s0 + $0xa1] sm:$0xf]  ;;  %v316_v49 = vmax.f32 %v267_v40, %v561_v35  ;;  %v609_v50 = vld [vmem:[%s1347_s0 + $0x91] sm:$0xf]  ;;  %v562_v51 = vld [vmem:[%s1347_s0 + $0x98] sm:$0xf]  ;;  %v76_v53 = vmax.f32 %v27_v44, %v468_v46 }
  0x3e   :  { %v268_v54 = vmax.f32 %v220_v45, %v538_v41  ;;  %v586_v55 = vld [vmem:[%s1347_s0 + $0x168] sm:$0xf]  ;;  %v539_v56 = vld [vmem:[%s1347_s0 + $0x239] sm:$0xf]  ;;  %v492_v57 = vld [vmem:[%s1347_s0 + $0x240] sm:$0xf] }
  0x3f   :  { %v412_v48 = vmax.f32 %v364_v39, %v608_v24  ;;  %v172_v52 = vmax.f32 %v123_v42, %v491_v38  ;;  %v365_v58 = vmax.f32 %v316_v49, %v585_v36  ;;  %v124_v60 = vmax.f32 %v76_v53, %v100_v47  ;;  %v28_v61 = vld [vmem:[%s1347_s0 + $0xa8] sm:$0xf]  ;;  %v469_v62 = vld [vmem:[%s1347_s0 + $0x178] sm:$0xf]  ;;  %v563_v0 = vld [vmem:[%s1347_s0 + $0xa0] sm:$0xf] }
  0x40   :  { %v317_v63 = vmax.f32 %v268_v54, %v562_v51  ;;  %v516_v1 = vld [vmem:[%s1347_s0 + $0x310] sm:$0xf]  ;;  %v77_v2 = vmax.f32 %v28_v61, %v469_v62  ;;  %v101_v3 = vld [vmem:[%s1347_s0 + $0xa9] sm:$0xf]  ;;  %v610_v5 = vld [vmem:[%s1347_s0 + $0x99] sm:$0xf] }
  0x41   :  { %436 = vst [vmem:[%s1348_s1 + $0x3c] sm:$0xf] %v412_v48  ;;  %v221_v59 = vmax.f32 %v172_v52, %v515_v43  ;;  %v413_v4 = vmax.f32 %v365_v58, %v609_v50  ;;  %v587_v7 = vld [vmem:[%s1347_s0 + $0x170] sm:$0xf]  ;;  %v173_v8 = vmax.f32 %v124_v60, %v492_v57  ;;  %v493_v9 = vld [vmem:[%s1347_s0 + $0x248] sm:$0xf] }
  0x42   :  { %v366_v10 = vmax.f32 %v317_v63, %v586_v55  ;;  %v611_v11 = vld [vmem:[%s1347_s0 + $0xa1] sm:$0xf]  ;;  %v125_v13 = vmax.f32 %v77_v2, %v101_v3  ;;  %v29_v14 = vld [vmem:[%s1347_s0 + $0xb0] sm:$0xf]  ;;  %v517_v18 = vld [vmem:[%s1347_s0 + $0x318] sm:$0xf] }
  0x43   :  { %v269_v6 = vmax.f32 %v221_v59, %v539_v56  ;;  %v540_v12 = vld [vmem:[%s1347_s0 + $0x241] sm:$0xf]  ;;  %437 = vst [vmem:[%s1348_s1 + $0x40] sm:$0xf] %v413_v4  ;;  %v222_v17 = vmax.f32 %v173_v8, %v516_v1  ;;  %v102_v20 = vld [vmem:[%s1347_s0 + $0xb1] sm:$0xf] }
  0x44   :  { %v470_v15 = vld [vmem:[%s1347_s0 + $0x180] sm:$0xf]  ;;  %v414_v21 = vmax.f32 %v366_v10, %v610_v5  ;;  %v564_v22 = vld [vmem:[%s1347_s0 + $0xa8] sm:$0xf]  ;;  %v588_v23 = vld [vmem:[%s1347_s0 + $0x178] sm:$0xf]  ;;  %v174_v24 = vmax.f32 %v125_v13, %v493_v9 }
  0x45   :  { %v318_v16 = vmax.f32 %v269_v6, %v563_v0  ;;  %v78_v19 = vmax.f32 %v29_v14, %v470_v15  ;;  %v494_v25 = vld [vmem:[%s1347_s0 + $0x250] sm:$0xf]  ;;  %v270_v27 = vmax.f32 %v222_v17, %v540_v12  ;;  %v541_v28 = vld [vmem:[%s1347_s0 + $0x249] sm:$0xf]  ;;  %v518_v30 = vld [vmem:[%s1347_s0 + $0x320] sm:$0xf] }
  0x46   :  { %v30_v31 = vld [vmem:[%s1347_s0 + $0xb8] sm:$0xf]  ;;  %438 = vst [vmem:[%s1348_s1 + $0x44] sm:$0xf] %v414_v21  ;;  %v223_v32 = vmax.f32 %v174_v24, %v517_v18  ;;  %v471_v33 = vld [vmem:[%s1347_s0 + $0x188] sm:$0xf] }
  0x47   :  { %v367_v26 = vmax.f32 %v318_v16, %v587_v7  ;;  %v126_v29 = vmax.f32 %v78_v19, %v102_v20  ;;  %v103_v34 = vld [vmem:[%s1347_s0 + $0xb9] sm:$0xf]  ;;  %v319_v36 = vmax.f32 %v270_v27, %v564_v22  ;;  %v612_v37 = vld [vmem:[%s1347_s0 + $0xa9] sm:$0xf]  ;;  %v565_v38 = vld [vmem:[%s1347_s0 + $0xb0] sm:$0xf]  ;;  %v79_v40 = vmax.f32 %v30_v31, %v471_v33 }
  0x48   :  { %v271_v41 = vmax.f32 %v223_v32, %v541_v28  ;;  %v589_v42 = vld [vmem:[%s1347_s0 + $0x180] sm:$0xf]  ;;  %v542_v43 = vld [vmem:[%s1347_s0 + $0x251] sm:$0xf]  ;;  %v495_v44 = vld [vmem:[%s1347_s0 + $0x258] sm:$0xf] }
  0x49   :  { %v415_v35 = vmax.f32 %v367_v26, %v611_v11  ;;  %v175_v39 = vmax.f32 %v126_v29, %v494_v25  ;;  %v368_v45 = vmax.f32 %v319_v36, %v588_v23  ;;  %v127_v47 = vmax.f32 %v79_v40, %v103_v34  ;;  %v31_v48 = vld [vmem:[%s1347_s0 + $0xc0] sm:$0xf]  ;;  %v472_v49 = vld [vmem:[%s1347_s0 + $0x190] sm:$0xf]  ;;  %v566_v51 = vld [vmem:[%s1347_s0 + $0xb8] sm:$0xf] }
  0x4a   :  { %v320_v50 = vmax.f32 %v271_v41, %v565_v38  ;;  %v519_v52 = vld [vmem:[%s1347_s0 + $0x328] sm:$0xf]  ;;  %v80_v53 = vmax.f32 %v31_v48, %v472_v49  ;;  %v104_v54 = vld [vmem:[%s1347_s0 + $0xc1] sm:$0xf]  ;;  %v613_v56 = vld [vmem:[%s1347_s0 + $0xb1] sm:$0xf] }
  0x4b   :  { %439 = vst [vmem:[%s1348_s1 + $0x48] sm:$0xf] %v415_v35  ;;  %v224_v46 = vmax.f32 %v175_v39, %v518_v30  ;;  %v416_v55 = vmax.f32 %v368_v45, %v612_v37  ;;  %v176_v58 = vmax.f32 %v127_v47, %v495_v44  ;;  %v496_v59 = vld [vmem:[%s1347_s0 + $0x260] sm:$0xf]  ;;  %v590_v61 = vld [vmem:[%s1347_s0 + $0x188] sm:$0xf] }
  0x4c   :  { %v369_v60 = vmax.f32 %v320_v50, %v589_v42  ;;  %v543_v62 = vld [vmem:[%s1347_s0 + $0x259] sm:$0xf]  ;;  %v128_v63 = vmax.f32 %v80_v53, %v104_v54  ;;  %v520_v2 = vld [vmem:[%s1347_s0 + $0x330] sm:$0xf]  ;;  %v567_v5 = vld [vmem:[%s1347_s0 + $0xc0] sm:$0xf] }
  0x4d   :  { %v272_v57 = vmax.f32 %v224_v46, %v542_v43  ;;  %440 = vst [vmem:[%s1348_s1 + $0x4c] sm:$0xf] %v416_v55  ;;  %v225_v1 = vmax.f32 %v176_v58, %v519_v52  ;;  %v614_v4 = vld [vmem:[%s1347_s0 + $0xb9] sm:$0xf]  ;;  %v544_v9 = vld [vmem:[%s1347_s0 + $0x261] sm:$0xf] }
  0x4e   :  { %v417_v3 = vmax.f32 %v369_v60, %v613_v56  ;;  %v177_v6 = vmax.f32 %v128_v63, %v496_v59  ;;  %v591_v10 = vld [vmem:[%s1347_s0 + $0x190] sm:$0xf]  ;;  %v568_v14 = vld [vmem:[%s1347_s0 + $0xc8] sm:$0xf]  ;;  %v615_v15 = vld [vmem:[%s1347_s0 + $0xc1] sm:$0xf] }
  0x4f   :  { %v321_v0 = vmax.f32 %v272_v57, %v566_v51  ;;  %v273_v8 = vmax.f32 %v225_v1, %v543_v62  ;;  %v592_v18 = vld [vmem:[%s1347_s0 + $0x198] sm:$0xf]  ;;  %v616_v21 = vld [vmem:[%s1347_s0 + $0xc9] sm:$0xf] }
  0x50   :  { %441 = vst [vmem:[%s1348_s1 + $0x50] sm:$0xf] %v417_v3  ;;  %v226_v11 = vmax.f32 %v177_v6, %v520_v2 }
  0x51   :  { %v370_v7 = vmax.f32 %v321_v0, %v590_v61  ;;  %v322_v13 = vmax.f32 %v273_v8, %v567_v5 }
  0x52   :  { %v274_v16 = vmax.f32 %v226_v11, %v544_v9 }
  0x53   :  { %v418_v12 = vmax.f32 %v370_v7, %v614_v4  ;;  %v371_v17 = vmax.f32 %v322_v13, %v591_v10 }
  0x54   :  { %v323_v19 = vmax.f32 %v274_v16, %v568_v14 }
  0x55   :  { %442 = vst [vmem:[%s1348_s1 + $0x54] sm:$0xf] %v418_v12  ;;  %v419_v20 = vmax.f32 %v371_v17, %v615_v15 }
  0x56   :  { %v372_v22 = vmax.f32 %v323_v19, %v592_v18 }
  0x57   :  { %443 = vst [vmem:[%s1348_s1 + $0x58] sm:$0xf] %v419_v20 }
  0x58   :  { %v420_v23 = vmax.f32 %v372_v22, %v616_v21 }
  0x5a   :  { %444 = vst [vmem:[%s1348_s1 + $0x5c] sm:$0xf] %v420_v23 }

// kernel: my_net_res50_forward.32
= control target key start
LH: loop header
LB: loop body
LE: loop exit
PB: predicated region body
PF: predicated region fallthrough
CT: control target
= control target key end

     0   :  { %s640_s15 = smov 0   ;;  %s779_s0 = inlined_call_operand.vmem [shape: bf16[96,128], index: 0, kind: input, shape index: {}]   ;;  %s780_s1 = inlined_call_operand.vmem [shape: bf16[128,256], index: 1, kind: input, shape index: {}]   ;;  %s781_s2 = inlined_call_operand.vmem [shape: f32[1,256], index: 2, kind: input, shape index: {}]   ;;  %s782_s3 = inlined_call_operand.vmem [shape: f32[1,256], index: 3, kind: input, shape index: {}]   ;;  %s783_s4 = inlined_call_operand.vmem [shape: f32[96,256], index: 4, kind: output, shape index: {}]  }
   0x1 LB: > { %s477_s16 = sadd.s32 4294967295, %s613_s15   ;;  %p481_p0 = scmp.ge.s32.totalorder %s613_s15, 1  ;;  %s613_s15 = sphi %s640_s15, %s14_s15  }
   0x2   : > { %p163_p1 = scmp.lt.s32.totalorder %s613_s15, 3 }
   0x4   : > { %p164_p2 = pnand %p481_p0, %p163_p1 }
   0x5   : > { %s190_s29 = smul.u32 (!%p164_p2), 6, %s477_s16 }
   0x6   : > { %167 = sbr.rel (%p164_p2) target bundleno = 207 (0xcf), region = 36 }
   0x7   : > { %p191_p3 = scmp.lt.s32.totalorder (!%p164_p2), %s190_s29, 11 }
   0xb   : > { %v555_v0 = vld [vmem:[%s780_s1 + $0x70] sm:$0xf]  ;;  %v582_v1 = vld [vmem:[%s780_s1 + $0x74] sm:$0xf0]  ;;  %v581_v2 = vld [vmem:[%s780_s1 + $0x74] sm:$0xf] }
   0xc   : > { %v556_v3 = vor.u32 %v582_v1, %v555_v0  ;;  %v557_v4 = vld [vmem:[%s780_s1 + $0x78] sm:$0xf0]  ;;  %v547_v5 = vld [vmem:[%s780_s1 + $0x60] sm:$0xf]  ;;  %v580_v6 = vld [vmem:[%s780_s1 + $0x64] sm:$0xf0] }
   0xd   : > { %v560_v7 = vor.u32 %v581_v2, %v557_v4  ;;  %v579_v8 = vld [vmem:[%s780_s1 + $0x64] sm:$0xf]  ;;  %v549_v9 = vld [vmem:[%s780_s1 + $0x68] sm:$0xf0]  ;;  %v548_v10 = vor.u32 %v580_v6, %v547_v5  ;;  %v539_v12 = vld [vmem:[%s780_s1 + $0x50] sm:$0xf] }
   0xe   : > { %583 = vmatpush.bf16.msra.mxu2 %v556_v3  ;;  %323 = vmatpush.bf16.msra.mxu0 %v556_v3  ;;  %v552_v11 = vor.u32 %v579_v8, %v549_v9  ;;  %v578_v13 = vld [vmem:[%s780_s1 + $0x54] sm:$0xf0]  ;;  %v577_v14 = vld [vmem:[%s780_s1 + $0x54] sm:$0xf]  ;;  %v541_v15 = vld [vmem:[%s780_s1 + $0x58] sm:$0xf0] }
   0xf   : > { %591 = vmatpush.bf16.msra.mxu3 %v560_v7  ;;  %347 = vmatpush.bf16.msra.mxu1 %v560_v7  ;;  %v540_v16 = vor.u32 %v578_v13, %v539_v12  ;;  %v544_v17 = vor.u32 %v577_v14, %v541_v15  ;;  %v531_v18 = vld [vmem:[%s780_s1 + $0x40] sm:$0xf]  ;;  %v576_v19 = vld [vmem:[%s780_s1 + $0x44] sm:$0xf0]  ;;  %v575_v20 = vld [vmem:[%s780_s1 + $0x44] sm:$0xf] }
  0x10   : > { %v533_v21 = vld [vmem:[%s780_s1 + $0x48] sm:$0xf0]  ;;  %v532_v22 = vor.u32 %v576_v19, %v531_v18  ;;  %v523_v24 = vld [vmem:[%s780_s1 + $0x30] sm:$0xf]  ;;  %v574_v25 = vld [vmem:[%s780_s1 + $0x34] sm:$0xf0] }
  0x11   : > { %v536_v23 = vor.u32 %v575_v20, %v533_v21  ;;  %v573_v26 = vld [vmem:[%s780_s1 + $0x34] sm:$0xf]  ;;  %v525_v27 = vld [vmem:[%s780_s1 + $0x38] sm:$0xf0]  ;;  %v524_v28 = vor.u32 %v574_v25, %v523_v24  ;;  %v515_v30 = vld [vmem:[%s780_s1 + $0x20] sm:$0xf] }
  0x12   : > { %584 = vmatpush.bf16.msra.mxu2 %v548_v10  ;;  %324 = vmatpush.bf16.msra.mxu0 %v548_v10  ;;  %v528_v29 = vor.u32 %v573_v26, %v525_v27  ;;  %v572_v31 = vld [vmem:[%s780_s1 + $0x24] sm:$0xf0]  ;;  %v571_v32 = vld [vmem:[%s780_s1 + $0x24] sm:$0xf]  ;;  %v517_v33 = vld [vmem:[%s780_s1 + $0x28] sm:$0xf0] }
  0x13   : > { %592 = vmatpush.bf16.msra.mxu3 %v552_v11  ;;  %348 = vmatpush.bf16.msra.mxu1 %v552_v11  ;;  %v516_v34 = vor.u32 %v572_v31, %v515_v30  ;;  %v520_v35 = vor.u32 %v571_v32, %v517_v33  ;;  %v507_v36 = vld [vmem:[%s780_s1 + $0x10] sm:$0xf]  ;;  %v570_v37 = vld [vmem:[%s780_s1 + $0x14] sm:$0xf0]  ;;  %s785_s29 = smov (!%p191_p3, %s190_s29), 11 }
  0x14   : > { %v569_v38 = vld [vmem:[%s780_s1 + $0x14] sm:$0xf]  ;;  %v509_v39 = vld [vmem:[%s780_s1 + $0x18] sm:$0xf0]  ;;  %v508_v40 = vor.u32 %v570_v37, %v507_v36  ;;  %v499_v42 = vld [vmem:[%s780_s1] sm:$0xf] }
  0x15   : > { %v512_v41 = vor.u32 %v569_v38, %v509_v39  ;;  %v568_v43 = vld [vmem:[%s780_s1 + $0x4] sm:$0xf0]  ;;  %s482_s30 = sshll.u32 %s785_s29, 2  ;;  %v567_v44 = vld [vmem:[%s780_s1 + $0x4] sm:$0xf]  ;;  %s563_s17 = sshll.u32 %s785_s29, 4 }
  0x16   : > { %585 = vmatpush.bf16.msra.mxu2 %v540_v16  ;;  %325 = vmatpush.bf16.msra.mxu0 %v540_v16  ;;  %v501_v45 = vld [vmem:[%s780_s1 + $0x8] sm:$0xf0]  ;;  %v500_v46 = vor.u32 %v568_v43, %v499_v42  ;;  %s194_s11 = scalar_lea.vmem %s779_s0, %s482_s30  ;;  %v371_v51 = vld [vmem:[%s781_s2] sm:$0x3]  ;;  %s762_s20 = scalar_lea.vmem %s783_s4, %s563_s17 }
  0x17   : > { %593 = vmatpush.bf16.msra.mxu3 %v544_v17  ;;  %349 = vmatpush.bf16.msra.mxu1 %v544_v17  ;;  %v504_v47 = vor.u32 %v567_v44, %v501_v45  ;;  %v565_v48 = vld [vmem:[%s194_s11 + $0x8] sm:$0xff]  ;;  %v564_v49 = vld [vmem:[%s194_s11] sm:$0xff]  ;;  %v566_v50 = vld [vmem:[%s194_s11 + $0x10] sm:$0xff]  ;;  %v373_v53 = vperm.slane %v371_v51, 0  ;;  %v374_v54 = vperm.slane %v371_v51, 1 }
  0x18   : > { %v389_v52 = vld [vmem:[%s782_s3] sm:$0x3] }
  0x19   : > { %v391_v56 = vperm.slane %v389_v52, 0  ;;  %v392_v59 = vperm.slane %v389_v52, 1 }
  0x1a   : > { %586 = vmatpush.bf16.msra.mxu2 %v532_v22  ;;  %326 = vmatpush.bf16.msra.mxu0 %v532_v22 }
  0x1b   : > { %594 = vmatpush.bf16.msra.mxu3 %v536_v23  ;;  %350 = vmatpush.bf16.msra.mxu1 %v536_v23 }
  0x1e   : > { %587 = vmatpush.bf16.msra.mxu2 %v524_v28  ;;  %327 = vmatpush.bf16.msra.mxu0 %v524_v28 }
  0x1f   : > { %595 = vmatpush.bf16.msra.mxu3 %v528_v29  ;;  %351 = vmatpush.bf16.msra.mxu1 %v528_v29 }
  0x22   : > { %588 = vmatpush.bf16.msra.mxu2 %v516_v34  ;;  %328 = vmatpush.bf16.msra.mxu0 %v516_v34 }
  0x23   : > { %596 = vmatpush.bf16.msra.mxu3 %v520_v35  ;;  %352 = vmatpush.bf16.msra.mxu1 %v520_v35 }
  0x26   : > { %589 = vmatpush.bf16.msra.mxu2 %v508_v40  ;;  %329 = vmatpush.bf16.msra.mxu0 %v508_v40 }
  0x27   : > { %597 = vmatpush.bf16.msra.mxu3 %v512_v41  ;;  %353 = vmatpush.bf16.msra.mxu1 %v512_v41 }
  0x2a   : > { %590 = vmatpush.bf16.msra.mxu2 %v500_v46  ;;  %330 = vmatpush.bf16.msra.mxu0 %v500_v46 }
  0x2b   : > { %598 = vmatpush.bf16.msra.mxu3 %v504_v47  ;;  %354 = vmatpush.bf16.msra.mxu1 %v504_v47 }
  0x2d   : > { %336 = vmatmul.bf16.vlgmr.msra.gmra.mxu2 %v565_v48  ;;  %331 = vmatmul.bf16.vlgmr.msra.gmra.mxu0 %v564_v49 }
  0x2e   : > { %360 = vmatmul.bf16.vlgmr.msra.gmra.mxu3 %v565_v48  ;;  %355 = vmatmul.bf16.vlgmr.msra.gmra.mxu1 %v564_v49 }
  0x3d   : > { %341 = vmatmul.bf16.gmra.mxu2 %v566_v50 }
  0x3e   : > { %365 = vmatmul.bf16.gmra.mxu3 %v566_v50 }
  0xaa   : > { %v332_v55 = vpop.f32.mrf.mxu0 }
  0xab   : > { %v377_v57 = vmul.f32 %v373_v53, %v332_v55  ;;  %v356_v58 = vpop.f32.mrf.mxu1 }
  0xac   : > { %v378_v60 = vmul.f32 %v374_v54, %v356_v58 }
  0xad   : > { %v395_v61 = vadd.f32 %v391_v56, %v377_v57 }
  0xae   : > { %v396_v62 = vadd.f32 %v392_v59, %v378_v60 }
  0xaf   : > { %407 = vst [vmem:[%s762_s20] sm:$0xff] %v395_v61 }
  0xb0   : > { %v337_v63 = vpop.f32.mrf.mxu2  ;;  %408 = vst [vmem:[%s762_s20 + $0x8] sm:$0xff] %v396_v62 }
  0xb1   : > { %v381_v0 = vmul.f32 %v373_v53, %v337_v63  ;;  %v361_v1 = vpop.f32.mrf.mxu3 }
  0xb2   : > { %v382_v2 = vmul.f32 %v374_v54, %v361_v1  ;;  %v334_v3 = vpop.f32.mrf.mxu0 }
  0xb3   : > { %v399_v4 = vadd.f32 %v391_v56, %v381_v0  ;;  %v379_v5 = vmul.f32 %v373_v53, %v334_v3  ;;  %v358_v6 = vpop.f32.mrf.mxu1 }
  0xb4   : > { %v400_v7 = vadd.f32 %v392_v59, %v382_v2  ;;  %v380_v8 = vmul.f32 %v374_v54, %v358_v6 }
  0xb5   : > { %411 = vst [vmem:[%s762_s20 + $0x20] sm:$0xff] %v399_v4  ;;  %v397_v9 = vadd.f32 %v391_v56, %v379_v5 }
  0xb6   : > { %412 = vst [vmem:[%s762_s20 + $0x28] sm:$0xff] %v400_v7  ;;  %v398_v10 = vadd.f32 %v392_v59, %v380_v8 }
  0xb7   : > { %409 = vst [vmem:[%s762_s20 + $0x10] sm:$0xff] %v397_v9 }
  0xb8   : > { %v339_v11 = vpop.f32.mrf.mxu2  ;;  %410 = vst [vmem:[%s762_s20 + $0x18] sm:$0xff] %v398_v10 }
  0xb9   : > { %v383_v12 = vmul.f32 %v373_v53, %v339_v11  ;;  %v363_v13 = vpop.f32.mrf.mxu3 }
  0xba   : > { %v384_v14 = vmul.f32 %v374_v54, %v363_v13 }
  0xbb   : > { %v401_v15 = vadd.f32 %v391_v56, %v383_v12 }
  0xbc   : > { %v402_v16 = vadd.f32 %v392_v59, %v384_v14 }
  0xbd   : > { %413 = vst [vmem:[%s762_s20 + $0x30] sm:$0xff] %v401_v15 }
  0xbe   : > { %414 = vst [vmem:[%s762_s20 + $0x38] sm:$0xff] %v402_v16 }
  0xc0   : > { %v342_v17 = vpop.f32.mrf.mxu2 }
  0xc1   : > { %v385_v18 = vmul.f32 %v373_v53, %v342_v17  ;;  %v366_v19 = vpop.f32.mrf.mxu3 }
  0xc2   : > { %v386_v20 = vmul.f32 %v374_v54, %v366_v19 }
  0xc3   : > { %v403_v21 = vadd.f32 %v391_v56, %v385_v18 }
  0xc4   : > { %v404_v22 = vadd.f32 %v392_v59, %v386_v20 }
  0xc5   : > { %415 = vst [vmem:[%s762_s20 + $0x40] sm:$0xff] %v403_v21 }
  0xc6   : > { %416 = vst [vmem:[%s762_s20 + $0x48] sm:$0xff] %v404_v22 }
  0xc8   : > { %v344_v23 = vpop.f32.mrf.mxu2 }
  0xc9   : > { %v387_v24 = vmul.f32 %v373_v53, %v344_v23  ;;  %v368_v25 = vpop.f32.mrf.mxu3 }
  0xca   : > { %v388_v26 = vmul.f32 %v374_v54, %v368_v25 }
  0xcb   : > { %v405_v27 = vadd.f32 %v391_v56, %v387_v24 }
  0xcc   : > { %v406_v28 = vadd.f32 %v392_v59, %v388_v26 }
  0xcd   : > { %417 = vst [vmem:[%s762_s20 + $0x50] sm:$0xff] %v405_v27 }
  0xce   : > { %418 = vst [vmem:[%s762_s20 + $0x58] sm:$0xff] %v406_v28 }
  0xcf PF: > { %s14_s15 = sadd.s32 1, %s613_s15  }
  0xd0   : > { %p11_p4 = scmp.ge.s32.totalorder %s14_s15, 4  }
  0xd2   :  { %13 = sbr.rel (!%p11_p4) target bundleno = 1 (0x1), region = 66 }

// kernel: my_net_res50_forward.33
= control target key start
LH: loop header
LB: loop body
LE: loop exit
PB: predicated region body
PF: predicated region fallthrough
CT: control target
= control target key end

     0   :  { %s748_s18 = smov 0   ;;  %s936_s0 = inlined_call_operand.vmem [shape: bf16[96,128], index: 0, kind: input, shape index: {}]   ;;  %s937_s1 = inlined_call_operand.vmem [shape: bf16[128,256], index: 1, kind: input, shape index: {}]   ;;  %s938_s2 = inlined_call_operand.vmem [shape: f32[1,256], index: 2, kind: input, shape index: {}]   ;;  %s939_s3 = inlined_call_operand.vmem [shape: f32[1,256], index: 3, kind: input, shape index: {}]   ;;  %s940_s4 = inlined_call_operand.vmem [shape: f32[96,256], index: 4, kind: input, shape index: {}]   ;;  %s941_s5 = inlined_call_operand.vmem [shape: f32[96,256], index: 5, kind: output, shape index: {}]  }
   0x1 LB: > { %s577_s19 = sadd.s32 4294967295, %s716_s18   ;;  %p581_p0 = scmp.ge.s32.totalorder %s716_s18, 1  ;;  %s716_s18 = sphi %s748_s18, %s15_s18  }
   0x2   : > { %p200_p1 = scmp.lt.s32.totalorder %s716_s18, 3 }
   0x4   : > { %p201_p2 = pnand %p581_p0, %p200_p1 }
   0x5   : > { %s235_s8 = smul.u32 (!%p201_p2), 6, %s577_s19 }
   0x6   : > { %204 = sbr.rel (%p201_p2) target bundleno = 211 (0xd3), region = 40 }
   0x7   : > { %p236_p3 = scmp.lt.s32.totalorder (!%p201_p2), %s235_s8, 11 }
   0xb   : > { %v657_v0 = vld [vmem:[%s937_s1 + $0x70] sm:$0xf]  ;;  %v685_v1 = vld [vmem:[%s937_s1 + $0x74] sm:$0xf0]  ;;  %v684_v2 = vld [vmem:[%s937_s1 + $0x74] sm:$0xf] }
   0xc   : > { %v658_v3 = vor.u32 %v685_v1, %v657_v0  ;;  %v659_v4 = vld [vmem:[%s937_s1 + $0x78] sm:$0xf0]  ;;  %v649_v5 = vld [vmem:[%s937_s1 + $0x60] sm:$0xf]  ;;  %v683_v6 = vld [vmem:[%s937_s1 + $0x64] sm:$0xf0] }
   0xd   : > { %v662_v7 = vor.u32 %v684_v2, %v659_v4  ;;  %v682_v8 = vld [vmem:[%s937_s1 + $0x64] sm:$0xf]  ;;  %v651_v9 = vld [vmem:[%s937_s1 + $0x68] sm:$0xf0]  ;;  %v650_v10 = vor.u32 %v683_v6, %v649_v5  ;;  %v641_v12 = vld [vmem:[%s937_s1 + $0x50] sm:$0xf] }
   0xe   : > { %686 = vmatpush.bf16.msra.mxu2 %v658_v3  ;;  %375 = vmatpush.bf16.msra.mxu0 %v658_v3  ;;  %v654_v11 = vor.u32 %v682_v8, %v651_v9  ;;  %v681_v13 = vld [vmem:[%s937_s1 + $0x54] sm:$0xf0]  ;;  %v680_v14 = vld [vmem:[%s937_s1 + $0x54] sm:$0xf]  ;;  %v643_v15 = vld [vmem:[%s937_s1 + $0x58] sm:$0xf0] }
   0xf   : > { %694 = vmatpush.bf16.msra.mxu3 %v662_v7  ;;  %399 = vmatpush.bf16.msra.mxu1 %v662_v7  ;;  %v642_v16 = vor.u32 %v681_v13, %v641_v12  ;;  %v646_v17 = vor.u32 %v680_v14, %v643_v15  ;;  %v633_v18 = vld [vmem:[%s937_s1 + $0x40] sm:$0xf]  ;;  %v679_v19 = vld [vmem:[%s937_s1 + $0x44] sm:$0xf0]  ;;  %v678_v20 = vld [vmem:[%s937_s1 + $0x44] sm:$0xf] }
  0x10   : > { %v635_v21 = vld [vmem:[%s937_s1 + $0x48] sm:$0xf0]  ;;  %v634_v22 = vor.u32 %v679_v19, %v633_v18  ;;  %v625_v24 = vld [vmem:[%s937_s1 + $0x30] sm:$0xf]  ;;  %v677_v25 = vld [vmem:[%s937_s1 + $0x34] sm:$0xf0] }
  0x11   : > { %v638_v23 = vor.u32 %v678_v20, %v635_v21  ;;  %v676_v26 = vld [vmem:[%s937_s1 + $0x34] sm:$0xf]  ;;  %v627_v27 = vld [vmem:[%s937_s1 + $0x38] sm:$0xf0]  ;;  %v626_v28 = vor.u32 %v677_v25, %v625_v24  ;;  %v617_v30 = vld [vmem:[%s937_s1 + $0x20] sm:$0xf] }
  0x12   : > { %687 = vmatpush.bf16.msra.mxu2 %v650_v10  ;;  %376 = vmatpush.bf16.msra.mxu0 %v650_v10  ;;  %v630_v29 = vor.u32 %v676_v26, %v627_v27  ;;  %v675_v31 = vld [vmem:[%s937_s1 + $0x24] sm:$0xf0]  ;;  %v674_v32 = vld [vmem:[%s937_s1 + $0x24] sm:$0xf]  ;;  %v619_v33 = vld [vmem:[%s937_s1 + $0x28] sm:$0xf0] }
  0x13   : > { %695 = vmatpush.bf16.msra.mxu3 %v654_v11  ;;  %400 = vmatpush.bf16.msra.mxu1 %v654_v11  ;;  %v618_v34 = vor.u32 %v675_v31, %v617_v30  ;;  %v622_v35 = vor.u32 %v674_v32, %v619_v33  ;;  %v609_v36 = vld [vmem:[%s937_s1 + $0x10] sm:$0xf]  ;;  %v673_v37 = vld [vmem:[%s937_s1 + $0x14] sm:$0xf0]  ;;  %s943_s8 = smov (!%p236_p3, %s235_s8), 11 }
  0x14   : > { %v672_v38 = vld [vmem:[%s937_s1 + $0x14] sm:$0xf]  ;;  %v611_v39 = vld [vmem:[%s937_s1 + $0x18] sm:$0xf0]  ;;  %v610_v40 = vor.u32 %v673_v37, %v609_v36  ;;  %v601_v42 = vld [vmem:[%s937_s1] sm:$0xf] }
  0x15   : > { %v614_v41 = vor.u32 %v672_v38, %v611_v39  ;;  %v671_v43 = vld [vmem:[%s937_s1 + $0x4] sm:$0xf0]  ;;  %s582_s10 = sshll.u32 %s943_s8, 2  ;;  %v670_v44 = vld [vmem:[%s937_s1 + $0x4] sm:$0xf]  ;;  %s665_s21 = sshll.u32 %s943_s8, 4 }
  0x16   : > { %688 = vmatpush.bf16.msra.mxu2 %v642_v16  ;;  %377 = vmatpush.bf16.msra.mxu0 %v642_v16  ;;  %v603_v45 = vld [vmem:[%s937_s1 + $0x8] sm:$0xf0]  ;;  %v602_v46 = vor.u32 %v671_v43, %v601_v42  ;;  %s239_s19 = scalar_lea.vmem %s936_s0, %s582_s10  ;;  %v423_v51 = vld [vmem:[%s938_s2] sm:$0x3]  ;;  %s874_s26 = scalar_lea.vmem %s940_s4, %s665_s21 }
  0x17   : > { %696 = vmatpush.bf16.msra.mxu3 %v646_v17  ;;  %401 = vmatpush.bf16.msra.mxu1 %v646_v17  ;;  %v606_v47 = vor.u32 %v670_v44, %v603_v45  ;;  %v668_v48 = vld [vmem:[%s239_s19 + $0x8] sm:$0xff]  ;;  %v667_v49 = vld [vmem:[%s239_s19] sm:$0xff]  ;;  %v669_v50 = vld [vmem:[%s239_s19 + $0x10] sm:$0xff]  ;;  %v867_v53 = vperm.slane %v423_v51, 0  ;;  %v869_v54 = vperm.slane %v423_v51, 1  ;;  %s890_s28 = scalar_lea.vmem %s941_s5, %s665_s21 }
  0x18   : > { %v441_v52 = vld [vmem:[%s939_s3] sm:$0x3]  ;;  %v460_v63 = vld [vmem:[%s874_s26 + $0x8] sm:$0xff]  ;;  %v461_v16 = vld [vmem:[%s874_s26 + $0x10] sm:$0xff] }
  0x19   : > { %v876_v56 = vperm.slane %v441_v52, 0  ;;  %v879_v59 = vperm.slane %v441_v52, 1  ;;  %v459_v60 = vld [vmem:[%s874_s26] sm:$0xff]  ;;  %v464_v12 = vld [vmem:[%s874_s26 + $0x28] sm:$0xff]  ;;  %v462_v20 = vld [vmem:[%s874_s26 + $0x18] sm:$0xff] }
  0x1a   : > { %689 = vmatpush.bf16.msra.mxu2 %v634_v22  ;;  %378 = vmatpush.bf16.msra.mxu0 %v634_v22  ;;  %v463_v7 = vld [vmem:[%s874_s26 + $0x20] sm:$0xff]  ;;  %v465_v31 = vld [vmem:[%s874_s26 + $0x30] sm:$0xff] }
  0x1b   : > { %697 = vmatpush.bf16.msra.mxu3 %v638_v23  ;;  %402 = vmatpush.bf16.msra.mxu1 %v638_v23  ;;  %v467_v44 = vld [vmem:[%s874_s26 + $0x40] sm:$0xff] }
  0x1e   : > { %690 = vmatpush.bf16.msra.mxu2 %v626_v28  ;;  %379 = vmatpush.bf16.msra.mxu0 %v626_v28 }
  0x1f   : > { %698 = vmatpush.bf16.msra.mxu3 %v630_v29  ;;  %403 = vmatpush.bf16.msra.mxu1 %v630_v29 }
  0x22   : > { %691 = vmatpush.bf16.msra.mxu2 %v618_v34  ;;  %380 = vmatpush.bf16.msra.mxu0 %v618_v34 }
  0x23   : > { %699 = vmatpush.bf16.msra.mxu3 %v622_v35  ;;  %404 = vmatpush.bf16.msra.mxu1 %v622_v35  ;;  %v466_v35 = vld [vmem:[%s874_s26 + $0x38] sm:$0xff] }
  0x26   : > { %692 = vmatpush.bf16.msra.mxu2 %v610_v40  ;;  %381 = vmatpush.bf16.msra.mxu0 %v610_v40 }
  0x27   : > { %700 = vmatpush.bf16.msra.mxu3 %v614_v41  ;;  %405 = vmatpush.bf16.msra.mxu1 %v614_v41 }
  0x2a   : > { %693 = vmatpush.bf16.msra.mxu2 %v602_v46  ;;  %382 = vmatpush.bf16.msra.mxu0 %v602_v46 }
  0x2b   : > { %701 = vmatpush.bf16.msra.mxu3 %v606_v47  ;;  %406 = vmatpush.bf16.msra.mxu1 %v606_v47  ;;  %v468_v47 = vld [vmem:[%s874_s26 + $0x48] sm:$0xff] }
  0x2d   : > { %388 = vmatmul.bf16.vlgmr.msra.gmra.mxu2 %v668_v48  ;;  %383 = vmatmul.bf16.vlgmr.msra.gmra.mxu0 %v667_v49 }
  0x2e   : > { %412 = vmatmul.bf16.vlgmr.msra.gmra.mxu3 %v668_v48  ;;  %407 = vmatmul.bf16.vlgmr.msra.gmra.mxu1 %v667_v49 }
  0x3d   : > { %393 = vmatmul.bf16.gmra.mxu2 %v669_v50 }
  0x3e   : > { %417 = vmatmul.bf16.gmra.mxu3 %v669_v50 }
  0xaa   : > { %v384_v55 = vpop.f32.mrf.mxu0 }
  0xab   : > { %v429_v57 = vmul.f32 %v867_v53, %v384_v55  ;;  %v408_v58 = vpop.f32.mrf.mxu1 }
  0xac   : > { %v430_v61 = vmul.f32 %v869_v54, %v408_v58 }
  0xad   : > { %v447_v62 = vadd.f32 %v876_v56, %v429_v57 }
  0xae   : > { %v448_v0 = vadd.f32 %v879_v59, %v430_v61 }
  0xaf   : > { %v471_v1 = vadd.f32 %v459_v60, %v447_v62  ;;  %v469_v60 = vld [vmem:[%s874_s26 + $0x50] sm:$0xff] }
  0xb0   : > { %v389_v2 = vpop.f32.mrf.mxu2  ;;  %v472_v3 = vadd.f32 %v460_v63, %v448_v0  ;;  %v470_v63 = vld [vmem:[%s874_s26 + $0x58] sm:$0xff] }
  0xb1   : > { %v433_v4 = vmul.f32 %v867_v53, %v389_v2  ;;  %v413_v5 = vpop.f32.mrf.mxu3  ;;  %v483_v6 = vmax.f32 %v471_v1, 0.0 }
  0xb2   : > { %v434_v8 = vmul.f32 %v869_v54, %v413_v5  ;;  %v484_v9 = vmax.f32 %v472_v3, 0.0  ;;  %v386_v10 = vpop.f32.mrf.mxu0 }
  0xb3   : > { %v451_v11 = vadd.f32 %v876_v56, %v433_v4  ;;  %495 = vst [vmem:[%s890_s28] sm:$0xff] %v483_v6  ;;  %v431_v13 = vmul.f32 %v867_v53, %v386_v10  ;;  %v410_v14 = vpop.f32.mrf.mxu1 }
  0xb4   : > { %v452_v15 = vadd.f32 %v879_v59, %v434_v8  ;;  %496 = vst [vmem:[%s890_s28 + $0x8] sm:$0xff] %v484_v9  ;;  %v432_v17 = vmul.f32 %v869_v54, %v410_v14 }
  0xb5   : > { %v475_v18 = vadd.f32 %v463_v7, %v451_v11  ;;  %v449_v19 = vadd.f32 %v876_v56, %v431_v13 }
  0xb6   : > { %v476_v21 = vadd.f32 %v464_v12, %v452_v15  ;;  %v450_v22 = vadd.f32 %v879_v59, %v432_v17 }
  0xb7   : > { %v487_v23 = vmax.f32 %v475_v18, 0.0  ;;  %v473_v24 = vadd.f32 %v461_v16, %v449_v19 }
  0xb8   : > { %v488_v25 = vmax.f32 %v476_v21, 0.0  ;;  %v391_v26 = vpop.f32.mrf.mxu2  ;;  %v474_v27 = vadd.f32 %v462_v20, %v450_v22 }
  0xb9   : > { %499 = vst [vmem:[%s890_s28 + $0x20] sm:$0xff] %v487_v23  ;;  %v435_v28 = vmul.f32 %v867_v53, %v391_v26  ;;  %v415_v29 = vpop.f32.mrf.mxu3  ;;  %v485_v30 = vmax.f32 %v473_v24, 0.0 }
  0xba   : > { %500 = vst [vmem:[%s890_s28 + $0x28] sm:$0xff] %v488_v25  ;;  %v436_v32 = vmul.f32 %v869_v54, %v415_v29  ;;  %v486_v33 = vmax.f32 %v474_v27, 0.0 }
  0xbb   : > { %v453_v34 = vadd.f32 %v876_v56, %v435_v28  ;;  %497 = vst [vmem:[%s890_s28 + $0x10] sm:$0xff] %v485_v30 }
  0xbc   : > { %v454_v36 = vadd.f32 %v879_v59, %v436_v32  ;;  %498 = vst [vmem:[%s890_s28 + $0x18] sm:$0xff] %v486_v33 }
  0xbd   : > { %v477_v37 = vadd.f32 %v465_v31, %v453_v34 }
  0xbe   : > { %v478_v38 = vadd.f32 %v466_v35, %v454_v36 }
  0xbf   : > { %v489_v39 = vmax.f32 %v477_v37, 0.0 }
  0xc0   : > { %v490_v40 = vmax.f32 %v478_v38, 0.0  ;;  %v394_v41 = vpop.f32.mrf.mxu2 }
  0xc1   : > { %501 = vst [vmem:[%s890_s28 + $0x30] sm:$0xff] %v489_v39  ;;  %v437_v42 = vmul.f32 %v867_v53, %v394_v41  ;;  %v418_v43 = vpop.f32.mrf.mxu3 }
  0xc2   : > { %502 = vst [vmem:[%s890_s28 + $0x38] sm:$0xff] %v490_v40  ;;  %v438_v45 = vmul.f32 %v869_v54, %v418_v43 }
  0xc3   : > { %v455_v46 = vadd.f32 %v876_v56, %v437_v42 }
  0xc4   : > { %v456_v48 = vadd.f32 %v879_v59, %v438_v45 }
  0xc5   : > { %v479_v49 = vadd.f32 %v467_v44, %v455_v46 }
  0xc6   : > { %v480_v50 = vadd.f32 %v468_v47, %v456_v48 }
  0xc7   : > { %v491_v51 = vmax.f32 %v479_v49, 0.0 }
  0xc8   : > { %v492_v52 = vmax.f32 %v480_v50, 0.0  ;;  %v396_v55 = vpop.f32.mrf.mxu2 }
  0xc9   : > { %503 = vst [vmem:[%s890_s28 + $0x40] sm:$0xff] %v491_v51  ;;  %v439_v57 = vmul.f32 %v867_v53, %v396_v55  ;;  %v420_v58 = vpop.f32.mrf.mxu3 }
  0xca   : > { %504 = vst [vmem:[%s890_s28 + $0x48] sm:$0xff] %v492_v52  ;;  %v440_v61 = vmul.f32 %v869_v54, %v420_v58 }
  0xcb   : > { %v457_v62 = vadd.f32 %v876_v56, %v439_v57 }
  0xcc   : > { %v458_v0 = vadd.f32 %v879_v59, %v440_v61 }
  0xcd   : > { %v481_v1 = vadd.f32 %v469_v60, %v457_v62 }
  0xce   : > { %v482_v2 = vadd.f32 %v470_v63, %v458_v0 }
  0xcf   : > { %v493_v3 = vmax.f32 %v481_v1, 0.0 }
  0xd0   : > { %v494_v4 = vmax.f32 %v482_v2, 0.0 }
  0xd1   : > { %505 = vst [vmem:[%s890_s28 + $0x50] sm:$0xff] %v493_v3 }
  0xd2   : > { %506 = vst [vmem:[%s890_s28 + $0x58] sm:$0xff] %v494_v4 }
  0xd3 PF: > { %s15_s18 = sadd.s32 1, %s716_s18  }
  0xd4   : > { %p12_p4 = scmp.ge.s32.totalorder %s15_s18, 4  }
  0xd6   :  { %14 = sbr.rel (!%p12_p4) target bundleno = 1 (0x1), region = 73 }

// kernel: my_net_res50_forward.31
= control target key start
LH: loop header
LB: loop body
LE: loop exit
PB: predicated region body
PF: predicated region fallthrough
CT: control target
= control target key end

     0   :  { %s1816_s15 = smov 0   ;;  %s2163_s0 = inlined_call_operand.vmem [shape: bf16[96,1152], index: 0, kind: input, shape index: {}]   ;;  %s2164_s1 = inlined_call_operand.vmem [shape: bf16[1152,128], index: 1, kind: input, shape index: {}]   ;;  %s2165_s2 = inlined_call_operand.vmem [shape: f32[1,128], index: 2, kind: input, shape index: {}]   ;;  %s2166_s3 = inlined_call_operand.vmem [shape: f32[1,128], index: 3, kind: input, shape index: {}]   ;;  %s2167_s4 = inlined_call_operand.vmem [shape: f32[96,128], index: 4, kind: output, shape index: {}]  }
   0x1 LB: > { %s1252_s16 = sadd.s32 4294967295, %s1789_s15   ;;  %p1256_p0 = scmp.ge.s32.totalorder %s1789_s15, 1  ;;  %s1789_s15 = sphi %s1816_s15, %s14_s15  }
   0x2   : > { %p164_p1 = scmp.lt.s32.totalorder %s1789_s15, 3 }
   0x4   : > { %p165_p2 = pnand %p1256_p0, %p164_p1 }
   0x5   : > { %s191_s5 = smul.u32 (!%p165_p2), 6, %s1252_s16 }
   0x6   : > { %168 = sbr.rel (%p165_p2) target bundleno = 304 (0x130), region = 36 }
   0x7   : > { %p192_p3 = scmp.lt.s32.totalorder (!%p165_p2), %s191_s5, 11 }
   0xb   : > { %v1691_v0 = vld [vmem:[%s2164_s1 + $0x38] sm:$0xff]  ;;  %v1690_v2 = vld [vmem:[%s2164_s1 + $0x30] sm:$0xff]  ;;  %v1689_v6 = vld [vmem:[%s2164_s1 + $0x28] sm:$0xff]  ;;  %s2169_s5 = smov (!%p192_p3, %s191_s5), 11 }
   0xc   : > { %v1707_v1 = vld [vmem:[%s2164_s1 + $0xb8] sm:$0xff]  ;;  %1756 = vmatpush.bf16.msra.mxu1 %v1691_v0  ;;  %948 = vmatpush.bf16.msra.mxu0 %v1691_v0  ;;  %v1706_v3 = vld [vmem:[%s2164_s1 + $0xb0] sm:$0xff]  ;;  %v1705_v7 = vld [vmem:[%s2164_s1 + $0xa8] sm:$0xff]  ;;  %s1772_s25 = smul.u32 36, %s2169_s5  ;;  %s1258_s28 = sshll.u32 %s2169_s5, 3 }
   0xd   : > { %996 = vmatpush.bf16.msra.mxu2 %v1707_v1  ;;  %v1715_v4 = vld [vmem:[%s2164_s1 + $0xf8] sm:$0xff]  ;;  %v1714_v5 = vld [vmem:[%s2164_s1 + $0xf0] sm:$0xff]  ;;  %v1713_v8 = vld [vmem:[%s2164_s1 + $0xe8] sm:$0xff]  ;;  %s2134_s6 = scalar_lea.vmem %s2167_s4, %s1258_s28 }
   0xe   : > { %1020 = vmatpush.bf16.msra.mxu3 %v1715_v4  ;;  %v1688_v9 = vld [vmem:[%s2164_s1 + $0x20] sm:$0xff]  ;;  %v1687_v12 = vld [vmem:[%s2164_s1 + $0x18] sm:$0xff]  ;;  %v1686_v15 = vld [vmem:[%s2164_s1 + $0x10] sm:$0xff]  ;;  %s1887_s9 = scalar_lea.vmem %s2163_s0, %s1772_s25 }
   0xf   : > { %v1704_v10 = vld [vmem:[%s2164_s1 + $0xa0] sm:$0xff]  ;;  %v1703_v13 = vld [vmem:[%s2164_s1 + $0x98] sm:$0xff]  ;;  %v1702_v16 = vld [vmem:[%s2164_s1 + $0x90] sm:$0xff] }
  0x10   : > { %1757 = vmatpush.bf16.msra.mxu1 %v1690_v2  ;;  %949 = vmatpush.bf16.msra.mxu0 %v1690_v2  ;;  %v1712_v11 = vld [vmem:[%s2164_s1 + $0xe0] sm:$0xff]  ;;  %v1711_v14 = vld [vmem:[%s2164_s1 + $0xd8] sm:$0xff]  ;;  %v1710_v17 = vld [vmem:[%s2164_s1 + $0xd0] sm:$0xff] }
  0x11   : > { %997 = vmatpush.bf16.msra.mxu2 %v1706_v3  ;;  %v1685_v18 = vld [vmem:[%s2164_s1 + $0x8] sm:$0xff]  ;;  %v1684_v20 = vld [vmem:[%s2164_s1] sm:$0xff]  ;;  %v1699_v21 = vld [vmem:[%s2164_s1 + $0x78] sm:$0xff] }
  0x12   : > { %1021 = vmatpush.bf16.msra.mxu3 %v1714_v5  ;;  %v1701_v19 = vld [vmem:[%s2164_s1 + $0x88] sm:$0xff]  ;;  %v1261_v22 = vld [vmem:[%s1887_s9] sm:$0xf]  ;;  %v1661_v24 = vld [vmem:[%s1887_s9 + $0x20] sm:$0xf0] }
  0x13   : > { %v1709_v23 = vld [vmem:[%s2164_s1 + $0xc8] sm:$0xff]  ;;  %v1333_v25 = vld [vmem:[%s1887_s9 + $0x90] sm:$0xf]  ;;  %v1679_v26 = vld [vmem:[%s1887_s9 + $0xb0] sm:$0xf0]  ;;  %v1262_v32 = vor.u32 %v1661_v24, %v1261_v22 }
  0x14   : > { %1758 = vmatpush.bf16.msra.mxu1 %v1689_v6  ;;  %950 = vmatpush.bf16.msra.mxu0 %v1689_v6  ;;  %v1700_v27 = vld [vmem:[%s2164_s1 + $0x80] sm:$0xff]  ;;  %v1269_v28 = vld [vmem:[%s1887_s9 + $0x8] sm:$0xf]  ;;  %v1662_v29 = vld [vmem:[%s1887_s9 + $0x28] sm:$0xf0]  ;;  %v1334_v33 = vor.u32 %v1679_v26, %v1333_v25 }
  0x15   : > { %998 = vmatpush.bf16.msra.mxu2 %v1705_v7  ;;  %v1723_v30 = vld [vmem:[%s2164_s1 + $0x138] sm:$0xff]  ;;  %v1270_v34 = vor.u32 %v1662_v29, %v1269_v28  ;;  %v1708_v35 = vld [vmem:[%s2164_s1 + $0xc0] sm:$0xff]  ;;  %v1658_v36 = vld [vmem:[%s1887_s9 + $0xc] sm:$0xf] }
  0x16   : > { %1022 = vmatpush.bf16.msra.mxu3 %v1713_v8  ;;  %v1739_v31 = vld [vmem:[%s2164_s1 + $0x1b8] sm:$0xff]  ;;  %v1271_v37 = vld [vmem:[%s1887_s9 + $0x2c] sm:$0xf0]  ;;  %v1697_v43 = vld [vmem:[%s2164_s1 + $0x68] sm:$0xff] }
  0x17   : > { %v1698_v38 = vld [vmem:[%s2164_s1 + $0x70] sm:$0xff]  ;;  %v1747_v39 = vld [vmem:[%s2164_s1 + $0x1f8] sm:$0xff]  ;;  %v1274_v42 = vor.u32 %v1658_v36, %v1271_v37  ;;  %v1721_v45 = vld [vmem:[%s2164_s1 + $0x128] sm:$0xff] }
  0x18   : > { %1759 = vmatpush.bf16.msra.mxu1 %v1688_v9  ;;  %951 = vmatpush.bf16.msra.mxu0 %v1688_v9  ;;  %v1722_v40 = vld [vmem:[%s2164_s1 + $0x130] sm:$0xff]  ;;  %v1737_v46 = vld [vmem:[%s2164_s1 + $0x1a8] sm:$0xff]  ;;  %v1696_v47 = vld [vmem:[%s2164_s1 + $0x60] sm:$0xff] }
  0x19   : > { %999 = vmatpush.bf16.msra.mxu2 %v1704_v10  ;;  %v1738_v41 = vld [vmem:[%s2164_s1 + $0x1b0] sm:$0xff]  ;;  %v1745_v48 = vld [vmem:[%s2164_s1 + $0x1e8] sm:$0xff]  ;;  %v1720_v49 = vld [vmem:[%s2164_s1 + $0x120] sm:$0xff] }
  0x1a   : > { %1023 = vmatpush.bf16.msra.mxu3 %v1712_v11  ;;  %v1746_v44 = vld [vmem:[%s2164_s1 + $0x1f0] sm:$0xff]  ;;  %v1736_v50 = vld [vmem:[%s2164_s1 + $0x1a0] sm:$0xff]  ;;  %v1297_v51 = vld [vmem:[%s1887_s9 + $0x48] sm:$0xf] }
  0x1b   : > { %v1670_v52 = vld [vmem:[%s1887_s9 + $0x68] sm:$0xf0]  ;;  %v1695_v53 = vld [vmem:[%s2164_s1 + $0x58] sm:$0xff]  ;;  %v1305_v54 = vld [vmem:[%s1887_s9 + $0x50] sm:$0xf] }
  0x1c   : > { %1760 = vmatpush.bf16.msra.mxu1 %v1687_v12  ;;  %952 = vmatpush.bf16.msra.mxu0 %v1687_v12  ;;  %v1671_v55 = vld [vmem:[%s1887_s9 + $0x70] sm:$0xf0]  ;;  %v1719_v56 = vld [vmem:[%s2164_s1 + $0x118] sm:$0xff]  ;;  %v1298_v58 = vor.u32 %v1670_v52, %v1297_v51  ;;  %v1744_v62 = vld [vmem:[%s2164_s1 + $0x1e0] sm:$0xff] }
  0x1d   : > { %1000 = vmatpush.bf16.msra.mxu2 %v1703_v13  ;;  %v1735_v57 = vld [vmem:[%s2164_s1 + $0x198] sm:$0xff]  ;;  %v1306_v59 = vor.u32 %v1671_v55, %v1305_v54  ;;  %v1667_v60 = vld [vmem:[%s1887_s9 + $0x54] sm:$0xf]  ;;  %v1693_v4 = vld [vmem:[%s2164_s1 + $0x48] sm:$0xff] }
  0x1e   : > { %1024 = vmatpush.bf16.msra.mxu3 %v1711_v14  ;;  %v1307_v61 = vld [vmem:[%s1887_s9 + $0x74] sm:$0xf0]  ;;  %v1694_v63 = vld [vmem:[%s2164_s1 + $0x50] sm:$0xff]  ;;  %v1717_v5 = vld [vmem:[%s2164_s1 + $0x108] sm:$0xff] }
  0x1f   : > { %v1718_v0 = vld [vmem:[%s2164_s1 + $0x110] sm:$0xff]  ;;  %v1310_v2 = vor.u32 %v1667_v60, %v1307_v61  ;;  %v1743_v3 = vld [vmem:[%s2164_s1 + $0x1d8] sm:$0xff]  ;;  %v1733_v6 = vld [vmem:[%s2164_s1 + $0x188] sm:$0xff] }
  0x20   : > { %1761 = vmatpush.bf16.msra.mxu1 %v1686_v15  ;;  %953 = vmatpush.bf16.msra.mxu0 %v1686_v15  ;;  %v1734_v1 = vld [vmem:[%s2164_s1 + $0x190] sm:$0xff]  ;;  %v1692_v8 = vld [vmem:[%s2164_s1 + $0x40] sm:$0xff]  ;;  %v1263_v10 = vld [vmem:[%s1887_s9 + $0x24] sm:$0xf0] }
  0x21   : > { %1001 = vmatpush.bf16.msra.mxu2 %v1702_v16  ;;  %v1742_v7 = vld [vmem:[%s2164_s1 + $0x1d0] sm:$0xff]  ;;  %v1657_v9 = vld [vmem:[%s1887_s9 + $0x4] sm:$0xf]  ;;  %v1731_v11 = vld [vmem:[%s2164_s1 + $0x178] sm:$0xff] }
  0x22   : > { %1025 = vmatpush.bf16.msra.mxu3 %v1710_v17  ;;  %v1716_v12 = vld [vmem:[%s2164_s1 + $0x100] sm:$0xff]  ;;  %v1755_v14 = vld [vmem:[%s2164_s1 + $0x238] sm:$0xff]  ;;  %v1266_v15 = vor.u32 %v1657_v9, %v1263_v10  ;;  %v1277_v16 = vld [vmem:[%s1887_s9 + $0x10] sm:$0xf] }
  0x23   : > { %v1732_v13 = vld [vmem:[%s2164_s1 + $0x180] sm:$0xff]  ;;  %v1663_v17 = vld [vmem:[%s1887_s9 + $0x30] sm:$0xf0]  ;;  %v1676_v24 = vld [vmem:[%s1887_s9 + $0x9c] sm:$0xf] }
  0x24   : > { %1762 = vmatpush.bf16.msra.mxu1 %v1685_v18  ;;  %954 = vmatpush.bf16.msra.mxu0 %v1685_v18  ;;  %v1741_v18 = vld [vmem:[%s2164_s1 + $0x1c8] sm:$0xff]  ;;  %v1278_v22 = vor.u32 %v1663_v17, %v1277_v16  ;;  %v1343_v25 = vld [vmem:[%s1887_s9 + $0xbc] sm:$0xf0]  ;;  %v1754_v26 = vld [vmem:[%s2164_s1 + $0x230] sm:$0xff] }
  0x25   : > { %1002 = vmatpush.bf16.msra.mxu2 %v1701_v19  ;;  %v1341_v19 = vld [vmem:[%s1887_s9 + $0x98] sm:$0xf]  ;;  %v1729_v28 = vld [vmem:[%s2164_s1 + $0x168] sm:$0xff]  ;;  %v1346_v29 = vor.u32 %v1676_v24, %v1343_v25  ;;  %v1724_v51 = vld [vmem:[%s2164_s1 + $0x140] sm:$0xff] }
  0x26   : > { %1026 = vmatpush.bf16.msra.mxu3 %v1709_v23  ;;  %v1313_v37 = vld [vmem:[%s1887_s9 + $0x58] sm:$0xf]  ;;  %v1748_v52 = vld [vmem:[%s2164_s1 + $0x200] sm:$0xff]  ;;  %v1678_v10 = vld [vmem:[%s1887_s9 + $0xac] sm:$0xf] }
  0x27   : > { %v1335_v54 = vld [vmem:[%s1887_s9 + $0xb4] sm:$0xf0]  ;;  %v1329_v16 = vld [vmem:[%s1887_s9 + $0x68] sm:$0xf]  ;;  %v1674_v17 = vld [vmem:[%s1887_s9 + $0x88] sm:$0xf0] }
  0x28   : > { %1763 = vmatpush.bf16.msra.mxu1 %v1684_v20  ;;  %955 = vmatpush.bf16.msra.mxu0 %v1684_v20  ;;  %v1680_v20 = vld [vmem:[%s1887_s9 + $0xb8] sm:$0xf0] }
  0x29   : > { %1003 = vmatpush.bf16.msra.mxu2 %v1700_v27  ;;  %v1342_v23 = vor.u32 %v1680_v20, %v1341_v19  ;;  %v1740_v27 = vld [vmem:[%s2164_s1 + $0x1c0] sm:$0xff]  ;;  %v1683_v19 = vld [vmem:[%s1887_s9 + $0xd0] sm:$0xf0]  ;;  %v1330_v20 = vor.u32 %v1674_v17, %v1329_v16 }
  0x2a   : > { %1027 = vmatpush.bf16.msra.mxu3 %v1708_v35  ;;  %v1727_v35 = vld [vmem:[%s2164_s1 + $0x158] sm:$0xff] }
  0x2b   : > { %956 = vmatmul.bf16.vlgmr.msra.gmra.mxu0 %v1262_v32  ;;  %966 = vmatmul.bf16.vlgmr.msra.gmra.mxu1 %v1334_v33  ;;  %v1752_v32 = vld [vmem:[%s2164_s1 + $0x220] sm:$0xff]  ;;  %v1666_v33 = vld [vmem:[%s1887_s9 + $0x4c] sm:$0xf] }
  0x2c   : > { %972 = vmatpush.bf16.msrb.mxu1 %v1699_v21  ;;  %1044 = vmatpush.bf16.msrb.mxu0 %v1723_v30  ;;  %v1730_v21 = vld [vmem:[%s2164_s1 + $0x170] sm:$0xff]  ;;  %v1753_v30 = vld [vmem:[%s2164_s1 + $0x228] sm:$0xff] }
  0x2d   : > { %1092 = vmatpush.bf16.msrb.mxu2 %v1739_v31  ;;  %1028 = vmatmul.bf16.vlgmr.msra.gmra.mxu3 %v1274_v42  ;;  %v1728_v31 = vld [vmem:[%s2164_s1 + $0x160] sm:$0xff]  ;;  %v1726_v42 = vld [vmem:[%s2164_s1 + $0x150] sm:$0xff] }
  0x2e   : > { %1004 = vmatmul.bf16.vlgmr.msra.gmra.mxu2 %v1270_v34  ;;  %1116 = vmatpush.bf16.msrb.mxu3 %v1747_v39  ;;  %v1299_v34 = vld [vmem:[%s1887_s9 + $0x6c] sm:$0xf0]  ;;  %v1751_v39 = vld [vmem:[%s2164_s1 + $0x218] sm:$0xff] }
  0x2f   : > { %v1302_v36 = vor.u32 %v1666_v33, %v1299_v34 }
  0x30   : > { %973 = vmatpush.bf16.msrb.mxu1 %v1698_v38  ;;  %1045 = vmatpush.bf16.msrb.mxu0 %v1722_v40  ;;  %v1672_v38 = vld [vmem:[%s1887_s9 + $0x78] sm:$0xf0]  ;;  %v1285_v40 = vld [vmem:[%s1887_s9 + $0x18] sm:$0xf] }
  0x31   : > { %1093 = vmatpush.bf16.msrb.mxu2 %v1738_v41  ;;  %v1664_v41 = vld [vmem:[%s1887_s9 + $0x38] sm:$0xf0] }
  0x32   : > { %1117 = vmatpush.bf16.msrb.mxu3 %v1746_v44  ;;  %v1286_v44 = vor.u32 %v1664_v41, %v1285_v40 }
  0x34   : > { %974 = vmatpush.bf16.msrb.mxu1 %v1697_v43  ;;  %1046 = vmatpush.bf16.msrb.mxu0 %v1721_v45  ;;  %v1314_v43 = vor.u32 %v1672_v38, %v1313_v37  ;;  %v1660_v45 = vld [vmem:[%s1887_s9 + $0x1c] sm:$0xf] }
  0x35   : > { %1094 = vmatpush.bf16.msrb.mxu2 %v1737_v46  ;;  %v1287_v46 = vld [vmem:[%s1887_s9 + $0x3c] sm:$0xf0] }
  0x36   : > { %1118 = vmatpush.bf16.msrb.mxu3 %v1745_v48  ;;  %v1725_v48 = vld [vmem:[%s2164_s1 + $0x148] sm:$0xff] }
  0x38   : > { %975 = vmatpush.bf16.msrb.mxu1 %v1696_v47  ;;  %1047 = vmatpush.bf16.msrb.mxu0 %v1720_v49  ;;  %v1750_v47 = vld [vmem:[%s2164_s1 + $0x210] sm:$0xff]  ;;  %v1290_v49 = vor.u32 %v1660_v45, %v1287_v46 }
  0x39   : > { %1095 = vmatpush.bf16.msrb.mxu2 %v1736_v50  ;;  %v1749_v50 = vld [vmem:[%s2164_s1 + $0x208] sm:$0xff] }
  0x3a   : > { %1119 = vmatpush.bf16.msrb.mxu3 %v1744_v62  ;;  %v1669_v62 = vld [vmem:[%s1887_s9 + $0x64] sm:$0xf] }
  0x3b   : > { %961 = vmatmul.bf16.gmra.mxu0 %v1298_v58  ;;  %v1321_v58 = vld [vmem:[%s1887_s9 + $0x60] sm:$0xf] }
  0x3c   : > { %976 = vmatpush.bf16.msrb.mxu1 %v1695_v53  ;;  %1048 = vmatpush.bf16.msrb.mxu0 %v1719_v56  ;;  %v1675_v53 = vld [vmem:[%s1887_s9 + $0x94] sm:$0xf]  ;;  %v1349_v56 = vld [vmem:[%s1887_s9 + $0xa0] sm:$0xf] }
  0x3d   : > { %1096 = vmatpush.bf16.msrb.mxu2 %v1735_v57  ;;  %1033 = vmatmul.bf16.gmra.mxu3 %v1310_v2  ;;  %v1338_v55 = vor.u32 %v1675_v53, %v1335_v54  ;;  %v1681_v57 = vld [vmem:[%s1887_s9 + $0xc0] sm:$0xf0]  ;;  %v1279_v2 = vld [vmem:[%s1887_s9 + $0x34] sm:$0xf0] }
  0x3e   : > { %1009 = vmatmul.bf16.gmra.mxu2 %v1306_v59  ;;  %1120 = vmatpush.bf16.msrb.mxu3 %v1743_v3  ;;  %v1673_v59 = vld [vmem:[%s1887_s9 + $0x80] sm:$0xf0]  ;;  %v1350_v60 = vor.u32 %v1681_v57, %v1349_v56 }
  0x3f   : > { %v1322_v61 = vor.u32 %v1673_v59, %v1321_v58 }
  0x40   : > { %977 = vmatpush.bf16.msrb.mxu1 %v1694_v63  ;;  %1049 = vmatpush.bf16.msrb.mxu0 %v1718_v0  ;;  %v1323_v63 = vld [vmem:[%s1887_s9 + $0x84] sm:$0xf0] }
  0x41   : > { %1097 = vmatpush.bf16.msrb.mxu2 %v1734_v1  ;;  %v1326_v0 = vor.u32 %v1669_v62, %v1323_v63  ;;  %v1659_v1 = vld [vmem:[%s1887_s9 + $0x14] sm:$0xf] }
  0x42   : > { %1121 = vmatpush.bf16.msrb.mxu3 %v1742_v7  ;;  %v1282_v3 = vor.u32 %v1659_v1, %v1279_v2  ;;  %v1682_v7 = vld [vmem:[%s1887_s9 + $0xc8] sm:$0xf0] }
  0x44   : > { %978 = vmatpush.bf16.msrb.mxu1 %v1693_v4  ;;  %1050 = vmatpush.bf16.msrb.mxu0 %v1717_v5  ;;  %v1293_v4 = vld [vmem:[%s1887_s9 + $0x20] sm:$0xf]  ;;  %v1665_v5 = vld [vmem:[%s1887_s9 + $0x40] sm:$0xf0] }
  0x45   : > { %1098 = vmatpush.bf16.msrb.mxu2 %v1733_v6  ;;  %v1357_v6 = vld [vmem:[%s1887_s9 + $0xa8] sm:$0xf] }
  0x46   : > { %1122 = vmatpush.bf16.msrb.mxu3 %v1741_v18  ;;  %v1358_v9 = vor.u32 %v1682_v7, %v1357_v6  ;;  %v1365_v18 = vld [vmem:[%s1887_s9 + $0xb0] sm:$0xf] }
  0x48   : > { %979 = vmatpush.bf16.msrb.mxu1 %v1692_v8  ;;  %1051 = vmatpush.bf16.msrb.mxu0 %v1716_v12  ;;  %v1294_v8 = vor.u32 %v1665_v5, %v1293_v4 }
  0x49   : > { %1099 = vmatpush.bf16.msrb.mxu2 %v1732_v13  ;;  %v1668_v13 = vld [vmem:[%s1887_s9 + $0x5c] sm:$0xf] }
  0x4a   : > { %1123 = vmatpush.bf16.msrb.mxu3 %v1740_v27 }
  0x4b   : > { %980 = vmatmul.bf16.vlgmr.msrb.gmra.mxu1 %v1266_v15  ;;  %1052 = vmatmul.bf16.vlgmr.msrb.gmra.mxu0 %v1278_v22  ;;  %v1677_v22 = vld [vmem:[%s1887_s9 + $0xa4] sm:$0xf] }
  0x4c   : > { %1068 = vmatpush.bf16.msra.mxu1 %v1731_v11  ;;  %1140 = vmatpush.bf16.msra.mxu0 %v1755_v14  ;;  %v1359_v11 = vld [vmem:[%s1887_s9 + $0xcc] sm:$0xf0] }
  0x4d   : > { %1764 = vmatpush.bf16.msra.mxu2 %v1755_v14  ;;  %1038 = vmatmul.bf16.gmra.mxu3 %v1346_v29  ;;  %v1362_v12 = vor.u32 %v1678_v10, %v1359_v11  ;;  %v1315_v14 = vld [vmem:[%s1887_s9 + $0x7c] sm:$0xf0] }
  0x4e   : > { %1014 = vmatmul.bf16.gmra.mxu2 %v1342_v23  ;;  %v1318_v15 = vor.u32 %v1668_v13, %v1315_v14  ;;  %v1351_v23 = vld [vmem:[%s1887_s9 + $0xc4] sm:$0xf0]  ;;  %v2126_v14 = vld [vmem:[%s2166_s3] ss:$0 sm:$0xff] }
  0x4f   : > { %v1354_v24 = vor.u32 %v1677_v22, %v1351_v23 }
  0x50   : > { %1069 = vmatpush.bf16.msra.mxu1 %v1730_v21  ;;  %1141 = vmatpush.bf16.msra.mxu0 %v1754_v26  ;;  %v1366_v21 = vor.u32 %v1683_v19, %v1365_v18 }
  0x51   : > { %1765 = vmatpush.bf16.msra.mxu2 %v1754_v26 }
  0x54   : > { %1070 = vmatpush.bf16.msra.mxu1 %v1729_v28  ;;  %1142 = vmatpush.bf16.msra.mxu0 %v1753_v30 }
  0x55   : > { %1766 = vmatpush.bf16.msra.mxu2 %v1753_v30 }
  0x58   : > { %1071 = vmatpush.bf16.msra.mxu1 %v1728_v31  ;;  %1143 = vmatpush.bf16.msra.mxu0 %v1752_v32 }
  0x59   : > { %1767 = vmatpush.bf16.msra.mxu2 %v1752_v32 }
  0x5b   : > { %985 = vmatmul.bf16.gmra.mxu1 %v1302_v36  ;;  %1057 = vmatmul.bf16.gmra.mxu0 %v1314_v43 }
  0x5c   : > { %1072 = vmatpush.bf16.msra.mxu1 %v1727_v35  ;;  %1144 = vmatpush.bf16.msra.mxu0 %v1751_v39 }
  0x5d   : > { %1768 = vmatpush.bf16.msra.mxu2 %v1751_v39  ;;  %1124 = vmatmul.bf16.vlgmr.msrb.gmra.mxu3 %v1290_v49 }
  0x5e   : > { %1100 = vmatmul.bf16.vlgmr.msrb.gmra.mxu2 %v1286_v44 }
  0x60   : > { %1073 = vmatpush.bf16.msra.mxu1 %v1726_v42  ;;  %1145 = vmatpush.bf16.msra.mxu0 %v1750_v47 }
  0x61   : > { %1769 = vmatpush.bf16.msra.mxu2 %v1750_v47 }
  0x64   : > { %1074 = vmatpush.bf16.msra.mxu1 %v1725_v48  ;;  %1146 = vmatpush.bf16.msra.mxu0 %v1749_v50 }
  0x65   : > { %1770 = vmatpush.bf16.msra.mxu2 %v1749_v50 }
  0x68   : > { %1075 = vmatpush.bf16.msra.mxu1 %v1724_v51  ;;  %1147 = vmatpush.bf16.msra.mxu0 %v1748_v52 }
  0x69   : > { %1771 = vmatpush.bf16.msra.mxu2 %v1748_v52 }
  0x6b   : > { %990 = vmatmul.bf16.gmra.mxu1 %v1338_v55  ;;  %1062 = vmatmul.bf16.gmra.mxu0 %v1350_v60 }
  0x6d   : > { %1129 = vmatmul.bf16.gmra.mxu3 %v1326_v0 }
  0x6e   : > { %1105 = vmatmul.bf16.gmra.mxu2 %v1322_v61 }
  0x7b   : > { %1076 = vmatmul.bf16.vlgmr.msra.gmra.mxu1 %v1282_v3  ;;  %1148 = vmatmul.bf16.vlgmr.msra.gmra.mxu0 %v1294_v8 }
  0x7d   : > { %1134 = vmatmul.bf16.gmra.mxu3 %v1362_v12 }
  0x7e   : > { %1110 = vmatmul.bf16.gmra.mxu2 %v1358_v9  ;;  %v2121_v9 = vld [vmem:[%s2165_s2] ss:$0 sm:$0xff] }
  0x8b   : > { %1081 = vmatmul.bf16.gmra.mxu1 %v1318_v15  ;;  %1153 = vmatmul.bf16.gmra.mxu0 %v1330_v20 }
  0x8e   : > { %1158 = vmatmul.bf16.vlgmr.msra.gmra.mxu2 %v1366_v21 }
  0x9b   : > { %1086 = vmatmul.bf16.gmra.mxu1 %v1354_v24 }
  0xa8   : > { %v957_v25 = vpop.f32.mrf.mxu0  ;;  %v2102_v28 = vpop.f32.mrf.mxu1 }
  0xb0   : > { %v959_v27 = vpop.f32.mrf.mxu0  ;;  %v1029_v29 = vpop.f32.mrf.mxu3 }
  0xb1   : > { %v1005_v26 = vpop.f32.mrf.mxu2  ;;  %v2104_v32 = vpop.f32.mrf.mxu1 }
  0xb8   : > { %v962_v31 = vpop.f32.mrf.mxu0  ;;  %v1031_v33 = vpop.f32.mrf.mxu3 }
  0xb9   : > { %v1007_v30 = vpop.f32.mrf.mxu2 }
  0xc0   : > { %v964_v35 = vpop.f32.mrf.mxu0  ;;  %v1034_v38 = vpop.f32.mrf.mxu3 }
  0xc1   : > { %v1010_v34 = vpop.f32.mrf.mxu2 }
  0xc8   : > { %v981_v36 = vpop.f32.mrf.mxu1  ;;  %v1053_v39 = vpop.f32.mrf.mxu0 }
  0xc9   : > { %v1012_v37 = vpop.f32.mrf.mxu2  ;;  %v1036_v43 = vpop.f32.mrf.mxu3  ;;  %v982_v54 = vadd.f32 %v981_v36, %v957_v25 }
  0xcb   : > { %v1006_v56 = vadd.f32 %v1005_v26, %v982_v54 }
  0xcd   : > { %v1030_v59 = vadd.f32 %v1029_v29, %v1006_v56 }
  0xcf   : > { %v1054_v63 = vadd.f32 %v1053_v39, %v1030_v59 }
  0xd0   : > { %v983_v40 = vpop.f32.mrf.mxu1  ;;  %v1055_v42 = vpop.f32.mrf.mxu0 }
  0xd1   : > { %v2106_v41 = vpop.f32.mrf.mxu2  ;;  %v2110_v47 = vpop.f32.mrf.mxu3  ;;  %v984_v60 = vadd.f32 %v983_v40, %v959_v27 }
  0xd3   : > { %v1008_v0 = vadd.f32 %v1007_v30, %v984_v60 }
  0xd5   : > { %v1032_v3 = vadd.f32 %v1031_v33, %v1008_v0 }
  0xd7   : > { %v1056_v11 = vadd.f32 %v1055_v42, %v1032_v3 }
  0xd8   : > { %v986_v44 = vpop.f32.mrf.mxu1  ;;  %v1058_v46 = vpop.f32.mrf.mxu0 }
  0xd9   : > { %v2108_v45 = vpop.f32.mrf.mxu2  ;;  %v2112_v52 = vpop.f32.mrf.mxu3  ;;  %v987_v4 = vadd.f32 %v986_v44, %v962_v31 }
  0xdb   : > { %v1011_v12 = vadd.f32 %v1010_v34, %v987_v4 }
  0xdd   : > { %v1035_v18 = vadd.f32 %v1034_v38, %v1011_v12 }
  0xdf   : > { %v1059_v26 = vadd.f32 %v1058_v46, %v1035_v18 }
  0xe0   : > { %v988_v48 = vpop.f32.mrf.mxu1  ;;  %v1060_v50 = vpop.f32.mrf.mxu0 }
  0xe1   : > { %v1101_v49 = vpop.f32.mrf.mxu2  ;;  %v1125_v58 = vpop.f32.mrf.mxu3  ;;  %v989_v19 = vadd.f32 %v988_v48, %v964_v35 }
  0xe3   : > { %v1013_v27 = vadd.f32 %v1012_v37, %v989_v19 }
  0xe5   : > { %v1037_v35 = vadd.f32 %v1036_v43, %v1013_v27 }
  0xe7   : > { %v1061_v48 = vadd.f32 %v1060_v50, %v1037_v35 }
  0xe8   : > { %v991_v51 = vpop.f32.mrf.mxu1  ;;  %v2114_v55 = vpop.f32.mrf.mxu0 }
  0xe9   : > { %v1103_v53 = vpop.f32.mrf.mxu2  ;;  %v1127_v7 = vpop.f32.mrf.mxu3  ;;  %v992_v36 = vadd.f32 %v991_v51, %v2102_v28 }
  0xeb   : > { %v1016_v37 = vadd.f32 %v2106_v41, %v992_v36 }
  0xed   : > { %v1040_v28 = vadd.f32 %v2110_v47, %v1016_v37 }
  0xef   : > { %v1064_v41 = vadd.f32 %v2114_v55, %v1040_v28 }
  0xf0   : > { %v993_v57 = vpop.f32.mrf.mxu1  ;;  %v2116_v61 = vpop.f32.mrf.mxu0 }
  0xf1   : > { %v1106_v62 = vpop.f32.mrf.mxu2  ;;  %v1130_v25 = vpop.f32.mrf.mxu3  ;;  %v994_v51 = vadd.f32 %v993_v57, %v2104_v32 }
  0xf8   : > { %v1077_v1 = vpop.f32.mrf.mxu1  ;;  %v1149_v6 = vpop.f32.mrf.mxu0 }
  0xf9   : > { %v1078_v2 = vadd.f32 %v1077_v1, %v1054_v63  ;;  %v1108_v10 = vpop.f32.mrf.mxu2  ;;  %v1018_v63 = vadd.f32 %v2108_v45, %v994_v51 }
  0xfb   : > { %v1102_v5 = vadd.f32 %v1101_v49, %v1078_v2  ;;  %v1132_v49 = vpop.f32.mrf.mxu3  ;;  %v1042_v32 = vadd.f32 %v2112_v52, %v1018_v63 }
  0xfd   : > { %v1126_v8 = vadd.f32 %v1125_v58, %v1102_v5  ;;  %v1066_v55 = vadd.f32 %v2116_v61, %v1042_v32 }
  0xff   : > { %v1150_v13 = vadd.f32 %v1149_v6, %v1126_v8 }
 0x100   : > { %v1079_v15 = vpop.f32.mrf.mxu1  ;;  %v1151_v22 = vpop.f32.mrf.mxu0 }
 0x101   : > { %v1168_v16 = vmul.f32 %v2121_v9, %v1150_v13  ;;  %v1080_v17 = vadd.f32 %v1079_v15, %v1056_v11  ;;  %v1111_v30 = vpop.f32.mrf.mxu2 }
 0x103   : > { %v1178_v20 = vadd.f32 %v2126_v14, %v1168_v16  ;;  %v1104_v21 = vadd.f32 %v1103_v53, %v1080_v17  ;;  %v1135_v47 = vpop.f32.mrf.mxu3 }
 0x105   : > { %v1184_v23 = vmax.f32 %v1178_v20, 0.0  ;;  %v1128_v24 = vadd.f32 %v1127_v7, %v1104_v21 }
 0x107   : > { %1190 = vst [vmem:[%s2134_s6] sm:$0xff] %v1184_v23  ;;  %v1152_v29 = vadd.f32 %v1151_v22, %v1128_v24 }
 0x108   : > { %v1082_v31 = vpop.f32.mrf.mxu1  ;;  %v1154_v40 = vpop.f32.mrf.mxu0 }
 0x109   : > { %v1169_v33 = vmul.f32 %v2121_v9, %v1152_v29  ;;  %v1083_v34 = vadd.f32 %v1082_v31, %v1059_v26  ;;  %v1113_v43 = vpop.f32.mrf.mxu2 }
 0x10b   : > { %v1179_v38 = vadd.f32 %v2126_v14, %v1169_v33  ;;  %v1107_v39 = vadd.f32 %v1106_v62, %v1083_v34  ;;  %v1137_v52 = vpop.f32.mrf.mxu3 }
 0x10d   : > { %v1185_v42 = vmax.f32 %v1179_v38, 0.0  ;;  %v1131_v44 = vadd.f32 %v1130_v25, %v1107_v39 }
 0x10f   : > { %1191 = vst [vmem:[%s2134_s6 + $0x8] sm:$0xff] %v1185_v42  ;;  %v1155_v46 = vadd.f32 %v1154_v40, %v1131_v44 }
 0x110   : > { %v1084_v53 = vpop.f32.mrf.mxu1  ;;  %v1156_v60 = vpop.f32.mrf.mxu0 }
 0x111   : > { %v1170_v54 = vmul.f32 %v2121_v9, %v1155_v46  ;;  %v1085_v56 = vadd.f32 %v1084_v53, %v1061_v48  ;;  %v1159_v5 = vpop.f32.mrf.mxu2 }
 0x113   : > { %v1180_v58 = vadd.f32 %v2126_v14, %v1170_v54  ;;  %v1109_v59 = vadd.f32 %v1108_v10, %v1085_v56 }
 0x115   : > { %v1186_v50 = vmax.f32 %v1180_v58, 0.0  ;;  %v1133_v62 = vadd.f32 %v1132_v49, %v1109_v59 }
 0x117   : > { %1192 = vst [vmem:[%s2134_s6 + $0x10] sm:$0xff] %v1186_v50  ;;  %v1157_v0 = vadd.f32 %v1156_v60, %v1133_v62 }
 0x118   : > { %v1087_v1 = vpop.f32.mrf.mxu1 }
 0x119   : > { %v1171_v2 = vmul.f32 %v2121_v9, %v1157_v0  ;;  %v1088_v3 = vadd.f32 %v1087_v1, %v1064_v41  ;;  %v1161_v17 = vpop.f32.mrf.mxu2 }
 0x11b   : > { %v1181_v57 = vadd.f32 %v2126_v14, %v1171_v2  ;;  %v1112_v4 = vadd.f32 %v1111_v30, %v1088_v3 }
 0x11d   : > { %v1187_v6 = vmax.f32 %v1181_v57, 0.0  ;;  %v1136_v7 = vadd.f32 %v1135_v47, %v1112_v4 }
 0x11f   : > { %1193 = vst [vmem:[%s2134_s6 + $0x18] sm:$0xff] %v1187_v6  ;;  %v1160_v45 = vadd.f32 %v1159_v5, %v1136_v7 }
 0x120   : > { %v1089_v8 = vpop.f32.mrf.mxu1 }
 0x121   : > { %v1172_v10 = vmul.f32 %v2121_v9, %v1160_v45  ;;  %v1090_v11 = vadd.f32 %v1089_v8, %v1066_v55 }
 0x123   : > { %v1182_v12 = vadd.f32 %v2126_v14, %v1172_v10  ;;  %v1114_v13 = vadd.f32 %v1113_v43, %v1090_v11 }
 0x125   : > { %v1188_v15 = vmax.f32 %v1182_v12, 0.0  ;;  %v1138_v16 = vadd.f32 %v1137_v52, %v1114_v13 }
 0x127   : > { %1194 = vst [vmem:[%s2134_s6 + $0x20] sm:$0xff] %v1188_v15  ;;  %v1162_v18 = vadd.f32 %v1161_v17, %v1138_v16 }
 0x129   : > { %v1173_v19 = vmul.f32 %v2121_v9, %v1162_v18 }
 0x12b   : > { %v1183_v61 = vadd.f32 %v2126_v14, %v1173_v19 }
 0x12d   : > { %v1189_v20 = vmax.f32 %v1183_v61, 0.0 }
 0x12f   : > { %1195 = vst [vmem:[%s2134_s6 + $0x28] sm:$0xff] %v1189_v20 }
 0x130 PF: > { %s14_s15 = sadd.s32 1, %s1789_s15  }
 0x131   : > { %p11_p4 = scmp.ge.s32.totalorder %s14_s15, 4  }
 0x133   :  { %13 = sbr.rel (!%p11_p4) target bundleno = 1 (0x1), region = 66 }

// kernel: my_net_res50_forward.34
= control target key start
LH: loop header
LB: loop body
LE: loop exit
PB: predicated region body
PF: predicated region fallthrough
CT: control target
= control target key end

     0   :  { %s684_s15 = smov 0   ;;  %s784_s0 = inlined_call_operand.vmem [shape: bf16[96,256], index: 0, kind: input, shape index: {}]   ;;  %s785_s1 = inlined_call_operand.vmem [shape: bf16[256,128], index: 1, kind: input, shape index: {}]   ;;  %s786_s2 = inlined_call_operand.vmem [shape: f32[1,128], index: 2, kind: input, shape index: {}]   ;;  %s787_s3 = inlined_call_operand.vmem [shape: f32[1,128], index: 3, kind: input, shape index: {}]   ;;  %s788_s4 = inlined_call_operand.vmem [shape: f32[96,128], index: 4, kind: output, shape index: {}]  }
   0x1 LB: > { %s504_s16 = sadd.s32 4294967295, %s657_s15   ;;  %p508_p0 = scmp.ge.s32.totalorder %s657_s15, 1  ;;  %s657_s15 = sphi %s684_s15, %s14_s15  }
   0x2   : > { %p164_p1 = scmp.lt.s32.totalorder %s657_s15, 3 }
   0x4   : > { %p165_p2 = pnand %p508_p0, %p164_p1 }
   0x5   : > { %s191_s29 = smul.u32 (!%p165_p2), 6, %s504_s16 }
   0x6   : > { %168 = sbr.rel (%p165_p2) target bundleno = 209 (0xd1), region = 36 }
   0x7   : > { %p192_p3 = scmp.lt.s32.totalorder (!%p165_p2), %s191_s29, 11 }
   0xb   : > { %v616_v0 = vld [vmem:[%s785_s1 + $0x38] sm:$0xff]  ;;  %v615_v2 = vld [vmem:[%s785_s1 + $0x30] sm:$0xff]  ;;  %v614_v4 = vld [vmem:[%s785_s1 + $0x28] sm:$0xff]  ;;  %s790_s29 = smov (!%p192_p3, %s191_s29), 11 }
   0xc   : > { %v624_v1 = vld [vmem:[%s785_s1 + $0x78] sm:$0xff]  ;;  %625 = vmatpush.bf16.msra.mxu2 %v616_v0  ;;  %v623_v3 = vld [vmem:[%s785_s1 + $0x70] sm:$0xff]  ;;  %368 = vmatpush.bf16.msra.mxu0 %v616_v0  ;;  %v622_v5 = vld [vmem:[%s785_s1 + $0x68] sm:$0xff]  ;;  %s602_s17 = sshll.u32 %s790_s29, 3 }
   0xd   : > { %633 = vmatpush.bf16.msra.mxu3 %v624_v1  ;;  %392 = vmatpush.bf16.msra.mxu1 %v624_v1  ;;  %v613_v6 = vld [vmem:[%s785_s1 + $0x20] sm:$0xff]  ;;  %v612_v8 = vld [vmem:[%s785_s1 + $0x18] sm:$0xff]  ;;  %v611_v10 = vld [vmem:[%s785_s1 + $0x10] sm:$0xff]  ;;  %s742_s24 = scalar_lea.vmem %s784_s0, %s602_s17  ;;  %s773_s10 = scalar_lea.vmem %s788_s4, %s602_s17 }
   0xe   : > { %v621_v7 = vld [vmem:[%s785_s1 + $0x60] sm:$0xff]  ;;  %v620_v9 = vld [vmem:[%s785_s1 + $0x58] sm:$0xff]  ;;  %v619_v11 = vld [vmem:[%s785_s1 + $0x50] sm:$0xff] }
   0xf   : > { %v610_v12 = vld [vmem:[%s785_s1 + $0x8] sm:$0xff]  ;;  %v609_v14 = vld [vmem:[%s785_s1] sm:$0xff]  ;;  %v522_v16 = vld [vmem:[%s742_s24 + $0x10] sm:$0xf] }
  0x10   : > { %626 = vmatpush.bf16.msra.mxu2 %v615_v2  ;;  %369 = vmatpush.bf16.msra.mxu0 %v615_v2  ;;  %v618_v13 = vld [vmem:[%s785_s1 + $0x48] sm:$0xff]  ;;  %v617_v15 = vld [vmem:[%s785_s1 + $0x40] sm:$0xff]  ;;  %v606_v17 = vld [vmem:[%s742_s24 + $0x14] sm:$0xf0] }
  0x11   : > { %634 = vmatpush.bf16.msra.mxu3 %v623_v3  ;;  %393 = vmatpush.bf16.msra.mxu1 %v623_v3  ;;  %v605_v18 = vld [vmem:[%s742_s24 + $0x14] sm:$0xf]  ;;  %v524_v19 = vld [vmem:[%s742_s24 + $0x18] sm:$0xf0]  ;;  %v514_v20 = vld [vmem:[%s742_s24] sm:$0xf]  ;;  %v523_v24 = vor.u32 %v606_v17, %v522_v16 }
  0x12   : > { %v604_v21 = vld [vmem:[%s742_s24 + $0x4] sm:$0xf0]  ;;  %v603_v22 = vld [vmem:[%s742_s24 + $0x4] sm:$0xf]  ;;  %v516_v23 = vld [vmem:[%s742_s24 + $0x8] sm:$0xf0]  ;;  %v527_v25 = vor.u32 %v605_v18, %v524_v19 }
  0x13   : > { %v515_v26 = vor.u32 %v604_v21, %v514_v20  ;;  %v519_v27 = vor.u32 %v603_v22, %v516_v23  ;;  %v530_v28 = vld [vmem:[%s742_s24 + $0x20] sm:$0xf]  ;;  %v608_v29 = vld [vmem:[%s742_s24 + $0x24] sm:$0xf0]  ;;  %v607_v30 = vld [vmem:[%s742_s24 + $0x24] sm:$0xf] }
  0x14   : > { %627 = vmatpush.bf16.msra.mxu2 %v614_v4  ;;  %370 = vmatpush.bf16.msra.mxu0 %v614_v4  ;;  %v532_v31 = vld [vmem:[%s742_s24 + $0x28] sm:$0xf0]  ;;  %v531_v32 = vor.u32 %v608_v29, %v530_v28  ;;  %v649_v36 = vld [vmem:[%s786_s2] ss:$0 sm:$0xff] }
  0x15   : > { %635 = vmatpush.bf16.msra.mxu3 %v622_v5  ;;  %394 = vmatpush.bf16.msra.mxu1 %v622_v5  ;;  %v535_v33 = vor.u32 %v607_v30, %v532_v31  ;;  %v650_v38 = vld [vmem:[%s787_s3] ss:$0 sm:$0xff] }
  0x18   : > { %628 = vmatpush.bf16.msra.mxu2 %v613_v6  ;;  %371 = vmatpush.bf16.msra.mxu0 %v613_v6 }
  0x19   : > { %636 = vmatpush.bf16.msra.mxu3 %v621_v7  ;;  %395 = vmatpush.bf16.msra.mxu1 %v621_v7 }
  0x1c   : > { %629 = vmatpush.bf16.msra.mxu2 %v612_v8  ;;  %372 = vmatpush.bf16.msra.mxu0 %v612_v8 }
  0x1d   : > { %637 = vmatpush.bf16.msra.mxu3 %v620_v9  ;;  %396 = vmatpush.bf16.msra.mxu1 %v620_v9 }
  0x20   : > { %630 = vmatpush.bf16.msra.mxu2 %v611_v10  ;;  %373 = vmatpush.bf16.msra.mxu0 %v611_v10 }
  0x21   : > { %638 = vmatpush.bf16.msra.mxu3 %v619_v11  ;;  %397 = vmatpush.bf16.msra.mxu1 %v619_v11 }
  0x24   : > { %631 = vmatpush.bf16.msra.mxu2 %v610_v12  ;;  %374 = vmatpush.bf16.msra.mxu0 %v610_v12 }
  0x25   : > { %639 = vmatpush.bf16.msra.mxu3 %v618_v13  ;;  %398 = vmatpush.bf16.msra.mxu1 %v618_v13 }
  0x28   : > { %632 = vmatpush.bf16.msra.mxu2 %v609_v14  ;;  %375 = vmatpush.bf16.msra.mxu0 %v609_v14 }
  0x29   : > { %640 = vmatpush.bf16.msra.mxu3 %v617_v15  ;;  %399 = vmatpush.bf16.msra.mxu1 %v617_v15 }
  0x2b   : > { %381 = vmatmul.bf16.vlgmr.msra.gmra.mxu2 %v523_v24  ;;  %376 = vmatmul.bf16.vlgmr.msra.gmra.mxu0 %v515_v26 }
  0x2c   : > { %405 = vmatmul.bf16.vlgmr.msra.gmra.mxu3 %v527_v25  ;;  %400 = vmatmul.bf16.vlgmr.msra.gmra.mxu1 %v519_v27 }
  0x3b   : > { %386 = vmatmul.bf16.gmra.mxu2 %v531_v32 }
  0x3c   : > { %410 = vmatmul.bf16.gmra.mxu3 %v535_v33 }
  0xa8   : > { %v377_v34 = vpop.f32.mrf.mxu0 }
  0xa9   : > { %v401_v35 = vpop.f32.mrf.mxu1 }
  0xaa   : > { %v402_v37 = vadd.f32 %v401_v35, %v377_v34 }
  0xac   : > { %v420_v39 = vmul.f32 %v649_v36, %v402_v37 }
  0xae   : > { %v382_v40 = vpop.f32.mrf.mxu2  ;;  %v430_v42 = vadd.f32 %v650_v38, %v420_v39 }
  0xaf   : > { %v406_v41 = vpop.f32.mrf.mxu3 }
  0xb0   : > { %v407_v43 = vadd.f32 %v406_v41, %v382_v40  ;;  %v436_v44 = vmax.f32 %v430_v42, 0.0  ;;  %v379_v46 = vpop.f32.mrf.mxu0 }
  0xb1   : > { %v403_v47 = vpop.f32.mrf.mxu1 }
  0xb2   : > { %v422_v45 = vmul.f32 %v649_v36, %v407_v43  ;;  %442 = vst [vmem:[%s773_s10] sm:$0xff] %v436_v44  ;;  %v404_v48 = vadd.f32 %v403_v47, %v379_v46 }
  0xb4   : > { %v432_v49 = vadd.f32 %v650_v38, %v422_v45  ;;  %v421_v50 = vmul.f32 %v649_v36, %v404_v48 }
  0xb6   : > { %v438_v51 = vmax.f32 %v432_v49, 0.0  ;;  %v384_v52 = vpop.f32.mrf.mxu2  ;;  %v431_v54 = vadd.f32 %v650_v38, %v421_v50 }
  0xb7   : > { %v408_v53 = vpop.f32.mrf.mxu3 }
  0xb8   : > { %444 = vst [vmem:[%s773_s10 + $0x10] sm:$0xff] %v438_v51  ;;  %v409_v55 = vadd.f32 %v408_v53, %v384_v52  ;;  %v437_v56 = vmax.f32 %v431_v54, 0.0 }
  0xba   : > { %v423_v57 = vmul.f32 %v649_v36, %v409_v55  ;;  %443 = vst [vmem:[%s773_s10 + $0x8] sm:$0xff] %v437_v56 }
  0xbc   : > { %v433_v58 = vadd.f32 %v650_v38, %v423_v57 }
  0xbe   : > { %v439_v59 = vmax.f32 %v433_v58, 0.0  ;;  %v387_v60 = vpop.f32.mrf.mxu2 }
  0xbf   : > { %v411_v61 = vpop.f32.mrf.mxu3 }
  0xc0   : > { %445 = vst [vmem:[%s773_s10 + $0x18] sm:$0xff] %v439_v59  ;;  %v412_v62 = vadd.f32 %v411_v61, %v387_v60 }
  0xc2   : > { %v424_v63 = vmul.f32 %v649_v36, %v412_v62 }
  0xc4   : > { %v434_v0 = vadd.f32 %v650_v38, %v424_v63 }
  0xc6   : > { %v440_v1 = vmax.f32 %v434_v0, 0.0  ;;  %v389_v2 = vpop.f32.mrf.mxu2 }
  0xc7   : > { %v413_v3 = vpop.f32.mrf.mxu3 }
  0xc8   : > { %446 = vst [vmem:[%s773_s10 + $0x20] sm:$0xff] %v440_v1  ;;  %v414_v4 = vadd.f32 %v413_v3, %v389_v2 }
  0xca   : > { %v425_v5 = vmul.f32 %v649_v36, %v414_v4 }
  0xcc   : > { %v435_v6 = vadd.f32 %v650_v38, %v425_v5 }
  0xce   : > { %v441_v7 = vmax.f32 %v435_v6, 0.0 }
  0xd0   : > { %447 = vst [vmem:[%s773_s10 + $0x28] sm:$0xff] %v441_v7 }
  0xd1 PF: > { %s14_s15 = sadd.s32 1, %s657_s15  }
  0xd2   : > { %p11_p4 = scmp.ge.s32.totalorder %s14_s15, 4  }
  0xd4   :  { %13 = sbr.rel (!%p11_p4) target bundleno = 1 (0x1), region = 66 }

// kernel: my_net_res50_forward.38
= control target key start
LH: loop header
LB: loop body
LE: loop exit
PB: predicated region body
PF: predicated region fallthrough
CT: control target
= control target key end

     0   :  { %9 = vsyncpa [#allocation3], 0  ;;  %s2336_s0 = inlined_call_operand.vmem [shape: bf16[96,1152], index: 0, kind: input, shape index: {}]   ;;  %s2337_s1 = inlined_call_operand.vmem [shape: bf16[1152,128], index: 1, kind: input, shape index: {}]   ;;  %s2338_s2 = inlined_call_operand.hbm [shape: f32[1,128], index: 2, kind: input, shape index: {}]   ;;  %s2339_s3 = inlined_call_operand.hbm [shape: f32[1,128], index: 3, kind: input, shape index: {}]   ;;  %s2340_s4 = inlined_call_operand.vmem [shape: f32[96,128], index: 4, kind: output, shape index: {}]  }
   0x1   :  { %10 = vsyncpa [#allocation5], 0  ;;  %s1963_s15 = smov 0  }
   0x2 LB: > { %s151_s18 = sshll.u32 %s2338_s2, 4  ;;  %s1304_s19 = sadd.s32 4294967295, %s1934_s15   ;;  %s1934_s15 = sphi %s1963_s15, %s16_s15   ;;  %s152_s18 = int_to_ptr.hbm [resolvable:$true] %s151_s18 }
   0x3   : > { %p1306_p0 = scmp.ge.s32.totalorder %s1934_s15, 1  ;;  %p136_p1 = scmp.lt.s32.totalorder %s1934_s15, 3 }
   0x4   : > { %p1976_p2 = scmp.eq.s32.totalorder %s1304_s19, 0  ;;  %s1936_s22 = smov [#allocation2]  }
   0x5   : > { %p1980_p3 = pnand %p1306_p0, %p136_p1  ;;  %s153_s23 = sshll.u32 %s1936_s22, 4  ;;  %s154_s23 = int_to_ptr.vmem [resolvable:$true] %s153_s23 }
   0x6   : > { %s163_s26 = sshll.u32 %s2339_s3, 4  ;;  %s1937_s27 = smov [#allocation4]   ;;  %s164_s26 = int_to_ptr.hbm [resolvable:$true] %s163_s26 }
   0x7   : > { %p1837_p4 = pneg %p1980_p3  ;;  %s165_s28 = sshll.u32 %s1937_s27, 4  ;;  %s166_s28 = int_to_ptr.vmem [resolvable:$true] %s165_s28 }
   0x8   : > { %188 = sbr.rel (%p1980_p3) target bundleno = 309 (0x135), region = 36 }
   0x9   : > { %p1838_p5 = pnand %p1976_p2, %p1837_p4 }
   0xb   : > { %1840 = dma.hbm_to_vmem [thread:$0]  (!%p1838_p5), %s152_s18, 16, %s154_s23, [#allocation3]  }
   0xc   : > { %1843 = dma.hbm_to_vmem [thread:$0]  (!%p1838_p5), %s164_s26, 16, %s166_s28, [#allocation5]  }
   0xd   : > { %1925 = dma.done.wait (%p1976_p2), [#allocation3], 16  }
   0xe   : > { %1927 = vsyncadd (%p1976_p2), [#allocation3], 4294967280 }
   0xf   : > { %1929 = dma.done.wait (%p1976_p2), [#allocation5], 16  }
  0x10   : > { %1931 = vsyncadd (%p1976_p2), [#allocation5], 4294967280  ;;  %v1747_v0 = vld [vmem:[%s2337_s1 + $0x38] sm:$0xff]  ;;  %v1746_v2 = vld [vmem:[%s2337_s1 + $0x30] sm:$0xff]  ;;  %s221_s18 = smul.u32 6, %s1304_s19 }
  0x11   : > { %v1763_v1 = vld [vmem:[%s2337_s1 + $0xb8] sm:$0xff]  ;;  %1812 = vmatpush.bf16.msra.mxu1 %v1747_v0  ;;  %978 = vmatpush.bf16.msra.mxu0 %v1747_v0  ;;  %v1762_v3 = vld [vmem:[%s2337_s1 + $0xb0] sm:$0xff]  ;;  %v1745_v6 = vld [vmem:[%s2337_s1 + $0x28] sm:$0xff] }
  0x12   : > { %1026 = vmatpush.bf16.msra.mxu2 %v1763_v1  ;;  %v1771_v4 = vld [vmem:[%s2337_s1 + $0xf8] sm:$0xff]  ;;  %v1770_v5 = vld [vmem:[%s2337_s1 + $0xf0] sm:$0xff]  ;;  %v1761_v7 = vld [vmem:[%s2337_s1 + $0xa8] sm:$0xff]  ;;  %p222_p6 = scmp.lt.s32.totalorder %s221_s18, 11 }
  0x13   : > { %1050 = vmatpush.bf16.msra.mxu3 %v1771_v4  ;;  %v1769_v8 = vld [vmem:[%s2337_s1 + $0xe8] sm:$0xff]  ;;  %v1744_v9 = vld [vmem:[%s2337_s1 + $0x20] sm:$0xff]  ;;  %v1743_v12 = vld [vmem:[%s2337_s1 + $0x18] sm:$0xff] }
  0x14   : > { %v1760_v10 = vld [vmem:[%s2337_s1 + $0xa0] sm:$0xff]  ;;  %s2344_s18 = smov (!%p222_p6, %s221_s18), 11  ;;  %v1759_v13 = vld [vmem:[%s2337_s1 + $0x98] sm:$0xff]  ;;  %v1742_v15 = vld [vmem:[%s2337_s1 + $0x10] sm:$0xff] }
  0x15   : > { %1813 = vmatpush.bf16.msra.mxu1 %v1746_v2  ;;  %979 = vmatpush.bf16.msra.mxu0 %v1746_v2  ;;  %v1768_v11 = vld [vmem:[%s2337_s1 + $0xe0] sm:$0xff]  ;;  %v1767_v14 = vld [vmem:[%s2337_s1 + $0xd8] sm:$0xff]  ;;  %s1828_s11 = smul.u32 36, %s2344_s18  ;;  %v1758_v16 = vld [vmem:[%s2337_s1 + $0x90] sm:$0xff] }
  0x16   : > { %1027 = vmatpush.bf16.msra.mxu2 %v1762_v3  ;;  %v1766_v17 = vld [vmem:[%s2337_s1 + $0xd0] sm:$0xff]  ;;  %v1741_v18 = vld [vmem:[%s2337_s1 + $0x8] sm:$0xff]  ;;  %v1740_v20 = vld [vmem:[%s2337_s1] sm:$0xff] }
  0x17   : > { %1051 = vmatpush.bf16.msra.mxu3 %v1770_v5  ;;  %s2066_s23 = scalar_lea.vmem %s2336_s0, %s1828_s11  ;;  %v1757_v19 = vld [vmem:[%s2337_s1 + $0x88] sm:$0xff]  ;;  %v1755_v21 = vld [vmem:[%s2337_s1 + $0x78] sm:$0xff]  ;;  %v1756_v27 = vld [vmem:[%s2337_s1 + $0x80] sm:$0xff] }
  0x18   : > { %v1317_v22 = vld [vmem:[%s2066_s23] sm:$0xf]  ;;  %v1765_v23 = vld [vmem:[%s2337_s1 + $0xc8] sm:$0xff]  ;;  %v1717_v24 = vld [vmem:[%s2066_s23 + $0x20] sm:$0xf0] }
  0x19   : > { %1814 = vmatpush.bf16.msra.mxu1 %v1745_v6  ;;  %980 = vmatpush.bf16.msra.mxu0 %v1745_v6  ;;  %v1389_v25 = vld [vmem:[%s2066_s23 + $0x90] sm:$0xf]  ;;  %v1735_v26 = vld [vmem:[%s2066_s23 + $0xb0] sm:$0xf0]  ;;  %v1325_v28 = vld [vmem:[%s2066_s23 + $0x8] sm:$0xf]  ;;  %v1318_v32 = vor.u32 %v1717_v24, %v1317_v22 }
  0x1a   : > { %1028 = vmatpush.bf16.msra.mxu2 %v1761_v7  ;;  %v1718_v29 = vld [vmem:[%s2066_s23 + $0x28] sm:$0xf0]  ;;  %v1779_v30 = vld [vmem:[%s2337_s1 + $0x138] sm:$0xff]  ;;  %v1390_v33 = vor.u32 %v1735_v26, %v1389_v25  ;;  %v1764_v35 = vld [vmem:[%s2337_s1 + $0xc0] sm:$0xff] }
  0x1b   : > { %1052 = vmatpush.bf16.msra.mxu3 %v1769_v8  ;;  %v1795_v31 = vld [vmem:[%s2337_s1 + $0x1b8] sm:$0xff]  ;;  %v1326_v34 = vor.u32 %v1718_v29, %v1325_v28  ;;  %v1714_v36 = vld [vmem:[%s2066_s23 + $0xc] sm:$0xf]  ;;  %v1327_v37 = vld [vmem:[%s2066_s23 + $0x2c] sm:$0xf0] }
  0x1c   : > { %v1754_v38 = vld [vmem:[%s2337_s1 + $0x70] sm:$0xff]  ;;  %v1803_v39 = vld [vmem:[%s2337_s1 + $0x1f8] sm:$0xff]  ;;  %v1330_v42 = vor.u32 %v1714_v36, %v1327_v37  ;;  %v1753_v43 = vld [vmem:[%s2337_s1 + $0x68] sm:$0xff] }
  0x1d   : > { %1815 = vmatpush.bf16.msra.mxu1 %v1744_v9  ;;  %981 = vmatpush.bf16.msra.mxu0 %v1744_v9  ;;  %v1778_v40 = vld [vmem:[%s2337_s1 + $0x130] sm:$0xff]  ;;  %v1777_v45 = vld [vmem:[%s2337_s1 + $0x128] sm:$0xff]  ;;  %v1752_v47 = vld [vmem:[%s2337_s1 + $0x60] sm:$0xff] }
  0x1e   : > { %1029 = vmatpush.bf16.msra.mxu2 %v1760_v10  ;;  %v1794_v41 = vld [vmem:[%s2337_s1 + $0x1b0] sm:$0xff]  ;;  %v1793_v46 = vld [vmem:[%s2337_s1 + $0x1a8] sm:$0xff]  ;;  %v1776_v49 = vld [vmem:[%s2337_s1 + $0x120] sm:$0xff] }
  0x1f   : > { %1053 = vmatpush.bf16.msra.mxu3 %v1768_v11  ;;  %v1802_v44 = vld [vmem:[%s2337_s1 + $0x1f0] sm:$0xff]  ;;  %v1801_v48 = vld [vmem:[%s2337_s1 + $0x1e8] sm:$0xff]  ;;  %v1792_v50 = vld [vmem:[%s2337_s1 + $0x1a0] sm:$0xff] }
  0x20   : > { %v1353_v51 = vld [vmem:[%s2066_s23 + $0x48] sm:$0xf]  ;;  %v1726_v52 = vld [vmem:[%s2066_s23 + $0x68] sm:$0xf0]  ;;  %v1751_v53 = vld [vmem:[%s2337_s1 + $0x58] sm:$0xff] }
  0x21   : > { %1816 = vmatpush.bf16.msra.mxu1 %v1743_v12  ;;  %982 = vmatpush.bf16.msra.mxu0 %v1743_v12  ;;  %v1361_v54 = vld [vmem:[%s2066_s23 + $0x50] sm:$0xf]  ;;  %v1727_v55 = vld [vmem:[%s2066_s23 + $0x70] sm:$0xf0]  ;;  %v1775_v56 = vld [vmem:[%s2337_s1 + $0x118] sm:$0xff]  ;;  %v1354_v58 = vor.u32 %v1726_v52, %v1353_v51 }
  0x22   : > { %1030 = vmatpush.bf16.msra.mxu2 %v1759_v13  ;;  %v1791_v57 = vld [vmem:[%s2337_s1 + $0x198] sm:$0xff]  ;;  %v1362_v59 = vor.u32 %v1727_v55, %v1361_v54  ;;  %v1723_v60 = vld [vmem:[%s2066_s23 + $0x54] sm:$0xf]  ;;  %v1800_v62 = vld [vmem:[%s2337_s1 + $0x1e0] sm:$0xff] }
  0x23   : > { %1054 = vmatpush.bf16.msra.mxu3 %v1767_v14  ;;  %v1363_v61 = vld [vmem:[%s2066_s23 + $0x74] sm:$0xf0]  ;;  %v1750_v63 = vld [vmem:[%s2337_s1 + $0x50] sm:$0xff]  ;;  %v1749_v4 = vld [vmem:[%s2337_s1 + $0x48] sm:$0xff] }
  0x24   : > { %v1774_v0 = vld [vmem:[%s2337_s1 + $0x110] sm:$0xff]  ;;  %v1366_v2 = vor.u32 %v1723_v60, %v1363_v61  ;;  %v1799_v3 = vld [vmem:[%s2337_s1 + $0x1d8] sm:$0xff]  ;;  %v1773_v5 = vld [vmem:[%s2337_s1 + $0x108] sm:$0xff] }
  0x25   : > { %1817 = vmatpush.bf16.msra.mxu1 %v1742_v15  ;;  %983 = vmatpush.bf16.msra.mxu0 %v1742_v15  ;;  %v1790_v1 = vld [vmem:[%s2337_s1 + $0x190] sm:$0xff]  ;;  %v1789_v6 = vld [vmem:[%s2337_s1 + $0x188] sm:$0xff]  ;;  %v1748_v8 = vld [vmem:[%s2337_s1 + $0x40] sm:$0xff] }
  0x26   : > { %1031 = vmatpush.bf16.msra.mxu2 %v1758_v16  ;;  %v1798_v7 = vld [vmem:[%s2337_s1 + $0x1d0] sm:$0xff]  ;;  %v1713_v9 = vld [vmem:[%s2066_s23 + $0x4] sm:$0xf]  ;;  %v1319_v10 = vld [vmem:[%s2066_s23 + $0x24] sm:$0xf0] }
  0x27   : > { %1055 = vmatpush.bf16.msra.mxu3 %v1766_v17  ;;  %v1787_v11 = vld [vmem:[%s2337_s1 + $0x178] sm:$0xff]  ;;  %v1772_v12 = vld [vmem:[%s2337_s1 + $0x100] sm:$0xff]  ;;  %v1322_v15 = vor.u32 %v1713_v9, %v1319_v10  ;;  %v1333_v16 = vld [vmem:[%s2066_s23 + $0x10] sm:$0xf] }
  0x28   : > { %v1788_v13 = vld [vmem:[%s2337_s1 + $0x180] sm:$0xff]  ;;  %v1811_v14 = vld [vmem:[%s2337_s1 + $0x238] sm:$0xff]  ;;  %v1719_v17 = vld [vmem:[%s2066_s23 + $0x30] sm:$0xf0] }
  0x29   : > { %1818 = vmatpush.bf16.msra.mxu1 %v1741_v18  ;;  %984 = vmatpush.bf16.msra.mxu0 %v1741_v18  ;;  %v1797_v18 = vld [vmem:[%s2337_s1 + $0x1c8] sm:$0xff]  ;;  %v1334_v22 = vor.u32 %v1719_v17, %v1333_v16  ;;  %v1732_v24 = vld [vmem:[%s2066_s23 + $0x9c] sm:$0xf]  ;;  %v1399_v25 = vld [vmem:[%s2066_s23 + $0xbc] sm:$0xf0] }
  0x2a   : > { %1032 = vmatpush.bf16.msra.mxu2 %v1757_v19  ;;  %v1397_v19 = vld [vmem:[%s2066_s23 + $0x98] sm:$0xf]  ;;  %v1810_v26 = vld [vmem:[%s2337_s1 + $0x230] sm:$0xff]  ;;  %v1785_v28 = vld [vmem:[%s2337_s1 + $0x168] sm:$0xff]  ;;  %v1402_v29 = vor.u32 %v1732_v24, %v1399_v25 }
  0x2b   : > { %1056 = vmatpush.bf16.msra.mxu3 %v1765_v23  ;;  %v1369_v37 = vld [vmem:[%s2066_s23 + $0x58] sm:$0xf]  ;;  %v1780_v51 = vld [vmem:[%s2337_s1 + $0x140] sm:$0xff]  ;;  %v1734_v10 = vld [vmem:[%s2066_s23 + $0xac] sm:$0xf] }
  0x2c   : > { %v1804_v52 = vld [vmem:[%s2337_s1 + $0x200] sm:$0xff]  ;;  %v1391_v54 = vld [vmem:[%s2066_s23 + $0xb4] sm:$0xf0]  ;;  %v1385_v16 = vld [vmem:[%s2066_s23 + $0x68] sm:$0xf] }
  0x2d   : > { %1819 = vmatpush.bf16.msra.mxu1 %v1740_v20  ;;  %985 = vmatpush.bf16.msra.mxu0 %v1740_v20  ;;  %v1736_v20 = vld [vmem:[%s2066_s23 + $0xb8] sm:$0xf0]  ;;  %v1730_v17 = vld [vmem:[%s2066_s23 + $0x88] sm:$0xf0] }
  0x2e   : > { %1033 = vmatpush.bf16.msra.mxu2 %v1756_v27  ;;  %v1398_v23 = vor.u32 %v1736_v20, %v1397_v19  ;;  %v1796_v27 = vld [vmem:[%s2337_s1 + $0x1c0] sm:$0xff]  ;;  %v1739_v19 = vld [vmem:[%s2066_s23 + $0xd0] sm:$0xf0]  ;;  %v1386_v20 = vor.u32 %v1730_v17, %v1385_v16 }
  0x2f   : > { %1057 = vmatpush.bf16.msra.mxu3 %v1764_v35  ;;  %v1783_v35 = vld [vmem:[%s2337_s1 + $0x158] sm:$0xff] }
  0x30   : > { %986 = vmatmul.bf16.vlgmr.msra.gmra.mxu0 %v1318_v32  ;;  %996 = vmatmul.bf16.vlgmr.msra.gmra.mxu1 %v1390_v33  ;;  %v1808_v32 = vld [vmem:[%s2337_s1 + $0x220] sm:$0xff]  ;;  %v1722_v33 = vld [vmem:[%s2066_s23 + $0x4c] sm:$0xf] }
  0x31   : > { %1002 = vmatpush.bf16.msrb.mxu1 %v1755_v21  ;;  %1074 = vmatpush.bf16.msrb.mxu0 %v1779_v30  ;;  %v1786_v21 = vld [vmem:[%s2337_s1 + $0x170] sm:$0xff]  ;;  %v1809_v30 = vld [vmem:[%s2337_s1 + $0x228] sm:$0xff] }
  0x32   : > { %1122 = vmatpush.bf16.msrb.mxu2 %v1795_v31  ;;  %1058 = vmatmul.bf16.vlgmr.msra.gmra.mxu3 %v1330_v42  ;;  %v1784_v31 = vld [vmem:[%s2337_s1 + $0x160] sm:$0xff]  ;;  %v1782_v42 = vld [vmem:[%s2337_s1 + $0x150] sm:$0xff] }
  0x33   : > { %1034 = vmatmul.bf16.vlgmr.msra.gmra.mxu2 %v1326_v34  ;;  %1146 = vmatpush.bf16.msrb.mxu3 %v1803_v39  ;;  %v1355_v34 = vld [vmem:[%s2066_s23 + $0x6c] sm:$0xf0]  ;;  %v1807_v39 = vld [vmem:[%s2337_s1 + $0x218] sm:$0xff] }
  0x34   : > { %v1358_v36 = vor.u32 %v1722_v33, %v1355_v34 }
  0x35   : > { %1003 = vmatpush.bf16.msrb.mxu1 %v1754_v38  ;;  %1075 = vmatpush.bf16.msrb.mxu0 %v1778_v40  ;;  %v1728_v38 = vld [vmem:[%s2066_s23 + $0x78] sm:$0xf0]  ;;  %v1341_v40 = vld [vmem:[%s2066_s23 + $0x18] sm:$0xf] }
  0x36   : > { %1123 = vmatpush.bf16.msrb.mxu2 %v1794_v41  ;;  %v1720_v41 = vld [vmem:[%s2066_s23 + $0x38] sm:$0xf0] }
  0x37   : > { %1147 = vmatpush.bf16.msrb.mxu3 %v1802_v44  ;;  %v1342_v44 = vor.u32 %v1720_v41, %v1341_v40 }
  0x39   : > { %1004 = vmatpush.bf16.msrb.mxu1 %v1753_v43  ;;  %1076 = vmatpush.bf16.msrb.mxu0 %v1777_v45  ;;  %v1370_v43 = vor.u32 %v1728_v38, %v1369_v37  ;;  %v1716_v45 = vld [vmem:[%s2066_s23 + $0x1c] sm:$0xf] }
  0x3a   : > { %1124 = vmatpush.bf16.msrb.mxu2 %v1793_v46  ;;  %v1343_v46 = vld [vmem:[%s2066_s23 + $0x3c] sm:$0xf0] }
  0x3b   : > { %1148 = vmatpush.bf16.msrb.mxu3 %v1801_v48  ;;  %v1781_v48 = vld [vmem:[%s2337_s1 + $0x148] sm:$0xff] }
  0x3d   : > { %1005 = vmatpush.bf16.msrb.mxu1 %v1752_v47  ;;  %1077 = vmatpush.bf16.msrb.mxu0 %v1776_v49  ;;  %v1806_v47 = vld [vmem:[%s2337_s1 + $0x210] sm:$0xff]  ;;  %v1346_v49 = vor.u32 %v1716_v45, %v1343_v46 }
  0x3e   : > { %1125 = vmatpush.bf16.msrb.mxu2 %v1792_v50  ;;  %v1805_v50 = vld [vmem:[%s2337_s1 + $0x208] sm:$0xff] }
  0x3f   : > { %1149 = vmatpush.bf16.msrb.mxu3 %v1800_v62  ;;  %v1725_v62 = vld [vmem:[%s2066_s23 + $0x64] sm:$0xf] }
  0x40   : > { %991 = vmatmul.bf16.gmra.mxu0 %v1354_v58  ;;  %v1377_v58 = vld [vmem:[%s2066_s23 + $0x60] sm:$0xf] }
  0x41   : > { %1006 = vmatpush.bf16.msrb.mxu1 %v1751_v53  ;;  %1078 = vmatpush.bf16.msrb.mxu0 %v1775_v56  ;;  %v1731_v53 = vld [vmem:[%s2066_s23 + $0x94] sm:$0xf]  ;;  %v1405_v56 = vld [vmem:[%s2066_s23 + $0xa0] sm:$0xf] }
  0x42   : > { %1126 = vmatpush.bf16.msrb.mxu2 %v1791_v57  ;;  %1063 = vmatmul.bf16.gmra.mxu3 %v1366_v2  ;;  %v1394_v55 = vor.u32 %v1731_v53, %v1391_v54  ;;  %v1737_v57 = vld [vmem:[%s2066_s23 + $0xc0] sm:$0xf0]  ;;  %v1335_v2 = vld [vmem:[%s2066_s23 + $0x34] sm:$0xf0] }
  0x43   : > { %1039 = vmatmul.bf16.gmra.mxu2 %v1362_v59  ;;  %1150 = vmatpush.bf16.msrb.mxu3 %v1799_v3  ;;  %v1729_v59 = vld [vmem:[%s2066_s23 + $0x80] sm:$0xf0]  ;;  %v1406_v60 = vor.u32 %v1737_v57, %v1405_v56 }
  0x44   : > { %v1378_v61 = vor.u32 %v1729_v59, %v1377_v58 }
  0x45   : > { %1007 = vmatpush.bf16.msrb.mxu1 %v1750_v63  ;;  %1079 = vmatpush.bf16.msrb.mxu0 %v1774_v0  ;;  %v1379_v63 = vld [vmem:[%s2066_s23 + $0x84] sm:$0xf0] }
  0x46   : > { %1127 = vmatpush.bf16.msrb.mxu2 %v1790_v1  ;;  %v1382_v0 = vor.u32 %v1725_v62, %v1379_v63  ;;  %v1715_v1 = vld [vmem:[%s2066_s23 + $0x14] sm:$0xf] }
  0x47   : > { %1151 = vmatpush.bf16.msrb.mxu3 %v1798_v7  ;;  %v1338_v3 = vor.u32 %v1715_v1, %v1335_v2  ;;  %v1738_v7 = vld [vmem:[%s2066_s23 + $0xc8] sm:$0xf0] }
  0x49   : > { %1008 = vmatpush.bf16.msrb.mxu1 %v1749_v4  ;;  %1080 = vmatpush.bf16.msrb.mxu0 %v1773_v5  ;;  %v1349_v4 = vld [vmem:[%s2066_s23 + $0x20] sm:$0xf]  ;;  %v1721_v5 = vld [vmem:[%s2066_s23 + $0x40] sm:$0xf0] }
  0x4a   : > { %1128 = vmatpush.bf16.msrb.mxu2 %v1789_v6  ;;  %v1413_v6 = vld [vmem:[%s2066_s23 + $0xa8] sm:$0xf] }
  0x4b   : > { %1152 = vmatpush.bf16.msrb.mxu3 %v1797_v18  ;;  %v1414_v9 = vor.u32 %v1738_v7, %v1413_v6  ;;  %v1421_v18 = vld [vmem:[%s2066_s23 + $0xb0] sm:$0xf] }
  0x4d   : > { %1009 = vmatpush.bf16.msrb.mxu1 %v1748_v8  ;;  %1081 = vmatpush.bf16.msrb.mxu0 %v1772_v12  ;;  %v1350_v8 = vor.u32 %v1721_v5, %v1349_v4 }
  0x4e   : > { %1129 = vmatpush.bf16.msrb.mxu2 %v1788_v13  ;;  %v1724_v13 = vld [vmem:[%s2066_s23 + $0x5c] sm:$0xf] }
  0x4f   : > { %1153 = vmatpush.bf16.msrb.mxu3 %v1796_v27 }
  0x50   : > { %1010 = vmatmul.bf16.vlgmr.msrb.gmra.mxu1 %v1322_v15  ;;  %1082 = vmatmul.bf16.vlgmr.msrb.gmra.mxu0 %v1334_v22  ;;  %v1733_v22 = vld [vmem:[%s2066_s23 + $0xa4] sm:$0xf] }
  0x51   : > { %1098 = vmatpush.bf16.msra.mxu1 %v1787_v11  ;;  %1170 = vmatpush.bf16.msra.mxu0 %v1811_v14  ;;  %v1415_v11 = vld [vmem:[%s2066_s23 + $0xcc] sm:$0xf0] }
  0x52   : > { %1820 = vmatpush.bf16.msra.mxu2 %v1811_v14  ;;  %1068 = vmatmul.bf16.gmra.mxu3 %v1402_v29  ;;  %v1418_v12 = vor.u32 %v1734_v10, %v1415_v11  ;;  %v1371_v14 = vld [vmem:[%s2066_s23 + $0x7c] sm:$0xf0] }
  0x53   : > { %1044 = vmatmul.bf16.gmra.mxu2 %v1398_v23  ;;  %v1374_v15 = vor.u32 %v1724_v13, %v1371_v14  ;;  %v1407_v23 = vld [vmem:[%s2066_s23 + $0xc4] sm:$0xf0]  ;;  %v2299_v14 = vld [vmem:[#allocation4] ss:$0 sm:$0xff]  ;;  %s1314_s23 = sshll.u32 %s2344_s18, 3 }
  0x54   : > { %v1410_v24 = vor.u32 %v1733_v22, %v1407_v23  ;;  %s2307_s13 = scalar_lea.vmem %s2340_s4, %s1314_s23 }
  0x55   : > { %1099 = vmatpush.bf16.msra.mxu1 %v1786_v21  ;;  %1171 = vmatpush.bf16.msra.mxu0 %v1810_v26  ;;  %v1422_v21 = vor.u32 %v1739_v19, %v1421_v18 }
  0x56   : > { %1821 = vmatpush.bf16.msra.mxu2 %v1810_v26 }
  0x59   : > { %1100 = vmatpush.bf16.msra.mxu1 %v1785_v28  ;;  %1172 = vmatpush.bf16.msra.mxu0 %v1809_v30 }
  0x5a   : > { %1822 = vmatpush.bf16.msra.mxu2 %v1809_v30 }
  0x5d   : > { %1101 = vmatpush.bf16.msra.mxu1 %v1784_v31  ;;  %1173 = vmatpush.bf16.msra.mxu0 %v1808_v32 }
  0x5e   : > { %1823 = vmatpush.bf16.msra.mxu2 %v1808_v32 }
  0x60   : > { %1015 = vmatmul.bf16.gmra.mxu1 %v1358_v36  ;;  %1087 = vmatmul.bf16.gmra.mxu0 %v1370_v43 }
  0x61   : > { %1102 = vmatpush.bf16.msra.mxu1 %v1783_v35  ;;  %1174 = vmatpush.bf16.msra.mxu0 %v1807_v39 }
  0x62   : > { %1824 = vmatpush.bf16.msra.mxu2 %v1807_v39  ;;  %1154 = vmatmul.bf16.vlgmr.msrb.gmra.mxu3 %v1346_v49 }
  0x63   : > { %1130 = vmatmul.bf16.vlgmr.msrb.gmra.mxu2 %v1342_v44 }
  0x65   : > { %1103 = vmatpush.bf16.msra.mxu1 %v1782_v42  ;;  %1175 = vmatpush.bf16.msra.mxu0 %v1806_v47 }
  0x66   : > { %1825 = vmatpush.bf16.msra.mxu2 %v1806_v47 }
  0x69   : > { %1104 = vmatpush.bf16.msra.mxu1 %v1781_v48  ;;  %1176 = vmatpush.bf16.msra.mxu0 %v1805_v50 }
  0x6a   : > { %1826 = vmatpush.bf16.msra.mxu2 %v1805_v50 }
  0x6d   : > { %1105 = vmatpush.bf16.msra.mxu1 %v1780_v51  ;;  %1177 = vmatpush.bf16.msra.mxu0 %v1804_v52 }
  0x6e   : > { %1827 = vmatpush.bf16.msra.mxu2 %v1804_v52 }
  0x70   : > { %1020 = vmatmul.bf16.gmra.mxu1 %v1394_v55  ;;  %1092 = vmatmul.bf16.gmra.mxu0 %v1406_v60 }
  0x72   : > { %1159 = vmatmul.bf16.gmra.mxu3 %v1382_v0 }
  0x73   : > { %1135 = vmatmul.bf16.gmra.mxu2 %v1378_v61 }
  0x80   : > { %1106 = vmatmul.bf16.vlgmr.msra.gmra.mxu1 %v1338_v3  ;;  %1178 = vmatmul.bf16.vlgmr.msra.gmra.mxu0 %v1350_v8 }
  0x82   : > { %1164 = vmatmul.bf16.gmra.mxu3 %v1418_v12 }
  0x83   : > { %1140 = vmatmul.bf16.gmra.mxu2 %v1414_v9  ;;  %v2297_v9 = vld [vmem:[#allocation2] ss:$0 sm:$0xff] }
  0x90   : > { %1111 = vmatmul.bf16.gmra.mxu1 %v1374_v15  ;;  %1183 = vmatmul.bf16.gmra.mxu0 %v1386_v20 }
  0x93   : > { %1188 = vmatmul.bf16.vlgmr.msra.gmra.mxu2 %v1422_v21 }
  0xa0   : > { %1116 = vmatmul.bf16.gmra.mxu1 %v1410_v24 }
  0xad   : > { %v987_v25 = vpop.f32.mrf.mxu0  ;;  %v2281_v28 = vpop.f32.mrf.mxu1 }
  0xb5   : > { %v989_v27 = vpop.f32.mrf.mxu0  ;;  %v1059_v29 = vpop.f32.mrf.mxu3 }
  0xb6   : > { %v1035_v26 = vpop.f32.mrf.mxu2  ;;  %v2283_v32 = vpop.f32.mrf.mxu1 }
  0xbd   : > { %v992_v31 = vpop.f32.mrf.mxu0  ;;  %v1061_v33 = vpop.f32.mrf.mxu3 }
  0xbe   : > { %v1037_v30 = vpop.f32.mrf.mxu2 }
  0xc5   : > { %v994_v35 = vpop.f32.mrf.mxu0  ;;  %v1064_v38 = vpop.f32.mrf.mxu3 }
  0xc6   : > { %v1040_v34 = vpop.f32.mrf.mxu2 }
  0xcd   : > { %v1011_v36 = vpop.f32.mrf.mxu1  ;;  %v1083_v39 = vpop.f32.mrf.mxu0 }
  0xce   : > { %v1042_v37 = vpop.f32.mrf.mxu2  ;;  %v1066_v43 = vpop.f32.mrf.mxu3  ;;  %v1012_v54 = vadd.f32 %v1011_v36, %v987_v25 }
  0xd0   : > { %v1036_v56 = vadd.f32 %v1035_v26, %v1012_v54 }
  0xd2   : > { %v1060_v59 = vadd.f32 %v1059_v29, %v1036_v56 }
  0xd4   : > { %v1084_v63 = vadd.f32 %v1083_v39, %v1060_v59 }
  0xd5   : > { %v1013_v40 = vpop.f32.mrf.mxu1  ;;  %v1085_v42 = vpop.f32.mrf.mxu0 }
  0xd6   : > { %v2285_v41 = vpop.f32.mrf.mxu2  ;;  %v2289_v47 = vpop.f32.mrf.mxu3  ;;  %v1014_v60 = vadd.f32 %v1013_v40, %v989_v27 }
  0xd8   : > { %v1038_v0 = vadd.f32 %v1037_v30, %v1014_v60 }
  0xda   : > { %v1062_v3 = vadd.f32 %v1061_v33, %v1038_v0 }
  0xdc   : > { %v1086_v11 = vadd.f32 %v1085_v42, %v1062_v3 }
  0xdd   : > { %v1016_v44 = vpop.f32.mrf.mxu1  ;;  %v1088_v46 = vpop.f32.mrf.mxu0 }
  0xde   : > { %v2287_v45 = vpop.f32.mrf.mxu2  ;;  %v2291_v52 = vpop.f32.mrf.mxu3  ;;  %v1017_v4 = vadd.f32 %v1016_v44, %v992_v31 }
  0xe0   : > { %v1041_v12 = vadd.f32 %v1040_v34, %v1017_v4 }
  0xe2   : > { %v1065_v18 = vadd.f32 %v1064_v38, %v1041_v12 }
  0xe4   : > { %v1089_v26 = vadd.f32 %v1088_v46, %v1065_v18 }
  0xe5   : > { %v1018_v48 = vpop.f32.mrf.mxu1  ;;  %v1090_v50 = vpop.f32.mrf.mxu0 }
  0xe6   : > { %v1131_v49 = vpop.f32.mrf.mxu2  ;;  %v1155_v58 = vpop.f32.mrf.mxu3  ;;  %v1019_v19 = vadd.f32 %v1018_v48, %v994_v35 }
  0xe8   : > { %v1043_v27 = vadd.f32 %v1042_v37, %v1019_v19 }
  0xea   : > { %v1067_v35 = vadd.f32 %v1066_v43, %v1043_v27 }
  0xec   : > { %v1091_v48 = vadd.f32 %v1090_v50, %v1067_v35 }
  0xed   : > { %v1021_v51 = vpop.f32.mrf.mxu1  ;;  %v2293_v55 = vpop.f32.mrf.mxu0 }
  0xee   : > { %v1133_v53 = vpop.f32.mrf.mxu2  ;;  %v1157_v7 = vpop.f32.mrf.mxu3  ;;  %v1022_v36 = vadd.f32 %v1021_v51, %v2281_v28 }
  0xf0   : > { %v1046_v37 = vadd.f32 %v2285_v41, %v1022_v36 }
  0xf2   : > { %v1070_v28 = vadd.f32 %v2289_v47, %v1046_v37 }
  0xf4   : > { %v1094_v41 = vadd.f32 %v2293_v55, %v1070_v28 }
  0xf5   : > { %v1023_v57 = vpop.f32.mrf.mxu1  ;;  %v2295_v61 = vpop.f32.mrf.mxu0 }
  0xf6   : > { %v1136_v62 = vpop.f32.mrf.mxu2  ;;  %v1160_v25 = vpop.f32.mrf.mxu3  ;;  %v1024_v51 = vadd.f32 %v1023_v57, %v2283_v32 }
  0xfd   : > { %v1107_v1 = vpop.f32.mrf.mxu1  ;;  %v1179_v6 = vpop.f32.mrf.mxu0 }
  0xfe   : > { %v1108_v2 = vadd.f32 %v1107_v1, %v1084_v63  ;;  %v1138_v10 = vpop.f32.mrf.mxu2  ;;  %v1048_v63 = vadd.f32 %v2287_v45, %v1024_v51 }
 0x100   : > { %v1132_v5 = vadd.f32 %v1131_v49, %v1108_v2  ;;  %v1162_v49 = vpop.f32.mrf.mxu3  ;;  %v1072_v32 = vadd.f32 %v2291_v52, %v1048_v63 }
 0x102   : > { %v1156_v8 = vadd.f32 %v1155_v58, %v1132_v5  ;;  %v1096_v55 = vadd.f32 %v2295_v61, %v1072_v32 }
 0x104   : > { %v1180_v13 = vadd.f32 %v1179_v6, %v1156_v8 }
 0x105   : > { %v1109_v15 = vpop.f32.mrf.mxu1  ;;  %v1181_v22 = vpop.f32.mrf.mxu0 }
 0x106   : > { %v1198_v16 = vmul.f32 %v2297_v9, %v1180_v13  ;;  %v1110_v17 = vadd.f32 %v1109_v15, %v1086_v11  ;;  %v1141_v30 = vpop.f32.mrf.mxu2 }
 0x108   : > { %v1208_v20 = vadd.f32 %v2299_v14, %v1198_v16  ;;  %v1134_v21 = vadd.f32 %v1133_v53, %v1110_v17  ;;  %v1165_v47 = vpop.f32.mrf.mxu3 }
 0x10a   : > { %v1214_v23 = vmax.f32 %v1208_v20, 0.0  ;;  %v1158_v24 = vadd.f32 %v1157_v7, %v1134_v21 }
 0x10c   : > { %1220 = vst [vmem:[%s2307_s13] sm:$0xff] %v1214_v23  ;;  %v1182_v29 = vadd.f32 %v1181_v22, %v1158_v24 }
 0x10d   : > { %v1112_v31 = vpop.f32.mrf.mxu1  ;;  %v1184_v40 = vpop.f32.mrf.mxu0 }
 0x10e   : > { %v1199_v33 = vmul.f32 %v2297_v9, %v1182_v29  ;;  %v1113_v34 = vadd.f32 %v1112_v31, %v1089_v26  ;;  %v1143_v43 = vpop.f32.mrf.mxu2 }
 0x110   : > { %v1209_v38 = vadd.f32 %v2299_v14, %v1199_v33  ;;  %v1137_v39 = vadd.f32 %v1136_v62, %v1113_v34  ;;  %v1167_v52 = vpop.f32.mrf.mxu3 }
 0x112   : > { %v1215_v42 = vmax.f32 %v1209_v38, 0.0  ;;  %v1161_v44 = vadd.f32 %v1160_v25, %v1137_v39 }
 0x114   : > { %1221 = vst [vmem:[%s2307_s13 + $0x8] sm:$0xff] %v1215_v42  ;;  %v1185_v46 = vadd.f32 %v1184_v40, %v1161_v44 }
 0x115   : > { %v1114_v53 = vpop.f32.mrf.mxu1  ;;  %v1186_v60 = vpop.f32.mrf.mxu0 }
 0x116   : > { %v1200_v54 = vmul.f32 %v2297_v9, %v1185_v46  ;;  %v1115_v56 = vadd.f32 %v1114_v53, %v1091_v48  ;;  %v1189_v5 = vpop.f32.mrf.mxu2 }
 0x118   : > { %v1210_v58 = vadd.f32 %v2299_v14, %v1200_v54  ;;  %v1139_v59 = vadd.f32 %v1138_v10, %v1115_v56 }
 0x11a   : > { %v1216_v50 = vmax.f32 %v1210_v58, 0.0  ;;  %v1163_v62 = vadd.f32 %v1162_v49, %v1139_v59 }
 0x11c   : > { %1222 = vst [vmem:[%s2307_s13 + $0x10] sm:$0xff] %v1216_v50  ;;  %v1187_v0 = vadd.f32 %v1186_v60, %v1163_v62 }
 0x11d   : > { %v1117_v1 = vpop.f32.mrf.mxu1 }
 0x11e   : > { %v1201_v2 = vmul.f32 %v2297_v9, %v1187_v0  ;;  %v1118_v3 = vadd.f32 %v1117_v1, %v1094_v41  ;;  %v1191_v17 = vpop.f32.mrf.mxu2 }
 0x120   : > { %v1211_v57 = vadd.f32 %v2299_v14, %v1201_v2  ;;  %v1142_v4 = vadd.f32 %v1141_v30, %v1118_v3 }
 0x122   : > { %v1217_v6 = vmax.f32 %v1211_v57, 0.0  ;;  %v1166_v7 = vadd.f32 %v1165_v47, %v1142_v4 }
 0x124   : > { %1223 = vst [vmem:[%s2307_s13 + $0x18] sm:$0xff] %v1217_v6  ;;  %v1190_v45 = vadd.f32 %v1189_v5, %v1166_v7 }
 0x125   : > { %v1119_v8 = vpop.f32.mrf.mxu1 }
 0x126   : > { %v1202_v10 = vmul.f32 %v2297_v9, %v1190_v45  ;;  %v1120_v11 = vadd.f32 %v1119_v8, %v1096_v55 }
 0x128   : > { %v1212_v12 = vadd.f32 %v2299_v14, %v1202_v10  ;;  %v1144_v13 = vadd.f32 %v1143_v43, %v1120_v11 }
 0x12a   : > { %v1218_v15 = vmax.f32 %v1212_v12, 0.0  ;;  %v1168_v16 = vadd.f32 %v1167_v52, %v1144_v13 }
 0x12c   : > { %1224 = vst [vmem:[%s2307_s13 + $0x20] sm:$0xff] %v1218_v15  ;;  %v1192_v18 = vadd.f32 %v1191_v17, %v1168_v16 }
 0x12e   : > { %v1203_v19 = vmul.f32 %v2297_v9, %v1192_v18 }
 0x130   : > { %v1213_v61 = vadd.f32 %v2299_v14, %v1203_v19 }
 0x132   : > { %v1219_v20 = vmax.f32 %v1213_v61, 0.0 }
 0x134   : > { %1225 = vst [vmem:[%s2307_s13 + $0x28] sm:$0xff] %v1219_v20 }
 0x135 PF: > { %s16_s15 = sadd.s32 1, %s1934_s15  }
 0x136   : > { %p13_p7 = scmp.ge.s32.totalorder %s16_s15, 4  }
 0x138   :  { %15 = sbr.rel (!%p13_p7) target bundleno = 2 (0x2), region = 75 }
 0x13d   :  { %1248 = vsyncpa [#allocation3], 1 }
 0x13e   :  { %1250 = vsyncpa [#allocation3 + $0x1], 1 }
 0x13f   :  { %1251 = vsyncpa [#allocation5], 1 }

// kernel: my_net_res50_forward.40
= control target key start
LH: loop header
LB: loop body
LE: loop exit
PB: predicated region body
PF: predicated region fallthrough
CT: control target
= control target key end

     0   :  { %9 = vsyncpa [#allocation3], 0  ;;  %s957_s0 = inlined_call_operand.vmem [shape: bf16[96,256], index: 0, kind: input, shape index: {}]   ;;  %s958_s1 = inlined_call_operand.vmem [shape: bf16[256,128], index: 1, kind: input, shape index: {}]   ;;  %s959_s2 = inlined_call_operand.hbm [shape: f32[1,128], index: 2, kind: input, shape index: {}]   ;;  %s960_s3 = inlined_call_operand.hbm [shape: f32[1,128], index: 3, kind: input, shape index: {}]   ;;  %s961_s4 = inlined_call_operand.vmem [shape: f32[96,128], index: 4, kind: output, shape index: {}]  }
   0x1   :  { %10 = vsyncpa [#allocation5], 0  ;;  %s831_s15 = smov 0  }
   0x2 LB: > { %s151_s18 = sshll.u32 %s959_s2, 4  ;;  %s556_s19 = sadd.s32 4294967295, %s802_s15   ;;  %s802_s15 = sphi %s831_s15, %s16_s15   ;;  %s152_s18 = int_to_ptr.hbm [resolvable:$true] %s151_s18 }
   0x3   : > { %p558_p0 = scmp.ge.s32.totalorder %s802_s15, 1  ;;  %p136_p1 = scmp.lt.s32.totalorder %s802_s15, 3 }
   0x4   : > { %p844_p2 = scmp.eq.s32.totalorder %s556_s19, 0  ;;  %s804_s22 = smov [#allocation2]  }
   0x5   : > { %p848_p3 = pnand %p558_p0, %p136_p1  ;;  %s153_s23 = sshll.u32 %s804_s22, 4  ;;  %s154_s23 = int_to_ptr.vmem [resolvable:$true] %s153_s23 }
   0x6   : > { %s163_s26 = sshll.u32 %s960_s3, 4  ;;  %s805_s27 = smov [#allocation4]   ;;  %s164_s26 = int_to_ptr.hbm [resolvable:$true] %s163_s26 }
   0x7   : > { %p705_p4 = pneg %p848_p3  ;;  %s165_s28 = sshll.u32 %s805_s27, 4  ;;  %s166_s28 = int_to_ptr.vmem [resolvable:$true] %s165_s28 }
   0x8   : > { %188 = sbr.rel (%p848_p3) target bundleno = 214 (0xd6), region = 36 }
   0x9   : > { %p706_p5 = pnand %p844_p2, %p705_p4 }
   0xb   : > { %708 = dma.hbm_to_vmem [thread:$0]  (!%p706_p5), %s152_s18, 16, %s154_s23, [#allocation3]  }
   0xc   : > { %711 = dma.hbm_to_vmem [thread:$0]  (!%p706_p5), %s164_s26, 16, %s166_s28, [#allocation5]  }
   0xd   : > { %793 = dma.done.wait (%p844_p2), [#allocation3], 16  }
   0xe   : > { %795 = vsyncadd (%p844_p2), [#allocation3], 4294967280 }
   0xf   : > { %797 = dma.done.wait (%p844_p2), [#allocation5], 16  }
  0x10   : > { %799 = vsyncadd (%p844_p2), [#allocation5], 4294967280  ;;  %v672_v0 = vld [vmem:[%s958_s1 + $0x38] sm:$0xff]  ;;  %v671_v2 = vld [vmem:[%s958_s1 + $0x30] sm:$0xff]  ;;  %s221_s16 = smul.u32 6, %s556_s19 }
  0x11   : > { %v680_v1 = vld [vmem:[%s958_s1 + $0x78] sm:$0xff]  ;;  %681 = vmatpush.bf16.msra.mxu2 %v672_v0  ;;  %v679_v3 = vld [vmem:[%s958_s1 + $0x70] sm:$0xff]  ;;  %398 = vmatpush.bf16.msra.mxu0 %v672_v0  ;;  %v670_v4 = vld [vmem:[%s958_s1 + $0x28] sm:$0xff] }
  0x12   : > { %689 = vmatpush.bf16.msra.mxu3 %v680_v1  ;;  %422 = vmatpush.bf16.msra.mxu1 %v680_v1  ;;  %v678_v5 = vld [vmem:[%s958_s1 + $0x68] sm:$0xff]  ;;  %v669_v6 = vld [vmem:[%s958_s1 + $0x20] sm:$0xff]  ;;  %p222_p6 = scmp.lt.s32.totalorder %s221_s16, 11  ;;  %v668_v8 = vld [vmem:[%s958_s1 + $0x18] sm:$0xff] }
  0x13   : > { %v677_v7 = vld [vmem:[%s958_s1 + $0x60] sm:$0xff]  ;;  %v676_v9 = vld [vmem:[%s958_s1 + $0x58] sm:$0xff]  ;;  %v667_v10 = vld [vmem:[%s958_s1 + $0x10] sm:$0xff] }
  0x14   : > { %s965_s16 = smov (!%p222_p6, %s221_s16), 11  ;;  %v675_v11 = vld [vmem:[%s958_s1 + $0x50] sm:$0xff]  ;;  %v666_v12 = vld [vmem:[%s958_s1 + $0x8] sm:$0xff]  ;;  %v665_v14 = vld [vmem:[%s958_s1] sm:$0xff] }
  0x15   : > { %682 = vmatpush.bf16.msra.mxu2 %v671_v2  ;;  %399 = vmatpush.bf16.msra.mxu0 %v671_v2  ;;  %s658_s29 = sshll.u32 %s965_s16, 3  ;;  %v674_v13 = vld [vmem:[%s958_s1 + $0x48] sm:$0xff]  ;;  %v673_v15 = vld [vmem:[%s958_s1 + $0x40] sm:$0xff] }
  0x16   : > { %690 = vmatpush.bf16.msra.mxu3 %v679_v3  ;;  %423 = vmatpush.bf16.msra.mxu1 %v679_v3  ;;  %s921_s10 = scalar_lea.vmem %s957_s0, %s658_s29  ;;  %v726_v36 = vld [vmem:[#allocation2] ss:$0 sm:$0xff]  ;;  %v727_v38 = vld [vmem:[#allocation4] ss:$0 sm:$0xff]  ;;  %s946_s20 = scalar_lea.vmem %s961_s4, %s658_s29 }
  0x17   : > { %v578_v16 = vld [vmem:[%s921_s10 + $0x10] sm:$0xf]  ;;  %v662_v17 = vld [vmem:[%s921_s10 + $0x14] sm:$0xf0]  ;;  %v661_v18 = vld [vmem:[%s921_s10 + $0x14] sm:$0xf] }
  0x18   : > { %v580_v19 = vld [vmem:[%s921_s10 + $0x18] sm:$0xf0]  ;;  %v570_v20 = vld [vmem:[%s921_s10] sm:$0xf]  ;;  %v660_v21 = vld [vmem:[%s921_s10 + $0x4] sm:$0xf0]  ;;  %v579_v24 = vor.u32 %v662_v17, %v578_v16 }
  0x19   : > { %683 = vmatpush.bf16.msra.mxu2 %v670_v4  ;;  %400 = vmatpush.bf16.msra.mxu0 %v670_v4  ;;  %v659_v22 = vld [vmem:[%s921_s10 + $0x4] sm:$0xf]  ;;  %v572_v23 = vld [vmem:[%s921_s10 + $0x8] sm:$0xf0]  ;;  %v583_v25 = vor.u32 %v661_v18, %v580_v19  ;;  %v571_v26 = vor.u32 %v660_v21, %v570_v20  ;;  %v586_v28 = vld [vmem:[%s921_s10 + $0x20] sm:$0xf] }
  0x1a   : > { %691 = vmatpush.bf16.msra.mxu3 %v678_v5  ;;  %424 = vmatpush.bf16.msra.mxu1 %v678_v5  ;;  %v575_v27 = vor.u32 %v659_v22, %v572_v23  ;;  %v664_v29 = vld [vmem:[%s921_s10 + $0x24] sm:$0xf0]  ;;  %v663_v30 = vld [vmem:[%s921_s10 + $0x24] sm:$0xf]  ;;  %v588_v31 = vld [vmem:[%s921_s10 + $0x28] sm:$0xf0] }
  0x1b   : > { %v587_v32 = vor.u32 %v664_v29, %v586_v28  ;;  %v591_v33 = vor.u32 %v663_v30, %v588_v31 }
  0x1d   : > { %684 = vmatpush.bf16.msra.mxu2 %v669_v6  ;;  %401 = vmatpush.bf16.msra.mxu0 %v669_v6 }
  0x1e   : > { %692 = vmatpush.bf16.msra.mxu3 %v677_v7  ;;  %425 = vmatpush.bf16.msra.mxu1 %v677_v7 }
  0x21   : > { %685 = vmatpush.bf16.msra.mxu2 %v668_v8  ;;  %402 = vmatpush.bf16.msra.mxu0 %v668_v8 }
  0x22   : > { %693 = vmatpush.bf16.msra.mxu3 %v676_v9  ;;  %426 = vmatpush.bf16.msra.mxu1 %v676_v9 }
  0x25   : > { %686 = vmatpush.bf16.msra.mxu2 %v667_v10  ;;  %403 = vmatpush.bf16.msra.mxu0 %v667_v10 }
  0x26   : > { %694 = vmatpush.bf16.msra.mxu3 %v675_v11  ;;  %427 = vmatpush.bf16.msra.mxu1 %v675_v11 }
  0x29   : > { %687 = vmatpush.bf16.msra.mxu2 %v666_v12  ;;  %404 = vmatpush.bf16.msra.mxu0 %v666_v12 }
  0x2a   : > { %695 = vmatpush.bf16.msra.mxu3 %v674_v13  ;;  %428 = vmatpush.bf16.msra.mxu1 %v674_v13 }
  0x2d   : > { %688 = vmatpush.bf16.msra.mxu2 %v665_v14  ;;  %405 = vmatpush.bf16.msra.mxu0 %v665_v14 }
  0x2e   : > { %696 = vmatpush.bf16.msra.mxu3 %v673_v15  ;;  %429 = vmatpush.bf16.msra.mxu1 %v673_v15 }
  0x30   : > { %411 = vmatmul.bf16.vlgmr.msra.gmra.mxu2 %v579_v24  ;;  %406 = vmatmul.bf16.vlgmr.msra.gmra.mxu0 %v571_v26 }
  0x31   : > { %435 = vmatmul.bf16.vlgmr.msra.gmra.mxu3 %v583_v25  ;;  %430 = vmatmul.bf16.vlgmr.msra.gmra.mxu1 %v575_v27 }
  0x40   : > { %416 = vmatmul.bf16.gmra.mxu2 %v587_v32 }
  0x41   : > { %440 = vmatmul.bf16.gmra.mxu3 %v591_v33 }
  0xad   : > { %v407_v34 = vpop.f32.mrf.mxu0 }
  0xae   : > { %v431_v35 = vpop.f32.mrf.mxu1 }
  0xaf   : > { %v432_v37 = vadd.f32 %v431_v35, %v407_v34 }
  0xb1   : > { %v450_v39 = vmul.f32 %v726_v36, %v432_v37 }
  0xb3   : > { %v412_v40 = vpop.f32.mrf.mxu2  ;;  %v460_v42 = vadd.f32 %v727_v38, %v450_v39 }
  0xb4   : > { %v436_v41 = vpop.f32.mrf.mxu3 }
  0xb5   : > { %v437_v43 = vadd.f32 %v436_v41, %v412_v40  ;;  %v466_v44 = vmax.f32 %v460_v42, 0.0  ;;  %v409_v46 = vpop.f32.mrf.mxu0 }
  0xb6   : > { %v433_v47 = vpop.f32.mrf.mxu1 }
  0xb7   : > { %v452_v45 = vmul.f32 %v726_v36, %v437_v43  ;;  %472 = vst [vmem:[%s946_s20] sm:$0xff] %v466_v44  ;;  %v434_v48 = vadd.f32 %v433_v47, %v409_v46 }
  0xb9   : > { %v462_v49 = vadd.f32 %v727_v38, %v452_v45  ;;  %v451_v50 = vmul.f32 %v726_v36, %v434_v48 }
  0xbb   : > { %v468_v51 = vmax.f32 %v462_v49, 0.0  ;;  %v414_v52 = vpop.f32.mrf.mxu2  ;;  %v461_v54 = vadd.f32 %v727_v38, %v451_v50 }
  0xbc   : > { %v438_v53 = vpop.f32.mrf.mxu3 }
  0xbd   : > { %474 = vst [vmem:[%s946_s20 + $0x10] sm:$0xff] %v468_v51  ;;  %v439_v55 = vadd.f32 %v438_v53, %v414_v52  ;;  %v467_v56 = vmax.f32 %v461_v54, 0.0 }
  0xbf   : > { %v453_v57 = vmul.f32 %v726_v36, %v439_v55  ;;  %473 = vst [vmem:[%s946_s20 + $0x8] sm:$0xff] %v467_v56 }
  0xc1   : > { %v463_v58 = vadd.f32 %v727_v38, %v453_v57 }
  0xc3   : > { %v469_v59 = vmax.f32 %v463_v58, 0.0  ;;  %v417_v60 = vpop.f32.mrf.mxu2 }
  0xc4   : > { %v441_v61 = vpop.f32.mrf.mxu3 }
  0xc5   : > { %475 = vst [vmem:[%s946_s20 + $0x18] sm:$0xff] %v469_v59  ;;  %v442_v62 = vadd.f32 %v441_v61, %v417_v60 }
  0xc7   : > { %v454_v63 = vmul.f32 %v726_v36, %v442_v62 }
  0xc9   : > { %v464_v0 = vadd.f32 %v727_v38, %v454_v63 }
  0xcb   : > { %v470_v1 = vmax.f32 %v464_v0, 0.0  ;;  %v419_v2 = vpop.f32.mrf.mxu2 }
  0xcc   : > { %v443_v3 = vpop.f32.mrf.mxu3 }
  0xcd   : > { %476 = vst [vmem:[%s946_s20 + $0x20] sm:$0xff] %v470_v1  ;;  %v444_v4 = vadd.f32 %v443_v3, %v419_v2 }
  0xcf   : > { %v455_v5 = vmul.f32 %v726_v36, %v444_v4 }
  0xd1   : > { %v465_v6 = vadd.f32 %v727_v38, %v455_v5 }
  0xd3   : > { %v471_v7 = vmax.f32 %v465_v6, 0.0 }
  0xd5   : > { %477 = vst [vmem:[%s946_s20 + $0x28] sm:$0xff] %v471_v7 }
  0xd6 PF: > { %s16_s15 = sadd.s32 1, %s802_s15  }
  0xd7   : > { %p13_p7 = scmp.ge.s32.totalorder %s16_s15, 4  }
  0xd9   :  { %15 = sbr.rel (!%p13_p7) target bundleno = 2 (0x2), region = 75 }
  0xde   :  { %500 = vsyncpa [#allocation3], 1 }
  0xdf   :  { %502 = vsyncpa [#allocation3 + $0x1], 1 }
  0xe0   :  { %503 = vsyncpa [#allocation5], 1 }

// kernel: my_net_res50_forward.42
= control target key start
LH: loop header
LB: loop body
LE: loop exit
PB: predicated region body
PF: predicated region fallthrough
CT: control target
= control target key end

     0   :  { %s1445_s1 = inlined_call_operand.vmem [shape: bf16[256,512], index: 1, kind: input, shape index: {}]   ;;  %s1446_s0 = inlined_call_operand.vmem [shape: bf16[24,256], index: 0, kind: input, shape index: {}]   ;;  %s1447_s2 = inlined_call_operand.vmem [shape: f32[1,512], index: 2, kind: input, shape index: {}]   ;;  %s1448_s3 = inlined_call_operand.vmem [shape: f32[1,512], index: 3, kind: input, shape index: {}]   ;;  %s1449_s4 = inlined_call_operand.vmem [shape: f32[24,512], index: 4, kind: output, shape index: {}]  }
   0x1   :  { %v747_v0 = vld [vmem:[%s1445_s1 + $0xe0] sm:$0xf]  ;;  %v921_v1 = vld [vmem:[%s1445_s1 + $0xec] sm:$0xf0]  ;;  %v919_v5 = vld [vmem:[%s1445_s1 + $0xe4] sm:$0xf] }
   0x2   :  { %v875_v2 = vld [vmem:[%s1445_s1 + $0x1e0] sm:$0xf]  ;;  %v748_v3 = vor.u32 %v921_v1, %v747_v0  ;;  %v953_v4 = vld [vmem:[%s1445_s1 + $0x1ec] sm:$0xf0]  ;;  %v749_v6 = vld [vmem:[%s1445_s1 + $0xf0] sm:$0xf0] }
   0x3   :  { %v876_v7 = vor.u32 %v953_v4, %v875_v2  ;;  %v752_v8 = vor.u32 %v919_v5, %v749_v6  ;;  %v951_v9 = vld [vmem:[%s1445_s1 + $0x1e4] sm:$0xf]  ;;  %v877_v10 = vld [vmem:[%s1445_s1 + $0x1f0] sm:$0xf0]  ;;  %v731_v11 = vld [vmem:[%s1445_s1 + $0xc0] sm:$0xf] }
   0x4   :  { %421 = vmatpush.bf16.msra.mxu0 %v748_v3  ;;  %v880_v12 = vor.u32 %v951_v9, %v877_v10  ;;  %v917_v13 = vld [vmem:[%s1445_s1 + $0xcc] sm:$0xf0]  ;;  %v859_v14 = vld [vmem:[%s1445_s1 + $0x1c0] sm:$0xf]  ;;  %v915_v18 = vld [vmem:[%s1445_s1 + $0xc4] sm:$0xf] }
   0x5   :  { %v949_v15 = vld [vmem:[%s1445_s1 + $0x1cc] sm:$0xf0]  ;;  %439 = vmatpush.bf16.msra.mxu1 %v876_v7  ;;  %457 = vmatpush.bf16.msra.mxu2 %v752_v8  ;;  %v732_v16 = vor.u32 %v917_v13, %v731_v11  ;;  %v733_v19 = vld [vmem:[%s1445_s1 + $0xd0] sm:$0xf0]  ;;  %v947_v20 = vld [vmem:[%s1445_s1 + $0x1c4] sm:$0xf] }
   0x6   :  { %v860_v17 = vor.u32 %v949_v15, %v859_v14  ;;  %475 = vmatpush.bf16.msra.mxu3 %v880_v12  ;;  %v736_v21 = vor.u32 %v915_v18, %v733_v19  ;;  %v861_v22 = vld [vmem:[%s1445_s1 + $0x1d0] sm:$0xf0]  ;;  %v715_v23 = vld [vmem:[%s1445_s1 + $0xa0] sm:$0xf]  ;;  %v913_v24 = vld [vmem:[%s1445_s1 + $0xac] sm:$0xf0] }
   0x7   :  { %v864_v25 = vor.u32 %v947_v20, %v861_v22  ;;  %v843_v26 = vld [vmem:[%s1445_s1 + $0x1a0] sm:$0xf]  ;;  %v945_v27 = vld [vmem:[%s1445_s1 + $0x1ac] sm:$0xf0]  ;;  %v911_v28 = vld [vmem:[%s1445_s1 + $0xa4] sm:$0xf]  ;;  %v716_v29 = vor.u32 %v913_v24, %v715_v23 }
   0x8   :  { %422 = vmatpush.bf16.msra.mxu0 %v732_v16  ;;  %v717_v30 = vld [vmem:[%s1445_s1 + $0xb0] sm:$0xf0]  ;;  %v943_v31 = vld [vmem:[%s1445_s1 + $0x1a4] sm:$0xf]  ;;  %v844_v33 = vor.u32 %v945_v27, %v843_v26  ;;  %v699_v35 = vld [vmem:[%s1445_s1 + $0x80] sm:$0xf] }
   0x9   :  { %v845_v32 = vld [vmem:[%s1445_s1 + $0x1b0] sm:$0xf0]  ;;  %440 = vmatpush.bf16.msra.mxu1 %v860_v17  ;;  %458 = vmatpush.bf16.msra.mxu2 %v736_v21  ;;  %v720_v34 = vor.u32 %v911_v28, %v717_v30  ;;  %v909_v36 = vld [vmem:[%s1445_s1 + $0x8c] sm:$0xf0]  ;;  %v827_v37 = vld [vmem:[%s1445_s1 + $0x180] sm:$0xf] }
   0xa   :  { %476 = vmatpush.bf16.msra.mxu3 %v864_v25  ;;  %v848_v38 = vor.u32 %v943_v31, %v845_v32  ;;  %v941_v39 = vld [vmem:[%s1445_s1 + $0x18c] sm:$0xf0]  ;;  %v907_v40 = vld [vmem:[%s1445_s1 + $0x84] sm:$0xf]  ;;  %v701_v41 = vld [vmem:[%s1445_s1 + $0x90] sm:$0xf0]  ;;  %v700_v44 = vor.u32 %v909_v36, %v699_v35 }
   0xb   :  { %v939_v42 = vld [vmem:[%s1445_s1 + $0x184] sm:$0xf]  ;;  %v829_v43 = vld [vmem:[%s1445_s1 + $0x190] sm:$0xf0]  ;;  %v828_v45 = vor.u32 %v941_v39, %v827_v37  ;;  %v704_v46 = vor.u32 %v907_v40, %v701_v41  ;;  %v683_v47 = vld [vmem:[%s1445_s1 + $0x60] sm:$0xf] }
   0xc   :  { %423 = vmatpush.bf16.msra.mxu0 %v716_v29  ;;  %v905_v48 = vld [vmem:[%s1445_s1 + $0x6c] sm:$0xf0]  ;;  %v811_v49 = vld [vmem:[%s1445_s1 + $0x160] sm:$0xf]  ;;  %v832_v50 = vor.u32 %v939_v42, %v829_v43  ;;  %v903_v52 = vld [vmem:[%s1445_s1 + $0x64] sm:$0xf] }
   0xd   :  { %441 = vmatpush.bf16.msra.mxu1 %v844_v33  ;;  %459 = vmatpush.bf16.msra.mxu2 %v720_v34  ;;  %v937_v51 = vld [vmem:[%s1445_s1 + $0x16c] sm:$0xf0]  ;;  %v685_v53 = vld [vmem:[%s1445_s1 + $0x70] sm:$0xf0]  ;;  %v935_v54 = vld [vmem:[%s1445_s1 + $0x164] sm:$0xf]  ;;  %v684_v56 = vor.u32 %v905_v48, %v683_v47 }
   0xe   :  { %477 = vmatpush.bf16.msra.mxu3 %v848_v38  ;;  %v813_v55 = vld [vmem:[%s1445_s1 + $0x170] sm:$0xf0]  ;;  %v812_v57 = vor.u32 %v937_v51, %v811_v49  ;;  %v688_v58 = vor.u32 %v903_v52, %v685_v53  ;;  %v667_v59 = vld [vmem:[%s1445_s1 + $0x40] sm:$0xf]  ;;  %v901_v60 = vld [vmem:[%s1445_s1 + $0x4c] sm:$0xf0] }
   0xf   :  { %v795_v61 = vld [vmem:[%s1445_s1 + $0x140] sm:$0xf]  ;;  %v816_v62 = vor.u32 %v935_v54, %v813_v55  ;;  %v933_v63 = vld [vmem:[%s1445_s1 + $0x14c] sm:$0xf0]  ;;  %v899_v0 = vld [vmem:[%s1445_s1 + $0x44] sm:$0xf]  ;;  %v668_v4 = vor.u32 %v901_v60, %v667_v59 }
  0x10   :  { %424 = vmatpush.bf16.msra.mxu0 %v700_v44  ;;  %v669_v1 = vld [vmem:[%s1445_s1 + $0x50] sm:$0xf0]  ;;  %v931_v2 = vld [vmem:[%s1445_s1 + $0x144] sm:$0xf]  ;;  %v796_v5 = vor.u32 %v933_v63, %v795_v61  ;;  %v651_v7 = vld [vmem:[%s1445_s1 + $0x20] sm:$0xf] }
  0x11   :  { %442 = vmatpush.bf16.msra.mxu1 %v828_v45  ;;  %460 = vmatpush.bf16.msra.mxu2 %v704_v46  ;;  %v797_v3 = vld [vmem:[%s1445_s1 + $0x150] sm:$0xf0]  ;;  %v672_v6 = vor.u32 %v899_v0, %v669_v1  ;;  %v897_v8 = vld [vmem:[%s1445_s1 + $0x2c] sm:$0xf0]  ;;  %v779_v9 = vld [vmem:[%s1445_s1 + $0x120] sm:$0xf] }
  0x12   :  { %478 = vmatpush.bf16.msra.mxu3 %v832_v50  ;;  %v800_v10 = vor.u32 %v931_v2, %v797_v3  ;;  %v929_v11 = vld [vmem:[%s1445_s1 + $0x12c] sm:$0xf0]  ;;  %v895_v12 = vld [vmem:[%s1445_s1 + $0x24] sm:$0xf]  ;;  %v653_v13 = vld [vmem:[%s1445_s1 + $0x30] sm:$0xf0]  ;;  %v652_v16 = vor.u32 %v897_v8, %v651_v7 }
  0x13   :  { %v927_v14 = vld [vmem:[%s1445_s1 + $0x124] sm:$0xf]  ;;  %v781_v15 = vld [vmem:[%s1445_s1 + $0x130] sm:$0xf0]  ;;  %v635_v17 = vld [vmem:[%s1445_s1] sm:$0xf]  ;;  %v780_v19 = vor.u32 %v929_v11, %v779_v9  ;;  %v656_v20 = vor.u32 %v895_v12, %v653_v13 }
  0x14   :  { %425 = vmatpush.bf16.msra.mxu0 %v684_v56  ;;  %v893_v18 = vld [vmem:[%s1445_s1 + $0xc] sm:$0xf0]  ;;  %v763_v21 = vld [vmem:[%s1445_s1 + $0x100] sm:$0xf]  ;;  %v891_v23 = vld [vmem:[%s1445_s1 + $0x4] sm:$0xf]  ;;  %v784_v24 = vor.u32 %v927_v14, %v781_v15 }
  0x15   :  { %443 = vmatpush.bf16.msra.mxu1 %v812_v57  ;;  %461 = vmatpush.bf16.msra.mxu2 %v688_v58  ;;  %v925_v22 = vld [vmem:[%s1445_s1 + $0x10c] sm:$0xf0]  ;;  %v637_v25 = vld [vmem:[%s1445_s1 + $0x10] sm:$0xf0]  ;;  %v923_v26 = vld [vmem:[%s1445_s1 + $0x104] sm:$0xf]  ;;  %v636_v31 = vor.u32 %v893_v18, %v635_v17 }
  0x16   :  { %479 = vmatpush.bf16.msra.mxu3 %v816_v62  ;;  %v765_v27 = vld [vmem:[%s1445_s1 + $0x110] sm:$0xf0]  ;;  %v627_v28 = vld [vmem:[%s1446_s0] sm:$0xf]  ;;  %v920_v29 = vld [vmem:[%s1445_s1 + $0xec] sm:$0xf]  ;;  %v764_v35 = vor.u32 %v925_v22, %v763_v21  ;;  %v640_v36 = vor.u32 %v891_v23, %v637_v25 }
  0x17   :  { %v757_v30 = vld [vmem:[%s1445_s1 + $0xf8] sm:$0xf0]  ;;  %v890_v32 = vld [vmem:[%s1446_s0 + $0x4] sm:$0xf0]  ;;  %v952_v33 = vld [vmem:[%s1445_s1 + $0x1ec] sm:$0xf]  ;;  %v768_v39 = vor.u32 %v923_v26, %v765_v27 }
  0x18   :  { %426 = vmatpush.bf16.msra.mxu0 %v668_v4  ;;  %v885_v34 = vld [vmem:[%s1445_s1 + $0x1f8] sm:$0xf0]  ;;  %v889_v37 = vld [vmem:[%s1446_s0 + $0x4] sm:$0xf]  ;;  %v629_v38 = vld [vmem:[%s1446_s0 + $0x8] sm:$0xf0]  ;;  %v760_v40 = vor.u32 %v920_v29, %v757_v30  ;;  %v1205_v44 = vor.u32 %v890_v32, %v627_v28 }
  0x19   :  { %444 = vmatpush.bf16.msra.mxu1 %v796_v5  ;;  %462 = vmatpush.bf16.msra.mxu2 %v672_v6  ;;  %v755_v41 = vld [vmem:[%s1445_s1 + $0xe8] sm:$0xf]  ;;  %v922_v42 = vld [vmem:[%s1445_s1 + $0xf4] sm:$0xf0]  ;;  %v888_v45 = vor.u32 %v952_v33, %v885_v34  ;;  %v916_v47 = vld [vmem:[%s1445_s1 + $0xcc] sm:$0xf]  ;;  %v1216_v49 = vor.u32 %v889_v37, %v629_v38 }
  0x1a   :  { %480 = vmatpush.bf16.msra.mxu3 %v800_v10  ;;  %v883_v43 = vld [vmem:[%s1445_s1 + $0x1e8] sm:$0xf]  ;;  %v954_v46 = vld [vmem:[%s1445_s1 + $0x1f4] sm:$0xf0]  ;;  %v741_v48 = vld [vmem:[%s1445_s1 + $0xd8] sm:$0xf0]  ;;  %v756_v52 = vor.u32 %v922_v42, %v755_v41 }
  0x1b   :  { %v948_v50 = vld [vmem:[%s1445_s1 + $0x1cc] sm:$0xf]  ;;  %v869_v51 = vld [vmem:[%s1445_s1 + $0x1d8] sm:$0xf0]  ;;  %v884_v53 = vor.u32 %v954_v46, %v883_v43  ;;  %v744_v54 = vor.u32 %v916_v47, %v741_v48  ;;  %v739_v55 = vld [vmem:[%s1445_s1 + $0xc8] sm:$0xf] }
  0x1c   :  { %427 = vmatpush.bf16.msra.mxu0 %v652_v16  ;;  %v918_v56 = vld [vmem:[%s1445_s1 + $0xd4] sm:$0xf0]  ;;  %v867_v57 = vld [vmem:[%s1445_s1 + $0x1c8] sm:$0xf]  ;;  %v872_v58 = vor.u32 %v948_v50, %v869_v51  ;;  %v912_v60 = vld [vmem:[%s1445_s1 + $0xac] sm:$0xf] }
  0x1d   :  { %445 = vmatpush.bf16.msra.mxu1 %v780_v19  ;;  %463 = vmatpush.bf16.msra.mxu2 %v656_v20  ;;  %v950_v59 = vld [vmem:[%s1445_s1 + $0x1d4] sm:$0xf0]  ;;  %v725_v61 = vld [vmem:[%s1445_s1 + $0xb8] sm:$0xf0]  ;;  %v944_v62 = vld [vmem:[%s1445_s1 + $0x1ac] sm:$0xf]  ;;  %v740_v0 = vor.u32 %v918_v56, %v739_v55 }
  0x1e   :  { %481 = vmatpush.bf16.msra.mxu3 %v784_v24  ;;  %v853_v63 = vld [vmem:[%s1445_s1 + $0x1b8] sm:$0xf0]  ;;  %v868_v1 = vor.u32 %v950_v59, %v867_v57  ;;  %v728_v2 = vor.u32 %v912_v60, %v725_v61  ;;  %v723_v3 = vld [vmem:[%s1445_s1 + $0xa8] sm:$0xf]  ;;  %v914_v4 = vld [vmem:[%s1445_s1 + $0xb4] sm:$0xf0] }
  0x1f   :  { %v851_v5 = vld [vmem:[%s1445_s1 + $0x1a8] sm:$0xf]  ;;  %v856_v6 = vor.u32 %v944_v62, %v853_v63  ;;  %v946_v7 = vld [vmem:[%s1445_s1 + $0x1b4] sm:$0xf0]  ;;  %v908_v8 = vld [vmem:[%s1445_s1 + $0x8c] sm:$0xf]  ;;  %v724_v13 = vor.u32 %v914_v4, %v723_v3 }
  0x20   :  { %428 = vmatpush.bf16.msra.mxu0 %v636_v31  ;;  %v709_v9 = vld [vmem:[%s1445_s1 + $0x98] sm:$0xf0]  ;;  %v940_v10 = vld [vmem:[%s1445_s1 + $0x18c] sm:$0xf]  ;;  %v19_v12 = vld [vmem:[%s1446_s0 + $0x10] sm:$0xff]  ;;  %v852_v14 = vor.u32 %v946_v7, %v851_v5 }
  0x21   :  { %446 = vmatpush.bf16.msra.mxu1 %v764_v35  ;;  %464 = vmatpush.bf16.msra.mxu2 %v640_v36  ;;  %v837_v11 = vld [vmem:[%s1445_s1 + $0x198] sm:$0xf0]  ;;  %v712_v15 = vor.u32 %v908_v8, %v709_v9  ;;  %v707_v16 = vld [vmem:[%s1445_s1 + $0x88] sm:$0xf]  ;;  %v910_v17 = vld [vmem:[%s1445_s1 + $0x94] sm:$0xf0]  ;;  %v91_v21 = vunpack.c.l.b16 %v19_v12  ;;  %v92_v24 = vunpack.c.h.b16 %v19_v12 }
  0x22   :  { %482 = vmatpush.bf16.msra.mxu3 %v768_v39  ;;  %v835_v18 = vld [vmem:[%s1445_s1 + $0x188] sm:$0xf]  ;;  %v840_v19 = vor.u32 %v940_v10, %v837_v11  ;;  %v942_v20 = vld [vmem:[%s1445_s1 + $0x194] sm:$0xf0]  ;;  %v904_v22 = vld [vmem:[%s1445_s1 + $0x6c] sm:$0xf]  ;;  %v708_v27 = vor.u32 %v910_v17, %v707_v16 }
  0x23   :  { %429 = vmatmul.bf16.vlgmr.msra.gmra.mxu0 %v1205_v44  ;;  %v693_v23 = vld [vmem:[%s1445_s1 + $0x78] sm:$0xf0]  ;;  %v936_v25 = vld [vmem:[%s1445_s1 + $0x16c] sm:$0xf]  ;;  %v836_v28 = vor.u32 %v942_v20, %v835_v18  ;;  %v691_v30 = vld [vmem:[%s1445_s1 + $0x68] sm:$0xf]  ;;  %v1312_v33 = vpack.c.b16 %v91_v21, %v91_v21  ;;  %v1323_v38 = vpack.c.b16 %v92_v24, %v92_v24 }
  0x24   :  { %447 = vmatmul.bf16.vlgmr.msra.gmra.mxu1 %v1216_v49  ;;  %465 = vmatmul.bf16.vlgmr.msra.gmra.mxu2 %v1205_v44  ;;  %v821_v26 = vld [vmem:[%s1445_s1 + $0x178] sm:$0xf0]  ;;  %v696_v29 = vor.u32 %v904_v22, %v693_v23  ;;  %v906_v31 = vld [vmem:[%s1445_s1 + $0x74] sm:$0xf0]  ;;  %v819_v32 = vld [vmem:[%s1445_s1 + $0x168] sm:$0xf] }
  0x25   :  { %529 = vmatpush.bf16.msrb.mxu2 %v760_v40  ;;  %483 = vmatmul.bf16.vlgmr.msra.gmra.mxu3 %v1216_v49  ;;  %v824_v34 = vor.u32 %v936_v25, %v821_v26  ;;  %v938_v35 = vld [vmem:[%s1445_s1 + $0x174] sm:$0xf0]  ;;  %v900_v36 = vld [vmem:[%s1445_s1 + $0x4c] sm:$0xf]  ;;  %v677_v37 = vld [vmem:[%s1445_s1 + $0x58] sm:$0xf0]  ;;  %v692_v41 = vor.u32 %v906_v31, %v691_v30 }
  0x26   :  { %547 = vmatpush.bf16.msrb.mxu3 %v888_v45  ;;  %493 = vmatpush.bf16.msrb.mxu0 %v756_v52  ;;  %v932_v39 = vld [vmem:[%s1445_s1 + $0x14c] sm:$0xf]  ;;  %v805_v40 = vld [vmem:[%s1445_s1 + $0x158] sm:$0xf0]  ;;  %v820_v42 = vor.u32 %v938_v35, %v819_v32  ;;  %v680_v43 = vor.u32 %v900_v36, %v677_v37  ;;  %v675_v45 = vld [vmem:[%s1445_s1 + $0x48] sm:$0xf] }
  0x27   :  { %511 = vmatpush.bf16.msrb.mxu1 %v884_v53  ;;  %v902_v46 = vld [vmem:[%s1445_s1 + $0x54] sm:$0xf0]  ;;  %v803_v47 = vld [vmem:[%s1445_s1 + $0x148] sm:$0xf]  ;;  %v808_v48 = vor.u32 %v932_v39, %v805_v40  ;;  %v896_v51 = vld [vmem:[%s1445_s1 + $0x2c] sm:$0xf] }
  0x28   :  { %v934_v50 = vld [vmem:[%s1445_s1 + $0x154] sm:$0xf0]  ;;  %v661_v52 = vld [vmem:[%s1445_s1 + $0x38] sm:$0xf0]  ;;  %v928_v53 = vld [vmem:[%s1445_s1 + $0x12c] sm:$0xf]  ;;  %v676_v55 = vor.u32 %v902_v46, %v675_v45 }
  0x29   :  { %530 = vmatpush.bf16.msrb.mxu2 %v744_v54  ;;  %v789_v54 = vld [vmem:[%s1445_s1 + $0x138] sm:$0xf0]  ;;  %v804_v56 = vor.u32 %v934_v50, %v803_v47  ;;  %v664_v57 = vor.u32 %v896_v51, %v661_v52  ;;  %v898_v59 = vld [vmem:[%s1445_s1 + $0x34] sm:$0xf0]  ;;  %v787_v60 = vld [vmem:[%s1445_s1 + $0x128] sm:$0xf] }
  0x2a   :  { %548 = vmatpush.bf16.msrb.mxu3 %v872_v58  ;;  %494 = vmatpush.bf16.msrb.mxu0 %v740_v0  ;;  %v659_v58 = vld [vmem:[%s1445_s1 + $0x28] sm:$0xf]  ;;  %v792_v61 = vor.u32 %v928_v53, %v789_v54  ;;  %v930_v62 = vld [vmem:[%s1445_s1 + $0x134] sm:$0xf0]  ;;  %v892_v63 = vld [vmem:[%s1445_s1 + $0xc] sm:$0xf] }
  0x2b   :  { %512 = vmatpush.bf16.msrb.mxu1 %v868_v1  ;;  %v645_v0 = vld [vmem:[%s1445_s1 + $0x18] sm:$0xf0]  ;;  %v924_v1 = vld [vmem:[%s1445_s1 + $0x10c] sm:$0xf]  ;;  %v660_v3 = vor.u32 %v898_v59, %v659_v58  ;;  %v788_v4 = vor.u32 %v930_v62, %v787_v60  ;;  %v894_v7 = vld [vmem:[%s1445_s1 + $0x14] sm:$0xf0] }
  0x2c   :  { %v648_v5 = vor.u32 %v892_v63, %v645_v0  ;;  %v771_v9 = vld [vmem:[%s1445_s1 + $0x108] sm:$0xf]  ;;  %v926_v10 = vld [vmem:[%s1445_s1 + $0x114] sm:$0xf0] }
  0x2d   :  { %531 = vmatpush.bf16.msrb.mxu2 %v728_v2  ;;  %v773_v2 = vld [vmem:[%s1445_s1 + $0x118] sm:$0xf0]  ;;  %v772_v12 = vor.u32 %v926_v10, %v771_v9 }
  0x2e   :  { %549 = vmatpush.bf16.msrb.mxu3 %v856_v6  ;;  %495 = vmatpush.bf16.msrb.mxu0 %v724_v13  ;;  %v643_v6 = vld [vmem:[%s1445_s1 + $0x8] sm:$0xf]  ;;  %v776_v8 = vor.u32 %v924_v1, %v773_v2  ;;  %v565_v13 = vld [vmem:[%s1447_s2] sm:$0xf] }
  0x2f   :  { %513 = vmatpush.bf16.msrb.mxu1 %v852_v14  ;;  %v644_v11 = vor.u32 %v894_v7, %v643_v6  ;;  %v568_v21 = vperm.slane %v565_v13, 1  ;;  %v569_v54 = vperm.slane %v565_v13, 2 }
  0x31   :  { %532 = vmatpush.bf16.msrb.mxu2 %v712_v15  ;;  %v567_v15 = vperm.slane %v565_v13, 0 }
  0x32   :  { %550 = vmatpush.bf16.msrb.mxu3 %v840_v19  ;;  %496 = vmatpush.bf16.msrb.mxu0 %v708_v27 }
  0x33   :  { %514 = vmatpush.bf16.msrb.mxu1 %v836_v28  ;;  %434 = vmatmul.bf16.gmra.mxu0 %v1312_v33 }
  0x34   :  { %452 = vmatmul.bf16.gmra.mxu1 %v1323_v38  ;;  %470 = vmatmul.bf16.gmra.mxu2 %v1312_v33 }
  0x35   :  { %533 = vmatpush.bf16.msrb.mxu2 %v696_v29  ;;  %488 = vmatmul.bf16.gmra.mxu3 %v1323_v38 }
  0x36   :  { %551 = vmatpush.bf16.msrb.mxu3 %v824_v34  ;;  %497 = vmatpush.bf16.msrb.mxu0 %v692_v41 }
  0x37   :  { %515 = vmatpush.bf16.msrb.mxu1 %v820_v42 }
  0x39   :  { %534 = vmatpush.bf16.msrb.mxu2 %v680_v43 }
  0x3a   :  { %552 = vmatpush.bf16.msrb.mxu3 %v808_v48  ;;  %498 = vmatpush.bf16.msrb.mxu0 %v676_v55 }
  0x3b   :  { %516 = vmatpush.bf16.msrb.mxu1 %v804_v56 }
  0x3d   :  { %535 = vmatpush.bf16.msrb.mxu2 %v664_v57 }
  0x3e   :  { %553 = vmatpush.bf16.msrb.mxu3 %v792_v61  ;;  %499 = vmatpush.bf16.msrb.mxu0 %v660_v3  ;;  %v570_v61 = vperm.slane %v565_v13, 3 }
  0x3f   :  { %517 = vmatpush.bf16.msrb.mxu1 %v788_v4 }
  0x41   :  { %536 = vmatpush.bf16.msrb.mxu2 %v648_v5 }
  0x42   :  { %554 = vmatpush.bf16.msrb.mxu3 %v776_v8  ;;  %500 = vmatpush.bf16.msrb.mxu0 %v644_v11 }
  0x43   :  { %518 = vmatpush.bf16.msrb.mxu1 %v772_v12 }
  0x44   :  { %537 = vmatmul.bf16.vlgmr.msrb.gmra.mxu2 %v1205_v44 }
  0x45   :  { %501 = vmatmul.bf16.vlgmr.msrb.gmra.mxu0 %v1205_v44  ;;  %555 = vmatmul.bf16.vlgmr.msrb.gmra.mxu3 %v1216_v49  ;;  %v587_v44 = vld [vmem:[%s1448_s3] sm:$0xf] }
  0x46   :  { %519 = vmatmul.bf16.vlgmr.msrb.gmra.mxu1 %v1216_v49  ;;  %v589_v17 = vperm.slane %v587_v44, 0  ;;  %v590_v25 = vperm.slane %v587_v44, 1  ;;  %v591_v57 = vperm.slane %v587_v44, 2  ;;  %v592_v0 = vperm.slane %v587_v44, 3 }
  0x54   :  { %542 = vmatmul.bf16.gmra.mxu2 %v1312_v33 }
  0x55   :  { %506 = vmatmul.bf16.gmra.mxu0 %v1312_v33  ;;  %560 = vmatmul.bf16.gmra.mxu3 %v1323_v38 }
  0x56   :  { %524 = vmatmul.bf16.gmra.mxu1 %v1323_v38 }
  0xa0   :  { %v430_v14 = vpop.f32.mrf.mxu0 }
  0xa1   :  { %v448_v16 = vpop.f32.mrf.mxu1 }
  0xa2   :  { %v449_v49 = vadd.f32 %v448_v16, %v430_v14 }
  0xa4   :  { %v575_v18 = vmul.f32 %v567_v15, %v449_v49 }
  0xa6   :  { %v597_v19 = vadd.f32 %v589_v17, %v575_v18 }
  0xa7   :  { %v466_v20 = vpop.f32.mrf.mxu2 }
  0xa8   :  { %609 = vst [vmem:[%s1449_s4] sm:$0xff] %v597_v19  ;;  %v484_v22 = vpop.f32.mrf.mxu3  ;;  %v432_v23 = vpop.f32.mrf.mxu0 }
  0xa9   :  { %v485_v24 = vadd.f32 %v484_v22, %v466_v20  ;;  %v450_v26 = vpop.f32.mrf.mxu1 }
  0xaa   :  { %v451_v27 = vadd.f32 %v450_v26, %v432_v23 }
  0xab   :  { %v576_v28 = vmul.f32 %v568_v21, %v485_v24 }
  0xac   :  { %v579_v29 = vmul.f32 %v567_v15, %v451_v27 }
  0xad   :  { %v598_v30 = vadd.f32 %v590_v25, %v576_v28 }
  0xae   :  { %v601_v31 = vadd.f32 %v589_v17, %v579_v29 }
  0xaf   :  { %610 = vst [vmem:[%s1449_s4 + $0x8] sm:$0xff] %v598_v30  ;;  %v468_v32 = vpop.f32.mrf.mxu2 }
  0xb0   :  { %613 = vst [vmem:[%s1449_s4 + $0x20] sm:$0xff] %v601_v31  ;;  %v486_v33 = vpop.f32.mrf.mxu3  ;;  %v435_v34 = vpop.f32.mrf.mxu0 }
  0xb1   :  { %v487_v35 = vadd.f32 %v486_v33, %v468_v32  ;;  %v453_v36 = vpop.f32.mrf.mxu1 }
  0xb2   :  { %v454_v37 = vadd.f32 %v453_v36, %v435_v34 }
  0xb3   :  { %v580_v38 = vmul.f32 %v568_v21, %v487_v35 }
  0xb4   :  { %v583_v39 = vmul.f32 %v567_v15, %v454_v37 }
  0xb5   :  { %v602_v40 = vadd.f32 %v590_v25, %v580_v38 }
  0xb6   :  { %v605_v41 = vadd.f32 %v589_v17, %v583_v39 }
  0xb7   :  { %614 = vst [vmem:[%s1449_s4 + $0x28] sm:$0xff] %v602_v40  ;;  %v471_v42 = vpop.f32.mrf.mxu2 }
  0xb8   :  { %617 = vst [vmem:[%s1449_s4 + $0x40] sm:$0xff] %v605_v41  ;;  %v489_v43 = vpop.f32.mrf.mxu3  ;;  %v437_v45 = vpop.f32.mrf.mxu0 }
  0xb9   :  { %v490_v46 = vadd.f32 %v489_v43, %v471_v42  ;;  %v455_v47 = vpop.f32.mrf.mxu1 }
  0xbb   :  { %v584_v48 = vmul.f32 %v568_v21, %v490_v46 }
  0xbd   :  { %v606_v50 = vadd.f32 %v590_v25, %v584_v48 }
  0xbf   :  { %618 = vst [vmem:[%s1449_s4 + $0x48] sm:$0xff] %v606_v50  ;;  %v473_v51 = vpop.f32.mrf.mxu2 }
  0xc0   :  { %v491_v52 = vpop.f32.mrf.mxu3 }
  0xc2   :  { %v502_v53 = vpop.f32.mrf.mxu0 }
  0xc3   :  { %v520_v55 = vpop.f32.mrf.mxu1 }
  0xc4   :  { %v521_v56 = vadd.f32 %v520_v55, %v502_v53 }
  0xc6   :  { %v577_v58 = vmul.f32 %v569_v54, %v521_v56 }
  0xc7   :  { %v538_v60 = vpop.f32.mrf.mxu2 }
  0xc8   :  { %v599_v59 = vadd.f32 %v591_v57, %v577_v58  ;;  %v556_v62 = vpop.f32.mrf.mxu3 }
  0xc9   :  { %v557_v63 = vadd.f32 %v556_v62, %v538_v60 }
  0xca   :  { %611 = vst [vmem:[%s1449_s4 + $0x10] sm:$0xff] %v599_v59  ;;  %v504_v1 = vpop.f32.mrf.mxu0 }
  0xcb   :  { %v522_v2 = vpop.f32.mrf.mxu1  ;;  %v578_v3 = vmul.f32 %v570_v61, %v557_v63 }
  0xcc   :  { %v523_v4 = vadd.f32 %v522_v2, %v504_v1 }
  0xcd   :  { %v600_v5 = vadd.f32 %v592_v0, %v578_v3 }
  0xce   :  { %v581_v6 = vmul.f32 %v569_v54, %v523_v4 }
  0xcf   :  { %612 = vst [vmem:[%s1449_s4 + $0x18] sm:$0xff] %v600_v5  ;;  %v540_v8 = vpop.f32.mrf.mxu2 }
  0xd0   :  { %v603_v7 = vadd.f32 %v591_v57, %v581_v6  ;;  %v558_v9 = vpop.f32.mrf.mxu3 }
  0xd1   :  { %v559_v10 = vadd.f32 %v558_v9, %v540_v8 }
  0xd2   :  { %615 = vst [vmem:[%s1449_s4 + $0x30] sm:$0xff] %v603_v7  ;;  %v507_v11 = vpop.f32.mrf.mxu0 }
  0xd3   :  { %v525_v12 = vpop.f32.mrf.mxu1  ;;  %v582_v13 = vmul.f32 %v570_v61, %v559_v10 }
  0xd4   :  { %v526_v44 = vadd.f32 %v525_v12, %v507_v11 }
  0xd5   :  { %v604_v14 = vadd.f32 %v592_v0, %v582_v13 }
  0xd6   :  { %v585_v15 = vmul.f32 %v569_v54, %v526_v44 }
  0xd7   :  { %616 = vst [vmem:[%s1449_s4 + $0x38] sm:$0xff] %v604_v14  ;;  %v543_v49 = vpop.f32.mrf.mxu2 }
  0xd8   :  { %v607_v16 = vadd.f32 %v591_v57, %v585_v15  ;;  %v561_v17 = vpop.f32.mrf.mxu3 }
  0xd9   :  { %v562_v18 = vadd.f32 %v561_v17, %v543_v49 }
  0xda   :  { %619 = vst [vmem:[%s1449_s4 + $0x50] sm:$0xff] %v607_v16  ;;  %v509_v19 = vpop.f32.mrf.mxu0 }
  0xdb   :  { %v527_v20 = vpop.f32.mrf.mxu1  ;;  %v586_v21 = vmul.f32 %v570_v61, %v562_v18 }
  0xdd   :  { %v608_v22 = vadd.f32 %v592_v0, %v586_v21 }
  0xdf   :  { %620 = vst [vmem:[%s1449_s4 + $0x58] sm:$0xff] %v608_v22  ;;  %v545_v23 = vpop.f32.mrf.mxu2 }
  0xe0   :  { %v563_v24 = vpop.f32.mrf.mxu3 }

// kernel: my_net_res50_forward.41
= control target key start
LH: loop header
LB: loop body
LE: loop exit
PB: predicated region body
PF: predicated region fallthrough
CT: control target
= control target key end

     0   :  { %9 = vsyncpa [#allocation3], 0  ;;  %s1698_s0 = inlined_call_operand.vmem [shape: bf16[24,1152], index: 0, kind: input, shape index: {}]   ;;  %s1699_s1 = inlined_call_operand.vmem [shape: bf16[1152,128], index: 1, kind: input, shape index: {}]   ;;  %s1700_s2 = inlined_call_operand.hbm [shape: f32[1,128], index: 2, kind: input, shape index: {}]   ;;  %s1701_s3 = inlined_call_operand.hbm [shape: f32[1,128], index: 3, kind: input, shape index: {}]   ;;  %s1702_s4 = inlined_call_operand.vmem [shape: f32[24,128], index: 4, kind: output, shape index: {}]  }
   0x1   :  { %s20_s17 = sshll.u32 %s1700_s2, 4  ;;  %s21_s17 = int_to_ptr.hbm [resolvable:$true] %s20_s17 }
   0x2   :  { %10 = vsyncpa [#allocation5], 0  ;;  %s1371_s18 = smov [#allocation2]   ;;  %s31_s22 = sshll.u32 %s1701_s3, 4  ;;  %s32_s22 = int_to_ptr.hbm [resolvable:$true] %s31_s22 }
   0x3   :  { %s22_s19 = sshll.u32 %s1371_s18, 4  ;;  %s1372_s23 = smov [#allocation4]   ;;  %s23_s19 = int_to_ptr.vmem [resolvable:$true] %s22_s19 }
   0x4   :  { %25 = dma.hbm_to_vmem [thread:$0]  %s21_s17, 16, %s23_s19, [#allocation3]  }
   0x5   :  { %s33_s24 = sshll.u32 %s1372_s23, 4  ;;  %s34_s24 = int_to_ptr.vmem [resolvable:$true] %s33_s24 }
   0x6   :  { %36 = dma.hbm_to_vmem [thread:$0]  %s32_s22, 16, %s34_s24, [#allocation5]  }
   0x7   :  { %1367 = dma.done.wait [#allocation3], 16  }
   0x8   :  { %1368 = vsyncadd [#allocation3], 4294967280 }
   0x9   :  { %1369 = dma.done.wait [#allocation5], 16  }
   0xa   :  { %1370 = vsyncadd [#allocation5], 4294967280  ;;  %v1242_v0 = vld [vmem:[%s1699_s1 + $0x38] sm:$0xff]  ;;  %v1241_v4 = vld [vmem:[%s1699_s1 + $0x30] sm:$0xff] }
   0xb   :  { %v1250_v1 = vld [vmem:[%s1699_s1 + $0x78] sm:$0xff]  ;;  %714 = vmatpush.bf16.msra.mxu0 %v1242_v0  ;;  %v1249_v5 = vld [vmem:[%s1699_s1 + $0x70] sm:$0xff]  ;;  %v1240_v8 = vld [vmem:[%s1699_s1 + $0x28] sm:$0xff] }
   0xc   :  { %v1258_v2 = vld [vmem:[%s1699_s1 + $0xb8] sm:$0xff]  ;;  %732 = vmatpush.bf16.msra.mxu1 %v1250_v1  ;;  %v1257_v6 = vld [vmem:[%s1699_s1 + $0xb0] sm:$0xff]  ;;  %v1248_v9 = vld [vmem:[%s1699_s1 + $0x68] sm:$0xff] }
   0xd   :  { %v1266_v3 = vld [vmem:[%s1699_s1 + $0xf8] sm:$0xff]  ;;  %750 = vmatpush.bf16.msra.mxu2 %v1258_v2  ;;  %v1265_v7 = vld [vmem:[%s1699_s1 + $0xf0] sm:$0xff]  ;;  %v1256_v10 = vld [vmem:[%s1699_s1 + $0xa8] sm:$0xff] }
   0xe   :  { %768 = vmatpush.bf16.msra.mxu3 %v1266_v3  ;;  %v1264_v11 = vld [vmem:[%s1699_s1 + $0xe8] sm:$0xff]  ;;  %v1239_v12 = vld [vmem:[%s1699_s1 + $0x20] sm:$0xff]  ;;  %v1238_v16 = vld [vmem:[%s1699_s1 + $0x18] sm:$0xff] }
   0xf   :  { %715 = vmatpush.bf16.msra.mxu0 %v1241_v4  ;;  %v1247_v13 = vld [vmem:[%s1699_s1 + $0x60] sm:$0xff]  ;;  %v1246_v17 = vld [vmem:[%s1699_s1 + $0x58] sm:$0xff]  ;;  %v1237_v20 = vld [vmem:[%s1699_s1 + $0x10] sm:$0xff] }
  0x10   :  { %733 = vmatpush.bf16.msra.mxu1 %v1249_v5  ;;  %v1255_v14 = vld [vmem:[%s1699_s1 + $0xa0] sm:$0xff]  ;;  %v1254_v18 = vld [vmem:[%s1699_s1 + $0x98] sm:$0xff]  ;;  %v1245_v21 = vld [vmem:[%s1699_s1 + $0x50] sm:$0xff] }
  0x11   :  { %751 = vmatpush.bf16.msra.mxu2 %v1257_v6  ;;  %v1263_v15 = vld [vmem:[%s1699_s1 + $0xe0] sm:$0xff]  ;;  %v1262_v19 = vld [vmem:[%s1699_s1 + $0xd8] sm:$0xff]  ;;  %v1253_v22 = vld [vmem:[%s1699_s1 + $0x90] sm:$0xff] }
  0x12   :  { %769 = vmatpush.bf16.msra.mxu3 %v1265_v7  ;;  %v1261_v23 = vld [vmem:[%s1699_s1 + $0xd0] sm:$0xff]  ;;  %v1236_v24 = vld [vmem:[%s1699_s1 + $0x8] sm:$0xff]  ;;  %v1235_v28 = vld [vmem:[%s1699_s1] sm:$0xff] }
  0x13   :  { %716 = vmatpush.bf16.msra.mxu0 %v1240_v8  ;;  %v1244_v25 = vld [vmem:[%s1699_s1 + $0x48] sm:$0xff]  ;;  %v1243_v29 = vld [vmem:[%s1699_s1 + $0x40] sm:$0xff]  ;;  %v914_v39 = vld [vmem:[%s1698_s0 + $0x2c] sm:$0xf0] }
  0x14   :  { %734 = vmatpush.bf16.msra.mxu1 %v1248_v9  ;;  %v1252_v26 = vld [vmem:[%s1699_s1 + $0x88] sm:$0xff]  ;;  %v1251_v30 = vld [vmem:[%s1699_s1 + $0x80] sm:$0xff]  ;;  %v1274_v40 = vld [vmem:[%s1699_s1 + $0x138] sm:$0xff] }
  0x15   :  { %752 = vmatpush.bf16.msra.mxu2 %v1256_v10  ;;  %v1260_v27 = vld [vmem:[%s1699_s1 + $0xc8] sm:$0xff]  ;;  %v1259_v31 = vld [vmem:[%s1699_s1 + $0xc0] sm:$0xff]  ;;  %v1282_v41 = vld [vmem:[%s1699_s1 + $0x178] sm:$0xff] }
  0x16   :  { %770 = vmatpush.bf16.msra.mxu3 %v1264_v11  ;;  %v904_v32 = vld [vmem:[%s1698_s0] sm:$0xf]  ;;  %v1230_v33 = vld [vmem:[%s1698_s0 + $0x20] sm:$0xf0]  ;;  %v906_v35 = vld [vmem:[%s1698_s0 + $0x24] sm:$0xf0] }
  0x17   :  { %717 = vmatpush.bf16.msra.mxu0 %v1239_v12  ;;  %v1226_v34 = vld [vmem:[%s1698_s0 + $0x4] sm:$0xf]  ;;  %v912_v36 = vld [vmem:[%s1698_s0 + $0x8] sm:$0xf]  ;;  %v1231_v37 = vld [vmem:[%s1698_s0 + $0x28] sm:$0xf0]  ;;  %v905_v42 = vor.u32 %v1230_v33, %v904_v32 }
  0x18   :  { %735 = vmatpush.bf16.msra.mxu1 %v1247_v13  ;;  %v1227_v38 = vld [vmem:[%s1698_s0 + $0xc] sm:$0xf]  ;;  %v909_v43 = vor.u32 %v1226_v34, %v906_v35  ;;  %v913_v44 = vor.u32 %v1231_v37, %v912_v36  ;;  %v1290_v46 = vld [vmem:[%s1699_s1 + $0x1b8] sm:$0xff]  ;;  %v1273_v48 = vld [vmem:[%s1699_s1 + $0x130] sm:$0xff] }
  0x19   :  { %753 = vmatpush.bf16.msra.mxu2 %v1255_v14  ;;  %v917_v45 = vor.u32 %v1227_v38, %v914_v39  ;;  %v1298_v47 = vld [vmem:[%s1699_s1 + $0x1f8] sm:$0xff]  ;;  %v1281_v49 = vld [vmem:[%s1699_s1 + $0x170] sm:$0xff]  ;;  %v1272_v52 = vld [vmem:[%s1699_s1 + $0x128] sm:$0xff] }
  0x1a   :  { %771 = vmatpush.bf16.msra.mxu3 %v1263_v15  ;;  %v1289_v50 = vld [vmem:[%s1699_s1 + $0x1b0] sm:$0xff]  ;;  %v1280_v53 = vld [vmem:[%s1699_s1 + $0x168] sm:$0xff]  ;;  %v1271_v58 = vld [vmem:[%s1699_s1 + $0x120] sm:$0xff] }
  0x1b   :  { %718 = vmatpush.bf16.msra.mxu0 %v1238_v16  ;;  %v1297_v51 = vld [vmem:[%s1699_s1 + $0x1f0] sm:$0xff]  ;;  %v55_v54 = vld [vmem:[%s1698_s0 + $0x48] sm:$0xff]  ;;  %v1279_v59 = vld [vmem:[%s1699_s1 + $0x160] sm:$0xff] }
  0x1c   :  { %736 = vmatpush.bf16.msra.mxu1 %v1246_v17  ;;  %v1288_v55 = vld [vmem:[%s1699_s1 + $0x1a8] sm:$0xff]  ;;  %v56_v57 = vld [vmem:[%s1698_s0 + $0x50] sm:$0xff]  ;;  %v237_v60 = vunpack.c.l.b16 %v55_v54  ;;  %v238_v61 = vunpack.c.h.b16 %v55_v54  ;;  %v1287_v0 = vld [vmem:[%s1699_s1 + $0x1a0] sm:$0xff] }
  0x1d   :  { %754 = vmatpush.bf16.msra.mxu2 %v1254_v18  ;;  %v1296_v56 = vld [vmem:[%s1699_s1 + $0x1e8] sm:$0xff]  ;;  %v239_v62 = vunpack.c.l.b16 %v56_v57  ;;  %v240_v63 = vunpack.c.h.b16 %v56_v57  ;;  %v1295_v1 = vld [vmem:[%s1699_s1 + $0x1e0] sm:$0xff]  ;;  %v1270_v2 = vld [vmem:[%s1699_s1 + $0x118] sm:$0xff] }
  0x1e   :  { %772 = vmatpush.bf16.msra.mxu3 %v1262_v19  ;;  %v1278_v3 = vld [vmem:[%s1699_s1 + $0x158] sm:$0xff]  ;;  %v255_v4 = vpack.c.b16 %v237_v60, %v237_v60  ;;  %v256_v5 = vpack.c.b16 %v238_v61, %v238_v61  ;;  %v1269_v10 = vld [vmem:[%s1699_s1 + $0x110] sm:$0xff]  ;;  %v1268_v14 = vld [vmem:[%s1699_s1 + $0x108] sm:$0xff] }
  0x1f   :  { %719 = vmatpush.bf16.msra.mxu0 %v1237_v20  ;;  %v257_v6 = vpack.c.b16 %v239_v62, %v239_v62  ;;  %v258_v7 = vpack.c.b16 %v240_v63, %v240_v63  ;;  %v1286_v8 = vld [vmem:[%s1699_s1 + $0x198] sm:$0xff]  ;;  %v1277_v11 = vld [vmem:[%s1699_s1 + $0x150] sm:$0xff]  ;;  %v1276_v15 = vld [vmem:[%s1699_s1 + $0x148] sm:$0xff] }
  0x20   :  { %737 = vmatpush.bf16.msra.mxu1 %v1245_v21  ;;  %v1294_v9 = vld [vmem:[%s1699_s1 + $0x1d8] sm:$0xff]  ;;  %v1285_v12 = vld [vmem:[%s1699_s1 + $0x190] sm:$0xff]  ;;  %v1284_v16 = vld [vmem:[%s1699_s1 + $0x188] sm:$0xff] }
  0x21   :  { %755 = vmatpush.bf16.msra.mxu2 %v1253_v22  ;;  %v1293_v13 = vld [vmem:[%s1699_s1 + $0x1d0] sm:$0xff]  ;;  %v1292_v17 = vld [vmem:[%s1699_s1 + $0x1c8] sm:$0xff]  ;;  %v1267_v18 = vld [vmem:[%s1699_s1 + $0x100] sm:$0xff] }
  0x22   :  { %773 = vmatpush.bf16.msra.mxu3 %v1261_v23  ;;  %v1275_v19 = vld [vmem:[%s1699_s1 + $0x140] sm:$0xff]  ;;  %v920_v22 = vld [vmem:[%s1698_s0 + $0x10] sm:$0xf]  ;;  %v1232_v23 = vld [vmem:[%s1698_s0 + $0x30] sm:$0xf0] }
  0x23   :  { %720 = vmatpush.bf16.msra.mxu0 %v1236_v24  ;;  %v1283_v20 = vld [vmem:[%s1699_s1 + $0x180] sm:$0xff]  ;;  %v1306_v24 = vld [vmem:[%s1699_s1 + $0x238] sm:$0xff]  ;;  %v1305_v35 = vld [vmem:[%s1699_s1 + $0x230] sm:$0xff] }
  0x24   :  { %738 = vmatpush.bf16.msra.mxu1 %v1244_v25  ;;  %v1291_v21 = vld [vmem:[%s1699_s1 + $0x1c0] sm:$0xff]  ;;  %v1228_v25 = vld [vmem:[%s1698_s0 + $0x14] sm:$0xf]  ;;  %v1304_v36 = vld [vmem:[%s1699_s1 + $0x228] sm:$0xff] }
  0x25   :  { %756 = vmatpush.bf16.msra.mxu2 %v1252_v26  ;;  %v922_v26 = vld [vmem:[%s1698_s0 + $0x34] sm:$0xf0]  ;;  %v1303_v38 = vld [vmem:[%s1699_s1 + $0x220] sm:$0xff] }
  0x26   :  { %774 = vmatpush.bf16.msra.mxu3 %v1260_v27  ;;  %v928_v27 = vld [vmem:[%s1698_s0 + $0x18] sm:$0xf]  ;;  %v925_v32 = vor.u32 %v1228_v25, %v922_v26  ;;  %v58_v39 = vld [vmem:[%s1698_s0 + $0x60] sm:$0xff] }
  0x27   :  { %721 = vmatpush.bf16.msra.mxu0 %v1235_v28  ;;  %v1233_v28 = vld [vmem:[%s1698_s0 + $0x38] sm:$0xf0]  ;;  %v936_v54 = vld [vmem:[%s1698_s0 + $0x20] sm:$0xf] }
  0x28   :  { %739 = vmatpush.bf16.msra.mxu1 %v1243_v29  ;;  %v1229_v29 = vld [vmem:[%s1698_s0 + $0x1c] sm:$0xf]  ;;  %v929_v33 = vor.u32 %v1233_v28, %v928_v27 }
  0x29   :  { %757 = vmatpush.bf16.msra.mxu2 %v1251_v30  ;;  %v930_v30 = vld [vmem:[%s1698_s0 + $0x3c] sm:$0xf0]  ;;  %v57_v37 = vld [vmem:[%s1698_s0 + $0x58] sm:$0xff] }
  0x2a   :  { %775 = vmatpush.bf16.msra.mxu3 %v1259_v31  ;;  %722 = vmatmul.bf16.vlgmr.msra.gmra.mxu0 %v905_v42  ;;  %v921_v31 = vor.u32 %v1232_v23, %v920_v22  ;;  %v933_v34 = vor.u32 %v1229_v29, %v930_v30  ;;  %v243_v42 = vunpack.c.l.b16 %v58_v39 }
  0x2b   :  { %786 = vmatpush.bf16.msrb.mxu0 %v1274_v40  ;;  %740 = vmatmul.bf16.vlgmr.msra.gmra.mxu1 %v909_v43  ;;  %v241_v40 = vunpack.c.l.b16 %v57_v37  ;;  %v244_v43 = vunpack.c.h.b16 %v58_v39 }
  0x2c   :  { %804 = vmatpush.bf16.msrb.mxu1 %v1282_v41  ;;  %758 = vmatmul.bf16.vlgmr.msra.gmra.mxu2 %v913_v44  ;;  %v242_v41 = vunpack.c.h.b16 %v57_v37  ;;  %v1302_v44 = vld [vmem:[%s1699_s1 + $0x218] sm:$0xff] }
  0x2d   :  { %776 = vmatmul.bf16.vlgmr.msra.gmra.mxu3 %v917_v45  ;;  %822 = vmatpush.bf16.msrb.mxu2 %v1290_v46  ;;  %v259_v45 = vpack.c.b16 %v241_v40, %v241_v40 }
  0x2e   :  { %840 = vmatpush.bf16.msrb.mxu3 %v1298_v47  ;;  %v260_v46 = vpack.c.b16 %v242_v41, %v242_v41  ;;  %v261_v47 = vpack.c.b16 %v243_v42, %v243_v42  ;;  %v1317_v42 = vld [vmem:[#allocation2] ss:$0 sm:$0xff] }
  0x2f   :  { %787 = vmatpush.bf16.msrb.mxu0 %v1273_v48  ;;  %v262_v48 = vpack.c.b16 %v244_v43, %v244_v43 }
  0x30   :  { %805 = vmatpush.bf16.msrb.mxu1 %v1281_v49  ;;  %v1301_v49 = vld [vmem:[%s1699_s1 + $0x210] sm:$0xff] }
  0x31   :  { %823 = vmatpush.bf16.msrb.mxu2 %v1289_v50  ;;  %v1300_v50 = vld [vmem:[%s1699_s1 + $0x208] sm:$0xff] }
  0x32   :  { %841 = vmatpush.bf16.msrb.mxu3 %v1297_v51  ;;  %v59_v51 = vld [vmem:[%s1698_s0 + $0x68] sm:$0xf] }
  0x33   :  { %788 = vmatpush.bf16.msrb.mxu0 %v1272_v52  ;;  %v1299_v52 = vld [vmem:[%s1699_s1 + $0x200] sm:$0xff] }
  0x34   :  { %806 = vmatpush.bf16.msrb.mxu1 %v1280_v53  ;;  %v245_v53 = vunpack.c.l.b16 %v59_v51 }
  0x35   :  { %824 = vmatpush.bf16.msrb.mxu2 %v1288_v55  ;;  %v1234_v55 = vld [vmem:[%s1698_s0 + $0x40] sm:$0xf0] }
  0x36   :  { %842 = vmatpush.bf16.msrb.mxu3 %v1296_v56  ;;  %v937_v56 = vor.u32 %v1234_v55, %v936_v54  ;;  %v263_v57 = vpack.c.b16 %v245_v53, %v245_v53 }
  0x37   :  { %789 = vmatpush.bf16.msrb.mxu0 %v1271_v58 }
  0x38   :  { %807 = vmatpush.bf16.msrb.mxu1 %v1279_v59 }
  0x39   :  { %825 = vmatpush.bf16.msrb.mxu2 %v1287_v0 }
  0x3a   :  { %843 = vmatpush.bf16.msrb.mxu3 %v1295_v1  ;;  %727 = vmatmul.bf16.gmra.mxu0 %v255_v4 }
  0x3b   :  { %790 = vmatpush.bf16.msrb.mxu0 %v1270_v2  ;;  %745 = vmatmul.bf16.gmra.mxu1 %v256_v5 }
  0x3c   :  { %808 = vmatpush.bf16.msrb.mxu1 %v1278_v3  ;;  %763 = vmatmul.bf16.gmra.mxu2 %v257_v6 }
  0x3d   :  { %781 = vmatmul.bf16.gmra.mxu3 %v258_v7  ;;  %826 = vmatpush.bf16.msrb.mxu2 %v1286_v8 }
  0x3e   :  { %844 = vmatpush.bf16.msrb.mxu3 %v1294_v9 }
  0x3f   :  { %791 = vmatpush.bf16.msrb.mxu0 %v1269_v10 }
  0x40   :  { %809 = vmatpush.bf16.msrb.mxu1 %v1277_v11 }
  0x41   :  { %827 = vmatpush.bf16.msrb.mxu2 %v1285_v12 }
  0x42   :  { %845 = vmatpush.bf16.msrb.mxu3 %v1293_v13 }
  0x43   :  { %792 = vmatpush.bf16.msrb.mxu0 %v1268_v14 }
  0x44   :  { %810 = vmatpush.bf16.msrb.mxu1 %v1276_v15 }
  0x45   :  { %828 = vmatpush.bf16.msrb.mxu2 %v1284_v16 }
  0x46   :  { %846 = vmatpush.bf16.msrb.mxu3 %v1292_v17 }
  0x47   :  { %793 = vmatpush.bf16.msrb.mxu0 %v1267_v18 }
  0x48   :  { %811 = vmatpush.bf16.msrb.mxu1 %v1275_v19 }
  0x49   :  { %829 = vmatpush.bf16.msrb.mxu2 %v1283_v20 }
  0x4a   :  { %847 = vmatpush.bf16.msrb.mxu3 %v1291_v21  ;;  %794 = vmatmul.bf16.vlgmr.msrb.gmra.mxu0 %v921_v31 }
  0x4b   :  { %858 = vmatpush.bf16.msra.mxu0 %v1306_v24  ;;  %812 = vmatmul.bf16.vlgmr.msrb.gmra.mxu1 %v925_v32 }
  0x4c   :  { %1307 = vmatpush.bf16.msra.mxu1 %v1306_v24  ;;  %830 = vmatmul.bf16.vlgmr.msrb.gmra.mxu2 %v929_v33 }
  0x4d   :  { %848 = vmatmul.bf16.vlgmr.msrb.gmra.mxu3 %v933_v34 }
  0x4f   :  { %859 = vmatpush.bf16.msra.mxu0 %v1305_v35 }
  0x50   :  { %1308 = vmatpush.bf16.msra.mxu1 %v1305_v35 }
  0x53   :  { %860 = vmatpush.bf16.msra.mxu0 %v1304_v36 }
  0x54   :  { %1309 = vmatpush.bf16.msra.mxu1 %v1304_v36 }
  0x57   :  { %861 = vmatpush.bf16.msra.mxu0 %v1303_v38 }
  0x58   :  { %1310 = vmatpush.bf16.msra.mxu1 %v1303_v38 }
  0x5a   :  { %799 = vmatmul.bf16.gmra.mxu0 %v259_v45 }
  0x5b   :  { %862 = vmatpush.bf16.msra.mxu0 %v1302_v44  ;;  %817 = vmatmul.bf16.gmra.mxu1 %v260_v46 }
  0x5c   :  { %1311 = vmatpush.bf16.msra.mxu1 %v1302_v44  ;;  %835 = vmatmul.bf16.gmra.mxu2 %v261_v47 }
  0x5d   :  { %853 = vmatmul.bf16.gmra.mxu3 %v262_v48 }
  0x5f   :  { %863 = vmatpush.bf16.msra.mxu0 %v1301_v49 }
  0x60   :  { %1312 = vmatpush.bf16.msra.mxu1 %v1301_v49  ;;  %v1318_v49 = vld [vmem:[#allocation4] ss:$0 sm:$0xff] }
  0x63   :  { %864 = vmatpush.bf16.msra.mxu0 %v1300_v50 }
  0x64   :  { %1313 = vmatpush.bf16.msra.mxu1 %v1300_v50 }
  0x67   :  { %865 = vmatpush.bf16.msra.mxu0 %v1299_v52 }
  0x68   :  { %1314 = vmatpush.bf16.msra.mxu1 %v1299_v52 }
  0x6a   :  { %866 = vmatmul.bf16.vlgmr.msra.gmra.mxu0 %v937_v56 }
  0x6b   :  { %871 = vmatmul.bf16.vlgmr.msra.gmra.mxu1 %v263_v57 }
  0xa7   :  { %v723_v58 = vpop.f32.mrf.mxu0 }
  0xa8   :  { %v741_v59 = vpop.f32.mrf.mxu1 }
  0xa9   :  { %v742_v16 = vadd.f32 %v741_v59, %v723_v58 }
  0xaf   :  { %v759_v60 = vpop.f32.mrf.mxu2  ;;  %v725_v62 = vpop.f32.mrf.mxu0 }
  0xb0   :  { %v777_v61 = vpop.f32.mrf.mxu3  ;;  %v743_v63 = vpop.f32.mrf.mxu1  ;;  %v760_v18 = vadd.f32 %v759_v60, %v742_v16 }
  0xb1   :  { %v744_v26 = vadd.f32 %v743_v63, %v725_v62 }
  0xb2   :  { %v778_v24 = vadd.f32 %v777_v61, %v760_v18 }
  0xb7   :  { %v761_v0 = vpop.f32.mrf.mxu2  ;;  %v728_v2 = vpop.f32.mrf.mxu0 }
  0xb8   :  { %v779_v1 = vpop.f32.mrf.mxu3  ;;  %v746_v3 = vpop.f32.mrf.mxu1  ;;  %v762_v29 = vadd.f32 %v761_v0, %v744_v26 }
  0xb9   :  { %v747_v17 = vadd.f32 %v746_v3, %v728_v2 }
  0xba   :  { %v780_v36 = vadd.f32 %v779_v1, %v762_v29 }
  0xbf   :  { %v764_v4 = vpop.f32.mrf.mxu2  ;;  %v730_v6 = vpop.f32.mrf.mxu0 }
  0xc0   :  { %v782_v5 = vpop.f32.mrf.mxu3  ;;  %v748_v7 = vpop.f32.mrf.mxu1  ;;  %v765_v19 = vadd.f32 %v764_v4, %v747_v17 }
  0xc2   :  { %v783_v25 = vadd.f32 %v782_v5, %v765_v19 }
  0xc7   :  { %v766_v8 = vpop.f32.mrf.mxu2  ;;  %v795_v10 = vpop.f32.mrf.mxu0 }
  0xc8   :  { %v784_v9 = vpop.f32.mrf.mxu3  ;;  %v813_v11 = vpop.f32.mrf.mxu1  ;;  %v796_v27 = vadd.f32 %v795_v10, %v778_v24 }
  0xca   :  { %v814_v34 = vadd.f32 %v813_v11, %v796_v27 }
  0xcf   :  { %v831_v12 = vpop.f32.mrf.mxu2  ;;  %v797_v14 = vpop.f32.mrf.mxu0 }
  0xd0   :  { %v849_v13 = vpop.f32.mrf.mxu3  ;;  %v815_v15 = vpop.f32.mrf.mxu1  ;;  %v832_v37 = vadd.f32 %v831_v12, %v814_v34  ;;  %v798_v39 = vadd.f32 %v797_v14, %v780_v36 }
  0xd2   :  { %v850_v40 = vadd.f32 %v849_v13, %v832_v37  ;;  %v816_v47 = vadd.f32 %v815_v15, %v798_v39 }
  0xd7   :  { %v833_v20 = vpop.f32.mrf.mxu2  ;;  %v800_v22 = vpop.f32.mrf.mxu0 }
  0xd8   :  { %v851_v21 = vpop.f32.mrf.mxu3  ;;  %v818_v23 = vpop.f32.mrf.mxu1  ;;  %v801_v28 = vadd.f32 %v800_v22, %v783_v25  ;;  %v834_v51 = vadd.f32 %v833_v20, %v816_v47 }
  0xda   :  { %v819_v35 = vadd.f32 %v818_v23, %v801_v28  ;;  %v852_v56 = vadd.f32 %v851_v21, %v834_v51 }
  0xdf   :  { %v836_v30 = vpop.f32.mrf.mxu2  ;;  %v802_v32 = vpop.f32.mrf.mxu0 }
  0xe0   :  { %v854_v31 = vpop.f32.mrf.mxu3  ;;  %v820_v33 = vpop.f32.mrf.mxu1  ;;  %v837_v38 = vadd.f32 %v836_v30, %v819_v35 }
  0xe2   :  { %v855_v41 = vadd.f32 %v854_v31, %v837_v38 }
  0xe7   :  { %v838_v43 = vpop.f32.mrf.mxu2  ;;  %v867_v45 = vpop.f32.mrf.mxu0 }
  0xe8   :  { %v856_v44 = vpop.f32.mrf.mxu3  ;;  %v872_v46 = vpop.f32.mrf.mxu1  ;;  %v868_v48 = vadd.f32 %v867_v45, %v850_v40 }
  0xe9   :  { %v873_v50 = vadd.f32 %v872_v46, %v855_v41 }
  0xea   :  { %v880_v52 = vmul.f32 %v1317_v42, %v868_v48 }
  0xeb   :  { %v882_v53 = vmul.f32 %v1317_v42, %v873_v50 }
  0xec   :  { %v887_v54 = vadd.f32 %v1318_v49, %v880_v52 }
  0xed   :  { %v889_v55 = vadd.f32 %v1318_v49, %v882_v53 }
  0xee   :  { %v890_v57 = vmax.f32 %v887_v54, 0.0 }
  0xef   :  { %v892_v58 = vmax.f32 %v889_v55, 0.0  ;;  %v869_v59 = vpop.f32.mrf.mxu0 }
  0xf0   :  { %v874_v60 = vpop.f32.mrf.mxu1  ;;  %893 = vst [vmem:[%s1702_s4] sm:$0xff] %v890_v57  ;;  %v870_v61 = vadd.f32 %v869_v59, %v852_v56 }
  0xf1   :  { %895 = vst [vmem:[%s1702_s4 + $0x10] sm:$0xff] %v892_v58 }
  0xf2   :  { %v881_v62 = vmul.f32 %v1317_v42, %v870_v61 }
  0xf4   :  { %v888_v63 = vadd.f32 %v1318_v49, %v881_v62 }
  0xf6   :  { %v891_v0 = vmax.f32 %v888_v63, 0.0 }
  0xf8   :  { %894 = vst [vmem:[%s1702_s4 + $0x8] sm:$0xff] %v891_v0 }
  0xf9   :  { %900 = vsyncpa [#allocation3], 1 }
  0xfa   :  { %901 = vsyncpa [#allocation5], 1 }

// kernel: my_net_res50_forward.43
= control target key start
LH: loop header
LB: loop body
LE: loop exit
PB: predicated region body
PF: predicated region fallthrough
CT: control target
= control target key end

     0   :  { %s889_s1 = inlined_call_operand.vmem [shape: bf16[128,512], index: 1, kind: input, shape index: {}]   ;;  %s890_s0 = inlined_call_operand.vmem [shape: bf16[24,128], index: 0, kind: input, shape index: {}]   ;;  %s891_s2 = inlined_call_operand.vmem [shape: f32[1,512], index: 2, kind: input, shape index: {}]   ;;  %s892_s3 = inlined_call_operand.vmem [shape: f32[1,512], index: 3, kind: input, shape index: {}]   ;;  %s893_s4 = inlined_call_operand.vmem [shape: f32[24,512], index: 4, kind: input, shape index: {}]   ;;  %s894_s5 = inlined_call_operand.vmem [shape: f32[24,512], index: 5, kind: output, shape index: {}]  }
   0x1   :  { %v511_v0 = vld [vmem:[%s889_s1 + $0xe0] sm:$0xf]  ;;  %v556_v1 = vld [vmem:[%s889_s1 + $0xec] sm:$0xf0]  ;;  %v554_v2 = vld [vmem:[%s889_s1 + $0xe4] sm:$0xf] }
   0x2   :  { %v512_v3 = vor.u32 %v556_v1, %v511_v0  ;;  %v513_v4 = vld [vmem:[%s889_s1 + $0xf0] sm:$0xf0]  ;;  %v519_v5 = vld [vmem:[%s889_s1 + $0xe8] sm:$0xf]  ;;  %v557_v6 = vld [vmem:[%s889_s1 + $0xf4] sm:$0xf0] }
   0x3   :  { %v516_v7 = vor.u32 %v554_v2, %v513_v4  ;;  %v520_v8 = vor.u32 %v557_v6, %v519_v5  ;;  %v555_v9 = vld [vmem:[%s889_s1 + $0xec] sm:$0xf]  ;;  %v521_v10 = vld [vmem:[%s889_s1 + $0xf8] sm:$0xf0]  ;;  %v495_v11 = vld [vmem:[%s889_s1 + $0xc0] sm:$0xf] }
   0x4   :  { %225 = vmatpush.bf16.msra.mxu0 %v512_v3  ;;  %v524_v12 = vor.u32 %v555_v9, %v521_v10  ;;  %v552_v13 = vld [vmem:[%s889_s1 + $0xcc] sm:$0xf0]  ;;  %v550_v14 = vld [vmem:[%s889_s1 + $0xc4] sm:$0xf]  ;;  %v497_v15 = vld [vmem:[%s889_s1 + $0xd0] sm:$0xf0] }
   0x5   :  { %243 = vmatpush.bf16.msra.mxu1 %v516_v7  ;;  %261 = vmatpush.bf16.msra.mxu2 %v520_v8  ;;  %v496_v16 = vor.u32 %v552_v13, %v495_v11  ;;  %v500_v17 = vor.u32 %v550_v14, %v497_v15  ;;  %v503_v18 = vld [vmem:[%s889_s1 + $0xc8] sm:$0xf]  ;;  %v553_v19 = vld [vmem:[%s889_s1 + $0xd4] sm:$0xf0]  ;;  %v551_v20 = vld [vmem:[%s889_s1 + $0xcc] sm:$0xf] }
   0x6   :  { %279 = vmatpush.bf16.msra.mxu3 %v524_v12  ;;  %v504_v21 = vor.u32 %v553_v19, %v503_v18  ;;  %v505_v22 = vld [vmem:[%s889_s1 + $0xd8] sm:$0xf0]  ;;  %v479_v23 = vld [vmem:[%s889_s1 + $0xa0] sm:$0xf]  ;;  %v548_v24 = vld [vmem:[%s889_s1 + $0xac] sm:$0xf0] }
   0x7   :  { %v508_v25 = vor.u32 %v551_v20, %v505_v22  ;;  %v546_v26 = vld [vmem:[%s889_s1 + $0xa4] sm:$0xf]  ;;  %v481_v27 = vld [vmem:[%s889_s1 + $0xb0] sm:$0xf0]  ;;  %v487_v28 = vld [vmem:[%s889_s1 + $0xa8] sm:$0xf]  ;;  %v480_v29 = vor.u32 %v548_v24, %v479_v23 }
   0x8   :  { %226 = vmatpush.bf16.msra.mxu0 %v496_v16  ;;  %v549_v30 = vld [vmem:[%s889_s1 + $0xb4] sm:$0xf0]  ;;  %v547_v31 = vld [vmem:[%s889_s1 + $0xac] sm:$0xf]  ;;  %v489_v32 = vld [vmem:[%s889_s1 + $0xb8] sm:$0xf0]  ;;  %v484_v33 = vor.u32 %v546_v26, %v481_v27 }
   0x9   :  { %244 = vmatpush.bf16.msra.mxu1 %v500_v17  ;;  %262 = vmatpush.bf16.msra.mxu2 %v504_v21  ;;  %v488_v34 = vor.u32 %v549_v30, %v487_v28  ;;  %v463_v35 = vld [vmem:[%s889_s1 + $0x80] sm:$0xf]  ;;  %v544_v36 = vld [vmem:[%s889_s1 + $0x8c] sm:$0xf0]  ;;  %v542_v37 = vld [vmem:[%s889_s1 + $0x84] sm:$0xf]  ;;  %v492_v38 = vor.u32 %v547_v31, %v489_v32 }
   0xa   :  { %280 = vmatpush.bf16.msra.mxu3 %v508_v25  ;;  %v465_v39 = vld [vmem:[%s889_s1 + $0x90] sm:$0xf0]  ;;  %v471_v40 = vld [vmem:[%s889_s1 + $0x88] sm:$0xf]  ;;  %v545_v41 = vld [vmem:[%s889_s1 + $0x94] sm:$0xf0]  ;;  %v464_v44 = vor.u32 %v544_v36, %v463_v35 }
   0xb   :  { %v543_v42 = vld [vmem:[%s889_s1 + $0x8c] sm:$0xf]  ;;  %v473_v43 = vld [vmem:[%s889_s1 + $0x98] sm:$0xf0]  ;;  %v468_v45 = vor.u32 %v542_v37, %v465_v39  ;;  %v472_v46 = vor.u32 %v545_v41, %v471_v40  ;;  %v447_v47 = vld [vmem:[%s889_s1 + $0x60] sm:$0xf] }
   0xc   :  { %227 = vmatpush.bf16.msra.mxu0 %v480_v29  ;;  %v540_v48 = vld [vmem:[%s889_s1 + $0x6c] sm:$0xf0]  ;;  %v538_v49 = vld [vmem:[%s889_s1 + $0x64] sm:$0xf]  ;;  %v476_v50 = vor.u32 %v543_v42, %v473_v43  ;;  %v449_v51 = vld [vmem:[%s889_s1 + $0x70] sm:$0xf0] }
   0xd   :  { %245 = vmatpush.bf16.msra.mxu1 %v484_v33  ;;  %263 = vmatpush.bf16.msra.mxu2 %v488_v34  ;;  %v455_v52 = vld [vmem:[%s889_s1 + $0x68] sm:$0xf]  ;;  %v541_v53 = vld [vmem:[%s889_s1 + $0x74] sm:$0xf0]  ;;  %v539_v54 = vld [vmem:[%s889_s1 + $0x6c] sm:$0xf]  ;;  %v448_v56 = vor.u32 %v540_v48, %v447_v47  ;;  %v452_v57 = vor.u32 %v538_v49, %v449_v51 }
   0xe   :  { %281 = vmatpush.bf16.msra.mxu3 %v492_v38  ;;  %v457_v55 = vld [vmem:[%s889_s1 + $0x78] sm:$0xf0]  ;;  %v456_v58 = vor.u32 %v541_v53, %v455_v52  ;;  %v431_v59 = vld [vmem:[%s889_s1 + $0x40] sm:$0xf]  ;;  %v536_v60 = vld [vmem:[%s889_s1 + $0x4c] sm:$0xf0] }
   0xf   :  { %v534_v61 = vld [vmem:[%s889_s1 + $0x44] sm:$0xf]  ;;  %v460_v62 = vor.u32 %v539_v54, %v457_v55  ;;  %v433_v63 = vld [vmem:[%s889_s1 + $0x50] sm:$0xf0]  ;;  %v439_v0 = vld [vmem:[%s889_s1 + $0x48] sm:$0xf]  ;;  %v432_v4 = vor.u32 %v536_v60, %v431_v59 }
  0x10   :  { %228 = vmatpush.bf16.msra.mxu0 %v464_v44  ;;  %v537_v1 = vld [vmem:[%s889_s1 + $0x54] sm:$0xf0]  ;;  %v535_v2 = vld [vmem:[%s889_s1 + $0x4c] sm:$0xf]  ;;  %v441_v3 = vld [vmem:[%s889_s1 + $0x58] sm:$0xf0]  ;;  %v436_v5 = vor.u32 %v534_v61, %v433_v63 }
  0x11   :  { %246 = vmatpush.bf16.msra.mxu1 %v468_v45  ;;  %264 = vmatpush.bf16.msra.mxu2 %v472_v46  ;;  %v440_v6 = vor.u32 %v537_v1, %v439_v0  ;;  %v415_v7 = vld [vmem:[%s889_s1 + $0x20] sm:$0xf]  ;;  %v532_v8 = vld [vmem:[%s889_s1 + $0x2c] sm:$0xf0]  ;;  %v530_v9 = vld [vmem:[%s889_s1 + $0x24] sm:$0xf]  ;;  %v444_v10 = vor.u32 %v535_v2, %v441_v3 }
  0x12   :  { %282 = vmatpush.bf16.msra.mxu3 %v476_v50  ;;  %v417_v11 = vld [vmem:[%s889_s1 + $0x30] sm:$0xf0]  ;;  %v423_v12 = vld [vmem:[%s889_s1 + $0x28] sm:$0xf]  ;;  %v533_v13 = vld [vmem:[%s889_s1 + $0x34] sm:$0xf0]  ;;  %v416_v16 = vor.u32 %v532_v8, %v415_v7 }
  0x13   :  { %v531_v14 = vld [vmem:[%s889_s1 + $0x2c] sm:$0xf]  ;;  %v425_v15 = vld [vmem:[%s889_s1 + $0x38] sm:$0xf0]  ;;  %v420_v17 = vor.u32 %v530_v9, %v417_v11  ;;  %v424_v18 = vor.u32 %v533_v13, %v423_v12  ;;  %v399_v19 = vld [vmem:[%s889_s1] sm:$0xf] }
  0x14   :  { %229 = vmatpush.bf16.msra.mxu0 %v448_v56  ;;  %v528_v20 = vld [vmem:[%s889_s1 + $0xc] sm:$0xf0]  ;;  %v526_v21 = vld [vmem:[%s889_s1 + $0x4] sm:$0xf]  ;;  %v428_v22 = vor.u32 %v531_v14, %v425_v15  ;;  %v401_v23 = vld [vmem:[%s889_s1 + $0x10] sm:$0xf0] }
  0x15   :  { %247 = vmatpush.bf16.msra.mxu1 %v452_v57  ;;  %265 = vmatpush.bf16.msra.mxu2 %v456_v58  ;;  %v407_v24 = vld [vmem:[%s889_s1 + $0x8] sm:$0xf]  ;;  %v529_v25 = vld [vmem:[%s889_s1 + $0x14] sm:$0xf0]  ;;  %v527_v26 = vld [vmem:[%s889_s1 + $0xc] sm:$0xf]  ;;  %v400_v28 = vor.u32 %v528_v20, %v399_v19  ;;  %v404_v29 = vor.u32 %v526_v21, %v401_v23 }
  0x16   :  { %283 = vmatpush.bf16.msra.mxu3 %v460_v62  ;;  %v409_v27 = vld [vmem:[%s889_s1 + $0x18] sm:$0xf0]  ;;  %v408_v30 = vor.u32 %v529_v25, %v407_v24  ;;  %v525_v32 = vld [vmem:[%s890_s0] sm:$0xff]  ;;  %v22_v33 = vld [vmem:[%s890_s0 + $0x8] sm:$0xf] }
  0x17   :  { %v412_v31 = vor.u32 %v527_v26, %v409_v27  ;;  %v60_v34 = vunpack.c.l.b16 %v22_v33  ;;  %v297_v36 = vld [vmem:[%s891_s2] sm:$0xf]  ;;  %v342_v48 = vld [vmem:[%s893_s4 + $0x8] sm:$0xff]  ;;  %v343_v62 = vld [vmem:[%s893_s4 + $0x10] sm:$0xff] }
  0x18   :  { %230 = vmatpush.bf16.msra.mxu0 %v432_v4  ;;  %v319_v37 = vld [vmem:[%s892_s3] sm:$0xf]  ;;  %v299_v38 = vperm.slane %v297_v36, 0  ;;  %v300_v39 = vperm.slane %v297_v36, 1  ;;  %v801_v50 = vperm.slane %v297_v36, 2  ;;  %v803_v52 = vperm.slane %v297_v36, 3 }
  0x19   :  { %248 = vmatpush.bf16.msra.mxu1 %v436_v5  ;;  %266 = vmatpush.bf16.msra.mxu2 %v440_v6  ;;  %v62_v35 = vpack.c.b16 %v60_v34, %v60_v34  ;;  %v321_v40 = vperm.slane %v319_v37, 0  ;;  %v792_v42 = vperm.slane %v319_v37, 1  ;;  %v341_v45 = vld [vmem:[%s893_s4] sm:$0xff]  ;;  %v805_v54 = vperm.slane %v319_v37, 2  ;;  %v344_v3 = vld [vmem:[%s893_s4 + $0x18] sm:$0xff]  ;;  %v346_v8 = vld [vmem:[%s893_s4 + $0x28] sm:$0xff] }
  0x1a   :  { %284 = vmatpush.bf16.msra.mxu3 %v444_v10  ;;  %v807_v57 = vperm.slane %v319_v37, 3  ;;  %v345_v4 = vld [vmem:[%s893_s4 + $0x20] sm:$0xff]  ;;  %v348_v27 = vld [vmem:[%s893_s4 + $0x38] sm:$0xff] }
  0x1c   :  { %231 = vmatpush.bf16.msra.mxu0 %v416_v16 }
  0x1d   :  { %249 = vmatpush.bf16.msra.mxu1 %v420_v17  ;;  %267 = vmatpush.bf16.msra.mxu2 %v424_v18 }
  0x1e   :  { %285 = vmatpush.bf16.msra.mxu3 %v428_v22  ;;  %v347_v22 = vld [vmem:[%s893_s4 + $0x30] sm:$0xff] }
  0x20   :  { %232 = vmatpush.bf16.msra.mxu0 %v400_v28  ;;  %v349_v28 = vld [vmem:[%s893_s4 + $0x40] sm:$0xff] }
  0x21   :  { %250 = vmatpush.bf16.msra.mxu1 %v404_v29  ;;  %268 = vmatpush.bf16.msra.mxu2 %v408_v30 }
  0x22   :  { %286 = vmatpush.bf16.msra.mxu3 %v412_v31 }
  0x23   :  { %233 = vmatmul.bf16.vlgmr.msra.gmra.mxu0 %v525_v32 }
  0x24   :  { %251 = vmatmul.bf16.vlgmr.msra.gmra.mxu1 %v525_v32  ;;  %269 = vmatmul.bf16.vlgmr.msra.gmra.mxu2 %v525_v32 }
  0x25   :  { %287 = vmatmul.bf16.vlgmr.msra.gmra.mxu3 %v525_v32  ;;  %v350_v32 = vld [vmem:[%s893_s4 + $0x48] sm:$0xff] }
  0x33   :  { %238 = vmatmul.bf16.gmra.mxu0 %v62_v35 }
  0x34   :  { %256 = vmatmul.bf16.gmra.mxu1 %v62_v35  ;;  %274 = vmatmul.bf16.gmra.mxu2 %v62_v35 }
  0x35   :  { %292 = vmatmul.bf16.gmra.mxu3 %v62_v35 }
  0xa0   :  { %v234_v41 = vpop.f32.mrf.mxu0 }
  0xa1   :  { %v307_v43 = vmul.f32 %v299_v38, %v234_v41  ;;  %v252_v44 = vpop.f32.mrf.mxu1 }
  0xa2   :  { %v308_v46 = vmul.f32 %v300_v39, %v252_v44 }
  0xa3   :  { %v329_v47 = vadd.f32 %v321_v40, %v307_v43 }
  0xa4   :  { %v330_v49 = vadd.f32 %v792_v42, %v308_v46 }
  0xa5   :  { %v353_v51 = vadd.f32 %v341_v45, %v329_v47 }
  0xa6   :  { %v354_v53 = vadd.f32 %v342_v48, %v330_v49 }
  0xa7   :  { %v365_v55 = vmax.f32 %v353_v51, 0.0  ;;  %v270_v56 = vpop.f32.mrf.mxu2 }
  0xa8   :  { %v366_v58 = vmax.f32 %v354_v53, 0.0  ;;  %v309_v59 = vmul.f32 %v801_v50, %v270_v56  ;;  %v288_v60 = vpop.f32.mrf.mxu3  ;;  %v236_v61 = vpop.f32.mrf.mxu0 }
  0xa9   :  { %377 = vst [vmem:[%s894_s5] sm:$0xff] %v365_v55  ;;  %v310_v63 = vmul.f32 %v803_v52, %v288_v60  ;;  %v311_v0 = vmul.f32 %v299_v38, %v236_v61  ;;  %v254_v1 = vpop.f32.mrf.mxu1 }
  0xaa   :  { %378 = vst [vmem:[%s894_s5 + $0x8] sm:$0xff] %v366_v58  ;;  %v331_v2 = vadd.f32 %v805_v54, %v309_v59  ;;  %v312_v5 = vmul.f32 %v300_v39, %v254_v1 }
  0xab   :  { %v332_v6 = vadd.f32 %v807_v57, %v310_v63  ;;  %v333_v7 = vadd.f32 %v321_v40, %v311_v0 }
  0xac   :  { %v355_v9 = vadd.f32 %v343_v62, %v331_v2  ;;  %v334_v10 = vadd.f32 %v792_v42, %v312_v5 }
  0xad   :  { %v356_v11 = vadd.f32 %v344_v3, %v332_v6  ;;  %v357_v12 = vadd.f32 %v345_v4, %v333_v7 }
  0xae   :  { %v367_v13 = vmax.f32 %v355_v9, 0.0  ;;  %v358_v14 = vadd.f32 %v346_v8, %v334_v10 }
  0xaf   :  { %v368_v15 = vmax.f32 %v356_v11, 0.0  ;;  %v369_v16 = vmax.f32 %v357_v12, 0.0  ;;  %v272_v17 = vpop.f32.mrf.mxu2 }
  0xb0   :  { %379 = vst [vmem:[%s894_s5 + $0x10] sm:$0xff] %v367_v13  ;;  %v370_v18 = vmax.f32 %v358_v14, 0.0  ;;  %v313_v19 = vmul.f32 %v801_v50, %v272_v17  ;;  %v290_v20 = vpop.f32.mrf.mxu3  ;;  %v239_v21 = vpop.f32.mrf.mxu0 }
  0xb1   :  { %380 = vst [vmem:[%s894_s5 + $0x18] sm:$0xff] %v368_v15  ;;  %v314_v23 = vmul.f32 %v803_v52, %v290_v20  ;;  %v315_v24 = vmul.f32 %v299_v38, %v239_v21  ;;  %v257_v25 = vpop.f32.mrf.mxu1 }
  0xb2   :  { %381 = vst [vmem:[%s894_s5 + $0x20] sm:$0xff] %v369_v16  ;;  %v335_v26 = vadd.f32 %v805_v54, %v313_v19  ;;  %v316_v29 = vmul.f32 %v300_v39, %v257_v25 }
  0xb3   :  { %382 = vst [vmem:[%s894_s5 + $0x28] sm:$0xff] %v370_v18  ;;  %v336_v30 = vadd.f32 %v807_v57, %v314_v23  ;;  %v337_v31 = vadd.f32 %v321_v40, %v315_v24 }
  0xb4   :  { %v359_v33 = vadd.f32 %v347_v22, %v335_v26  ;;  %v338_v34 = vadd.f32 %v792_v42, %v316_v29  ;;  %v351_v42 = vld [vmem:[%s893_s4 + $0x50] sm:$0xff] }
  0xb5   :  { %v360_v35 = vadd.f32 %v348_v27, %v336_v30  ;;  %v361_v36 = vadd.f32 %v349_v28, %v337_v31 }
  0xb6   :  { %v371_v37 = vmax.f32 %v359_v33, 0.0  ;;  %v362_v38 = vadd.f32 %v350_v32, %v338_v34 }
  0xb7   :  { %v372_v41 = vmax.f32 %v360_v35, 0.0  ;;  %v373_v39 = vmax.f32 %v361_v36, 0.0  ;;  %v275_v43 = vpop.f32.mrf.mxu2 }
  0xb8   :  { %383 = vst [vmem:[%s894_s5 + $0x30] sm:$0xff] %v371_v37  ;;  %v374_v44 = vmax.f32 %v362_v38, 0.0  ;;  %v317_v40 = vmul.f32 %v801_v50, %v275_v43  ;;  %v293_v45 = vpop.f32.mrf.mxu3  ;;  %v241_v46 = vpop.f32.mrf.mxu0  ;;  %v352_v50 = vld [vmem:[%s893_s4 + $0x58] sm:$0xff] }
  0xb9   :  { %384 = vst [vmem:[%s894_s5 + $0x38] sm:$0xff] %v372_v41  ;;  %v318_v47 = vmul.f32 %v803_v52, %v293_v45  ;;  %v259_v48 = vpop.f32.mrf.mxu1 }
  0xba   :  { %385 = vst [vmem:[%s894_s5 + $0x40] sm:$0xff] %v373_v39  ;;  %v339_v49 = vadd.f32 %v805_v54, %v317_v40 }
  0xbb   :  { %386 = vst [vmem:[%s894_s5 + $0x48] sm:$0xff] %v374_v44  ;;  %v340_v51 = vadd.f32 %v807_v57, %v318_v47 }
  0xbc   :  { %v363_v53 = vadd.f32 %v351_v42, %v339_v49 }
  0xbd   :  { %v364_v55 = vadd.f32 %v352_v50, %v340_v51 }
  0xbe   :  { %v375_v52 = vmax.f32 %v363_v53, 0.0 }
  0xbf   :  { %v376_v56 = vmax.f32 %v364_v55, 0.0  ;;  %v277_v58 = vpop.f32.mrf.mxu2 }
  0xc0   :  { %387 = vst [vmem:[%s894_s5 + $0x50] sm:$0xff] %v375_v52  ;;  %v295_v54 = vpop.f32.mrf.mxu3 }
  0xc1   :  { %388 = vst [vmem:[%s894_s5 + $0x58] sm:$0xff] %v376_v56 }

// kernel: my_net_res50_forward.44
= control target key start
LH: loop header
LB: loop body
LE: loop exit
PB: predicated region body
PF: predicated region fallthrough
CT: control target
= control target key end

     0   :  { %9 = vsyncpa [#allocation3], 0  ;;  %s843_s0 = inlined_call_operand.vmem [shape: bf16[24,512], index: 0, kind: input, shape index: {}]   ;;  %s844_s1 = inlined_call_operand.vmem [shape: bf16[512,128], index: 1, kind: input, shape index: {}]   ;;  %s845_s2 = inlined_call_operand.hbm [shape: f32[1,128], index: 2, kind: input, shape index: {}]   ;;  %s846_s3 = inlined_call_operand.hbm [shape: f32[1,128], index: 3, kind: input, shape index: {}]   ;;  %s847_s4 = inlined_call_operand.vmem [shape: f32[24,128], index: 4, kind: output, shape index: {}]  }
   0x1   :  { %s20_s17 = sshll.u32 %s845_s2, 4  ;;  %s21_s17 = int_to_ptr.hbm [resolvable:$true] %s20_s17 }
   0x2   :  { %10 = vsyncpa [#allocation5], 0  ;;  %s675_s18 = smov [#allocation2]   ;;  %s31_s22 = sshll.u32 %s846_s3, 4  ;;  %s32_s22 = int_to_ptr.hbm [resolvable:$true] %s31_s22 }
   0x3   :  { %s22_s19 = sshll.u32 %s675_s18, 4  ;;  %s676_s23 = smov [#allocation4]   ;;  %s23_s19 = int_to_ptr.vmem [resolvable:$true] %s22_s19 }
   0x4   :  { %25 = dma.hbm_to_vmem [thread:$0]  %s21_s17, 16, %s23_s19, [#allocation3]  }
   0x5   :  { %s33_s24 = sshll.u32 %s676_s23, 4  ;;  %s34_s24 = int_to_ptr.vmem [resolvable:$true] %s33_s24 }
   0x6   :  { %36 = dma.hbm_to_vmem [thread:$0]  %s32_s22, 16, %s34_s24, [#allocation5]  }
   0x7   :  { %671 = dma.done.wait [#allocation3], 16  }
   0x8   :  { %672 = vsyncadd [#allocation3], 4294967280 }
   0x9   :  { %673 = dma.done.wait [#allocation5], 16  }
   0xa   :  { %674 = vsyncadd [#allocation5], 4294967280  ;;  %v594_v0 = vld [vmem:[%s844_s1 + $0x38] sm:$0xff]  ;;  %v593_v4 = vld [vmem:[%s844_s1 + $0x30] sm:$0xff] }
   0xb   :  { %v602_v1 = vld [vmem:[%s844_s1 + $0x78] sm:$0xff]  ;;  %341 = vmatpush.bf16.msra.mxu0 %v594_v0  ;;  %v601_v5 = vld [vmem:[%s844_s1 + $0x70] sm:$0xff]  ;;  %v592_v8 = vld [vmem:[%s844_s1 + $0x28] sm:$0xff] }
   0xc   :  { %v610_v2 = vld [vmem:[%s844_s1 + $0xb8] sm:$0xff]  ;;  %359 = vmatpush.bf16.msra.mxu1 %v602_v1  ;;  %v609_v6 = vld [vmem:[%s844_s1 + $0xb0] sm:$0xff]  ;;  %v600_v9 = vld [vmem:[%s844_s1 + $0x68] sm:$0xff] }
   0xd   :  { %v618_v3 = vld [vmem:[%s844_s1 + $0xf8] sm:$0xff]  ;;  %377 = vmatpush.bf16.msra.mxu2 %v610_v2  ;;  %v617_v7 = vld [vmem:[%s844_s1 + $0xf0] sm:$0xff]  ;;  %v608_v10 = vld [vmem:[%s844_s1 + $0xa8] sm:$0xff] }
   0xe   :  { %395 = vmatpush.bf16.msra.mxu3 %v618_v3  ;;  %v616_v11 = vld [vmem:[%s844_s1 + $0xe8] sm:$0xff]  ;;  %v591_v12 = vld [vmem:[%s844_s1 + $0x20] sm:$0xff]  ;;  %v590_v16 = vld [vmem:[%s844_s1 + $0x18] sm:$0xff] }
   0xf   :  { %342 = vmatpush.bf16.msra.mxu0 %v593_v4  ;;  %v599_v13 = vld [vmem:[%s844_s1 + $0x60] sm:$0xff]  ;;  %v598_v17 = vld [vmem:[%s844_s1 + $0x58] sm:$0xff]  ;;  %v589_v20 = vld [vmem:[%s844_s1 + $0x10] sm:$0xff] }
  0x10   :  { %360 = vmatpush.bf16.msra.mxu1 %v601_v5  ;;  %v607_v14 = vld [vmem:[%s844_s1 + $0xa0] sm:$0xff]  ;;  %v606_v18 = vld [vmem:[%s844_s1 + $0x98] sm:$0xff]  ;;  %v597_v21 = vld [vmem:[%s844_s1 + $0x50] sm:$0xff] }
  0x11   :  { %378 = vmatpush.bf16.msra.mxu2 %v609_v6  ;;  %v615_v15 = vld [vmem:[%s844_s1 + $0xe0] sm:$0xff]  ;;  %v614_v19 = vld [vmem:[%s844_s1 + $0xd8] sm:$0xff]  ;;  %v605_v22 = vld [vmem:[%s844_s1 + $0x90] sm:$0xff] }
  0x12   :  { %396 = vmatpush.bf16.msra.mxu3 %v617_v7  ;;  %v613_v23 = vld [vmem:[%s844_s1 + $0xd0] sm:$0xff]  ;;  %v588_v24 = vld [vmem:[%s844_s1 + $0x8] sm:$0xff]  ;;  %v587_v28 = vld [vmem:[%s844_s1] sm:$0xff] }
  0x13   :  { %343 = vmatpush.bf16.msra.mxu0 %v592_v8  ;;  %v596_v25 = vld [vmem:[%s844_s1 + $0x48] sm:$0xff]  ;;  %v595_v29 = vld [vmem:[%s844_s1 + $0x40] sm:$0xff]  ;;  %v585_v33 = vld [vmem:[%s843_s0 + $0xc] sm:$0xf0] }
  0x14   :  { %361 = vmatpush.bf16.msra.mxu1 %v600_v9  ;;  %v604_v26 = vld [vmem:[%s844_s1 + $0x88] sm:$0xff]  ;;  %v603_v30 = vld [vmem:[%s844_s1 + $0x80] sm:$0xff]  ;;  %v443_v35 = vld [vmem:[%s843_s0 + $0x10] sm:$0xf0] }
  0x15   :  { %379 = vmatpush.bf16.msra.mxu2 %v608_v10  ;;  %v612_v27 = vld [vmem:[%s844_s1 + $0xc8] sm:$0xff]  ;;  %v611_v31 = vld [vmem:[%s844_s1 + $0xc0] sm:$0xff]  ;;  %v586_v37 = vld [vmem:[%s843_s0 + $0x14] sm:$0xf0] }
  0x16   :  { %397 = vmatpush.bf16.msra.mxu3 %v616_v11  ;;  %v441_v32 = vld [vmem:[%s843_s0] sm:$0xf]  ;;  %v583_v34 = vld [vmem:[%s843_s0 + $0x4] sm:$0xf]  ;;  %v449_v36 = vld [vmem:[%s843_s0 + $0x8] sm:$0xf] }
  0x17   :  { %344 = vmatpush.bf16.msra.mxu0 %v591_v12  ;;  %v584_v38 = vld [vmem:[%s843_s0 + $0xc] sm:$0xf]  ;;  %v451_v39 = vld [vmem:[%s843_s0 + $0x18] sm:$0xf0]  ;;  %v442_v40 = vor.u32 %v585_v33, %v441_v32  ;;  %v446_v41 = vor.u32 %v583_v34, %v443_v35  ;;  %v450_v42 = vor.u32 %v586_v37, %v449_v36  ;;  %v49_v44 = vld [vmem:[%s843_s0 + $0x20] sm:$0xff] }
  0x18   :  { %362 = vmatpush.bf16.msra.mxu1 %v599_v13  ;;  %v454_v43 = vor.u32 %v584_v38, %v451_v39  ;;  %v50_v45 = vld [vmem:[%s843_s0 + $0x28] sm:$0xff]  ;;  %v129_v46 = vunpack.c.l.b16 %v49_v44  ;;  %v130_v47 = vunpack.c.h.b16 %v49_v44  ;;  %v621_v60 = vld [vmem:[#allocation2] ss:$0 sm:$0xff]  ;;  %v622_v0 = vld [vmem:[#allocation4] ss:$0 sm:$0xff] }
  0x19   :  { %380 = vmatpush.bf16.msra.mxu2 %v607_v14  ;;  %v131_v48 = vunpack.c.l.b16 %v50_v45  ;;  %v132_v49 = vunpack.c.h.b16 %v50_v45 }
  0x1a   :  { %398 = vmatpush.bf16.msra.mxu3 %v615_v15  ;;  %v137_v50 = vpack.c.b16 %v129_v46, %v129_v46  ;;  %v138_v51 = vpack.c.b16 %v130_v47, %v130_v47 }
  0x1b   :  { %345 = vmatpush.bf16.msra.mxu0 %v590_v16  ;;  %v139_v52 = vpack.c.b16 %v131_v48, %v131_v48  ;;  %v140_v53 = vpack.c.b16 %v132_v49, %v132_v49 }
  0x1c   :  { %363 = vmatpush.bf16.msra.mxu1 %v598_v17 }
  0x1d   :  { %381 = vmatpush.bf16.msra.mxu2 %v606_v18 }
  0x1e   :  { %399 = vmatpush.bf16.msra.mxu3 %v614_v19 }
  0x1f   :  { %346 = vmatpush.bf16.msra.mxu0 %v589_v20 }
  0x20   :  { %364 = vmatpush.bf16.msra.mxu1 %v597_v21 }
  0x21   :  { %382 = vmatpush.bf16.msra.mxu2 %v605_v22 }
  0x22   :  { %400 = vmatpush.bf16.msra.mxu3 %v613_v23 }
  0x23   :  { %347 = vmatpush.bf16.msra.mxu0 %v588_v24 }
  0x24   :  { %365 = vmatpush.bf16.msra.mxu1 %v596_v25 }
  0x25   :  { %383 = vmatpush.bf16.msra.mxu2 %v604_v26 }
  0x26   :  { %401 = vmatpush.bf16.msra.mxu3 %v612_v27 }
  0x27   :  { %348 = vmatpush.bf16.msra.mxu0 %v587_v28 }
  0x28   :  { %366 = vmatpush.bf16.msra.mxu1 %v595_v29 }
  0x29   :  { %384 = vmatpush.bf16.msra.mxu2 %v603_v30 }
  0x2a   :  { %402 = vmatpush.bf16.msra.mxu3 %v611_v31  ;;  %349 = vmatmul.bf16.vlgmr.msra.gmra.mxu0 %v442_v40 }
  0x2b   :  { %367 = vmatmul.bf16.vlgmr.msra.gmra.mxu1 %v446_v41 }
  0x2c   :  { %385 = vmatmul.bf16.vlgmr.msra.gmra.mxu2 %v450_v42 }
  0x2d   :  { %403 = vmatmul.bf16.vlgmr.msra.gmra.mxu3 %v454_v43 }
  0x3a   :  { %354 = vmatmul.bf16.gmra.mxu0 %v137_v50 }
  0x3b   :  { %372 = vmatmul.bf16.gmra.mxu1 %v138_v51 }
  0x3c   :  { %390 = vmatmul.bf16.gmra.mxu2 %v139_v52 }
  0x3d   :  { %408 = vmatmul.bf16.gmra.mxu3 %v140_v53 }
  0xa7   :  { %v350_v54 = vpop.f32.mrf.mxu0 }
  0xa8   :  { %v368_v55 = vpop.f32.mrf.mxu1 }
  0xa9   :  { %v369_v56 = vadd.f32 %v368_v55, %v350_v54 }
  0xaf   :  { %v386_v57 = vpop.f32.mrf.mxu2  ;;  %v352_v61 = vpop.f32.mrf.mxu0 }
  0xb0   :  { %v404_v58 = vpop.f32.mrf.mxu3  ;;  %v387_v59 = vadd.f32 %v386_v57, %v369_v56  ;;  %v370_v62 = vpop.f32.mrf.mxu1 }
  0xb1   :  { %v371_v3 = vadd.f32 %v370_v62, %v352_v61 }
  0xb2   :  { %v405_v63 = vadd.f32 %v404_v58, %v387_v59 }
  0xb4   :  { %v417_v1 = vmul.f32 %v621_v60, %v405_v63 }
  0xb6   :  { %v424_v2 = vadd.f32 %v622_v0, %v417_v1 }
  0xb7   :  { %v388_v4 = vpop.f32.mrf.mxu2  ;;  %v355_v8 = vpop.f32.mrf.mxu0 }
  0xb8   :  { %v406_v5 = vpop.f32.mrf.mxu3  ;;  %v427_v6 = vmax.f32 %v424_v2, 0.0  ;;  %v389_v7 = vadd.f32 %v388_v4, %v371_v3  ;;  %v373_v9 = vpop.f32.mrf.mxu1 }
  0xb9   :  { %v374_v12 = vadd.f32 %v373_v9, %v355_v8 }
  0xba   :  { %430 = vst [vmem:[%s847_s4] sm:$0xff] %v427_v6  ;;  %v407_v10 = vadd.f32 %v406_v5, %v389_v7 }
  0xbc   :  { %v418_v11 = vmul.f32 %v621_v60, %v407_v10 }
  0xbe   :  { %v425_v13 = vadd.f32 %v622_v0, %v418_v11 }
  0xbf   :  { %v391_v14 = vpop.f32.mrf.mxu2  ;;  %v357_v18 = vpop.f32.mrf.mxu0 }
  0xc0   :  { %v409_v15 = vpop.f32.mrf.mxu3  ;;  %v428_v16 = vmax.f32 %v425_v13, 0.0  ;;  %v392_v17 = vadd.f32 %v391_v14, %v374_v12  ;;  %v375_v19 = vpop.f32.mrf.mxu1 }
  0xc2   :  { %431 = vst [vmem:[%s847_s4 + $0x8] sm:$0xff] %v428_v16  ;;  %v410_v20 = vadd.f32 %v409_v15, %v392_v17 }
  0xc4   :  { %v419_v21 = vmul.f32 %v621_v60, %v410_v20 }
  0xc6   :  { %v426_v22 = vadd.f32 %v622_v0, %v419_v21 }
  0xc7   :  { %v393_v23 = vpop.f32.mrf.mxu2 }
  0xc8   :  { %v411_v24 = vpop.f32.mrf.mxu3  ;;  %v429_v25 = vmax.f32 %v426_v22, 0.0 }
  0xca   :  { %432 = vst [vmem:[%s847_s4 + $0x10] sm:$0xff] %v429_v25 }
  0xcb   :  { %437 = vsyncpa [#allocation3], 1 }
  0xcc   :  { %438 = vsyncpa [#allocation5], 1 }

// kernel: my_net_res50_forward.45
= control target key start
LH: loop header
LB: loop body
LE: loop exit
PB: predicated region body
PF: predicated region fallthrough
CT: control target
= control target key end

     0   :  { %s1612_s1 = inlined_call_operand.vmem [shape: bf16[1152,128], index: 1, kind: input, shape index: {}]   ;;  %s1613_s0 = inlined_call_operand.vmem [shape: bf16[24,1152], index: 0, kind: input, shape index: {}]   ;;  %s1614_s2 = inlined_call_operand.vmem [shape: f32[1,128], index: 2, kind: input, shape index: {}]   ;;  %s1615_s3 = inlined_call_operand.vmem [shape: f32[1,128], index: 3, kind: input, shape index: {}]   ;;  %s1616_s4 = inlined_call_operand.vmem [shape: f32[24,128], index: 4, kind: output, shape index: {}]  }
   0x1   :  { %v1212_v0 = vld [vmem:[%s1612_s1 + $0x38] sm:$0xff]  ;;  %v1211_v4 = vld [vmem:[%s1612_s1 + $0x30] sm:$0xff]  ;;  %v1210_v8 = vld [vmem:[%s1612_s1 + $0x28] sm:$0xff] }
   0x2   :  { %v1220_v1 = vld [vmem:[%s1612_s1 + $0x78] sm:$0xff]  ;;  %686 = vmatpush.bf16.msra.mxu0 %v1212_v0  ;;  %v1219_v5 = vld [vmem:[%s1612_s1 + $0x70] sm:$0xff]  ;;  %v1218_v9 = vld [vmem:[%s1612_s1 + $0x68] sm:$0xff] }
   0x3   :  { %v1228_v2 = vld [vmem:[%s1612_s1 + $0xb8] sm:$0xff]  ;;  %704 = vmatpush.bf16.msra.mxu1 %v1220_v1  ;;  %v1227_v6 = vld [vmem:[%s1612_s1 + $0xb0] sm:$0xff]  ;;  %v1226_v10 = vld [vmem:[%s1612_s1 + $0xa8] sm:$0xff] }
   0x4   :  { %v1236_v3 = vld [vmem:[%s1612_s1 + $0xf8] sm:$0xff]  ;;  %722 = vmatpush.bf16.msra.mxu2 %v1228_v2  ;;  %v1235_v7 = vld [vmem:[%s1612_s1 + $0xf0] sm:$0xff]  ;;  %v1234_v11 = vld [vmem:[%s1612_s1 + $0xe8] sm:$0xff] }
   0x5   :  { %740 = vmatpush.bf16.msra.mxu3 %v1236_v3  ;;  %v1209_v12 = vld [vmem:[%s1612_s1 + $0x20] sm:$0xff]  ;;  %v1208_v16 = vld [vmem:[%s1612_s1 + $0x18] sm:$0xff]  ;;  %v1207_v20 = vld [vmem:[%s1612_s1 + $0x10] sm:$0xff] }
   0x6   :  { %687 = vmatpush.bf16.msra.mxu0 %v1211_v4  ;;  %v1217_v13 = vld [vmem:[%s1612_s1 + $0x60] sm:$0xff]  ;;  %v1216_v17 = vld [vmem:[%s1612_s1 + $0x58] sm:$0xff]  ;;  %v1215_v21 = vld [vmem:[%s1612_s1 + $0x50] sm:$0xff] }
   0x7   :  { %705 = vmatpush.bf16.msra.mxu1 %v1219_v5  ;;  %v1225_v14 = vld [vmem:[%s1612_s1 + $0xa0] sm:$0xff]  ;;  %v1224_v18 = vld [vmem:[%s1612_s1 + $0x98] sm:$0xff]  ;;  %v1223_v22 = vld [vmem:[%s1612_s1 + $0x90] sm:$0xff] }
   0x8   :  { %723 = vmatpush.bf16.msra.mxu2 %v1227_v6  ;;  %v1233_v15 = vld [vmem:[%s1612_s1 + $0xe0] sm:$0xff]  ;;  %v1232_v19 = vld [vmem:[%s1612_s1 + $0xd8] sm:$0xff]  ;;  %v1231_v23 = vld [vmem:[%s1612_s1 + $0xd0] sm:$0xff] }
   0x9   :  { %741 = vmatpush.bf16.msra.mxu3 %v1235_v7  ;;  %v1206_v24 = vld [vmem:[%s1612_s1 + $0x8] sm:$0xff]  ;;  %v1205_v28 = vld [vmem:[%s1612_s1] sm:$0xff]  ;;  %v884_v39 = vld [vmem:[%s1613_s0 + $0x2c] sm:$0xf0] }
   0xa   :  { %688 = vmatpush.bf16.msra.mxu0 %v1210_v8  ;;  %v1214_v25 = vld [vmem:[%s1612_s1 + $0x48] sm:$0xff]  ;;  %v1213_v29 = vld [vmem:[%s1612_s1 + $0x40] sm:$0xff]  ;;  %v1244_v40 = vld [vmem:[%s1612_s1 + $0x138] sm:$0xff] }
   0xb   :  { %706 = vmatpush.bf16.msra.mxu1 %v1218_v9  ;;  %v1222_v26 = vld [vmem:[%s1612_s1 + $0x88] sm:$0xff]  ;;  %v1221_v30 = vld [vmem:[%s1612_s1 + $0x80] sm:$0xff]  ;;  %v1252_v41 = vld [vmem:[%s1612_s1 + $0x178] sm:$0xff] }
   0xc   :  { %724 = vmatpush.bf16.msra.mxu2 %v1226_v10  ;;  %v1230_v27 = vld [vmem:[%s1612_s1 + $0xc8] sm:$0xff]  ;;  %v1229_v31 = vld [vmem:[%s1612_s1 + $0xc0] sm:$0xff]  ;;  %v1260_v46 = vld [vmem:[%s1612_s1 + $0x1b8] sm:$0xff] }
   0xd   :  { %742 = vmatpush.bf16.msra.mxu3 %v1234_v11  ;;  %v874_v32 = vld [vmem:[%s1613_s0] sm:$0xf]  ;;  %v1200_v33 = vld [vmem:[%s1613_s0 + $0x20] sm:$0xf0]  ;;  %v876_v35 = vld [vmem:[%s1613_s0 + $0x24] sm:$0xf0] }
   0xe   :  { %689 = vmatpush.bf16.msra.mxu0 %v1209_v12  ;;  %v1196_v34 = vld [vmem:[%s1613_s0 + $0x4] sm:$0xf]  ;;  %v882_v36 = vld [vmem:[%s1613_s0 + $0x8] sm:$0xf]  ;;  %v1201_v37 = vld [vmem:[%s1613_s0 + $0x28] sm:$0xf0]  ;;  %v875_v42 = vor.u32 %v1200_v33, %v874_v32 }
   0xf   :  { %707 = vmatpush.bf16.msra.mxu1 %v1217_v13  ;;  %v1197_v38 = vld [vmem:[%s1613_s0 + $0xc] sm:$0xf]  ;;  %v879_v43 = vor.u32 %v1196_v34, %v876_v35  ;;  %v883_v44 = vor.u32 %v1201_v37, %v882_v36  ;;  %v1268_v47 = vld [vmem:[%s1612_s1 + $0x1f8] sm:$0xff]  ;;  %v1243_v48 = vld [vmem:[%s1612_s1 + $0x130] sm:$0xff] }
  0x10   :  { %725 = vmatpush.bf16.msra.mxu2 %v1225_v14  ;;  %v887_v45 = vor.u32 %v1197_v38, %v884_v39  ;;  %v1251_v49 = vld [vmem:[%s1612_s1 + $0x170] sm:$0xff]  ;;  %v1242_v52 = vld [vmem:[%s1612_s1 + $0x128] sm:$0xff]  ;;  %v1241_v58 = vld [vmem:[%s1612_s1 + $0x120] sm:$0xff] }
  0x11   :  { %743 = vmatpush.bf16.msra.mxu3 %v1233_v15  ;;  %v1259_v50 = vld [vmem:[%s1612_s1 + $0x1b0] sm:$0xff]  ;;  %v1250_v53 = vld [vmem:[%s1612_s1 + $0x168] sm:$0xff]  ;;  %v1249_v59 = vld [vmem:[%s1612_s1 + $0x160] sm:$0xff] }
  0x12   :  { %690 = vmatpush.bf16.msra.mxu0 %v1208_v16  ;;  %v1267_v51 = vld [vmem:[%s1612_s1 + $0x1f0] sm:$0xff]  ;;  %v27_v54 = vld [vmem:[%s1613_s0 + $0x48] sm:$0xff]  ;;  %v1257_v0 = vld [vmem:[%s1612_s1 + $0x1a0] sm:$0xff] }
  0x13   :  { %708 = vmatpush.bf16.msra.mxu1 %v1216_v17  ;;  %v1258_v55 = vld [vmem:[%s1612_s1 + $0x1a8] sm:$0xff]  ;;  %v28_v57 = vld [vmem:[%s1613_s0 + $0x50] sm:$0xff]  ;;  %v209_v60 = vunpack.c.l.b16 %v27_v54  ;;  %v210_v61 = vunpack.c.h.b16 %v27_v54  ;;  %v1265_v1 = vld [vmem:[%s1612_s1 + $0x1e0] sm:$0xff] }
  0x14   :  { %726 = vmatpush.bf16.msra.mxu2 %v1224_v18  ;;  %v1266_v56 = vld [vmem:[%s1612_s1 + $0x1e8] sm:$0xff]  ;;  %v211_v62 = vunpack.c.l.b16 %v28_v57  ;;  %v212_v63 = vunpack.c.h.b16 %v28_v57  ;;  %v1240_v2 = vld [vmem:[%s1612_s1 + $0x118] sm:$0xff]  ;;  %v1239_v10 = vld [vmem:[%s1612_s1 + $0x110] sm:$0xff] }
  0x15   :  { %744 = vmatpush.bf16.msra.mxu3 %v1232_v19  ;;  %v1248_v3 = vld [vmem:[%s1612_s1 + $0x158] sm:$0xff]  ;;  %v227_v4 = vpack.c.b16 %v209_v60, %v209_v60  ;;  %v228_v5 = vpack.c.b16 %v210_v61, %v210_v61  ;;  %v1247_v11 = vld [vmem:[%s1612_s1 + $0x150] sm:$0xff]  ;;  %v1238_v14 = vld [vmem:[%s1612_s1 + $0x108] sm:$0xff] }
  0x16   :  { %691 = vmatpush.bf16.msra.mxu0 %v1207_v20  ;;  %v229_v6 = vpack.c.b16 %v211_v62, %v211_v62  ;;  %v230_v7 = vpack.c.b16 %v212_v63, %v212_v63  ;;  %v1256_v8 = vld [vmem:[%s1612_s1 + $0x198] sm:$0xff]  ;;  %v1255_v12 = vld [vmem:[%s1612_s1 + $0x190] sm:$0xff]  ;;  %v1246_v15 = vld [vmem:[%s1612_s1 + $0x148] sm:$0xff] }
  0x17   :  { %709 = vmatpush.bf16.msra.mxu1 %v1215_v21  ;;  %v1264_v9 = vld [vmem:[%s1612_s1 + $0x1d8] sm:$0xff]  ;;  %v1263_v13 = vld [vmem:[%s1612_s1 + $0x1d0] sm:$0xff]  ;;  %v1254_v16 = vld [vmem:[%s1612_s1 + $0x188] sm:$0xff] }
  0x18   :  { %727 = vmatpush.bf16.msra.mxu2 %v1223_v22  ;;  %v1262_v17 = vld [vmem:[%s1612_s1 + $0x1c8] sm:$0xff]  ;;  %v1237_v18 = vld [vmem:[%s1612_s1 + $0x100] sm:$0xff]  ;;  %v890_v22 = vld [vmem:[%s1613_s0 + $0x10] sm:$0xf] }
  0x19   :  { %745 = vmatpush.bf16.msra.mxu3 %v1231_v23  ;;  %v1245_v19 = vld [vmem:[%s1612_s1 + $0x140] sm:$0xff]  ;;  %v1202_v23 = vld [vmem:[%s1613_s0 + $0x30] sm:$0xf0]  ;;  %v1274_v36 = vld [vmem:[%s1612_s1 + $0x228] sm:$0xff] }
  0x1a   :  { %692 = vmatpush.bf16.msra.mxu0 %v1206_v24  ;;  %v1253_v20 = vld [vmem:[%s1612_s1 + $0x180] sm:$0xff]  ;;  %v1276_v24 = vld [vmem:[%s1612_s1 + $0x238] sm:$0xff]  ;;  %v1275_v35 = vld [vmem:[%s1612_s1 + $0x230] sm:$0xff] }
  0x1b   :  { %710 = vmatpush.bf16.msra.mxu1 %v1214_v25  ;;  %v1261_v21 = vld [vmem:[%s1612_s1 + $0x1c0] sm:$0xff]  ;;  %v1198_v25 = vld [vmem:[%s1613_s0 + $0x14] sm:$0xf]  ;;  %v29_v37 = vld [vmem:[%s1613_s0 + $0x58] sm:$0xff] }
  0x1c   :  { %728 = vmatpush.bf16.msra.mxu2 %v1222_v26  ;;  %v892_v26 = vld [vmem:[%s1613_s0 + $0x34] sm:$0xf0]  ;;  %v1273_v38 = vld [vmem:[%s1612_s1 + $0x220] sm:$0xff] }
  0x1d   :  { %746 = vmatpush.bf16.msra.mxu3 %v1230_v27  ;;  %v898_v27 = vld [vmem:[%s1613_s0 + $0x18] sm:$0xf]  ;;  %v895_v32 = vor.u32 %v1198_v25, %v892_v26  ;;  %v30_v39 = vld [vmem:[%s1613_s0 + $0x60] sm:$0xff] }
  0x1e   :  { %693 = vmatpush.bf16.msra.mxu0 %v1205_v28  ;;  %v1203_v28 = vld [vmem:[%s1613_s0 + $0x38] sm:$0xf0]  ;;  %v906_v54 = vld [vmem:[%s1613_s0 + $0x20] sm:$0xf] }
  0x1f   :  { %711 = vmatpush.bf16.msra.mxu1 %v1213_v29  ;;  %v1199_v29 = vld [vmem:[%s1613_s0 + $0x1c] sm:$0xf]  ;;  %v899_v33 = vor.u32 %v1203_v28, %v898_v27 }
  0x20   :  { %729 = vmatpush.bf16.msra.mxu2 %v1221_v30  ;;  %v900_v30 = vld [vmem:[%s1613_s0 + $0x3c] sm:$0xf0] }
  0x21   :  { %747 = vmatpush.bf16.msra.mxu3 %v1229_v31  ;;  %694 = vmatmul.bf16.vlgmr.msra.gmra.mxu0 %v875_v42  ;;  %v891_v31 = vor.u32 %v1202_v23, %v890_v22  ;;  %v903_v34 = vor.u32 %v1199_v29, %v900_v30  ;;  %v215_v42 = vunpack.c.l.b16 %v30_v39 }
  0x22   :  { %758 = vmatpush.bf16.msrb.mxu0 %v1244_v40  ;;  %712 = vmatmul.bf16.vlgmr.msra.gmra.mxu1 %v879_v43  ;;  %v213_v40 = vunpack.c.l.b16 %v29_v37  ;;  %v216_v43 = vunpack.c.h.b16 %v30_v39 }
  0x23   :  { %776 = vmatpush.bf16.msrb.mxu1 %v1252_v41  ;;  %730 = vmatmul.bf16.vlgmr.msra.gmra.mxu2 %v883_v44  ;;  %v214_v41 = vunpack.c.h.b16 %v29_v37  ;;  %v1272_v44 = vld [vmem:[%s1612_s1 + $0x218] sm:$0xff] }
  0x24   :  { %748 = vmatmul.bf16.vlgmr.msra.gmra.mxu3 %v887_v45  ;;  %794 = vmatpush.bf16.msrb.mxu2 %v1260_v46  ;;  %v231_v45 = vpack.c.b16 %v213_v40, %v213_v40 }
  0x25   :  { %812 = vmatpush.bf16.msrb.mxu3 %v1268_v47  ;;  %v232_v46 = vpack.c.b16 %v214_v41, %v214_v41  ;;  %v233_v47 = vpack.c.b16 %v215_v42, %v215_v42  ;;  %v1285_v42 = vld [vmem:[%s1614_s2] ss:$0 sm:$0xff] }
  0x26   :  { %759 = vmatpush.bf16.msrb.mxu0 %v1243_v48  ;;  %v234_v48 = vpack.c.b16 %v216_v43, %v216_v43 }
  0x27   :  { %777 = vmatpush.bf16.msrb.mxu1 %v1251_v49  ;;  %v1271_v49 = vld [vmem:[%s1612_s1 + $0x210] sm:$0xff] }
  0x28   :  { %795 = vmatpush.bf16.msrb.mxu2 %v1259_v50  ;;  %v1270_v50 = vld [vmem:[%s1612_s1 + $0x208] sm:$0xff] }
  0x29   :  { %813 = vmatpush.bf16.msrb.mxu3 %v1267_v51  ;;  %v31_v51 = vld [vmem:[%s1613_s0 + $0x68] sm:$0xf] }
  0x2a   :  { %760 = vmatpush.bf16.msrb.mxu0 %v1242_v52  ;;  %v1269_v52 = vld [vmem:[%s1612_s1 + $0x200] sm:$0xff] }
  0x2b   :  { %778 = vmatpush.bf16.msrb.mxu1 %v1250_v53  ;;  %v217_v53 = vunpack.c.l.b16 %v31_v51 }
  0x2c   :  { %796 = vmatpush.bf16.msrb.mxu2 %v1258_v55  ;;  %v1204_v55 = vld [vmem:[%s1613_s0 + $0x40] sm:$0xf0] }
  0x2d   :  { %814 = vmatpush.bf16.msrb.mxu3 %v1266_v56  ;;  %v907_v56 = vor.u32 %v1204_v55, %v906_v54  ;;  %v235_v57 = vpack.c.b16 %v217_v53, %v217_v53 }
  0x2e   :  { %761 = vmatpush.bf16.msrb.mxu0 %v1241_v58 }
  0x2f   :  { %779 = vmatpush.bf16.msrb.mxu1 %v1249_v59 }
  0x30   :  { %797 = vmatpush.bf16.msrb.mxu2 %v1257_v0 }
  0x31   :  { %815 = vmatpush.bf16.msrb.mxu3 %v1265_v1  ;;  %699 = vmatmul.bf16.gmra.mxu0 %v227_v4 }
  0x32   :  { %762 = vmatpush.bf16.msrb.mxu0 %v1240_v2  ;;  %717 = vmatmul.bf16.gmra.mxu1 %v228_v5 }
  0x33   :  { %780 = vmatpush.bf16.msrb.mxu1 %v1248_v3  ;;  %735 = vmatmul.bf16.gmra.mxu2 %v229_v6 }
  0x34   :  { %753 = vmatmul.bf16.gmra.mxu3 %v230_v7  ;;  %798 = vmatpush.bf16.msrb.mxu2 %v1256_v8 }
  0x35   :  { %816 = vmatpush.bf16.msrb.mxu3 %v1264_v9 }
  0x36   :  { %763 = vmatpush.bf16.msrb.mxu0 %v1239_v10 }
  0x37   :  { %781 = vmatpush.bf16.msrb.mxu1 %v1247_v11 }
  0x38   :  { %799 = vmatpush.bf16.msrb.mxu2 %v1255_v12 }
  0x39   :  { %817 = vmatpush.bf16.msrb.mxu3 %v1263_v13 }
  0x3a   :  { %764 = vmatpush.bf16.msrb.mxu0 %v1238_v14 }
  0x3b   :  { %782 = vmatpush.bf16.msrb.mxu1 %v1246_v15 }
  0x3c   :  { %800 = vmatpush.bf16.msrb.mxu2 %v1254_v16 }
  0x3d   :  { %818 = vmatpush.bf16.msrb.mxu3 %v1262_v17 }
  0x3e   :  { %765 = vmatpush.bf16.msrb.mxu0 %v1237_v18 }
  0x3f   :  { %783 = vmatpush.bf16.msrb.mxu1 %v1245_v19 }
  0x40   :  { %801 = vmatpush.bf16.msrb.mxu2 %v1253_v20 }
  0x41   :  { %819 = vmatpush.bf16.msrb.mxu3 %v1261_v21  ;;  %766 = vmatmul.bf16.vlgmr.msrb.gmra.mxu0 %v891_v31 }
  0x42   :  { %830 = vmatpush.bf16.msra.mxu0 %v1276_v24  ;;  %784 = vmatmul.bf16.vlgmr.msrb.gmra.mxu1 %v895_v32 }
  0x43   :  { %1277 = vmatpush.bf16.msra.mxu1 %v1276_v24  ;;  %802 = vmatmul.bf16.vlgmr.msrb.gmra.mxu2 %v899_v33 }
  0x44   :  { %820 = vmatmul.bf16.vlgmr.msrb.gmra.mxu3 %v903_v34 }
  0x46   :  { %831 = vmatpush.bf16.msra.mxu0 %v1275_v35 }
  0x47   :  { %1278 = vmatpush.bf16.msra.mxu1 %v1275_v35 }
  0x4a   :  { %832 = vmatpush.bf16.msra.mxu0 %v1274_v36 }
  0x4b   :  { %1279 = vmatpush.bf16.msra.mxu1 %v1274_v36 }
  0x4e   :  { %833 = vmatpush.bf16.msra.mxu0 %v1273_v38 }
  0x4f   :  { %1280 = vmatpush.bf16.msra.mxu1 %v1273_v38 }
  0x51   :  { %771 = vmatmul.bf16.gmra.mxu0 %v231_v45 }
  0x52   :  { %834 = vmatpush.bf16.msra.mxu0 %v1272_v44  ;;  %789 = vmatmul.bf16.gmra.mxu1 %v232_v46 }
  0x53   :  { %1281 = vmatpush.bf16.msra.mxu1 %v1272_v44  ;;  %807 = vmatmul.bf16.gmra.mxu2 %v233_v47 }
  0x54   :  { %825 = vmatmul.bf16.gmra.mxu3 %v234_v48 }
  0x56   :  { %835 = vmatpush.bf16.msra.mxu0 %v1271_v49 }
  0x57   :  { %1282 = vmatpush.bf16.msra.mxu1 %v1271_v49  ;;  %v1286_v49 = vld [vmem:[%s1615_s3] ss:$0 sm:$0xff] }
  0x5a   :  { %836 = vmatpush.bf16.msra.mxu0 %v1270_v50 }
  0x5b   :  { %1283 = vmatpush.bf16.msra.mxu1 %v1270_v50 }
  0x5e   :  { %837 = vmatpush.bf16.msra.mxu0 %v1269_v52 }
  0x5f   :  { %1284 = vmatpush.bf16.msra.mxu1 %v1269_v52 }
  0x61   :  { %838 = vmatmul.bf16.vlgmr.msra.gmra.mxu0 %v907_v56 }
  0x62   :  { %843 = vmatmul.bf16.vlgmr.msra.gmra.mxu1 %v235_v57 }
  0x9e   :  { %v695_v58 = vpop.f32.mrf.mxu0 }
  0x9f   :  { %v713_v59 = vpop.f32.mrf.mxu1 }
  0xa0   :  { %v714_v16 = vadd.f32 %v713_v59, %v695_v58 }
  0xa6   :  { %v731_v60 = vpop.f32.mrf.mxu2  ;;  %v697_v62 = vpop.f32.mrf.mxu0 }
  0xa7   :  { %v749_v61 = vpop.f32.mrf.mxu3  ;;  %v715_v63 = vpop.f32.mrf.mxu1  ;;  %v732_v18 = vadd.f32 %v731_v60, %v714_v16 }
  0xa8   :  { %v716_v26 = vadd.f32 %v715_v63, %v697_v62 }
  0xa9   :  { %v750_v24 = vadd.f32 %v749_v61, %v732_v18 }
  0xae   :  { %v733_v0 = vpop.f32.mrf.mxu2  ;;  %v700_v2 = vpop.f32.mrf.mxu0 }
  0xaf   :  { %v751_v1 = vpop.f32.mrf.mxu3  ;;  %v718_v3 = vpop.f32.mrf.mxu1  ;;  %v734_v29 = vadd.f32 %v733_v0, %v716_v26 }
  0xb0   :  { %v719_v17 = vadd.f32 %v718_v3, %v700_v2 }
  0xb1   :  { %v752_v36 = vadd.f32 %v751_v1, %v734_v29 }
  0xb6   :  { %v736_v4 = vpop.f32.mrf.mxu2  ;;  %v702_v6 = vpop.f32.mrf.mxu0 }
  0xb7   :  { %v754_v5 = vpop.f32.mrf.mxu3  ;;  %v720_v7 = vpop.f32.mrf.mxu1  ;;  %v737_v19 = vadd.f32 %v736_v4, %v719_v17 }
  0xb9   :  { %v755_v25 = vadd.f32 %v754_v5, %v737_v19 }
  0xbe   :  { %v738_v8 = vpop.f32.mrf.mxu2  ;;  %v767_v10 = vpop.f32.mrf.mxu0 }
  0xbf   :  { %v756_v9 = vpop.f32.mrf.mxu3  ;;  %v785_v11 = vpop.f32.mrf.mxu1  ;;  %v768_v27 = vadd.f32 %v767_v10, %v750_v24 }
  0xc1   :  { %v786_v34 = vadd.f32 %v785_v11, %v768_v27 }
  0xc6   :  { %v803_v12 = vpop.f32.mrf.mxu2  ;;  %v769_v14 = vpop.f32.mrf.mxu0 }
  0xc7   :  { %v821_v13 = vpop.f32.mrf.mxu3  ;;  %v787_v15 = vpop.f32.mrf.mxu1  ;;  %v804_v37 = vadd.f32 %v803_v12, %v786_v34  ;;  %v770_v39 = vadd.f32 %v769_v14, %v752_v36 }
  0xc9   :  { %v822_v40 = vadd.f32 %v821_v13, %v804_v37  ;;  %v788_v47 = vadd.f32 %v787_v15, %v770_v39 }
  0xce   :  { %v805_v20 = vpop.f32.mrf.mxu2  ;;  %v772_v22 = vpop.f32.mrf.mxu0 }
  0xcf   :  { %v823_v21 = vpop.f32.mrf.mxu3  ;;  %v790_v23 = vpop.f32.mrf.mxu1  ;;  %v773_v28 = vadd.f32 %v772_v22, %v755_v25  ;;  %v806_v51 = vadd.f32 %v805_v20, %v788_v47 }
  0xd1   :  { %v791_v35 = vadd.f32 %v790_v23, %v773_v28  ;;  %v824_v56 = vadd.f32 %v823_v21, %v806_v51 }
  0xd6   :  { %v808_v30 = vpop.f32.mrf.mxu2  ;;  %v774_v32 = vpop.f32.mrf.mxu0 }
  0xd7   :  { %v826_v31 = vpop.f32.mrf.mxu3  ;;  %v792_v33 = vpop.f32.mrf.mxu1  ;;  %v809_v38 = vadd.f32 %v808_v30, %v791_v35 }
  0xd9   :  { %v827_v41 = vadd.f32 %v826_v31, %v809_v38 }
  0xde   :  { %v810_v43 = vpop.f32.mrf.mxu2  ;;  %v839_v45 = vpop.f32.mrf.mxu0 }
  0xdf   :  { %v828_v44 = vpop.f32.mrf.mxu3  ;;  %v844_v46 = vpop.f32.mrf.mxu1  ;;  %v840_v48 = vadd.f32 %v839_v45, %v822_v40 }
  0xe0   :  { %v845_v50 = vadd.f32 %v844_v46, %v827_v41 }
  0xe1   :  { %v852_v52 = vmul.f32 %v1285_v42, %v840_v48 }
  0xe2   :  { %v854_v53 = vmul.f32 %v1285_v42, %v845_v50 }
  0xe3   :  { %v859_v54 = vadd.f32 %v1286_v49, %v852_v52 }
  0xe4   :  { %v861_v55 = vadd.f32 %v1286_v49, %v854_v53 }
  0xe5   :  { %v862_v57 = vmax.f32 %v859_v54, 0.0 }
  0xe6   :  { %v864_v58 = vmax.f32 %v861_v55, 0.0  ;;  %v841_v59 = vpop.f32.mrf.mxu0 }
  0xe7   :  { %v846_v60 = vpop.f32.mrf.mxu1  ;;  %865 = vst [vmem:[%s1616_s4] sm:$0xff] %v862_v57  ;;  %v842_v61 = vadd.f32 %v841_v59, %v824_v56 }
  0xe8   :  { %867 = vst [vmem:[%s1616_s4 + $0x10] sm:$0xff] %v864_v58 }
  0xe9   :  { %v853_v62 = vmul.f32 %v1285_v42, %v842_v61 }
  0xeb   :  { %v860_v63 = vadd.f32 %v1286_v49, %v853_v62 }
  0xed   :  { %v863_v0 = vmax.f32 %v860_v63, 0.0 }
  0xef   :  { %866 = vst [vmem:[%s1616_s4 + $0x8] sm:$0xff] %v863_v0 }

// kernel: my_net_res50_forward.47
= control target key start
LH: loop header
LB: loop body
LE: loop exit
PB: predicated region body
PF: predicated region fallthrough
CT: control target
= control target key end

     0   :  { %s757_s1 = inlined_call_operand.vmem [shape: bf16[512,128], index: 1, kind: input, shape index: {}]   ;;  %s758_s0 = inlined_call_operand.vmem [shape: bf16[24,512], index: 0, kind: input, shape index: {}]   ;;  %s759_s2 = inlined_call_operand.vmem [shape: f32[1,128], index: 2, kind: input, shape index: {}]   ;;  %s760_s3 = inlined_call_operand.vmem [shape: f32[1,128], index: 3, kind: input, shape index: {}]   ;;  %s761_s4 = inlined_call_operand.vmem [shape: f32[24,128], index: 4, kind: output, shape index: {}]  }
   0x1   :  { %v564_v0 = vld [vmem:[%s757_s1 + $0x38] sm:$0xff]  ;;  %v563_v4 = vld [vmem:[%s757_s1 + $0x30] sm:$0xff]  ;;  %v562_v8 = vld [vmem:[%s757_s1 + $0x28] sm:$0xff] }
   0x2   :  { %v572_v1 = vld [vmem:[%s757_s1 + $0x78] sm:$0xff]  ;;  %313 = vmatpush.bf16.msra.mxu0 %v564_v0  ;;  %v571_v5 = vld [vmem:[%s757_s1 + $0x70] sm:$0xff]  ;;  %v570_v9 = vld [vmem:[%s757_s1 + $0x68] sm:$0xff] }
   0x3   :  { %v580_v2 = vld [vmem:[%s757_s1 + $0xb8] sm:$0xff]  ;;  %331 = vmatpush.bf16.msra.mxu1 %v572_v1  ;;  %v579_v6 = vld [vmem:[%s757_s1 + $0xb0] sm:$0xff]  ;;  %v578_v10 = vld [vmem:[%s757_s1 + $0xa8] sm:$0xff] }
   0x4   :  { %v588_v3 = vld [vmem:[%s757_s1 + $0xf8] sm:$0xff]  ;;  %349 = vmatpush.bf16.msra.mxu2 %v580_v2  ;;  %v587_v7 = vld [vmem:[%s757_s1 + $0xf0] sm:$0xff]  ;;  %v586_v11 = vld [vmem:[%s757_s1 + $0xe8] sm:$0xff] }
   0x5   :  { %367 = vmatpush.bf16.msra.mxu3 %v588_v3  ;;  %v561_v12 = vld [vmem:[%s757_s1 + $0x20] sm:$0xff]  ;;  %v560_v16 = vld [vmem:[%s757_s1 + $0x18] sm:$0xff]  ;;  %v559_v20 = vld [vmem:[%s757_s1 + $0x10] sm:$0xff] }
   0x6   :  { %314 = vmatpush.bf16.msra.mxu0 %v563_v4  ;;  %v569_v13 = vld [vmem:[%s757_s1 + $0x60] sm:$0xff]  ;;  %v568_v17 = vld [vmem:[%s757_s1 + $0x58] sm:$0xff]  ;;  %v567_v21 = vld [vmem:[%s757_s1 + $0x50] sm:$0xff] }
   0x7   :  { %332 = vmatpush.bf16.msra.mxu1 %v571_v5  ;;  %v577_v14 = vld [vmem:[%s757_s1 + $0xa0] sm:$0xff]  ;;  %v576_v18 = vld [vmem:[%s757_s1 + $0x98] sm:$0xff]  ;;  %v575_v22 = vld [vmem:[%s757_s1 + $0x90] sm:$0xff] }
   0x8   :  { %350 = vmatpush.bf16.msra.mxu2 %v579_v6  ;;  %v585_v15 = vld [vmem:[%s757_s1 + $0xe0] sm:$0xff]  ;;  %v584_v19 = vld [vmem:[%s757_s1 + $0xd8] sm:$0xff]  ;;  %v583_v23 = vld [vmem:[%s757_s1 + $0xd0] sm:$0xff] }
   0x9   :  { %368 = vmatpush.bf16.msra.mxu3 %v587_v7  ;;  %v558_v24 = vld [vmem:[%s757_s1 + $0x8] sm:$0xff]  ;;  %v557_v28 = vld [vmem:[%s757_s1] sm:$0xff]  ;;  %v555_v33 = vld [vmem:[%s758_s0 + $0xc] sm:$0xf0] }
   0xa   :  { %315 = vmatpush.bf16.msra.mxu0 %v562_v8  ;;  %v566_v25 = vld [vmem:[%s757_s1 + $0x48] sm:$0xff]  ;;  %v565_v29 = vld [vmem:[%s757_s1 + $0x40] sm:$0xff]  ;;  %v413_v35 = vld [vmem:[%s758_s0 + $0x10] sm:$0xf0] }
   0xb   :  { %333 = vmatpush.bf16.msra.mxu1 %v570_v9  ;;  %v574_v26 = vld [vmem:[%s757_s1 + $0x88] sm:$0xff]  ;;  %v573_v30 = vld [vmem:[%s757_s1 + $0x80] sm:$0xff]  ;;  %v556_v37 = vld [vmem:[%s758_s0 + $0x14] sm:$0xf0] }
   0xc   :  { %351 = vmatpush.bf16.msra.mxu2 %v578_v10  ;;  %v582_v27 = vld [vmem:[%s757_s1 + $0xc8] sm:$0xff]  ;;  %v581_v31 = vld [vmem:[%s757_s1 + $0xc0] sm:$0xff]  ;;  %v421_v39 = vld [vmem:[%s758_s0 + $0x18] sm:$0xf0] }
   0xd   :  { %369 = vmatpush.bf16.msra.mxu3 %v586_v11  ;;  %v411_v32 = vld [vmem:[%s758_s0] sm:$0xf]  ;;  %v553_v34 = vld [vmem:[%s758_s0 + $0x4] sm:$0xf]  ;;  %v419_v36 = vld [vmem:[%s758_s0 + $0x8] sm:$0xf] }
   0xe   :  { %316 = vmatpush.bf16.msra.mxu0 %v561_v12  ;;  %v554_v38 = vld [vmem:[%s758_s0 + $0xc] sm:$0xf]  ;;  %v412_v40 = vor.u32 %v555_v33, %v411_v32  ;;  %v416_v41 = vor.u32 %v553_v34, %v413_v35  ;;  %v420_v42 = vor.u32 %v556_v37, %v419_v36  ;;  %v21_v44 = vld [vmem:[%s758_s0 + $0x20] sm:$0xff] }
   0xf   :  { %334 = vmatpush.bf16.msra.mxu1 %v569_v13  ;;  %v424_v43 = vor.u32 %v554_v38, %v421_v39  ;;  %v22_v45 = vld [vmem:[%s758_s0 + $0x28] sm:$0xff]  ;;  %v101_v46 = vunpack.c.l.b16 %v21_v44  ;;  %v102_v47 = vunpack.c.h.b16 %v21_v44  ;;  %v589_v60 = vld [vmem:[%s759_s2] ss:$0 sm:$0xff] }
  0x10   :  { %352 = vmatpush.bf16.msra.mxu2 %v577_v14  ;;  %v103_v48 = vunpack.c.l.b16 %v22_v45  ;;  %v104_v49 = vunpack.c.h.b16 %v22_v45  ;;  %v590_v0 = vld [vmem:[%s760_s3] ss:$0 sm:$0xff] }
  0x11   :  { %370 = vmatpush.bf16.msra.mxu3 %v585_v15  ;;  %v109_v50 = vpack.c.b16 %v101_v46, %v101_v46  ;;  %v110_v51 = vpack.c.b16 %v102_v47, %v102_v47 }
  0x12   :  { %317 = vmatpush.bf16.msra.mxu0 %v560_v16  ;;  %v111_v52 = vpack.c.b16 %v103_v48, %v103_v48  ;;  %v112_v53 = vpack.c.b16 %v104_v49, %v104_v49 }
  0x13   :  { %335 = vmatpush.bf16.msra.mxu1 %v568_v17 }
  0x14   :  { %353 = vmatpush.bf16.msra.mxu2 %v576_v18 }
  0x15   :  { %371 = vmatpush.bf16.msra.mxu3 %v584_v19 }
  0x16   :  { %318 = vmatpush.bf16.msra.mxu0 %v559_v20 }
  0x17   :  { %336 = vmatpush.bf16.msra.mxu1 %v567_v21 }
  0x18   :  { %354 = vmatpush.bf16.msra.mxu2 %v575_v22 }
  0x19   :  { %372 = vmatpush.bf16.msra.mxu3 %v583_v23 }
  0x1a   :  { %319 = vmatpush.bf16.msra.mxu0 %v558_v24 }
  0x1b   :  { %337 = vmatpush.bf16.msra.mxu1 %v566_v25 }
  0x1c   :  { %355 = vmatpush.bf16.msra.mxu2 %v574_v26 }
  0x1d   :  { %373 = vmatpush.bf16.msra.mxu3 %v582_v27 }
  0x1e   :  { %320 = vmatpush.bf16.msra.mxu0 %v557_v28 }
  0x1f   :  { %338 = vmatpush.bf16.msra.mxu1 %v565_v29 }
  0x20   :  { %356 = vmatpush.bf16.msra.mxu2 %v573_v30 }
  0x21   :  { %374 = vmatpush.bf16.msra.mxu3 %v581_v31  ;;  %321 = vmatmul.bf16.vlgmr.msra.gmra.mxu0 %v412_v40 }
  0x22   :  { %339 = vmatmul.bf16.vlgmr.msra.gmra.mxu1 %v416_v41 }
  0x23   :  { %357 = vmatmul.bf16.vlgmr.msra.gmra.mxu2 %v420_v42 }
  0x24   :  { %375 = vmatmul.bf16.vlgmr.msra.gmra.mxu3 %v424_v43 }
  0x31   :  { %326 = vmatmul.bf16.gmra.mxu0 %v109_v50 }
  0x32   :  { %344 = vmatmul.bf16.gmra.mxu1 %v110_v51 }
  0x33   :  { %362 = vmatmul.bf16.gmra.mxu2 %v111_v52 }
  0x34   :  { %380 = vmatmul.bf16.gmra.mxu3 %v112_v53 }
  0x9e   :  { %v322_v54 = vpop.f32.mrf.mxu0 }
  0x9f   :  { %v340_v55 = vpop.f32.mrf.mxu1 }
  0xa0   :  { %v341_v56 = vadd.f32 %v340_v55, %v322_v54 }
  0xa6   :  { %v358_v57 = vpop.f32.mrf.mxu2  ;;  %v324_v61 = vpop.f32.mrf.mxu0 }
  0xa7   :  { %v376_v58 = vpop.f32.mrf.mxu3  ;;  %v359_v59 = vadd.f32 %v358_v57, %v341_v56  ;;  %v342_v62 = vpop.f32.mrf.mxu1 }
  0xa8   :  { %v343_v3 = vadd.f32 %v342_v62, %v324_v61 }
  0xa9   :  { %v377_v63 = vadd.f32 %v376_v58, %v359_v59 }
  0xab   :  { %v389_v1 = vmul.f32 %v589_v60, %v377_v63 }
  0xad   :  { %v396_v2 = vadd.f32 %v590_v0, %v389_v1 }
  0xae   :  { %v360_v4 = vpop.f32.mrf.mxu2  ;;  %v327_v8 = vpop.f32.mrf.mxu0 }
  0xaf   :  { %v378_v5 = vpop.f32.mrf.mxu3  ;;  %v399_v6 = vmax.f32 %v396_v2, 0.0  ;;  %v361_v7 = vadd.f32 %v360_v4, %v343_v3  ;;  %v345_v9 = vpop.f32.mrf.mxu1 }
  0xb0   :  { %v346_v12 = vadd.f32 %v345_v9, %v327_v8 }
  0xb1   :  { %402 = vst [vmem:[%s761_s4] sm:$0xff] %v399_v6  ;;  %v379_v10 = vadd.f32 %v378_v5, %v361_v7 }
  0xb3   :  { %v390_v11 = vmul.f32 %v589_v60, %v379_v10 }
  0xb5   :  { %v397_v13 = vadd.f32 %v590_v0, %v390_v11 }
  0xb6   :  { %v363_v14 = vpop.f32.mrf.mxu2  ;;  %v329_v18 = vpop.f32.mrf.mxu0 }
  0xb7   :  { %v381_v15 = vpop.f32.mrf.mxu3  ;;  %v400_v16 = vmax.f32 %v397_v13, 0.0  ;;  %v364_v17 = vadd.f32 %v363_v14, %v346_v12  ;;  %v347_v19 = vpop.f32.mrf.mxu1 }
  0xb9   :  { %403 = vst [vmem:[%s761_s4 + $0x8] sm:$0xff] %v400_v16  ;;  %v382_v20 = vadd.f32 %v381_v15, %v364_v17 }
  0xbb   :  { %v391_v21 = vmul.f32 %v589_v60, %v382_v20 }
  0xbd   :  { %v398_v22 = vadd.f32 %v590_v0, %v391_v21 }
  0xbe   :  { %v365_v23 = vpop.f32.mrf.mxu2 }
  0xbf   :  { %v383_v24 = vpop.f32.mrf.mxu3  ;;  %v401_v25 = vmax.f32 %v398_v22, 0.0 }
  0xc1   :  { %404 = vst [vmem:[%s761_s4 + $0x10] sm:$0xff] %v401_v25 }

// kernel: my_net_res50_forward.53
= control target key start
LH: loop header
LB: loop body
LE: loop exit
PB: predicated region body
PF: predicated region fallthrough
CT: control target
= control target key end

     0   :  { %v278_v2 = vmov 6.0   ;;  %vm141_vm0 = vcmask 1041408   ;;  %vm260_vm2 = vcmask 1045508   ;;  %vm262_vm3 = vcmask 1043456   ;;  %s404_s0 = inlined_call_operand.vmem [shape: f32[2,6,2,512], index: 0, kind: input, shape index: {}]   ;;  %s405_s1 = inlined_call_operand.vmem [shape: f32[2,1,2,512], index: 1, kind: output, shape index: {}]  }
   0x1   :  { %v8_v0 = vld [vmem:[%s404_s0] sm:$0xff]  ;;  %v9_v1 = vld [vmem:[%s404_s0 + $0x8] sm:$0xff]  ;;  %276 = vrcp.f32 %v278_v2  ;;  %v10_v4 = vld [vmem:[%s404_s0 + $0x10] sm:$0xff] }
   0x2   :  { %32 = vst [vmem:[#allocation1] ss:$4 sm:$0xff] %v8_v0  ;;  %v11_v9 = vld [vmem:[%s404_s0 + $0x18] sm:$0xff]  ;;  %v12_v23 = vld [vmem:[%s404_s0 + $0x20] sm:$0xff]  ;;  %v13_v27 = vld [vmem:[%s404_s0 + $0x28] sm:$0xff] }
   0x3   :  { %38 = vst [vmem:[#allocation1 + $0x20] ss:$4 sm:$0xff] %v9_v1  ;;  %v14_v51 = vld [vmem:[%s404_s0 + $0x30] sm:$0xff]  ;;  %v15_v54 = vld [vmem:[%s404_s0 + $0x38] sm:$0xff] }
   0x7   :  { %v295_v3 = vpop.eup %276 }
   0x8   :  { %v231_v10 = vmul.f32 6.0, %v295_v3  ;;  %vm235_vm1 = vweird.f32 %v295_v3 }
   0x9   :  { %v33_v5 = vld.sshfl [vmem:[#allocation1] sm:$0xff pattern:$0x73625140]  ;;  %v34_v6 = vld.sshfl [vmem:[#allocation1 + $0x8] sm:$0xff pattern:$0x73625140] }
   0xa   :  { %v35_v7 = vld.sshfl [vmem:[#allocation1 + $0x10] sm:$0xff pattern:$0x73625140]  ;;  %v36_v8 = vld.sshfl [vmem:[#allocation1 + $0x18] sm:$0xff pattern:$0x73625140] }
   0xb   :  { %43 = vst [vmem:[#allocation1] ss:$4 sm:$0xff] %v10_v4  ;;  %v39_v11 = vld.sshfl [vmem:[#allocation1 + $0x20] sm:$0xff pattern:$0x73625140]  ;;  %v142_v15 = vsel %vm141_vm0, %v33_v5, 0.0 }
   0xc   :  { %v40_v12 = vld.sshfl [vmem:[#allocation1 + $0x28] sm:$0xff pattern:$0x73625140]  ;;  %v41_v13 = vld.sshfl [vmem:[#allocation1 + $0x30] sm:$0xff pattern:$0x73625140] }
   0xd   :  { %v42_v14 = vld.sshfl [vmem:[#allocation1 + $0x38] sm:$0xff pattern:$0x73625140]  ;;  %v153_v16 = vsel %vm141_vm0, %v34_v6, 0.0  ;;  %v164_v17 = vsel %vm141_vm0, %v35_v7, 0.0  ;;  %v175_v18 = vsel %vm141_vm0, %v36_v8, 0.0 }
   0xe   :  { %48 = vst [vmem:[#allocation1 + $0x20] ss:$4 sm:$0xff] %v11_v9  ;;  %v143_v19 = vsel %vm141_vm0, %v39_v11, 0.0  ;;  %v154_v20 = vsel %vm141_vm0, %v40_v12, 0.0  ;;  %v165_v21 = vsel %vm141_vm0, %v41_v13, 0.0  ;;  %v176_v22 = vsel %vm141_vm0, %v42_v14, 0.0 }
   0xf   :  { %v232_v24 = vsub.f32 1.0, %v231_v10  ;;  %v144_v38 = vadd.f32 %v143_v19, %v142_v15  ;;  %v155_v39 = vadd.f32 %v154_v20, %v153_v16  ;;  %v166_v40 = vadd.f32 %v165_v21, %v164_v17  ;;  %v16_v20 = vld [vmem:[%s404_s0 + $0x40] sm:$0xff] }
  0x10   :  { %v177_v41 = vadd.f32 %v176_v22, %v175_v18 }
  0x11   :  { %v233_v42 = vmul.f32 %v295_v3, %v232_v24 }
  0x12   :  { %v44_v25 = vld.sshfl [vmem:[#allocation1] sm:$0xff pattern:$0x73625140]  ;;  %v45_v26 = vld.sshfl [vmem:[#allocation1 + $0x8] sm:$0xff pattern:$0x73625140] }
  0x13   :  { %v46_v28 = vld.sshfl [vmem:[#allocation1 + $0x10] sm:$0xff pattern:$0x73625140]  ;;  %v47_v29 = vld.sshfl [vmem:[#allocation1 + $0x18] sm:$0xff pattern:$0x73625140]  ;;  %v234_v55 = vadd.f32 %v295_v3, %v233_v42 }
  0x14   :  { %53 = vst [vmem:[#allocation1] ss:$4 sm:$0xff] %v12_v23  ;;  %v145_v30 = vsel %vm141_vm0, %v44_v25, 0.0  ;;  %v156_v31 = vsel %vm141_vm0, %v45_v26, 0.0  ;;  %v167_v32 = vsel %vm141_vm0, %v46_v28, 0.0  ;;  %v178_v33 = vsel %vm141_vm0, %v47_v29, 0.0 }
  0x15   :  { %v49_v34 = vld.sshfl [vmem:[#allocation1 + $0x20] sm:$0xff pattern:$0x73625140]  ;;  %v50_v35 = vld.sshfl [vmem:[#allocation1 + $0x28] sm:$0xff pattern:$0x73625140]  ;;  %v146_v43 = vadd.f32 %v145_v30, %v144_v38  ;;  %v157_v44 = vadd.f32 %v156_v31, %v155_v39  ;;  %v168_v45 = vadd.f32 %v167_v32, %v166_v40  ;;  %v179_v46 = vadd.f32 %v178_v33, %v177_v41 }
  0x16   :  { %v51_v36 = vld.sshfl [vmem:[#allocation1 + $0x30] sm:$0xff pattern:$0x73625140]  ;;  %v52_v37 = vld.sshfl [vmem:[#allocation1 + $0x38] sm:$0xff pattern:$0x73625140]  ;;  %v342_v11 = vsel %vm235_vm1, %v295_v3, %v234_v55 }
  0x17   :  { %58 = vst [vmem:[#allocation1 + $0x20] ss:$4 sm:$0xff] %v13_v27  ;;  %v147_v47 = vsel %vm141_vm0, %v49_v34, 0.0  ;;  %v158_v48 = vsel %vm141_vm0, %v50_v35, 0.0  ;;  %v169_v49 = vsel %vm141_vm0, %v51_v36, 0.0  ;;  %v180_v50 = vsel %vm141_vm0, %v52_v37, 0.0 }
  0x18   :  { %v148_v58 = vadd.f32 %v147_v47, %v146_v43  ;;  %v159_v59 = vadd.f32 %v158_v48, %v157_v44  ;;  %v170_v60 = vadd.f32 %v169_v49, %v168_v45  ;;  %v181_v61 = vadd.f32 %v180_v50, %v179_v46  ;;  %v17_v27 = vld [vmem:[%s404_s0 + $0x48] sm:$0xff]  ;;  %v18_v43 = vld [vmem:[%s404_s0 + $0x50] sm:$0xff]  ;;  %v19_v48 = vld [vmem:[%s404_s0 + $0x58] sm:$0xff] }
  0x1b   :  { %v54_v52 = vld.sshfl [vmem:[#allocation1] sm:$0xff pattern:$0x73625140]  ;;  %v55_v53 = vld.sshfl [vmem:[#allocation1 + $0x8] sm:$0xff pattern:$0x73625140] }
  0x1c   :  { %v56_v56 = vld.sshfl [vmem:[#allocation1 + $0x10] sm:$0xff pattern:$0x73625140]  ;;  %v57_v57 = vld.sshfl [vmem:[#allocation1 + $0x18] sm:$0xff pattern:$0x73625140] }
  0x1d   :  { %63 = vst [vmem:[#allocation1] ss:$4 sm:$0xff] %v14_v51  ;;  %v149_v62 = vsel %vm141_vm0, %v54_v52, 0.0  ;;  %v160_v63 = vsel %vm141_vm0, %v55_v53, 0.0  ;;  %v171_v0 = vsel %vm141_vm0, %v56_v56, 0.0  ;;  %v182_v1 = vsel %vm141_vm0, %v57_v57, 0.0 }
  0x1e   :  { %v59_v2 = vld.sshfl [vmem:[#allocation1 + $0x20] sm:$0xff pattern:$0x73625140]  ;;  %v60_v4 = vld.sshfl [vmem:[#allocation1 + $0x28] sm:$0xff pattern:$0x73625140]  ;;  %v150_v5 = vadd.f32 %v149_v62, %v148_v58  ;;  %v161_v6 = vadd.f32 %v160_v63, %v159_v59  ;;  %v172_v7 = vadd.f32 %v171_v0, %v170_v60  ;;  %v183_v8 = vadd.f32 %v182_v1, %v181_v61 }
  0x1f   :  { %v61_v9 = vld.sshfl [vmem:[#allocation1 + $0x30] sm:$0xff pattern:$0x73625140]  ;;  %v62_v10 = vld.sshfl [vmem:[#allocation1 + $0x38] sm:$0xff pattern:$0x73625140] }
  0x20   :  { %68 = vst [vmem:[#allocation1 + $0x20] ss:$4 sm:$0xff] %v15_v54  ;;  %v151_v12 = vsel %vm141_vm0, %v59_v2, 0.0  ;;  %v162_v13 = vsel %vm141_vm0, %v60_v4, 0.0  ;;  %v173_v14 = vsel %vm141_vm0, %v61_v9, 0.0  ;;  %v184_v15 = vsel %vm141_vm0, %v62_v10, 0.0 }
  0x21   :  { %v163_v16 = vadd.f32 %v162_v13, %v161_v6  ;;  %v174_v17 = vadd.f32 %v173_v14, %v172_v7  ;;  %v185_v18 = vadd.f32 %v184_v15, %v183_v8  ;;  %v152_v19 = vadd.f32 %v151_v12, %v150_v5 }
  0x23   :  { %v238_v3 = vmul.f32 %v342_v11, %v163_v16  ;;  %v239_v21 = vmul.f32 %v342_v11, %v174_v17  ;;  %v240_v22 = vmul.f32 %v342_v11, %v185_v18  ;;  %v237_v28 = vmul.f32 %v342_v11, %v152_v19 }
  0x24   :  { %v64_v23 = vld.sshfl [vmem:[#allocation1] sm:$0xff pattern:$0x73625140]  ;;  %v65_v24 = vld.sshfl [vmem:[#allocation1 + $0x8] sm:$0xff pattern:$0x73625140] }
  0x25   :  { %v66_v25 = vld.sshfl [vmem:[#allocation1 + $0x10] sm:$0xff pattern:$0x73625140]  ;;  %v67_v26 = vld.sshfl [vmem:[#allocation1 + $0x18] sm:$0xff pattern:$0x73625140] }
  0x26   :  { %73 = vst [vmem:[#allocation1] ss:$4 sm:$0xff] %v16_v20  ;;  %v253_v29 = vrot.slane %v238_v3, 6  ;;  %v254_v30 = vrot.slane %v239_v21, 4  ;;  %v255_v31 = vrot.slane %v240_v22, 2  ;;  %v186_v39 = vsel %vm141_vm0, %v64_v23, 0.0 }
  0x27   :  { %v69_v32 = vld.sshfl [vmem:[#allocation1 + $0x20] sm:$0xff pattern:$0x73625140]  ;;  %v70_v33 = vld.sshfl [vmem:[#allocation1 + $0x28] sm:$0xff pattern:$0x73625140] }
  0x28   :  { %v71_v34 = vld.sshfl [vmem:[#allocation1 + $0x30] sm:$0xff pattern:$0x73625140]  ;;  %v72_v35 = vld.sshfl [vmem:[#allocation1 + $0x38] sm:$0xff pattern:$0x73625140]  ;;  %v259_v36 = vsel %vm141_vm0, %v237_v28, %v253_v29  ;;  %v261_v37 = vsel %vm260_vm2, %v254_v30, %v255_v31 }
  0x29   :  { %78 = vst [vmem:[#allocation1 + $0x20] ss:$4 sm:$0xff] %v17_v27  ;;  %v263_v38 = vsel %vm262_vm3, %v259_v36, %v261_v37  ;;  %v187_v40 = vsel %vm141_vm0, %v69_v32, 0.0  ;;  %v197_v41 = vsel %vm141_vm0, %v65_v24, 0.0  ;;  %v198_v42 = vsel %vm141_vm0, %v70_v33, 0.0 }
  0x2a   :  { %269 = vst [vmem:[%s405_s1] sm:$0xff] %v263_v38  ;;  %v208_v44 = vsel %vm141_vm0, %v66_v25, 0.0  ;;  %v209_v45 = vsel %vm141_vm0, %v71_v34, 0.0  ;;  %v219_v46 = vsel %vm141_vm0, %v67_v26, 0.0  ;;  %v220_v47 = vsel %vm141_vm0, %v72_v35, 0.0 }
  0x2b   :  { %v188_v61 = vadd.f32 %v187_v40, %v186_v39  ;;  %v199_v62 = vadd.f32 %v198_v42, %v197_v41  ;;  %v210_v63 = vadd.f32 %v209_v45, %v208_v44  ;;  %v221_v0 = vadd.f32 %v220_v47, %v219_v46 }
  0x2d   :  { %v74_v49 = vld.sshfl [vmem:[#allocation1] sm:$0xff pattern:$0x73625140]  ;;  %v75_v50 = vld.sshfl [vmem:[#allocation1 + $0x8] sm:$0xff pattern:$0x73625140] }
  0x2e   :  { %v76_v51 = vld.sshfl [vmem:[#allocation1 + $0x10] sm:$0xff pattern:$0x73625140]  ;;  %v77_v52 = vld.sshfl [vmem:[#allocation1 + $0x18] sm:$0xff pattern:$0x73625140] }
  0x2f   :  { %83 = vst [vmem:[#allocation1] ss:$4 sm:$0xff] %v18_v43  ;;  %v189_v53 = vsel %vm141_vm0, %v74_v49, 0.0  ;;  %v200_v54 = vsel %vm141_vm0, %v75_v50, 0.0  ;;  %v211_v55 = vsel %vm141_vm0, %v76_v51, 0.0  ;;  %v222_v56 = vsel %vm141_vm0, %v77_v52, 0.0 }
  0x30   :  { %v79_v57 = vld.sshfl [vmem:[#allocation1 + $0x20] sm:$0xff pattern:$0x73625140]  ;;  %v80_v58 = vld.sshfl [vmem:[#allocation1 + $0x28] sm:$0xff pattern:$0x73625140]  ;;  %v190_v1 = vadd.f32 %v189_v53, %v188_v61  ;;  %v201_v2 = vadd.f32 %v200_v54, %v199_v62  ;;  %v212_v4 = vadd.f32 %v211_v55, %v210_v63  ;;  %v223_v5 = vadd.f32 %v222_v56, %v221_v0 }
  0x31   :  { %v81_v59 = vld.sshfl [vmem:[#allocation1 + $0x30] sm:$0xff pattern:$0x73625140]  ;;  %v82_v60 = vld.sshfl [vmem:[#allocation1 + $0x38] sm:$0xff pattern:$0x73625140] }
  0x32   :  { %88 = vst [vmem:[#allocation1 + $0x20] ss:$4 sm:$0xff] %v19_v48  ;;  %v191_v6 = vsel %vm141_vm0, %v79_v57, 0.0  ;;  %v202_v7 = vsel %vm141_vm0, %v80_v58, 0.0  ;;  %v213_v8 = vsel %vm141_vm0, %v81_v59, 0.0  ;;  %v224_v9 = vsel %vm141_vm0, %v82_v60, 0.0 }
  0x33   :  { %v192_v15 = vadd.f32 %v191_v6, %v190_v1  ;;  %v203_v16 = vadd.f32 %v202_v7, %v201_v2  ;;  %v214_v17 = vadd.f32 %v213_v8, %v212_v4  ;;  %v225_v18 = vadd.f32 %v224_v9, %v223_v5 }
  0x36   :  { %v84_v10 = vld.sshfl [vmem:[#allocation1] sm:$0xff pattern:$0x73625140]  ;;  %v85_v12 = vld.sshfl [vmem:[#allocation1 + $0x8] sm:$0xff pattern:$0x73625140] }
  0x37   :  { %v86_v13 = vld.sshfl [vmem:[#allocation1 + $0x10] sm:$0xff pattern:$0x73625140]  ;;  %v87_v14 = vld.sshfl [vmem:[#allocation1 + $0x18] sm:$0xff pattern:$0x73625140] }
  0x38   :  { %v193_v19 = vsel %vm141_vm0, %v84_v10, 0.0  ;;  %v204_v20 = vsel %vm141_vm0, %v85_v12, 0.0  ;;  %v215_v3 = vsel %vm141_vm0, %v86_v13, 0.0  ;;  %v226_v21 = vsel %vm141_vm0, %v87_v14, 0.0 }
  0x39   :  { %v89_v22 = vld.sshfl [vmem:[#allocation1 + $0x20] sm:$0xff pattern:$0x73625140]  ;;  %v90_v23 = vld.sshfl [vmem:[#allocation1 + $0x28] sm:$0xff pattern:$0x73625140]  ;;  %v194_v24 = vadd.f32 %v193_v19, %v192_v15  ;;  %v205_v25 = vadd.f32 %v204_v20, %v203_v16  ;;  %v216_v26 = vadd.f32 %v215_v3, %v214_v17  ;;  %v227_v27 = vadd.f32 %v226_v21, %v225_v18 }
  0x3a   :  { %v91_v28 = vld.sshfl [vmem:[#allocation1 + $0x30] sm:$0xff pattern:$0x73625140]  ;;  %v92_v29 = vld.sshfl [vmem:[#allocation1 + $0x38] sm:$0xff pattern:$0x73625140] }
  0x3b   :  { %v195_v30 = vsel %vm141_vm0, %v89_v22, 0.0  ;;  %v206_v31 = vsel %vm141_vm0, %v90_v23, 0.0  ;;  %v217_v32 = vsel %vm141_vm0, %v91_v28, 0.0  ;;  %v228_v33 = vsel %vm141_vm0, %v92_v29, 0.0 }
  0x3c   :  { %v196_v34 = vadd.f32 %v195_v30, %v194_v24  ;;  %v207_v35 = vadd.f32 %v206_v31, %v205_v25  ;;  %v218_v36 = vadd.f32 %v217_v32, %v216_v26  ;;  %v229_v37 = vadd.f32 %v228_v33, %v227_v27 }
  0x3e   :  { %v242_v38 = vmul.f32 %v342_v11, %v207_v35  ;;  %v243_v39 = vmul.f32 %v342_v11, %v218_v36  ;;  %v244_v40 = vmul.f32 %v342_v11, %v229_v37  ;;  %v241_v41 = vmul.f32 %v342_v11, %v196_v34 }
  0x40   :  { %v256_v42 = vrot.slane %v242_v38, 6  ;;  %v257_v43 = vrot.slane %v243_v39, 4  ;;  %v258_v44 = vrot.slane %v244_v40, 2 }
  0x42   :  { %v264_v45 = vsel %vm141_vm0, %v241_v41, %v256_v42  ;;  %v265_v46 = vsel %vm260_vm2, %v257_v43, %v258_v44 }
  0x43   :  { %v266_v47 = vsel %vm262_vm3, %v264_v45, %v265_v46 }
  0x44   :  { %270 = vst [vmem:[%s405_s1 + $0x8] sm:$0xff] %v266_v47 }

// kernel: my_net_res50_forward.55
= control target key start
LH: loop header
LB: loop body
LE: loop exit
PB: predicated region body
PF: predicated region fallthrough
CT: control target
= control target key end

     0   :  { %vm10_vm0 = vcmask 1043456   ;;  %s88_s0 = inlined_call_operand.vmem [shape: f32[4,128], index: 0, kind: input, shape index: {}]   ;;  %s89_s1 = inlined_call_operand.hbm [shape: f32[4,128], index: 1, kind: output, shape index: {}]  }
   0x1   :  { %v9_v0 = vld [vmem:[%s88_s0] sm:$0xf] }
   0x2   :  { %6 = vsyncpa [#allocation3], 0  ;;  %v11_v1 = vsel %vm10_vm0, %v9_v0, -inf  ;;  %s71_s8 = smov [#allocation2]   ;;  %s31_s0 = sshll.u32 %s89_s1, 4  ;;  %s32_s0 = int_to_ptr.hbm [resolvable:$true] %s31_s0 }
   0x3   :  { %12 = vmax.xlane.f32.xlu0 %v11_v1  ;;  %s29_s9 = sshll.u32 %s71_s8, 4  ;;  %s30_s9 = int_to_ptr.vmem [resolvable:$true] %s29_s9 }
  0x76   :  { %v13_v2 = vpop.xlane.xlu0 %12 }
  0x77   :  { %v14_v3 = vsub.f32 %v9_v0, %v13_v2 }
  0x79   :  { %v15_v4 = vmul.f32 1.442695, %v14_v3 }
  0x7b   :  { %41 = vpow2.f32 %v15_v4 }
  0x81   :  { %v42_v5 = vpop.eup %41 }
  0x82   :  { %v17_v6 = vsel %vm10_vm0, %v42_v5, 0.0 }
  0x83   :  { %18 = vadd.xlane.f32.xlu0 %v17_v6 }
  0xf6   :  { %v19_v7 = vpop.xlane.xlu0 %18 }
  0xf7   :  { %43 = vlog2.f32 %v19_v7 }
  0xfd   :  { %v44_v8 = vpop.eup %43 }
  0xfe   :  { %v21_v9 = vmul.f32 0.6931472, %v44_v8 }
 0x100   :  { %v22_v10 = vsub.f32 %v14_v3, %v21_v9 }
 0x102   :  { %23 = vst [vmem:[#allocation2] sm:$0xf] %v22_v10 }
 0x103   :  { %34 = dma.vmem_to_hbm [thread:$0]  %s30_s9, 64, %s32_s0, [#allocation3]  }
 0x104   :  { %69 = dma.done.wait [#allocation3], 64  }
 0x105   :  { %70 = vsyncadd [#allocation3], 4294967232 }
 0x106   :  { %39 = vsyncpa [#allocation3], 1 }

// kernel: my_net_res50_forward.54
= control target key start
LH: loop header
LB: loop body
LE: loop exit
PB: predicated region body
PF: predicated region fallthrough
CT: control target
= control target key end

     0   :  { %s646_s1 = inlined_call_operand.vmem [shape: bf16[512,128], index: 1, kind: input, shape index: {}]   ;;  %s647_s0 = inlined_call_operand.vmem [shape: bf16[4,512], index: 0, kind: input, shape index: {}]   ;;  %s648_s2 = inlined_call_operand.vmem [shape: f32[1,128], index: 2, kind: input, shape index: {}]   ;;  %s649_s3 = inlined_call_operand.vmem [shape: f32[1,128], index: 3, kind: input, shape index: {}]   ;;  %s650_s4 = inlined_call_operand.vmem [shape: f32[4,128], index: 4, kind: output, shape index: {}]  }
   0x1   :  { %v486_v0 = vld [vmem:[%s646_s1 + $0x38] sm:$0xff]  ;;  %v485_v4 = vld [vmem:[%s646_s1 + $0x30] sm:$0xff]  ;;  %v484_v8 = vld [vmem:[%s646_s1 + $0x28] sm:$0xff] }
   0x2   :  { %v494_v1 = vld [vmem:[%s646_s1 + $0x78] sm:$0xff]  ;;  %284 = vmatpush.bf16.msra.mxu0 %v486_v0  ;;  %v493_v5 = vld [vmem:[%s646_s1 + $0x70] sm:$0xff]  ;;  %v492_v9 = vld [vmem:[%s646_s1 + $0x68] sm:$0xff] }
   0x3   :  { %v502_v2 = vld [vmem:[%s646_s1 + $0xb8] sm:$0xff]  ;;  %297 = vmatpush.bf16.msra.mxu1 %v494_v1  ;;  %v501_v6 = vld [vmem:[%s646_s1 + $0xb0] sm:$0xff]  ;;  %v500_v10 = vld [vmem:[%s646_s1 + $0xa8] sm:$0xff] }
   0x4   :  { %v510_v3 = vld [vmem:[%s646_s1 + $0xf8] sm:$0xff]  ;;  %310 = vmatpush.bf16.msra.mxu2 %v502_v2  ;;  %v509_v7 = vld [vmem:[%s646_s1 + $0xf0] sm:$0xff]  ;;  %v508_v11 = vld [vmem:[%s646_s1 + $0xe8] sm:$0xff] }
   0x5   :  { %323 = vmatpush.bf16.msra.mxu3 %v510_v3  ;;  %v483_v12 = vld [vmem:[%s646_s1 + $0x20] sm:$0xff]  ;;  %v482_v17 = vld [vmem:[%s646_s1 + $0x18] sm:$0xff]  ;;  %v481_v21 = vld [vmem:[%s646_s1 + $0x10] sm:$0xff] }
   0x6   :  { %285 = vmatpush.bf16.msra.mxu0 %v485_v4  ;;  %v491_v13 = vld [vmem:[%s646_s1 + $0x60] sm:$0xff]  ;;  %v490_v18 = vld [vmem:[%s646_s1 + $0x58] sm:$0xff]  ;;  %v489_v22 = vld [vmem:[%s646_s1 + $0x50] sm:$0xff] }
   0x7   :  { %298 = vmatpush.bf16.msra.mxu1 %v493_v5  ;;  %v17_v14 = vld [vmem:[%s647_s0] sm:$0xff]  ;;  %v498_v19 = vld [vmem:[%s646_s1 + $0x98] sm:$0xff]  ;;  %v497_v23 = vld [vmem:[%s646_s1 + $0x90] sm:$0xff] }
   0x8   :  { %311 = vmatpush.bf16.msra.mxu2 %v501_v6  ;;  %v499_v15 = vld [vmem:[%s646_s1 + $0xa0] sm:$0xff]  ;;  %83 = vst [vmem:[#allocation1] ss:$4 sm:$0xff] %v17_v14  ;;  %v506_v20 = vld [vmem:[%s646_s1 + $0xd8] sm:$0xff]  ;;  %v505_v24 = vld [vmem:[%s646_s1 + $0xd0] sm:$0xff] }
   0x9   :  { %324 = vmatpush.bf16.msra.mxu3 %v509_v7  ;;  %v507_v16 = vld [vmem:[%s646_s1 + $0xe0] sm:$0xff]  ;;  %v480_v25 = vld [vmem:[%s646_s1 + $0x8] sm:$0xff] }
   0xa   :  { %286 = vmatpush.bf16.msra.mxu0 %v484_v8  ;;  %v488_v26 = vld [vmem:[%s646_s1 + $0x48] sm:$0xff]  ;;  %v479_v29 = vld [vmem:[%s646_s1] sm:$0xff] }
   0xb   :  { %299 = vmatpush.bf16.msra.mxu1 %v492_v9  ;;  %v496_v27 = vld [vmem:[%s646_s1 + $0x88] sm:$0xff]  ;;  %v487_v30 = vld [vmem:[%s646_s1 + $0x40] sm:$0xff] }
   0xc   :  { %312 = vmatpush.bf16.msra.mxu2 %v500_v10  ;;  %v504_v28 = vld [vmem:[%s646_s1 + $0xc8] sm:$0xff]  ;;  %v495_v31 = vld [vmem:[%s646_s1 + $0x80] sm:$0xff] }
   0xd   :  { %325 = vmatpush.bf16.msra.mxu3 %v508_v11  ;;  %v503_v32 = vld [vmem:[%s646_s1 + $0xc0] sm:$0xff] }
   0xe   :  { %287 = vmatpush.bf16.msra.mxu0 %v483_v12  ;;  %v511_v43 = vld [vmem:[%s648_s2] ss:$0 sm:$0xff] }
   0xf   :  { %300 = vmatpush.bf16.msra.mxu1 %v491_v13  ;;  %v84_v33 = vld.sshfl [vmem:[#allocation1] sm:$0xff pattern:$0x73625140]  ;;  %v85_v34 = vld.sshfl [vmem:[#allocation1 + $0x8] sm:$0xff pattern:$0x73625140] }
  0x10   :  { %313 = vmatpush.bf16.msra.mxu2 %v499_v15  ;;  %v86_v35 = vld.sshfl [vmem:[#allocation1 + $0x10] sm:$0xff pattern:$0x73625140]  ;;  %v87_v36 = vld.sshfl [vmem:[#allocation1 + $0x18] sm:$0xff pattern:$0x73625140] }
  0x11   :  { %326 = vmatpush.bf16.msra.mxu3 %v507_v16  ;;  %v512_v47 = vld [vmem:[%s649_s3] ss:$0 sm:$0xff] }
  0x12   :  { %288 = vmatpush.bf16.msra.mxu0 %v482_v17 }
  0x13   :  { %301 = vmatpush.bf16.msra.mxu1 %v490_v18 }
  0x14   :  { %314 = vmatpush.bf16.msra.mxu2 %v498_v19 }
  0x15   :  { %327 = vmatpush.bf16.msra.mxu3 %v506_v20 }
  0x16   :  { %289 = vmatpush.bf16.msra.mxu0 %v481_v21 }
  0x17   :  { %302 = vmatpush.bf16.msra.mxu1 %v489_v22 }
  0x18   :  { %315 = vmatpush.bf16.msra.mxu2 %v497_v23 }
  0x19   :  { %328 = vmatpush.bf16.msra.mxu3 %v505_v24 }
  0x1a   :  { %290 = vmatpush.bf16.msra.mxu0 %v480_v25 }
  0x1b   :  { %303 = vmatpush.bf16.msra.mxu1 %v488_v26 }
  0x1c   :  { %316 = vmatpush.bf16.msra.mxu2 %v496_v27 }
  0x1d   :  { %329 = vmatpush.bf16.msra.mxu3 %v504_v28 }
  0x1e   :  { %291 = vmatpush.bf16.msra.mxu0 %v479_v29 }
  0x1f   :  { %304 = vmatpush.bf16.msra.mxu1 %v487_v30 }
  0x20   :  { %317 = vmatpush.bf16.msra.mxu2 %v495_v31 }
  0x21   :  { %330 = vmatpush.bf16.msra.mxu3 %v503_v32  ;;  %292 = vmatmul.bf16.vlgmr.msra.gmra.mxu0 %v84_v33 }
  0x22   :  { %305 = vmatmul.bf16.vlgmr.msra.gmra.mxu1 %v85_v34 }
  0x23   :  { %318 = vmatmul.bf16.vlgmr.msra.gmra.mxu2 %v86_v35 }
  0x24   :  { %331 = vmatmul.bf16.vlgmr.msra.gmra.mxu3 %v87_v36 }
  0x9e   :  { %v293_v37 = vpop.f32.mrf.mxu0 }
  0x9f   :  { %v306_v38 = vpop.f32.mrf.mxu1 }
  0xa0   :  { %v307_v39 = vadd.f32 %v306_v38, %v293_v37 }
  0xa6   :  { %v319_v40 = vpop.f32.mrf.mxu2  ;;  %v295_v44 = vpop.f32.mrf.mxu0 }
  0xa7   :  { %v332_v41 = vpop.f32.mrf.mxu3  ;;  %v320_v42 = vadd.f32 %v319_v40, %v307_v39  ;;  %v308_v45 = vpop.f32.mrf.mxu1 }
  0xa9   :  { %v333_v46 = vadd.f32 %v332_v41, %v320_v42 }
  0xab   :  { %v340_v48 = vmul.f32 %v511_v43, %v333_v46 }
  0xad   :  { %v345_v49 = vadd.f32 %v512_v47, %v340_v48 }
  0xae   :  { %v321_v50 = vpop.f32.mrf.mxu2 }
  0xaf   :  { %v334_v51 = vpop.f32.mrf.mxu3  ;;  %346 = vst [vmem:[%s650_s4] sm:$0xf] %v345_v49 }

</bundles_post_ra>
